<compile_context>
chip_gen: v7x
topology: tpu7x:2x2x1
jax: 0.10.0
libtpu: 0.0.40
codegen_flags: <defaults>
</compile_context>

<pallas_src>
import math

import jax
import jax.numpy as jnp
from jax.experimental import pallas as pl
from jax.experimental.pallas import tpu as pltpu

# ---- model hyper-parameters (nn.Transformer defaults, small n_features/seq) ----
S = 8            # sequence length (small example)
F = 16           # n_features (small example)
E = 64           # embedding_dim == d_model (module default)
H = 8            # nhead (nn.Transformer default)
DH = E // H      # head dim
FF = 2048        # dim_feedforward (nn.Transformer default)
NLAYERS = 6      # num encoder layers == num decoder layers (default)
EPS = 1e-5       # layer_norm_eps (default)
SCALE = 1.0 / math.sqrt(DH)

WDT = jnp.bfloat16   # storage dtype for matmul weights (HBM-read bound model)


# --------------------------- in-kernel helpers ---------------------------
def _layernorm(x, g, b):
    mu = jnp.mean(x, axis=-1, keepdims=True)
    xc = x - mu
    var = jnp.mean(xc * xc, axis=-1, keepdims=True)
    return xc * jax.lax.rsqrt(var + EPS) * g + b


def _proj(x, w, b):
    # bf16 weights, f32 accumulation.
    return jnp.dot(x.astype(w.dtype), w, preferred_element_type=jnp.float32) + b


def _attn(q, k, v, out_w, out_b):
    """Multi-head attention core (no mask, batch=1); q/k/v: (S, E) f32.

    Heads are batched via two einsums (batch dim leading) instead of a per-head loop.
    The 1/sqrt(DH) scale is pre-folded into the Q projection at packing time.
    """
    qh = jnp.swapaxes(q.reshape(S, H, DH), 0, 1).astype(WDT)   # (H, S, DH)
    kh = jnp.swapaxes(k.reshape(S, H, DH), 0, 1).astype(WDT)
    vh = jnp.swapaxes(v.reshape(S, H, DH), 0, 1).astype(WDT)
    s = jnp.einsum("hqd,hkd->hqk", qh, kh, preferred_element_type=jnp.float32)
    s = s - jnp.max(s, axis=-1, keepdims=True)
    p = jnp.exp(s)
    p = p / jnp.sum(p, axis=-1, keepdims=True)                  # exact softmax denom
    ctx = jnp.einsum("hqk,hkd->hqd", p.astype(WDT), vh,
                     preferred_element_type=jnp.float32)        # (H, S, DH)
    ctx = jnp.swapaxes(ctx, 0, 1).reshape(S, E)
    return _proj(ctx, out_w, out_b)                             # output projection (E,E)


def _ffn(x, w1, b1, w2, b2):
    h = jnp.maximum(_proj(x, w1, b1), 0.0)   # relu
    return _proj(h, w2, b2)


# ------------------------------- kernel ---------------------------------
def ae_kernel(x_ref,
              # encoder per-layer stacks (leading layer axis, one slice per grid step)
              e_qkv_w, e_qkv_b, e_ow, e_sm, e_f1w, e_f1b, e_f2w,
              # decoder per-layer stacks
              d_sa_qkv_w, d_sa_qkv_b, d_sa_ow,
              d_ca_qw, d_ca_kvw, d_ca_kvb, d_ca_ow,
              d_sm, d_f1w, d_f1b, d_f2w,
              # shared (layer-invariant) tensors
              emb_w, emb_b, en_g, en_b, dn_g, dn_b, out_w, out_b,
              # output
              y_ref,
              # VMEM scratch (persist across grid steps)
              x_sc, h_sc, mem_sc):
    """grid=(2*NLAYERS,): steps 0..NL-1 = encoder layers, steps NL..2NL-1 = decoder layers."""
    l = pl.program_id(0)

    # ---- step 0: embedding Linear(F, E); keep embedded input for decoder tgt ----
    @pl.when(l == 0)
    def _():
        emb = _proj(x_ref[...], emb_w[...], emb_b[...])     # (S, E)
        h_sc[...] = emb
        x_sc[...] = emb

    # ---- encoder layer l (post-norm) ----
    @pl.when(l < NLAYERS)
    def _enc_layer():
        x = x_sc[...]
        sm = e_sm[0]                                         # (6, E) packed small params
        qkv = _proj(x, e_qkv_w[0], e_qkv_b[0])               # fused QKV: (S, 3E)
        a = _attn(qkv[:, 0:E], qkv[:, E:2 * E], qkv[:, 2 * E:3 * E],
                  e_ow[0], sm[0:1])
        x = _layernorm(x + a, sm[1:2], sm[2:3])
        f = _ffn(x, e_f1w[0], e_f1b[0], e_f2w[0], sm[3:4])
        x = _layernorm(x + f, sm[4:5], sm[5:6])
        x_sc[...] = x

        @pl.when(l == NLAYERS - 1)
        def _():
            mem_sc[...] = _layernorm(x, en_g[...], en_b[...])   # final encoder norm
            x_sc[...] = h_sc[...]                               # reset activation to tgt

    # ---- decoder layer (l - NLAYERS) (post-norm, self + cross attention) ----
    @pl.when(l >= NLAYERS)
    def _dec_layer():
        x = x_sc[...]
        m = mem_sc[...]
        sm = d_sm[0]                                         # (10, E) packed small params
        # self-attention
        qkv = _proj(x, d_sa_qkv_w[0], d_sa_qkv_b[0])         # (S, 3E)
        a = _attn(qkv[:, 0:E], qkv[:, E:2 * E], qkv[:, 2 * E:3 * E],
                  d_sa_ow[0], sm[0:1])
        x = _layernorm(x + a, sm[1:2], sm[2:3])
        # cross-attention (Q from x, K/V from encoder memory)
        q = _proj(x, d_ca_qw[0], sm[3:4])                    # (S, E), scale folded in
        kv = _proj(m, d_ca_kvw[0], d_ca_kvb[0])              # (S, 2E)
        a = _attn(q, kv[:, 0:E], kv[:, E:2 * E], d_ca_ow[0], sm[4:5])
        x = _layernorm(x + a, sm[5:6], sm[6:7])
        # feed-forward
        f = _ffn(x, d_f1w[0], d_f1b[0], d_f2w[0], sm[7:8])
        x = _layernorm(x + f, sm[8:9], sm[9:10])
        x_sc[...] = x

        @pl.when(l == 2 * NLAYERS - 1)
        def _():
            xn = _layernorm(x, dn_g[...], dn_b[...])          # final decoder norm
            y_ref[...] = _proj(xn, out_w[...], out_b[...])    # output Linear(E, F)


# --------------------------- pallas_call glue ----------------------------
def _enc_spec(a):
    # Encoder stack: advances 0..NL-1 during encoder steps, then stays clamped (no re-DMA).
    return pl.BlockSpec((1,) + a.shape[1:],
                        lambda l: (jnp.minimum(l, NLAYERS - 1), 0, 0))


def _dec_spec(a):
    # Decoder stack: stays at 0 during encoder steps, then advances 0..NL-1.
    return pl.BlockSpec((1,) + a.shape[1:],
                        lambda l: (jnp.maximum(l - NLAYERS, 0), 0, 0))


def _shared_spec(a):
    # Layer-invariant tensor: constant block index -> DMA'd once, stays VMEM-resident.
    return pl.BlockSpec(a.shape, lambda l: (0,) * a.ndim)


def _bytes(args):
    return sum(int(a.size) * a.dtype.itemsize for a in args)


_ATTN_FLOPS = 2 * S * E * (3 * E) + 4 * S * S * E + 2 * S * E * E   # QKV + scores + PV + out
_FFN_FLOPS = 4 * S * E * FF


@jax.jit
def transformer_autoencoder_forward(x, packed):
    # x: (S, F)  ->  (S, F)
    enc_s, dec_s, shr = packed["enc"], packed["dec"], packed["shared"]
    args = (x,) + enc_s + dec_s + shr

    in_specs = ([_shared_spec(x)]
                + [_enc_spec(a) for a in enc_s]
                + [_dec_spec(a) for a in dec_s]
                + [_shared_spec(a) for a in shr])

    flops = (NLAYERS * (_ATTN_FLOPS + _FFN_FLOPS)
             + NLAYERS * (2 * _ATTN_FLOPS + _FFN_FLOPS)
             + 2 * S * F * E + 2 * S * E * F)
    trans = 3 * NLAYERS * H * S * S

    return pl.pallas_call(
        ae_kernel,
        out_shape=jax.ShapeDtypeStruct((S, F), jnp.float32),
        grid=(2 * NLAYERS,),
        in_specs=in_specs,
        out_specs=pl.BlockSpec((S, F), lambda l: (0, 0)),
        scratch_shapes=[pltpu.VMEM((S, E), jnp.float32),   # running activation
                        pltpu.VMEM((S, E), jnp.float32),   # embedded input (decoder tgt)
                        pltpu.VMEM((S, E), jnp.float32)],  # encoder memory
        compiler_params=pltpu.CompilerParams(dimension_semantics=("arbitrary",)),
        cost_estimate=pl.CostEstimate(flops=int(flops), transcendentals=int(trans),
                                      bytes_accessed=_bytes(args) + S * F * 4),
    )(*args)


# ------------------------------ parameters -------------------------------
def init_params(key):
    """PyTorch-shaped parameters (per-layer dicts, f32, packed QKV), input-major weights."""
    keys = iter(jax.random.split(key, 512))

    def nrm(shape, scale=0.05):
        return (scale * jax.random.normal(next(keys), shape)).astype(jnp.float32)

    def attn():
        return dict(in_w=nrm((E, 3 * E)), in_b=nrm((1, 3 * E)),
                    out_w=nrm((E, E)), out_b=nrm((1, E)))

    def ln():
        return dict(g=jnp.ones((1, E), jnp.float32), b=jnp.zeros((1, E), jnp.float32))

    def enc_p():
        return dict(sa=attn(), ln1=ln(),
                    ff1_w=nrm((E, FF)), ff1_b=nrm((1, FF)),
                    ff2_w=nrm((FF, E), scale=0.02), ff2_b=nrm((1, E)),
                    ln2=ln())

    def dec_p():
        d = enc_p()
        d["ca"] = attn()
        d["ln3"] = ln()
        return d

    return dict(
        emb_w=nrm((F, E)), emb_b=nrm((1, E)),
        enc=[enc_p() for _ in range(NLAYERS)],
        enc_norm=ln(),
        dec=[dec_p() for _ in range(NLAYERS)],
        dec_norm=ln(),
        out_w=nrm((E, F)), out_b=nrm((1, F)),
    )


def pack_params(p):
    """Kernel-ready params: fold 1/sqrt(DH) into Q, keep QKV packed (one lane-dense matmul),
    cast matmul weights to bf16, pack small per-layer vectors into one (L, rows, E) tensor,
    and stack per-layer tensors along a leading L axis."""
    def wcast(a):
        return a.astype(WDT)

    def fold_qkv(a):   # packed (E,3E)/(1,3E) with SCALE folded into the Q third
        w = jnp.concatenate([a["in_w"][:, :E] * SCALE, a["in_w"][:, E:]], axis=1)
        b = jnp.concatenate([a["in_b"][:, :E] * SCALE, a["in_b"][:, E:]], axis=1)
        return wcast(w), b

    def stack(fn, layers):
        return jnp.stack([fn(lp) for lp in layers], axis=0)

    enc, dec = p["enc"], p["dec"]

    # ---- encoder stacks ----
    e_qkv = [fold_qkv(lp["sa"]) for lp in enc]
    enc_stacks = (
        jnp.stack([w for w, _ in e_qkv], axis=0),                 # e_qkv_w  (L, E, 3E) bf16
        jnp.stack([b for _, b in e_qkv], axis=0),                 # e_qkv_b  (L, 1, 3E) f32
        stack(lambda lp: wcast(lp["sa"]["out_w"]), enc),          # e_ow     (L, E, E)  bf16
        stack(lambda lp: jnp.concatenate(                         # e_sm     (L, 6, E)  f32
            [lp["sa"]["out_b"], lp["ln1"]["g"], lp["ln1"]["b"],
             lp["ff2_b"], lp["ln2"]["g"], lp["ln2"]["b"]], axis=0), enc),
        stack(lambda lp: wcast(lp["ff1_w"]), enc),                # e_f1w    (L, E, FF) bf16
        stack(lambda lp: lp["ff1_b"], enc),                       # e_f1b    (L, 1, FF) f32
        stack(lambda lp: wcast(lp["ff2_w"]), enc),                # e_f2w    (L, FF, E) bf16
    )

    # ---- decoder stacks ----
    d_sa = [fold_qkv(lp["sa"]) for lp in dec]
    dec_stacks = (
        jnp.stack([w for w, _ in d_sa], axis=0),                  # d_sa_qkv_w (L, E, 3E)
        jnp.stack([b for _, b in d_sa], axis=0),                  # d_sa_qkv_b (L, 1, 3E)
        stack(lambda lp: wcast(lp["sa"]["out_w"]), dec),          # d_sa_ow    (L, E, E)
        stack(lambda lp: wcast(lp["ca"]["in_w"][:, :E] * SCALE), dec),   # d_ca_qw  (L, E, E)
        stack(lambda lp: wcast(lp["ca"]["in_w"][:, E:]), dec),           # d_ca_kvw (L, E, 2E)
        stack(lambda lp: lp["ca"]["in_b"][:, E:], dec),                  # d_ca_kvb (L, 1, 2E)
        stack(lambda lp: wcast(lp["ca"]["out_w"]), dec),          # d_ca_ow    (L, E, E)
        stack(lambda lp: jnp.concatenate(                         # d_sm       (L, 10, E)
            [lp["sa"]["out_b"], lp["ln1"]["g"], lp["ln1"]["b"],
             lp["ca"]["in_b"][:, :E] * SCALE, lp["ca"]["out_b"],
             lp["ln2"]["g"], lp["ln2"]["b"],
             lp["ff2_b"], lp["ln3"]["g"], lp["ln3"]["b"]], axis=0), dec),
        stack(lambda lp: wcast(lp["ff1_w"]), dec),                # d_f1w      (L, E, FF)
        stack(lambda lp: lp["ff1_b"], dec),                       # d_f1b      (L, 1, FF)
        stack(lambda lp: wcast(lp["ff2_w"]), dec),                # d_f2w      (L, FF, E)
    )

    shared = (wcast(p["emb_w"]), p["emb_b"],
              p["enc_norm"]["g"], p["enc_norm"]["b"],
              p["dec_norm"]["g"], p["dec_norm"]["b"],
              wcast(p["out_w"]), p["out_b"])

    return dict(enc=enc_stacks, dec=dec_stacks, shared=shared)


# -------------------------------- main -----------------------------------
if __name__ == "__main__":
    key = jax.random.PRNGKey(0)
    pkey, xkey = jax.random.split(key)
    params = init_params(pkey)
    packed = pack_params(params)
    x = jax.random.normal(xkey, (S, F), dtype=jnp.float32)

    y = transformer_autoencoder_forward(x, packed)
    y = jax.block_until_ready(y)

    assert y.shape == (S, F), y.shape
    assert bool(jnp.all(jnp.isfinite(y)))
    print("KERNEL_OK")
</pallas_src>

<mosaic_0001>
module attributes {stable_mosaic.version = 11 : i64} {
  func.func @ae_kernel(%arg0: i32, %arg1: memref<8x16xf32, #tpu.memory_space<vmem>>, %arg2: memref<1x64x192xbf16, #tpu.memory_space<vmem>>, %arg3: memref<1x1x192xf32, #tpu.memory_space<vmem>>, %arg4: memref<1x64x64xbf16, #tpu.memory_space<vmem>>, %arg5: memref<1x6x64xf32, #tpu.memory_space<vmem>>, %arg6: memref<1x64x2048xbf16, #tpu.memory_space<vmem>>, %arg7: memref<1x1x2048xf32, #tpu.memory_space<vmem>>, %arg8: memref<1x2048x64xbf16, #tpu.memory_space<vmem>>, %arg9: memref<1x64x192xbf16, #tpu.memory_space<vmem>>, %arg10: memref<1x1x192xf32, #tpu.memory_space<vmem>>, %arg11: memref<1x64x64xbf16, #tpu.memory_space<vmem>>, %arg12: memref<1x64x64xbf16, #tpu.memory_space<vmem>>, %arg13: memref<1x64x128xbf16, #tpu.memory_space<vmem>>, %arg14: memref<1x1x128xf32, #tpu.memory_space<vmem>>, %arg15: memref<1x64x64xbf16, #tpu.memory_space<vmem>>, %arg16: memref<1x10x64xf32, #tpu.memory_space<vmem>>, %arg17: memref<1x64x2048xbf16, #tpu.memory_space<vmem>>, %arg18: memref<1x1x2048xf32, #tpu.memory_space<vmem>>, %arg19: memref<1x2048x64xbf16, #tpu.memory_space<vmem>>, %arg20: memref<16x64xbf16, #tpu.memory_space<vmem>>, %arg21: memref<1x64xf32, #tpu.memory_space<vmem>>, %arg22: memref<1x64xf32, #tpu.memory_space<vmem>>, %arg23: memref<1x64xf32, #tpu.memory_space<vmem>>, %arg24: memref<1x64xf32, #tpu.memory_space<vmem>>, %arg25: memref<1x64xf32, #tpu.memory_space<vmem>>, %arg26: memref<64x16xbf16, #tpu.memory_space<vmem>>, %arg27: memref<1x16xf32, #tpu.memory_space<vmem>>, %arg28: memref<8x16xf32, #tpu.memory_space<vmem>>, %arg29: memref<8x64xf32, #tpu.memory_space<vmem>>, %arg30: memref<8x64xf32, #tpu.memory_space<vmem>>, %arg31: memref<8x64xf32, #tpu.memory_space<vmem>>) attributes {dimension_semantics = [#tpu.dimension_semantics<arbitrary>], iteration_bounds = array<i64: 12>, scalar_prefetch = 0 : i64, scratch_operands = 3 : i64, tpu.core_type = #tpu.core_type<tc>, window_params = [{pipeline_mode = #tpu.pipeline_mode<synchronous>, transform_indices = @transform_0, window_bounds = array<i64: 8, 16>}, {transform_indices = @transform_1, window_bounds = array<i64: 1, 64, 192>}, {transform_indices = @transform_2, window_bounds = array<i64: 1, 1, 192>}, {transform_indices = @transform_3, window_bounds = array<i64: 1, 64, 64>}, {transform_indices = @transform_4, window_bounds = array<i64: 1, 6, 64>}, {transform_indices = @transform_5, window_bounds = array<i64: 1, 64, 2048>}, {transform_indices = @transform_6, window_bounds = array<i64: 1, 1, 2048>}, {transform_indices = @transform_7, window_bounds = array<i64: 1, 2048, 64>}, {transform_indices = @transform_8, window_bounds = array<i64: 1, 64, 192>}, {transform_indices = @transform_9, window_bounds = array<i64: 1, 1, 192>}, {transform_indices = @transform_10, window_bounds = array<i64: 1, 64, 64>}, {transform_indices = @transform_11, window_bounds = array<i64: 1, 64, 64>}, {transform_indices = @transform_12, window_bounds = array<i64: 1, 64, 128>}, {transform_indices = @transform_13, window_bounds = array<i64: 1, 1, 128>}, {transform_indices = @transform_14, window_bounds = array<i64: 1, 64, 64>}, {transform_indices = @transform_15, window_bounds = array<i64: 1, 10, 64>}, {transform_indices = @transform_16, window_bounds = array<i64: 1, 64, 2048>}, {transform_indices = @transform_17, window_bounds = array<i64: 1, 1, 2048>}, {transform_indices = @transform_18, window_bounds = array<i64: 1, 2048, 64>}, {pipeline_mode = #tpu.pipeline_mode<synchronous>, transform_indices = @transform_19, window_bounds = array<i64: 16, 64>}, {pipeline_mode = #tpu.pipeline_mode<synchronous>, transform_indices = @transform_20, window_bounds = array<i64: 1, 64>}, {pipeline_mode = #tpu.pipeline_mode<synchronous>, transform_indices = @transform_21, window_bounds = array<i64: 1, 64>}, {pipeline_mode = #tpu.pipeline_mode<synchronous>, transform_indices = @transform_22, window_bounds = array<i64: 1, 64>}, {pipeline_mode = #tpu.pipeline_mode<synchronous>, transform_indices = @transform_23, window_bounds = array<i64: 1, 64>}, {pipeline_mode = #tpu.pipeline_mode<synchronous>, transform_indices = @transform_24, window_bounds = array<i64: 1, 64>}, {pipeline_mode = #tpu.pipeline_mode<synchronous>, transform_indices = @transform_25, window_bounds = array<i64: 64, 16>}, {pipeline_mode = #tpu.pipeline_mode<synchronous>, transform_indices = @transform_26, window_bounds = array<i64: 1, 16>}, {pipeline_mode = #tpu.pipeline_mode<synchronous>, transform_indices = @transform_27, window_bounds = array<i64: 8, 16>}]} {
    %c0_i32 = arith.constant 0 : i32
    %0 = arith.cmpi eq, %arg0, %c0_i32 : i32
    %1 = arith.extui %0 : i1 to i32
    %c0_i32_0 = arith.constant 0 : i32
    %2 = arith.cmpi ne, %1, %c0_i32_0 : i32
    scf.if %2 {
      %c0 = arith.constant 0 : index
      %c0_4 = arith.constant 0 : index
      %9 = vector.load %arg1[%c0, %c0_4] : memref<8x16xf32, #tpu.memory_space<vmem>>, vector<8x16xf32>
      %c0_5 = arith.constant 0 : index
      %c0_6 = arith.constant 0 : index
      %10 = vector.load %arg20[%c0_5, %c0_6] : memref<16x64xbf16, #tpu.memory_space<vmem>>, vector<16x64xbf16>
      %c0_7 = arith.constant 0 : index
      %c0_8 = arith.constant 0 : index
      %11 = vector.load %arg21[%c0_7, %c0_8] : memref<1x64xf32, #tpu.memory_space<vmem>>, vector<1x64xf32>
      %12 = arith.truncf %9 : vector<8x16xf32> to vector<8x16xbf16>
      %cst = arith.constant dense<0.000000e+00> : vector<8x64xf32>
      %13 = tpu.matmul %12, %10, %cst {dimension_numbers = #tpu.dot_dimension_numbers<[1], [0], [0], [1], [0, 0, 1, 1], [], []>} : vector<8x16xbf16>, vector<16x64xbf16>, vector<8x64xf32> -> vector<8x64xf32>
      %14 = vector.broadcast %11 : vector<1x64xf32> to vector<8x64xf32>
      %15 = arith.addf %13, %14 : vector<8x64xf32>
      %c0_9 = arith.constant 0 : index
      %c0_10 = arith.constant 0 : index
      %16 = vector.load %arg30[%c0_9, %c0_10] : memref<8x64xf32, #tpu.memory_space<vmem>>, vector<8x64xf32>
      tpu.vector_store %arg30[%c0_9, %c0_10], %15 {strides = array<i32>} : memref<8x64xf32, #tpu.memory_space<vmem>>, vector<8x64xf32>,
      %c0_11 = arith.constant 0 : index
      %c0_12 = arith.constant 0 : index
      %17 = vector.load %arg29[%c0_11, %c0_12] : memref<8x64xf32, #tpu.memory_space<vmem>>, vector<8x64xf32>
      tpu.vector_store %arg29[%c0_11, %c0_12], %15 {strides = array<i32>} : memref<8x64xf32, #tpu.memory_space<vmem>>, vector<8x64xf32>,
    } else {
    }
    %c6_i32 = arith.constant 6 : i32
    %3 = arith.cmpi slt, %arg0, %c6_i32 : i32
    %4 = arith.extui %3 : i1 to i32
    %c0_i32_1 = arith.constant 0 : i32
    %5 = arith.cmpi ne, %4, %c0_i32_1 : i32
    scf.if %5 {
      %c0 = arith.constant 0 : index
      %c0_4 = arith.constant 0 : index
      %9 = vector.load %arg29[%c0, %c0_4] : memref<8x64xf32, #tpu.memory_space<vmem>>, vector<8x64xf32>
      %c0_5 = arith.constant 0 : index
      %c0_6 = arith.constant 0 : index
      %c0_7 = arith.constant 0 : index
      %10 = vector.load %arg5[%c0_5, %c0_6, %c0_7] : memref<1x6x64xf32, #tpu.memory_space<vmem>>, vector<1x6x64xf32>
      %11 = vector.shape_cast %10 : vector<1x6x64xf32> to vector<6x64xf32>
      %c0_8 = arith.constant 0 : index
      %c0_9 = arith.constant 0 : index
      %c0_10 = arith.constant 0 : index
      %12 = vector.load %arg2[%c0_8, %c0_9, %c0_10] : memref<1x64x192xbf16, #tpu.memory_space<vmem>>, vector<1x64x192xbf16>
      %13 = vector.shape_cast %12 : vector<1x64x192xbf16> to vector<64x192xbf16>
      %c0_11 = arith.constant 0 : index
      %c0_12 = arith.constant 0 : index
      %c0_13 = arith.constant 0 : index
      %14 = vector.load %arg3[%c0_11, %c0_12, %c0_13] : memref<1x1x192xf32, #tpu.memory_space<vmem>>, vector<1x1x192xf32>
      %15 = vector.shape_cast %14 : vector<1x1x192xf32> to vector<1x192xf32>
      %16 = arith.truncf %9 : vector<8x64xf32> to vector<8x64xbf16>
      %cst = arith.constant dense<0.000000e+00> : vector<8x192xf32>
      %17 = tpu.matmul %16, %13, %cst {dimension_numbers = #tpu.dot_dimension_numbers<[1], [0], [0], [1], [0, 0, 1, 1], [], []>} : vector<8x64xbf16>, vector<64x192xbf16>, vector<8x192xf32> -> vector<8x192xf32>
      %18 = vector.broadcast %15 : vector<1x192xf32> to vector<8x192xf32>
      %19 = arith.addf %17, %18 : vector<8x192xf32>
      %20 = vector.extract_strided_slice %19 {offsets = [0, 0], sizes = [8, 64], strides = [1, 1]} : vector<8x192xf32> to vector<8x64xf32>
      %21 = vector.extract_strided_slice %19 {offsets = [0, 64], sizes = [8, 64], strides = [1, 1]} : vector<8x192xf32> to vector<8x64xf32>
      %22 = vector.extract_strided_slice %19 {offsets = [0, 128], sizes = [8, 64], strides = [1, 1]} : vector<8x192xf32> to vector<8x64xf32>
      %c0_14 = arith.constant 0 : index
      %c0_15 = arith.constant 0 : index
      %c0_16 = arith.constant 0 : index
      %23 = vector.load %arg4[%c0_14, %c0_15, %c0_16] : memref<1x64x64xbf16, #tpu.memory_space<vmem>>, vector<1x64x64xbf16>
      %24 = vector.shape_cast %23 : vector<1x64x64xbf16> to vector<64x64xbf16>
      %25 = vector.extract_strided_slice %11 {offsets = [0, 0], sizes = [1, 64], strides = [1, 1]} : vector<6x64xf32> to vector<1x64xf32>
      %26 = vector.shape_cast %20 : vector<8x64xf32> to vector<8x8x8xf32>
      %27 = tpu.transpose %26, [1, 0, 2] : vector<8x8x8xf32> -> vector<8x8x8xf32>
      %28 = arith.truncf %27 : vector<8x8x8xf32> to vector<8x8x8xbf16>
      %29 = vector.shape_cast %21 : vector<8x64xf32> to vector<8x8x8xf32>
      %30 = tpu.transpose %29, [1, 0, 2] : vector<8x8x8xf32> -> vector<8x8x8xf32>
      %31 = arith.truncf %30 : vector<8x8x8xf32> to vector<8x8x8xbf16>
      %32 = vector.shape_cast %22 : vector<8x64xf32> to vector<8x8x8xf32>
      %33 = tpu.transpose %32, [1, 0, 2] : vector<8x8x8xf32> -> vector<8x8x8xf32>
      %34 = arith.truncf %33 : vector<8x8x8xf32> to vector<8x8x8xbf16>
      "tpu.trace_start"() <{level = 10 : i32, message = "hqd,hkd->hqk"}> : () -> ()
      %cst_17 = arith.constant dense<0.000000e+00> : vector<8x8x8xf32>
      %35 = tpu.matmul %28, %31, %cst_17 {dimension_numbers = #tpu.dot_dimension_numbers<[2], [2], [1], [1], [0, 0, 0, 1, 1, 1], [0], [0]>} : vector<8x8x8xbf16>, vector<8x8x8xbf16>, vector<8x8x8xf32> -> vector<8x8x8xf32>
      "tpu.trace_stop"() : () -> ()
      %cst_18 = arith.constant dense<0xFF800000> : vector<8x8xf32>
      %36 = vector.multi_reduction <maximumf>, %35, %cst_18 [2] : vector<8x8x8xf32> to vector<8x8xf32>
      %37 = vector.shape_cast %36 : vector<8x8xf32> to vector<8x8x1xf32>
      %38 = vector.broadcast %37 : vector<8x8x1xf32> to vector<8x8x8xf32>
      %39 = arith.subf %35, %38 : vector<8x8x8xf32>
      %40 = math.exp %39 : vector<8x8x8xf32>
      %cst_19 = arith.constant dense<0.000000e+00> : vector<8x8xf32>
      %41 = vector.multi_reduction <add>, %40, %cst_19 [2] : vector<8x8x8xf32> to vector<8x8xf32>
      %42 = vector.shape_cast %41 : vector<8x8xf32> to vector<8x8x1xf32>
      %43 = vector.broadcast %42 : vector<8x8x1xf32> to vector<8x8x8xf32>
      %44 = arith.divf %40, %43 : vector<8x8x8xf32>
      %45 = arith.truncf %44 : vector<8x8x8xf32> to vector<8x8x8xbf16>
      "tpu.trace_start"() <{level = 10 : i32, message = "hqk,hkd->hqd"}> : () -> ()
      %cst_20 = arith.constant dense<0.000000e+00> : vector<8x8x8xf32>
      %46 = tpu.matmul %45, %34, %cst_20 {dimension_numbers = #tpu.dot_dimension_numbers<[2], [1], [1], [2], [0, 0, 0, 1, 1, 2], [0], [0]>} : vector<8x8x8xbf16>, vector<8x8x8xbf16>, vector<8x8x8xf32> -> vector<8x8x8xf32>
      "tpu.trace_stop"() : () -> ()
      %47 = tpu.transpose %46, [1, 0, 2] : vector<8x8x8xf32> -> vector<8x8x8xf32>
      %48 = vector.shape_cast %47 : vector<8x8x8xf32> to vector<8x64xf32>
      %49 = arith.truncf %48 : vector<8x64xf32> to vector<8x64xbf16>
      %cst_21 = arith.constant dense<0.000000e+00> : vector<8x64xf32>
      %50 = tpu.matmul %49, %24, %cst_21 {dimension_numbers = #tpu.dot_dimension_numbers<[1], [0], [0], [1], [0, 0, 1, 1], [], []>} : vector<8x64xbf16>, vector<64x64xbf16>, vector<8x64xf32> -> vector<8x64xf32>
      %51 = vector.broadcast %25 : vector<1x64xf32> to vector<8x64xf32>
      %52 = arith.addf %50, %51 : vector<8x64xf32>
      %53 = arith.addf %9, %52 : vector<8x64xf32>
      %54 = vector.extract_strided_slice %11 {offsets = [1, 0], sizes = [1, 64], strides = [1, 1]} : vector<6x64xf32> to vector<1x64xf32>
      %55 = vector.extract_strided_slice %11 {offsets = [2, 0], sizes = [1, 64], strides = [1, 1]} : vector<6x64xf32> to vector<1x64xf32>
      %cst_22 = arith.constant dense<0.000000e+00> : vector<8xf32>
      %56 = vector.multi_reduction <add>, %53, %cst_22 [1] : vector<8x64xf32> to vector<8xf32>
      %57 = vector.shape_cast %56 : vector<8xf32> to vector<8x1xf32>
      %cst_23 = arith.constant 6.400000e+01 : f32
      %58 = vector.broadcast %cst_23 : f32 to vector<8x1xf32>
      %59 = arith.divf %57, %58 : vector<8x1xf32>
      %60 = vector.broadcast %59 : vector<8x1xf32> to vector<8x64xf32>
      %61 = arith.subf %53, %60 : vector<8x64xf32>
      %62 = arith.mulf %61, %61 : vector<8x64xf32>
      %cst_24 = arith.constant dense<0.000000e+00> : vector<8xf32>
      %63 = vector.multi_reduction <add>, %62, %cst_24 [1] : vector<8x64xf32> to vector<8xf32>
      %64 = vector.shape_cast %63 : vector<8xf32> to vector<8x1xf32>
      %cst_25 = arith.constant 6.400000e+01 : f32
      %65 = vector.broadcast %cst_25 : f32 to vector<8x1xf32>
      %66 = arith.divf %64, %65 : vector<8x1xf32>
      %cst_26 = arith.constant 9.99999974E-6 : f32
      %67 = vector.broadcast %cst_26 : f32 to vector<8x1xf32>
      %68 = arith.addf %66, %67 : vector<8x1xf32>
      %69 = math.rsqrt %68 : vector<8x1xf32>
      %70 = vector.broadcast %69 : vector<8x1xf32> to vector<8x64xf32>
      %71 = arith.mulf %61, %70 : vector<8x64xf32>
      %72 = vector.broadcast %54 : vector<1x64xf32> to vector<8x64xf32>
      %73 = arith.mulf %71, %72 : vector<8x64xf32>
      %74 = vector.broadcast %55 : vector<1x64xf32> to vector<8x64xf32>
      %75 = arith.addf %73, %74 : vector<8x64xf32>
      %c0_27 = arith.constant 0 : index
      %c0_28 = arith.constant 0 : index
      %c0_29 = arith.constant 0 : index
      %76 = vector.load %arg6[%c0_27, %c0_28, %c0_29] : memref<1x64x2048xbf16, #tpu.memory_space<vmem>>, vector<1x64x2048xbf16>
      %77 = vector.shape_cast %76 : vector<1x64x2048xbf16> to vector<64x2048xbf16>
      %c0_30 = arith.constant 0 : index
      %c0_31 = arith.constant 0 : index
      %c0_32 = arith.constant 0 : index
      %78 = vector.load %arg7[%c0_30, %c0_31, %c0_32] : memref<1x1x2048xf32, #tpu.memory_space<vmem>>, vector<1x1x2048xf32>
      %79 = vector.shape_cast %78 : vector<1x1x2048xf32> to vector<1x2048xf32>
      %c0_33 = arith.constant 0 : index
      %c0_34 = arith.constant 0 : index
      %c0_35 = arith.constant 0 : index
      %80 = vector.load %arg8[%c0_33, %c0_34, %c0_35] : memref<1x2048x64xbf16, #tpu.memory_space<vmem>>, vector<1x2048x64xbf16>
      %81 = vector.shape_cast %80 : vector<1x2048x64xbf16> to vector<2048x64xbf16>
      %82 = vector.extract_strided_slice %11 {offsets = [3, 0], sizes = [1, 64], strides = [1, 1]} : vector<6x64xf32> to vector<1x64xf32>
      %83 = arith.truncf %75 : vector<8x64xf32> to vector<8x64xbf16>
      %cst_36 = arith.constant dense<0.000000e+00> : vector<8x2048xf32>
      %84 = tpu.matmul %83, %77, %cst_36 {dimension_numbers = #tpu.dot_dimension_numbers<[1], [0], [0], [1], [0, 0, 1, 1], [], []>} : vector<8x64xbf16>, vector<64x2048xbf16>, vector<8x2048xf32> -> vector<8x2048xf32>
      %85 = vector.broadcast %79 : vector<1x2048xf32> to vector<8x2048xf32>
      %86 = arith.addf %84, %85 : vector<8x2048xf32>
      %cst_37 = arith.constant 0.000000e+00 : f32
      %87 = vector.broadcast %cst_37 : f32 to vector<8x2048xf32>
      %88 = arith.maximumf %86, %87 : vector<8x2048xf32>
      %89 = arith.truncf %88 : vector<8x2048xf32> to vector<8x2048xbf16>
      %cst_38 = arith.constant dense<0.000000e+00> : vector<8x64xf32>
      %90 = tpu.matmul %89, %81, %cst_38 {dimension_numbers = #tpu.dot_dimension_numbers<[1], [0], [0], [1], [0, 0, 1, 1], [], []>} : vector<8x2048xbf16>, vector<2048x64xbf16>, vector<8x64xf32> -> vector<8x64xf32>
      %91 = vector.broadcast %82 : vector<1x64xf32> to vector<8x64xf32>
      %92 = arith.addf %90, %91 : vector<8x64xf32>
      %93 = arith.addf %75, %92 : vector<8x64xf32>
      %94 = vector.extract_strided_slice %11 {offsets = [4, 0], sizes = [1, 64], strides = [1, 1]} : vector<6x64xf32> to vector<1x64xf32>
      %95 = vector.extract_strided_slice %11 {offsets = [5, 0], sizes = [1, 64], strides = [1, 1]} : vector<6x64xf32> to vector<1x64xf32>
      %cst_39 = arith.constant dense<0.000000e+00> : vector<8xf32>
      %96 = vector.multi_reduction <add>, %93, %cst_39 [1] : vector<8x64xf32> to vector<8xf32>
      %97 = vector.shape_cast %96 : vector<8xf32> to vector<8x1xf32>
      %cst_40 = arith.constant 6.400000e+01 : f32
      %98 = vector.broadcast %cst_40 : f32 to vector<8x1xf32>
      %99 = arith.divf %97, %98 : vector<8x1xf32>
      %100 = vector.broadcast %99 : vector<8x1xf32> to vector<8x64xf32>
      %101 = arith.subf %93, %100 : vector<8x64xf32>
      %102 = arith.mulf %101, %101 : vector<8x64xf32>
      %cst_41 = arith.constant dense<0.000000e+00> : vector<8xf32>
      %103 = vector.multi_reduction <add>, %102, %cst_41 [1] : vector<8x64xf32> to vector<8xf32>
      %104 = vector.shape_cast %103 : vector<8xf32> to vector<8x1xf32>
      %cst_42 = arith.constant 6.400000e+01 : f32
      %105 = vector.broadcast %cst_42 : f32 to vector<8x1xf32>
      %106 = arith.divf %104, %105 : vector<8x1xf32>
      %cst_43 = arith.constant 9.99999974E-6 : f32
      %107 = vector.broadcast %cst_43 : f32 to vector<8x1xf32>
      %108 = arith.addf %106, %107 : vector<8x1xf32>
      %109 = math.rsqrt %108 : vector<8x1xf32>
      %110 = vector.broadcast %109 : vector<8x1xf32> to vector<8x64xf32>
      %111 = arith.mulf %101, %110 : vector<8x64xf32>
      %112 = vector.broadcast %94 : vector<1x64xf32> to vector<8x64xf32>
      %113 = arith.mulf %111, %112 : vector<8x64xf32>
      %114 = vector.broadcast %95 : vector<1x64xf32> to vector<8x64xf32>
      %115 = arith.addf %113, %114 : vector<8x64xf32>
      %c0_44 = arith.constant 0 : index
      %c0_45 = arith.constant 0 : index
      %116 = vector.load %arg29[%c0_44, %c0_45] : memref<8x64xf32, #tpu.memory_space<vmem>>, vector<8x64xf32>
      tpu.vector_store %arg29[%c0_44, %c0_45], %115 {strides = array<i32>} : memref<8x64xf32, #tpu.memory_space<vmem>>, vector<8x64xf32>,
      %c5_i32 = arith.constant 5 : i32
      %117 = arith.cmpi eq, %arg0, %c5_i32 : i32
      %118 = arith.extui %117 : i1 to i32
      %c0_i32_46 = arith.constant 0 : i32
      %119 = arith.cmpi ne, %118, %c0_i32_46 : i32
      scf.if %119 {
        %c0_47 = arith.constant 0 : index
        %c0_48 = arith.constant 0 : index
        %120 = vector.load %arg22[%c0_47, %c0_48] : memref<1x64xf32, #tpu.memory_space<vmem>>, vector<1x64xf32>
        %c0_49 = arith.constant 0 : index
        %c0_50 = arith.constant 0 : index
        %121 = vector.load %arg23[%c0_49, %c0_50] : memref<1x64xf32, #tpu.memory_space<vmem>>, vector<1x64xf32>
        %cst_51 = arith.constant dense<0.000000e+00> : vector<8xf32>
        %122 = vector.multi_reduction <add>, %115, %cst_51 [1] : vector<8x64xf32> to vector<8xf32>
        %123 = vector.shape_cast %122 : vector<8xf32> to vector<8x1xf32>
        %cst_52 = arith.constant 6.400000e+01 : f32
        %124 = vector.broadcast %cst_52 : f32 to vector<8x1xf32>
        %125 = arith.divf %123, %124 : vector<8x1xf32>
        %126 = vector.broadcast %125 : vector<8x1xf32> to vector<8x64xf32>
        %127 = arith.subf %115, %126 : vector<8x64xf32>
        %128 = arith.mulf %127, %127 : vector<8x64xf32>
        %cst_53 = arith.constant dense<0.000000e+00> : vector<8xf32>
        %129 = vector.multi_reduction <add>, %128, %cst_53 [1] : vector<8x64xf32> to vector<8xf32>
        %130 = vector.shape_cast %129 : vector<8xf32> to vector<8x1xf32>
        %cst_54 = arith.constant 6.400000e+01 : f32
        %131 = vector.broadcast %cst_54 : f32 to vector<8x1xf32>
        %132 = arith.divf %130, %131 : vector<8x1xf32>
        %cst_55 = arith.constant 9.99999974E-6 : f32
        %133 = vector.broadcast %cst_55 : f32 to vector<8x1xf32>
        %134 = arith.addf %132, %133 : vector<8x1xf32>
        %135 = math.rsqrt %134 : vector<8x1xf32>
        %136 = vector.broadcast %135 : vector<8x1xf32> to vector<8x64xf32>
        %137 = arith.mulf %127, %136 : vector<8x64xf32>
        %138 = vector.broadcast %120 : vector<1x64xf32> to vector<8x64xf32>
        %139 = arith.mulf %137, %138 : vector<8x64xf32>
        %140 = vector.broadcast %121 : vector<1x64xf32> to vector<8x64xf32>
        %141 = arith.addf %139, %140 : vector<8x64xf32>
        %c0_56 = arith.constant 0 : index
        %c0_57 = arith.constant 0 : index
        %142 = vector.load %arg31[%c0_56, %c0_57] : memref<8x64xf32, #tpu.memory_space<vmem>>, vector<8x64xf32>
        tpu.vector_store %arg31[%c0_56, %c0_57], %141 {strides = array<i32>} : memref<8x64xf32, #tpu.memory_space<vmem>>, vector<8x64xf32>,
        %c0_58 = arith.constant 0 : index
        %c0_59 = arith.constant 0 : index
        %143 = vector.load %arg30[%c0_58, %c0_59] : memref<8x64xf32, #tpu.memory_space<vmem>>, vector<8x64xf32>
        %c0_60 = arith.constant 0 : index
        %c0_61 = arith.constant 0 : index
        %144 = vector.load %arg29[%c0_60, %c0_61] : memref<8x64xf32, #tpu.memory_space<vmem>>, vector<8x64xf32>
        tpu.vector_store %arg29[%c0_60, %c0_61], %143 {strides = array<i32>} : memref<8x64xf32, #tpu.memory_space<vmem>>, vector<8x64xf32>,
      } else {
      }
    } else {
    }
    %c6_i32_2 = arith.constant 6 : i32
    %6 = arith.cmpi sge, %arg0, %c6_i32_2 : i32
    %7 = arith.extui %6 : i1 to i32
    %c0_i32_3 = arith.constant 0 : i32
    %8 = arith.cmpi ne, %7, %c0_i32_3 : i32
    scf.if %8 {
      %c0 = arith.constant 0 : index
      %c0_4 = arith.constant 0 : index
      %9 = vector.load %arg29[%c0, %c0_4] : memref<8x64xf32, #tpu.memory_space<vmem>>, vector<8x64xf32>
      %c0_5 = arith.constant 0 : index
      %c0_6 = arith.constant 0 : index
      %10 = vector.load %arg31[%c0_5, %c0_6] : memref<8x64xf32, #tpu.memory_space<vmem>>, vector<8x64xf32>
      %c0_7 = arith.constant 0 : index
      %c0_8 = arith.constant 0 : index
      %c0_9 = arith.constant 0 : index
      %11 = vector.load %arg16[%c0_7, %c0_8, %c0_9] : memref<1x10x64xf32, #tpu.memory_space<vmem>>, vector<1x10x64xf32>
      %12 = vector.shape_cast %11 : vector<1x10x64xf32> to vector<10x64xf32>
      %c0_10 = arith.constant 0 : index
      %c0_11 = arith.constant 0 : index
      %c0_12 = arith.constant 0 : index
      %13 = vector.load %arg9[%c0_10, %c0_11, %c0_12] : memref<1x64x192xbf16, #tpu.memory_space<vmem>>, vector<1x64x192xbf16>
      %14 = vector.shape_cast %13 : vector<1x64x192xbf16> to vector<64x192xbf16>
      %c0_13 = arith.constant 0 : index
      %c0_14 = arith.constant 0 : index
      %c0_15 = arith.constant 0 : index
      %15 = vector.load %arg10[%c0_13, %c0_14, %c0_15] : memref<1x1x192xf32, #tpu.memory_space<vmem>>, vector<1x1x192xf32>
      %16 = vector.shape_cast %15 : vector<1x1x192xf32> to vector<1x192xf32>
      %17 = arith.truncf %9 : vector<8x64xf32> to vector<8x64xbf16>
      %cst = arith.constant dense<0.000000e+00> : vector<8x192xf32>
      %18 = tpu.matmul %17, %14, %cst {dimension_numbers = #tpu.dot_dimension_numbers<[1], [0], [0], [1], [0, 0, 1, 1], [], []>} : vector<8x64xbf16>, vector<64x192xbf16>, vector<8x192xf32> -> vector<8x192xf32>
      %19 = vector.broadcast %16 : vector<1x192xf32> to vector<8x192xf32>
      %20 = arith.addf %18, %19 : vector<8x192xf32>
      %21 = vector.extract_strided_slice %20 {offsets = [0, 0], sizes = [8, 64], strides = [1, 1]} : vector<8x192xf32> to vector<8x64xf32>
      %22 = vector.extract_strided_slice %20 {offsets = [0, 64], sizes = [8, 64], strides = [1, 1]} : vector<8x192xf32> to vector<8x64xf32>
      %23 = vector.extract_strided_slice %20 {offsets = [0, 128], sizes = [8, 64], strides = [1, 1]} : vector<8x192xf32> to vector<8x64xf32>
      %c0_16 = arith.constant 0 : index
      %c0_17 = arith.constant 0 : index
      %c0_18 = arith.constant 0 : index
      %24 = vector.load %arg11[%c0_16, %c0_17, %c0_18] : memref<1x64x64xbf16, #tpu.memory_space<vmem>>, vector<1x64x64xbf16>
      %25 = vector.shape_cast %24 : vector<1x64x64xbf16> to vector<64x64xbf16>
      %26 = vector.extract_strided_slice %12 {offsets = [0, 0], sizes = [1, 64], strides = [1, 1]} : vector<10x64xf32> to vector<1x64xf32>
      %27 = vector.shape_cast %21 : vector<8x64xf32> to vector<8x8x8xf32>
      %28 = tpu.transpose %27, [1, 0, 2] : vector<8x8x8xf32> -> vector<8x8x8xf32>
      %29 = arith.truncf %28 : vector<8x8x8xf32> to vector<8x8x8xbf16>
      %30 = vector.shape_cast %22 : vector<8x64xf32> to vector<8x8x8xf32>
      %31 = tpu.transpose %30, [1, 0, 2] : vector<8x8x8xf32> -> vector<8x8x8xf32>
      %32 = arith.truncf %31 : vector<8x8x8xf32> to vector<8x8x8xbf16>
      %33 = vector.shape_cast %23 : vector<8x64xf32> to vector<8x8x8xf32>
      %34 = tpu.transpose %33, [1, 0, 2] : vector<8x8x8xf32> -> vector<8x8x8xf32>
      %35 = arith.truncf %34 : vector<8x8x8xf32> to vector<8x8x8xbf16>
      "tpu.trace_start"() <{level = 10 : i32, message = "hqd,hkd->hqk"}> : () -> ()
      %cst_19 = arith.constant dense<0.000000e+00> : vector<8x8x8xf32>
      %36 = tpu.matmul %29, %32, %cst_19 {dimension_numbers = #tpu.dot_dimension_numbers<[2], [2], [1], [1], [0, 0, 0, 1, 1, 1], [0], [0]>} : vector<8x8x8xbf16>, vector<8x8x8xbf16>, vector<8x8x8xf32> -> vector<8x8x8xf32>
      "tpu.trace_stop"() : () -> ()
      %cst_20 = arith.constant dense<0xFF800000> : vector<8x8xf32>
      %37 = vector.multi_reduction <maximumf>, %36, %cst_20 [2] : vector<8x8x8xf32> to vector<8x8xf32>
      %38 = vector.shape_cast %37 : vector<8x8xf32> to vector<8x8x1xf32>
      %39 = vector.broadcast %38 : vector<8x8x1xf32> to vector<8x8x8xf32>
      %40 = arith.subf %36, %39 : vector<8x8x8xf32>
      %41 = math.exp %40 : vector<8x8x8xf32>
      %cst_21 = arith.constant dense<0.000000e+00> : vector<8x8xf32>
      %42 = vector.multi_reduction <add>, %41, %cst_21 [2] : vector<8x8x8xf32> to vector<8x8xf32>
      %43 = vector.shape_cast %42 : vector<8x8xf32> to vector<8x8x1xf32>
      %44 = vector.broadcast %43 : vector<8x8x1xf32> to vector<8x8x8xf32>
      %45 = arith.divf %41, %44 : vector<8x8x8xf32>
      %46 = arith.truncf %45 : vector<8x8x8xf32> to vector<8x8x8xbf16>
      "tpu.trace_start"() <{level = 10 : i32, message = "hqk,hkd->hqd"}> : () -> ()
      %cst_22 = arith.constant dense<0.000000e+00> : vector<8x8x8xf32>
      %47 = tpu.matmul %46, %35, %cst_22 {dimension_numbers = #tpu.dot_dimension_numbers<[2], [1], [1], [2], [0, 0, 0, 1, 1, 2], [0], [0]>} : vector<8x8x8xbf16>, vector<8x8x8xbf16>, vector<8x8x8xf32> -> vector<8x8x8xf32>
      "tpu.trace_stop"() : () -> ()
      %48 = tpu.transpose %47, [1, 0, 2] : vector<8x8x8xf32> -> vector<8x8x8xf32>
      %49 = vector.shape_cast %48 : vector<8x8x8xf32> to vector<8x64xf32>
      %50 = arith.truncf %49 : vector<8x64xf32> to vector<8x64xbf16>
      %cst_23 = arith.constant dense<0.000000e+00> : vector<8x64xf32>
      %51 = tpu.matmul %50, %25, %cst_23 {dimension_numbers = #tpu.dot_dimension_numbers<[1], [0], [0], [1], [0, 0, 1, 1], [], []>} : vector<8x64xbf16>, vector<64x64xbf16>, vector<8x64xf32> -> vector<8x64xf32>
      %52 = vector.broadcast %26 : vector<1x64xf32> to vector<8x64xf32>
      %53 = arith.addf %51, %52 : vector<8x64xf32>
      %54 = arith.addf %9, %53 : vector<8x64xf32>
      %55 = vector.extract_strided_slice %12 {offsets = [1, 0], sizes = [1, 64], strides = [1, 1]} : vector<10x64xf32> to vector<1x64xf32>
      %56 = vector.extract_strided_slice %12 {offsets = [2, 0], sizes = [1, 64], strides = [1, 1]} : vector<10x64xf32> to vector<1x64xf32>
      %cst_24 = arith.constant dense<0.000000e+00> : vector<8xf32>
      %57 = vector.multi_reduction <add>, %54, %cst_24 [1] : vector<8x64xf32> to vector<8xf32>
      %58 = vector.shape_cast %57 : vector<8xf32> to vector<8x1xf32>
      %cst_25 = arith.constant 6.400000e+01 : f32
      %59 = vector.broadcast %cst_25 : f32 to vector<8x1xf32>
      %60 = arith.divf %58, %59 : vector<8x1xf32>
      %61 = vector.broadcast %60 : vector<8x1xf32> to vector<8x64xf32>
      %62 = arith.subf %54, %61 : vector<8x64xf32>
      %63 = arith.mulf %62, %62 : vector<8x64xf32>
      %cst_26 = arith.constant dense<0.000000e+00> : vector<8xf32>
      %64 = vector.multi_reduction <add>, %63, %cst_26 [1] : vector<8x64xf32> to vector<8xf32>
      %65 = vector.shape_cast %64 : vector<8xf32> to vector<8x1xf32>
      %cst_27 = arith.constant 6.400000e+01 : f32
      %66 = vector.broadcast %cst_27 : f32 to vector<8x1xf32>
      %67 = arith.divf %65, %66 : vector<8x1xf32>
      %cst_28 = arith.constant 9.99999974E-6 : f32
      %68 = vector.broadcast %cst_28 : f32 to vector<8x1xf32>
      %69 = arith.addf %67, %68 : vector<8x1xf32>
      %70 = math.rsqrt %69 : vector<8x1xf32>
      %71 = vector.broadcast %70 : vector<8x1xf32> to vector<8x64xf32>
      %72 = arith.mulf %62, %71 : vector<8x64xf32>
      %73 = vector.broadcast %55 : vector<1x64xf32> to vector<8x64xf32>
      %74 = arith.mulf %72, %73 : vector<8x64xf32>
      %75 = vector.broadcast %56 : vector<1x64xf32> to vector<8x64xf32>
      %76 = arith.addf %74, %75 : vector<8x64xf32>
      %c0_29 = arith.constant 0 : index
      %c0_30 = arith.constant 0 : index
      %c0_31 = arith.constant 0 : index
      %77 = vector.load %arg12[%c0_29, %c0_30, %c0_31] : memref<1x64x64xbf16, #tpu.memory_space<vmem>>, vector<1x64x64xbf16>
      %78 = vector.shape_cast %77 : vector<1x64x64xbf16> to vector<64x64xbf16>
      %79 = vector.extract_strided_slice %12 {offsets = [3, 0], sizes = [1, 64], strides = [1, 1]} : vector<10x64xf32> to vector<1x64xf32>
      %80 = arith.truncf %76 : vector<8x64xf32> to vector<8x64xbf16>
      %cst_32 = arith.constant dense<0.000000e+00> : vector<8x64xf32>
      %81 = tpu.matmul %80, %78, %cst_32 {dimension_numbers = #tpu.dot_dimension_numbers<[1], [0], [0], [1], [0, 0, 1, 1], [], []>} : vector<8x64xbf16>, vector<64x64xbf16>, vector<8x64xf32> -> vector<8x64xf32>
      %82 = vector.broadcast %79 : vector<1x64xf32> to vector<8x64xf32>
      %83 = arith.addf %81, %82 : vector<8x64xf32>
      %c0_33 = arith.constant 0 : index
      %c0_34 = arith.constant 0 : index
      %c0_35 = arith.constant 0 : index
      %84 = vector.load %arg13[%c0_33, %c0_34, %c0_35] : memref<1x64x128xbf16, #tpu.memory_space<vmem>>, vector<1x64x128xbf16>
      %85 = vector.shape_cast %84 : vector<1x64x128xbf16> to vector<64x128xbf16>
      %c0_36 = arith.constant 0 : index
      %c0_37 = arith.constant 0 : index
      %c0_38 = arith.constant 0 : index
      %86 = vector.load %arg14[%c0_36, %c0_37, %c0_38] : memref<1x1x128xf32, #tpu.memory_space<vmem>>, vector<1x1x128xf32>
      %87 = vector.shape_cast %86 : vector<1x1x128xf32> to vector<1x128xf32>
      %88 = arith.truncf %10 : vector<8x64xf32> to vector<8x64xbf16>
      %cst_39 = arith.constant dense<0.000000e+00> : vector<8x128xf32>
      %89 = tpu.matmul %88, %85, %cst_39 {dimension_numbers = #tpu.dot_dimension_numbers<[1], [0], [0], [1], [0, 0, 1, 1], [], []>} : vector<8x64xbf16>, vector<64x128xbf16>, vector<8x128xf32> -> vector<8x128xf32>
      %90 = vector.broadcast %87 : vector<1x128xf32> to vector<8x128xf32>
      %91 = arith.addf %89, %90 : vector<8x128xf32>
      %92 = vector.extract_strided_slice %91 {offsets = [0, 0], sizes = [8, 64], strides = [1, 1]} : vector<8x128xf32> to vector<8x64xf32>
      %93 = vector.extract_strided_slice %91 {offsets = [0, 64], sizes = [8, 64], strides = [1, 1]} : vector<8x128xf32> to vector<8x64xf32>
      %c0_40 = arith.constant 0 : index
      %c0_41 = arith.constant 0 : index
      %c0_42 = arith.constant 0 : index
      %94 = vector.load %arg15[%c0_40, %c0_41, %c0_42] : memref<1x64x64xbf16, #tpu.memory_space<vmem>>, vector<1x64x64xbf16>
      %95 = vector.shape_cast %94 : vector<1x64x64xbf16> to vector<64x64xbf16>
      %96 = vector.extract_strided_slice %12 {offsets = [4, 0], sizes = [1, 64], strides = [1, 1]} : vector<10x64xf32> to vector<1x64xf32>
      %97 = vector.shape_cast %83 : vector<8x64xf32> to vector<8x8x8xf32>
      %98 = tpu.transpose %97, [1, 0, 2] : vector<8x8x8xf32> -> vector<8x8x8xf32>
      %99 = arith.truncf %98 : vector<8x8x8xf32> to vector<8x8x8xbf16>
      %100 = vector.shape_cast %92 : vector<8x64xf32> to vector<8x8x8xf32>
      %101 = tpu.transpose %100, [1, 0, 2] : vector<8x8x8xf32> -> vector<8x8x8xf32>
      %102 = arith.truncf %101 : vector<8x8x8xf32> to vector<8x8x8xbf16>
      %103 = vector.shape_cast %93 : vector<8x64xf32> to vector<8x8x8xf32>
      %104 = tpu.transpose %103, [1, 0, 2] : vector<8x8x8xf32> -> vector<8x8x8xf32>
      %105 = arith.truncf %104 : vector<8x8x8xf32> to vector<8x8x8xbf16>
      "tpu.trace_start"() <{level = 10 : i32, message = "hqd,hkd->hqk"}> : () -> ()
      %cst_43 = arith.constant dense<0.000000e+00> : vector<8x8x8xf32>
      %106 = tpu.matmul %99, %102, %cst_43 {dimension_numbers = #tpu.dot_dimension_numbers<[2], [2], [1], [1], [0, 0, 0, 1, 1, 1], [0], [0]>} : vector<8x8x8xbf16>, vector<8x8x8xbf16>, vector<8x8x8xf32> -> vector<8x8x8xf32>
      "tpu.trace_stop"() : () -> ()
      %cst_44 = arith.constant dense<0xFF800000> : vector<8x8xf32>
      %107 = vector.multi_reduction <maximumf>, %106, %cst_44 [2] : vector<8x8x8xf32> to vector<8x8xf32>
      %108 = vector.shape_cast %107 : vector<8x8xf32> to vector<8x8x1xf32>
      %109 = vector.broadcast %108 : vector<8x8x1xf32> to vector<8x8x8xf32>
      %110 = arith.subf %106, %109 : vector<8x8x8xf32>
      %111 = math.exp %110 : vector<8x8x8xf32>
      %cst_45 = arith.constant dense<0.000000e+00> : vector<8x8xf32>
      %112 = vector.multi_reduction <add>, %111, %cst_45 [2] : vector<8x8x8xf32> to vector<8x8xf32>
      %113 = vector.shape_cast %112 : vector<8x8xf32> to vector<8x8x1xf32>
      %114 = vector.broadcast %113 : vector<8x8x1xf32> to vector<8x8x8xf32>
      %115 = arith.divf %111, %114 : vector<8x8x8xf32>
      %116 = arith.truncf %115 : vector<8x8x8xf32> to vector<8x8x8xbf16>
      "tpu.trace_start"() <{level = 10 : i32, message = "hqk,hkd->hqd"}> : () -> ()
      %cst_46 = arith.constant dense<0.000000e+00> : vector<8x8x8xf32>
      %117 = tpu.matmul %116, %105, %cst_46 {dimension_numbers = #tpu.dot_dimension_numbers<[2], [1], [1], [2], [0, 0, 0, 1, 1, 2], [0], [0]>} : vector<8x8x8xbf16>, vector<8x8x8xbf16>, vector<8x8x8xf32> -> vector<8x8x8xf32>
      "tpu.trace_stop"() : () -> ()
      %118 = tpu.transpose %117, [1, 0, 2] : vector<8x8x8xf32> -> vector<8x8x8xf32>
      %119 = vector.shape_cast %118 : vector<8x8x8xf32> to vector<8x64xf32>
      %120 = arith.truncf %119 : vector<8x64xf32> to vector<8x64xbf16>
      %cst_47 = arith.constant dense<0.000000e+00> : vector<8x64xf32>
      %121 = tpu.matmul %120, %95, %cst_47 {dimension_numbers = #tpu.dot_dimension_numbers<[1], [0], [0], [1], [0, 0, 1, 1], [], []>} : vector<8x64xbf16>, vector<64x64xbf16>, vector<8x64xf32> -> vector<8x64xf32>
      %122 = vector.broadcast %96 : vector<1x64xf32> to vector<8x64xf32>
      %123 = arith.addf %121, %122 : vector<8x64xf32>
      %124 = arith.addf %76, %123 : vector<8x64xf32>
      %125 = vector.extract_strided_slice %12 {offsets = [5, 0], sizes = [1, 64], strides = [1, 1]} : vector<10x64xf32> to vector<1x64xf32>
      %126 = vector.extract_strided_slice %12 {offsets = [6, 0], sizes = [1, 64], strides = [1, 1]} : vector<10x64xf32> to vector<1x64xf32>
      %cst_48 = arith.constant dense<0.000000e+00> : vector<8xf32>
      %127 = vector.multi_reduction <add>, %124, %cst_48 [1] : vector<8x64xf32> to vector<8xf32>
      %128 = vector.shape_cast %127 : vector<8xf32> to vector<8x1xf32>
      %cst_49 = arith.constant 6.400000e+01 : f32
      %129 = vector.broadcast %cst_49 : f32 to vector<8x1xf32>
      %130 = arith.divf %128, %129 : vector<8x1xf32>
      %131 = vector.broadcast %130 : vector<8x1xf32> to vector<8x64xf32>
      %132 = arith.subf %124, %131 : vector<8x64xf32>
      %133 = arith.mulf %132, %132 : vector<8x64xf32>
      %cst_50 = arith.constant dense<0.000000e+00> : vector<8xf32>
      %134 = vector.multi_reduction <add>, %133, %cst_50 [1] : vector<8x64xf32> to vector<8xf32>
      %135 = vector.shape_cast %134 : vector<8xf32> to vector<8x1xf32>
      %cst_51 = arith.constant 6.400000e+01 : f32
      %136 = vector.broadcast %cst_51 : f32 to vector<8x1xf32>
      %137 = arith.divf %135, %136 : vector<8x1xf32>
      %cst_52 = arith.constant 9.99999974E-6 : f32
      %138 = vector.broadcast %cst_52 : f32 to vector<8x1xf32>
      %139 = arith.addf %137, %138 : vector<8x1xf32>
      %140 = math.rsqrt %139 : vector<8x1xf32>
      %141 = vector.broadcast %140 : vector<8x1xf32> to vector<8x64xf32>
      %142 = arith.mulf %132, %141 : vector<8x64xf32>
      %143 = vector.broadcast %125 : vector<1x64xf32> to vector<8x64xf32>
      %144 = arith.mulf %142, %143 : vector<8x64xf32>
      %145 = vector.broadcast %126 : vector<1x64xf32> to vector<8x64xf32>
      %146 = arith.addf %144, %145 : vector<8x64xf32>
      %c0_53 = arith.constant 0 : index
      %c0_54 = arith.constant 0 : index
      %c0_55 = arith.constant 0 : index
      %147 = vector.load %arg17[%c0_53, %c0_54, %c0_55] : memref<1x64x2048xbf16, #tpu.memory_space<vmem>>, vector<1x64x2048xbf16>
      %148 = vector.shape_cast %147 : vector<1x64x2048xbf16> to vector<64x2048xbf16>
      %c0_56 = arith.constant 0 : index
      %c0_57 = arith.constant 0 : index
      %c0_58 = arith.constant 0 : index
      %149 = vector.load %arg18[%c0_56, %c0_57, %c0_58] : memref<1x1x2048xf32, #tpu.memory_space<vmem>>, vector<1x1x2048xf32>
      %150 = vector.shape_cast %149 : vector<1x1x2048xf32> to vector<1x2048xf32>
      %c0_59 = arith.constant 0 : index
      %c0_60 = arith.constant 0 : index
      %c0_61 = arith.constant 0 : index
      %151 = vector.load %arg19[%c0_59, %c0_60, %c0_61] : memref<1x2048x64xbf16, #tpu.memory_space<vmem>>, vector<1x2048x64xbf16>
      %152 = vector.shape_cast %151 : vector<1x2048x64xbf16> to vector<2048x64xbf16>
      %153 = vector.extract_strided_slice %12 {offsets = [7, 0], sizes = [1, 64], strides = [1, 1]} : vector<10x64xf32> to vector<1x64xf32>
      %154 = arith.truncf %146 : vector<8x64xf32> to vector<8x64xbf16>
      %cst_62 = arith.constant dense<0.000000e+00> : vector<8x2048xf32>
      %155 = tpu.matmul %154, %148, %cst_62 {dimension_numbers = #tpu.dot_dimension_numbers<[1], [0], [0], [1], [0, 0, 1, 1], [], []>} : vector<8x64xbf16>, vector<64x2048xbf16>, vector<8x2048xf32> -> vector<8x2048xf32>
      %156 = vector.broadcast %150 : vector<1x2048xf32> to vector<8x2048xf32>
      %157 = arith.addf %155, %156 : vector<8x2048xf32>
      %cst_63 = arith.constant 0.000000e+00 : f32
      %158 = vector.broadcast %cst_63 : f32 to vector<8x2048xf32>
      %159 = arith.maximumf %157, %158 : vector<8x2048xf32>
      %160 = arith.truncf %159 : vector<8x2048xf32> to vector<8x2048xbf16>
      %cst_64 = arith.constant dense<0.000000e+00> : vector<8x64xf32>
      %161 = tpu.matmul %160, %152, %cst_64 {dimension_numbers = #tpu.dot_dimension_numbers<[1], [0], [0], [1], [0, 0, 1, 1], [], []>} : vector<8x2048xbf16>, vector<2048x64xbf16>, vector<8x64xf32> -> vector<8x64xf32>
      %162 = vector.broadcast %153 : vector<1x64xf32> to vector<8x64xf32>
      %163 = arith.addf %161, %162 : vector<8x64xf32>
      %164 = arith.addf %146, %163 : vector<8x64xf32>
      %165 = vector.extract_strided_slice %12 {offsets = [8, 0], sizes = [1, 64], strides = [1, 1]} : vector<10x64xf32> to vector<1x64xf32>
      %166 = vector.extract_strided_slice %12 {offsets = [9, 0], sizes = [1, 64], strides = [1, 1]} : vector<10x64xf32> to vector<1x64xf32>
      %cst_65 = arith.constant dense<0.000000e+00> : vector<8xf32>
      %167 = vector.multi_reduction <add>, %164, %cst_65 [1] : vector<8x64xf32> to vector<8xf32>
      %168 = vector.shape_cast %167 : vector<8xf32> to vector<8x1xf32>
      %cst_66 = arith.constant 6.400000e+01 : f32
      %169 = vector.broadcast %cst_66 : f32 to vector<8x1xf32>
      %170 = arith.divf %168, %169 : vector<8x1xf32>
      %171 = vector.broadcast %170 : vector<8x1xf32> to vector<8x64xf32>
      %172 = arith.subf %164, %171 : vector<8x64xf32>
      %173 = arith.mulf %172, %172 : vector<8x64xf32>
      %cst_67 = arith.constant dense<0.000000e+00> : vector<8xf32>
      %174 = vector.multi_reduction <add>, %173, %cst_67 [1] : vector<8x64xf32> to vector<8xf32>
      %175 = vector.shape_cast %174 : vector<8xf32> to vector<8x1xf32>
      %cst_68 = arith.constant 6.400000e+01 : f32
      %176 = vector.broadcast %cst_68 : f32 to vector<8x1xf32>
      %177 = arith.divf %175, %176 : vector<8x1xf32>
      %cst_69 = arith.constant 9.99999974E-6 : f32
      %178 = vector.broadcast %cst_69 : f32 to vector<8x1xf32>
      %179 = arith.addf %177, %178 : vector<8x1xf32>
      %180 = math.rsqrt %179 : vector<8x1xf32>
      %181 = vector.broadcast %180 : vector<8x1xf32> to vector<8x64xf32>
      %182 = arith.mulf %172, %181 : vector<8x64xf32>
      %183 = vector.broadcast %165 : vector<1x64xf32> to vector<8x64xf32>
      %184 = arith.mulf %182, %183 : vector<8x64xf32>
      %185 = vector.broadcast %166 : vector<1x64xf32> to vector<8x64xf32>
      %186 = arith.addf %184, %185 : vector<8x64xf32>
      %c0_70 = arith.constant 0 : index
      %c0_71 = arith.constant 0 : index
      %187 = vector.load %arg29[%c0_70, %c0_71] : memref<8x64xf32, #tpu.memory_space<vmem>>, vector<8x64xf32>
      tpu.vector_store %arg29[%c0_70, %c0_71], %186 {strides = array<i32>} : memref<8x64xf32, #tpu.memory_space<vmem>>, vector<8x64xf32>,
      %c11_i32 = arith.constant 11 : i32
      %188 = arith.cmpi eq, %arg0, %c11_i32 : i32
      %189 = arith.extui %188 : i1 to i32
      %c0_i32_72 = arith.constant 0 : i32
      %190 = arith.cmpi ne, %189, %c0_i32_72 : i32
      scf.if %190 {
        %c0_73 = arith.constant 0 : index
        %c0_74 = arith.constant 0 : index
        %191 = vector.load %arg24[%c0_73, %c0_74] : memref<1x64xf32, #tpu.memory_space<vmem>>, vector<1x64xf32>
        %c0_75 = arith.constant 0 : index
        %c0_76 = arith.constant 0 : index
        %192 = vector.load %arg25[%c0_75, %c0_76] : memref<1x64xf32, #tpu.memory_space<vmem>>, vector<1x64xf32>
        %cst_77 = arith.constant dense<0.000000e+00> : vector<8xf32>
        %193 = vector.multi_reduction <add>, %186, %cst_77 [1] : vector<8x64xf32> to vector<8xf32>
        %194 = vector.shape_cast %193 : vector<8xf32> to vector<8x1xf32>
        %cst_78 = arith.constant 6.400000e+01 : f32
        %195 = vector.broadcast %cst_78 : f32 to vector<8x1xf32>
        %196 = arith.divf %194, %195 : vector<8x1xf32>
        %197 = vector.broadcast %196 : vector<8x1xf32> to vector<8x64xf32>
        %198 = arith.subf %186, %197 : vector<8x64xf32>
        %199 = arith.mulf %198, %198 : vector<8x64xf32>
        %cst_79 = arith.constant dense<0.000000e+00> : vector<8xf32>
        %200 = vector.multi_reduction <add>, %199, %cst_79 [1] : vector<8x64xf32> to vector<8xf32>
        %201 = vector.shape_cast %200 : vector<8xf32> to vector<8x1xf32>
        %cst_80 = arith.constant 6.400000e+01 : f32
        %202 = vector.broadcast %cst_80 : f32 to vector<8x1xf32>
        %203 = arith.divf %201, %202 : vector<8x1xf32>
        %cst_81 = arith.constant 9.99999974E-6 : f32
        %204 = vector.broadcast %cst_81 : f32 to vector<8x1xf32>
        %205 = arith.addf %203, %204 : vector<8x1xf32>
        %206 = math.rsqrt %205 : vector<8x1xf32>
        %207 = vector.broadcast %206 : vector<8x1xf32> to vector<8x64xf32>
        %208 = arith.mulf %198, %207 : vector<8x64xf32>
        %209 = vector.broadcast %191 : vector<1x64xf32> to vector<8x64xf32>
        %210 = arith.mulf %208, %209 : vector<8x64xf32>
        %211 = vector.broadcast %192 : vector<1x64xf32> to vector<8x64xf32>
        %212 = arith.addf %210, %211 : vector<8x64xf32>
        %c0_82 = arith.constant 0 : index
        %c0_83 = arith.constant 0 : index
        %213 = vector.load %arg26[%c0_82, %c0_83] : memref<64x16xbf16, #tpu.memory_space<vmem>>, vector<64x16xbf16>
        %c0_84 = arith.constant 0 : index
        %c0_85 = arith.constant 0 : index
        %214 = vector.load %arg27[%c0_84, %c0_85] : memref<1x16xf32, #tpu.memory_space<vmem>>, vector<1x16xf32>
        %215 = arith.truncf %212 : vector<8x64xf32> to vector<8x64xbf16>
        %cst_86 = arith.constant dense<0.000000e+00> : vector<8x16xf32>
        %216 = tpu.matmul %215, %213, %cst_86 {dimension_numbers = #tpu.dot_dimension_numbers<[1], [0], [0], [1], [0, 0, 1, 1], [], []>} : vector<8x64xbf16>, vector<64x16xbf16>, vector<8x16xf32> -> vector<8x16xf32>
        %217 = vector.broadcast %214 : vector<1x16xf32> to vector<8x16xf32>
        %218 = arith.addf %216, %217 : vector<8x16xf32>
        %c0_87 = arith.constant 0 : index
        %c0_88 = arith.constant 0 : index
        %219 = vector.load %arg28[%c0_87, %c0_88] : memref<8x16xf32, #tpu.memory_space<vmem>>, vector<8x16xf32>
        tpu.vector_store %arg28[%c0_87, %c0_88], %218 {strides = array<i32>} : memref<8x16xf32, #tpu.memory_space<vmem>>, vector<8x16xf32>,
      } else {
      }
    } else {
    }
    return
  }
  func.func @transform_0(%arg0: i32) -> (i32, i32) {
    %c0_i32 = arith.constant 0 : i32
    %c0_i32_0 = arith.constant 0 : i32
    %c0_i32_1 = arith.constant 0 : i32
    return %c0_i32, %c0_i32_0 : i32, i32
  }
  func.func @transform_1(%arg0: i32) -> (i32, i32, i32) {
    %c5_i32 = arith.constant 5 : i32
    %0 = arith.minsi %arg0, %c5_i32 : i32
    %c0_i32 = arith.constant 0 : i32
    %c0_i32_0 = arith.constant 0 : i32
    %c0_i32_1 = arith.constant 0 : i32
    return %0, %c0_i32, %c0_i32_0 : i32, i32, i32
  }
  func.func @transform_2(%arg0: i32) -> (i32, i32, i32) {
    %c5_i32 = arith.constant 5 : i32
    %0 = arith.minsi %arg0, %c5_i32 : i32
    %c0_i32 = arith.constant 0 : i32
    %c0_i32_0 = arith.constant 0 : i32
    %c0_i32_1 = arith.constant 0 : i32
    return %0, %c0_i32, %c0_i32_0 : i32, i32, i32
  }
  func.func @transform_3(%arg0: i32) -> (i32, i32, i32) {
    %c5_i32 = arith.constant 5 : i32
    %0 = arith.minsi %arg0, %c5_i32 : i32
    %c0_i32 = arith.constant 0 : i32
    %c0_i32_0 = arith.constant 0 : i32
    %c0_i32_1 = arith.constant 0 : i32
    return %0, %c0_i32, %c0_i32_0 : i32, i32, i32
  }
  func.func @transform_4(%arg0: i32) -> (i32, i32, i32) {
    %c5_i32 = arith.constant 5 : i32
    %0 = arith.minsi %arg0, %c5_i32 : i32
    %c0_i32 = arith.constant 0 : i32
    %c0_i32_0 = arith.constant 0 : i32
    %c0_i32_1 = arith.constant 0 : i32
    return %0, %c0_i32, %c0_i32_0 : i32, i32, i32
  }
  func.func @transform_5(%arg0: i32) -> (i32, i32, i32) {
    %c5_i32 = arith.constant 5 : i32
    %0 = arith.minsi %arg0, %c5_i32 : i32
    %c0_i32 = arith.constant 0 : i32
    %c0_i32_0 = arith.constant 0 : i32
    %c0_i32_1 = arith.constant 0 : i32
    return %0, %c0_i32, %c0_i32_0 : i32, i32, i32
  }
  func.func @transform_6(%arg0: i32) -> (i32, i32, i32) {
    %c5_i32 = arith.constant 5 : i32
    %0 = arith.minsi %arg0, %c5_i32 : i32
    %c0_i32 = arith.constant 0 : i32
    %c0_i32_0 = arith.constant 0 : i32
    %c0_i32_1 = arith.constant 0 : i32
    return %0, %c0_i32, %c0_i32_0 : i32, i32, i32
  }
  func.func @transform_7(%arg0: i32) -> (i32, i32, i32) {
    %c5_i32 = arith.constant 5 : i32
    %0 = arith.minsi %arg0, %c5_i32 : i32
    %c0_i32 = arith.constant 0 : i32
    %c0_i32_0 = arith.constant 0 : i32
    %c0_i32_1 = arith.constant 0 : i32
    return %0, %c0_i32, %c0_i32_0 : i32, i32, i32
  }
  func.func @transform_8(%arg0: i32) -> (i32, i32, i32) {
    %c6_i32 = arith.constant 6 : i32
    %0 = arith.subi %arg0, %c6_i32 : i32
    %c0_i32 = arith.constant 0 : i32
    %1 = arith.maxsi %0, %c0_i32 : i32
    %c0_i32_0 = arith.constant 0 : i32
    %c0_i32_1 = arith.constant 0 : i32
    %c0_i32_2 = arith.constant 0 : i32
    return %1, %c0_i32_0, %c0_i32_1 : i32, i32, i32
  }
  func.func @transform_9(%arg0: i32) -> (i32, i32, i32) {
    %c6_i32 = arith.constant 6 : i32
    %0 = arith.subi %arg0, %c6_i32 : i32
    %c0_i32 = arith.constant 0 : i32
    %1 = arith.maxsi %0, %c0_i32 : i32
    %c0_i32_0 = arith.constant 0 : i32
    %c0_i32_1 = arith.constant 0 : i32
    %c0_i32_2 = arith.constant 0 : i32
    return %1, %c0_i32_0, %c0_i32_1 : i32, i32, i32
  }
  func.func @transform_10(%arg0: i32) -> (i32, i32, i32) {
    %c6_i32 = arith.constant 6 : i32
    %0 = arith.subi %arg0, %c6_i32 : i32
    %c0_i32 = arith.constant 0 : i32
    %1 = arith.maxsi %0, %c0_i32 : i32
    %c0_i32_0 = arith.constant 0 : i32
    %c0_i32_1 = arith.constant 0 : i32
    %c0_i32_2 = arith.constant 0 : i32
    return %1, %c0_i32_0, %c0_i32_1 : i32, i32, i32
  }
  func.func @transform_11(%arg0: i32) -> (i32, i32, i32) {
    %c6_i32 = arith.constant 6 : i32
    %0 = arith.subi %arg0, %c6_i32 : i32
    %c0_i32 = arith.constant 0 : i32
    %1 = arith.maxsi %0, %c0_i32 : i32
    %c0_i32_0 = arith.constant 0 : i32
    %c0_i32_1 = arith.constant 0 : i32
    %c0_i32_2 = arith.constant 0 : i32
    return %1, %c0_i32_0, %c0_i32_1 : i32, i32, i32
  }
  func.func @transform_12(%arg0: i32) -> (i32, i32, i32) {
    %c6_i32 = arith.constant 6 : i32
    %0 = arith.subi %arg0, %c6_i32 : i32
    %c0_i32 = arith.constant 0 : i32
    %1 = arith.maxsi %0, %c0_i32 : i32
    %c0_i32_0 = arith.constant 0 : i32
    %c0_i32_1 = arith.constant 0 : i32
    %c0_i32_2 = arith.constant 0 : i32
    return %1, %c0_i32_0, %c0_i32_1 : i32, i32, i32
  }
  func.func @transform_13(%arg0: i32) -> (i32, i32, i32) {
    %c6_i32 = arith.constant 6 : i32
    %0 = arith.subi %arg0, %c6_i32 : i32
    %c0_i32 = arith.constant 0 : i32
    %1 = arith.maxsi %0, %c0_i32 : i32
    %c0_i32_0 = arith.constant 0 : i32
    %c0_i32_1 = arith.constant 0 : i32
    %c0_i32_2 = arith.constant 0 : i32
    return %1, %c0_i32_0, %c0_i32_1 : i32, i32, i32
  }
  func.func @transform_14(%arg0: i32) -> (i32, i32, i32) {
    %c6_i32 = arith.constant 6 : i32
    %0 = arith.subi %arg0, %c6_i32 : i32
    %c0_i32 = arith.constant 0 : i32
    %1 = arith.maxsi %0, %c0_i32 : i32
    %c0_i32_0 = arith.constant 0 : i32
    %c0_i32_1 = arith.constant 0 : i32
    %c0_i32_2 = arith.constant 0 : i32
    return %1, %c0_i32_0, %c0_i32_1 : i32, i32, i32
  }
  func.func @transform_15(%arg0: i32) -> (i32, i32, i32) {
    %c6_i32 = arith.constant 6 : i32
    %0 = arith.subi %arg0, %c6_i32 : i32
    %c0_i32 = arith.constant 0 : i32
    %1 = arith.maxsi %0, %c0_i32 : i32
    %c0_i32_0 = arith.constant 0 : i32
    %c0_i32_1 = arith.constant 0 : i32
    %c0_i32_2 = arith.constant 0 : i32
    return %1, %c0_i32_0, %c0_i32_1 : i32, i32, i32
  }
  func.func @transform_16(%arg0: i32) -> (i32, i32, i32) {
    %c6_i32 = arith.constant 6 : i32
    %0 = arith.subi %arg0, %c6_i32 : i32
    %c0_i32 = arith.constant 0 : i32
    %1 = arith.maxsi %0, %c0_i32 : i32
    %c0_i32_0 = arith.constant 0 : i32
    %c0_i32_1 = arith.constant 0 : i32
    %c0_i32_2 = arith.constant 0 : i32
    return %1, %c0_i32_0, %c0_i32_1 : i32, i32, i32
  }
  func.func @transform_17(%arg0: i32) -> (i32, i32, i32) {
    %c6_i32 = arith.constant 6 : i32
    %0 = arith.subi %arg0, %c6_i32 : i32
    %c0_i32 = arith.constant 0 : i32
    %1 = arith.maxsi %0, %c0_i32 : i32
    %c0_i32_0 = arith.constant 0 : i32
    %c0_i32_1 = arith.constant 0 : i32
    %c0_i32_2 = arith.constant 0 : i32
    return %1, %c0_i32_0, %c0_i32_1 : i32, i32, i32
  }
  func.func @transform_18(%arg0: i32) -> (i32, i32, i32) {
    %c6_i32 = arith.constant 6 : i32
    %0 = arith.subi %arg0, %c6_i32 : i32
    %c0_i32 = arith.constant 0 : i32
    %1 = arith.maxsi %0, %c0_i32 : i32
    %c0_i32_0 = arith.constant 0 : i32
    %c0_i32_1 = arith.constant 0 : i32
    %c0_i32_2 = arith.constant 0 : i32
    return %1, %c0_i32_0, %c0_i32_1 : i32, i32, i32
  }
  func.func @transform_19(%arg0: i32) -> (i32, i32) {
    %c0_i32 = arith.constant 0 : i32
    %c0_i32_0 = arith.constant 0 : i32
    %c0_i32_1 = arith.constant 0 : i32
    return %c0_i32, %c0_i32_0 : i32, i32
  }
  func.func @transform_20(%arg0: i32) -> (i32, i32) {
    %c0_i32 = arith.constant 0 : i32
    %c0_i32_0 = arith.constant 0 : i32
    %c0_i32_1 = arith.constant 0 : i32
    return %c0_i32, %c0_i32_0 : i32, i32
  }
  func.func @transform_21(%arg0: i32) -> (i32, i32) {
    %c0_i32 = arith.constant 0 : i32
    %c0_i32_0 = arith.constant 0 : i32
    %c0_i32_1 = arith.constant 0 : i32
    return %c0_i32, %c0_i32_0 : i32, i32
  }
  func.func @transform_22(%arg0: i32) -> (i32, i32) {
    %c0_i32 = arith.constant 0 : i32
    %c0_i32_0 = arith.constant 0 : i32
    %c0_i32_1 = arith.constant 0 : i32
    return %c0_i32, %c0_i32_0 : i32, i32
  }
  func.func @transform_23(%arg0: i32) -> (i32, i32) {
    %c0_i32 = arith.constant 0 : i32
    %c0_i32_0 = arith.constant 0 : i32
    %c0_i32_1 = arith.constant 0 : i32
    return %c0_i32, %c0_i32_0 : i32, i32
  }
  func.func @transform_24(%arg0: i32) -> (i32, i32) {
    %c0_i32 = arith.constant 0 : i32
    %c0_i32_0 = arith.constant 0 : i32
    %c0_i32_1 = arith.constant 0 : i32
    return %c0_i32, %c0_i32_0 : i32, i32
  }
  func.func @transform_25(%arg0: i32) -> (i32, i32) {
    %c0_i32 = arith.constant 0 : i32
    %c0_i32_0 = arith.constant 0 : i32
    %c0_i32_1 = arith.constant 0 : i32
    return %c0_i32, %c0_i32_0 : i32, i32
  }
  func.func @transform_26(%arg0: i32) -> (i32, i32) {
    %c0_i32 = arith.constant 0 : i32
    %c0_i32_0 = arith.constant 0 : i32
    %c0_i32_1 = arith.constant 0 : i32
    return %c0_i32, %c0_i32_0 : i32, i32
  }
  func.func @transform_27(%arg0: i32) -> (i32, i32) {
    %c0_i32 = arith.constant 0 : i32
    %c0_i32_0 = arith.constant 0 : i32
    %c0_i32_1 = arith.constant 0 : i32
    return %c0_i32, %c0_i32_0 : i32, i32
  }
}

</mosaic_0001>

<bundles_post_ra>
// kernel: transformer_autoencoder_forward.1
= control target key start
LH: loop header
LB: loop body
LE: loop exit
PB: predicated region body
PF: predicated region fallthrough
CT: control target
= control target key end

     0   :  { %s17590_s0 = inlined_call_operand.vmem [shape: f32[8,16], index: 0, kind: input, shape index: {}]   ;;  %s17591_s1 = inlined_call_operand.vmem [shape: bf16[6,64,192], index: 1, kind: input, shape index: {}]   ;;  %s17592_s2 = inlined_call_operand.vmem [shape: f32[6,1,192], index: 2, kind: input, shape index: {}]   ;;  %s17593_s3 = inlined_call_operand.vmem [shape: bf16[6,64,64], index: 3, kind: input, shape index: {}]   ;;  %s17594_s4 = inlined_call_operand.vmem [shape: f32[6,6,64], index: 4, kind: input, shape index: {}]   ;;  %s17595_s5 = inlined_call_operand.vmem [shape: bf16[6,64,2048], index: 5, kind: input, shape index: {}]   ;;  %s17596_s6 = inlined_call_operand.vmem [shape: f32[6,1,2048], index: 6, kind: input, shape index: {}]   ;;  %s17597_s7 = inlined_call_operand.vmem [shape: bf16[6,2048,64], index: 7, kind: input, shape index: {}]   ;;  %s17598_s8 = inlined_call_operand.vmem [shape: bf16[6,64,192], index: 8, kind: input, shape index: {}]   ;;  %s17599_s9 = inlined_call_operand.vmem [shape: f32[6,1,192], index: 9, kind: input, shape index: {}]   ;;  %s17600_s10 = inlined_call_operand.vmem [shape: bf16[6,64,64], index: 10, kind: input, shape index: {}]   ;;  %s17601_s11 = inlined_call_operand.vmem [shape: bf16[6,64,64], index: 11, kind: input, shape index: {}]   ;;  %s17602_s12 = inlined_call_operand.vmem [shape: bf16[6,64,128], index: 12, kind: input, shape index: {}]   ;;  %s17603_s13 = inlined_call_operand.vmem [shape: f32[6,1,128], index: 13, kind: input, shape index: {}]   ;;  %s17604_s14 = inlined_call_operand.vmem [shape: bf16[6,64,64], index: 14, kind: input, shape index: {}]   ;;  %s17605_s15 = inlined_call_operand.vmem [shape: f32[6,10,64], index: 15, kind: input, shape index: {}]   ;;  %s17606_s16 = inlined_call_operand.vmem [shape: bf16[6,64,2048], index: 16, kind: input, shape index: {}]   ;;  %s17607_s17 = inlined_call_operand.vmem [shape: f32[6,1,2048], index: 17, kind: input, shape index: {}]   ;;  %s17608_s18 = inlined_call_operand.vmem [shape: bf16[6,2048,64], index: 18, kind: input, shape index: {}]   ;;  %s17609_s19 = inlined_call_operand.vmem [shape: bf16[16,64], index: 19, kind: input, shape index: {}]   ;;  %s17610_s20 = inlined_call_operand.vmem [shape: f32[1,64], index: 20, kind: input, shape index: {}]   ;;  %s17611_s21 = inlined_call_operand.vmem [shape: f32[1,64], index: 21, kind: input, shape index: {}]   ;;  %s17612_s22 = inlined_call_operand.vmem [shape: f32[1,64], index: 22, kind: input, shape index: {}]   ;;  %s17613_s23 = inlined_call_operand.vmem [shape: f32[1,64], index: 23, kind: input, shape index: {}]   ;;  %s17614_s24 = inlined_call_operand.vmem [shape: f32[1,64], index: 24, kind: input, shape index: {}]   ;;  %s17615_s25 = inlined_call_operand.vmem [shape: bf16[64,16], index: 25, kind: input, shape index: {}]   ;;  %s17616_s26 = inlined_call_operand.vmem [shape: f32[1,16], index: 26, kind: input, shape index: {}]   ;;  %s17617_s27 = inlined_call_operand.hbm [shape: f32[8,16], index: 27, kind: output, shape index: {}]  }
   0x1   :  { %17630 = sst [smem:[#allocation16_spill]] %s17590_s0 }
   0x2   :  { %17631 = sst [smem:[#allocation17_spill]] %s17591_s1 }
   0x3   :  { %17632 = sst [smem:[#allocation18_spill]] %s17592_s2 }
   0x4   :  { %17633 = sst [smem:[#allocation19_spill]] %s17593_s3 }
   0x5   :  { %17634 = sst [smem:[#allocation20_spill]] %s17594_s4 }
   0x6   :  { %17635 = sst [smem:[#allocation21_spill]] %s17595_s5 }
   0x7   :  { %17636 = sst [smem:[#allocation22_spill]] %s17596_s6 }
   0x8   :  { %17637 = sst [smem:[#allocation23_spill]] %s17597_s7 }
   0x9   :  { %17638 = sst [smem:[#allocation24_spill]] %s17598_s8 }
   0xa   :  { %17639 = sst [smem:[#allocation25_spill]] %s17599_s9 }
   0xb   :  { %17640 = sst [smem:[#allocation26_spill]] %s17600_s10 }
   0xc   :  { %17641 = sst [smem:[#allocation27_spill]] %s17601_s11 }
   0xd   :  { %17642 = sst [smem:[#allocation28_spill]] %s17602_s12 }
   0xe   :  { %17643 = sst [smem:[#allocation29_spill]] %s17611_s21 }
   0xf   :  { %17644 = sst [smem:[#allocation30_spill]] %s17612_s22 }
  0x10   :  { %17645 = sst [smem:[#allocation31_spill]] %s17613_s23 }
  0x11   :  { %17646 = sst [smem:[#allocation32_spill]] %s17614_s24 }
  0x12   :  { %17647 = sst [smem:[#allocation33_spill]] %s17615_s25 }
  0x13   :  { %17648 = sst [smem:[#allocation34_spill]] %s17616_s26 }
  0x14   :  { %17649 = sst [smem:[#allocation35_spill]] %s17617_s27 }
  0x15   :  { %32 = vsyncpa [#allocation6], 0  ;;  %s15526_s7 = smov 0  }
  0x16 LB: > { %17650 = sst [smem:[#allocation8_spill]] %s15339_s7  ;;  %s15532_s4 = sadd.s32 4294967295, %s15339_s7   ;;  %s15339_s7 = sphi %s15526_s7, %s38_s7  }
  0x17   : > { %p13217_p0 = scmp.ge.s32.totalorder %s15339_s7, 1  ;;  %p1084_p1 = scmp.lt.s32.totalorder %s15339_s7, 13 }
  0x19   : > { %p1085_p2 = pnand %p13217_p0, %p1084_p1 }
  0x1b   : > { %1088 = sbr.rel (%p1085_p2) target bundleno = 8763 (0x223b), region = 128 }
  0x22   : > { %p1276_p3 = scmp.lt.s32.totalorder %s15532_s4, 5  ;;  %s13250_s8 = sadd.s32 4294967290, %s15532_s4 }
  0x23   : > { %p1337_p4 = scmp.gt.s32.totalorder %s13250_s8, 0  ;;  %p13251_p5 = scmp.lt.s32.totalorder %s13250_s8, 5 }
  0x24   : > { %s1277_s30 = scalar_select %p1276_p3, %s15532_s4, 5 }
  0x25   : > { %s17691_s8 = smov (!%p1337_p4, %s13250_s8), 0  ;;  %s17651_s10 = sld [smem:[#allocation17_spill]] }
  0x26   : > { %s17693_s30 = smov (!%p1276_p3, %s1277_s30), 5  ;;  %s17695_s8 = smov (!%p13251_p5, %s17691_s8), 5 }
  0x27   : > { %s13944_s9 = sshll.u32 %s17693_s30, 6  ;;  %s13226_s5 = sshll.u32 %s17693_s30, 1 }
  0x28   : > { %s17653_s11 = sld [smem:[#allocation18_spill]]  ;;  %s13945_s3 = sshll.u32 %s17693_s30, 5 }
  0x29   : > { %s13235_s7 = sshll.u32 %s17693_s30, 3  ;;  %s17655_s24 = sld [smem:[#allocation19_spill]] }
  0x2a   : > { %s17657_s21 = sld [smem:[#allocation20_spill]]  ;;  %s13244_s0 = sshll.u32 %s17693_s30, 4 }
  0x2b   : > { %s15544_s29 = scalar_lea.vmem %s17651_s10, %s13944_s9  ;;  %s13946_s9 = sshll.u32 %s17693_s30, 9 }
  0x2c   : > { %17652 = sst [smem:[#allocation9_spill]] %s15544_s29  ;;  %s17661_s26 = sld [smem:[#allocation22_spill]] }
  0x2d   : > { %s13947_s27 = sshll.u32 %s17693_s30, 10  ;;  %s17664_s29 = sld [smem:[#allocation24_spill]] }
  0x2e   : > { %s15549_s2 = scalar_lea.vmem %s17653_s11, %s13226_s5  ;;  %s17659_s5 = sld [smem:[#allocation21_spill]] }
  0x2f   : > { %17654 = sst [smem:[#allocation10_spill]] %s15549_s2  ;;  %s15554_s23 = scalar_lea.vmem %s17655_s24, %s13945_s3 }
  0x30   : > { %17656 = sst [smem:[#allocation11_spill]] %s15554_s23  ;;  %s15559_s28 = scalar_lea.vmem %s17657_s21, %s13235_s7 }
  0x31   : > { %17658 = sst [smem:[#allocation12_spill]] %s15559_s28  ;;  %s13950_s3 = sshll.u32 %s17695_s8, 6 }
  0x32   : > { %s15569_s24 = scalar_lea.vmem %s17661_s26, %s13244_s0  ;;  %s17663_s21 = sld [smem:[#allocation23_spill]] }
  0x33   : > { %17662 = sst [smem:[#allocation14_spill]] %s15569_s24  ;;  %s15580_s10 = scalar_lea.vmem %s17664_s29, %s13950_s3 }
  0x34   : > { %s15564_s6 = scalar_lea.vmem %s17659_s5, %s13946_s9  ;;  %17665 = sst [smem:[#allocation15_spill]] %s15580_s10 }
  0x35   : > { %17660 = sst [smem:[#allocation13_spill]] %s15564_s6  ;;  %s13264_s9 = sshll.u32 %s17695_s8, 1 }
  0x36   : > { %s13955_s1 = sshll.u32 %s17695_s8, 5  ;;  %s17666_s2 = sld [smem:[#allocation25_spill]] }
  0x37   : > { %s17667_s26 = sld [smem:[#allocation26_spill]]  ;;  %s17668_s25 = sld [smem:[#allocation27_spill]] }
  0x38   : > { %s15575_s7 = scalar_lea.vmem %s17663_s21, %s13947_s27  ;;  %s17669_s12 = sld [smem:[#allocation28_spill]] }
  0x39   : > { %s13969_s30 = sshll.u32 %s17695_s8, 4  ;;  %s13972_s11 = sshll.u32 %s17695_s8, 9 }
  0x3a   : > { %s15618_s27 = scalar_lea.vmem %s17605_s15, %s13969_s30  ;;  %s15623_s29 = scalar_lea.vmem %s17606_s16, %s13972_s11 }
  0x3b   : > { %s15628_s3 = scalar_lea.vmem %s17607_s17, %s13969_s30  ;;  %p13334_p6 = scmp.ne.s32.totalorder %s15532_s4, 0 }
  0x3c   : > { %s15587_s0 = scalar_lea.vmem %s17666_s2, %s13264_s9  ;;  %s15611_s2 = scalar_lea.vmem %s17604_s14, %s13955_s1  ;;  %v14883_v0 = vld [vmem:[%s17609_s19] sm:$0xff] (!%p13334_p6)   ;;  %v15341_v1 = vmov (!%p13334_p6), 0.0   ;;  %vm15342_vm0 = vmmov (!%p13334_p6), 0   ;;  %vm1475_vm1 = vcmask (!%p13334_p6), 130048   ;;  %vm1519_vm2 = vcmask (!%p13334_p6), 523264  }
  0x3d   : > { %s15592_s24 = scalar_lea.vmem %s17667_s26, %s13955_s1  ;;  %s15597_s21 = scalar_lea.vmem %s17668_s25, %s13955_s1  ;;  %14458 = vmatprep.subr.bf16.mxu0 (!%p13334_p6), %v15341_v1  ;;  %14460 = vmatprep.mubr.msk.bf16.mxu0 (!%p13334_p6), %vm15342_vm0, %v15341_v1  ;;  %v13335_v4 = vld [vmem:[%s17610_s20] ss:$0 sm:$0xff] (!%p13334_p6) }
  0x3e   : > { %s15602_s28 = scalar_lea.vmem %s17669_s12, %s13955_s1  ;;  %s13977_s9 = sshll.u32 %s17695_s8, 10  ;;  %14459 = vmatpush3.bf16.msra.mxu0 (!%p13334_p6), %v14883_v0 }
  0x3f   : > { %s15634_s6 = scalar_lea.vmem %s17608_s18, %s13977_s9  ;;  %1457 = sbr.rel (%p13334_p6) target bundleno = 288 (0x120), region = 132 }
  0x40   : > { %s17670_s12 = sld [smem:[#allocation16_spill]] (!%p13334_p6) }
  0x46   : > { %v1458_v2 = vld [vmem:[%s17670_s12] sm:$0xff] }
  0x47   : > { %v1462_v3 = vpack.c.bf16 %v1458_v2, %v1458_v2 }
  0x49   : > { %14461 = vmatmul.mubr.msk.bf16.vlgmr.msra.gmra.mrb[0].mxu0 %vm1475_vm1, %v1462_v3 }
 0x11c   : > { %v1513_v5 = vpop.f32.mrb[0].mxu0 }
 0x11d   : > { %v1514_v6 = vadd.f32 %v13335_v4, %v1513_v5  ;;  %v14462_v7 = vpop.f32.mrb[1].mxu0 }
 0x11e   : > { %v1516_v8 = vpop.f32.mrb[2].mxu0 }
 0x11f   : > { %1520 = vst.msk [vmem:[#allocation3] sm:$0xff] %vm1519_vm2, %v1514_v6  ;;  %1521 = vst.msk [vmem:[#allocation2] sm:$0xff] %vm1519_vm2, %v1514_v6  ;;  %v14463_v9 = vpop.f32.mrb[3].mxu0 }
 0x120 PF: > { %p13338_p7 = scmp.ge.s32.totalorder %s15532_s4, 6 }
 0x121   : > { %s17671_s10 = sld [smem:[#allocation9_spill]] (!%p13338_p7)  ;;  %v15343_v12 = vmov (!%p13338_p7), 0   ;;  %s17672_s9 = sld [smem:[#allocation10_spill]] (!%p13338_p7)  ;;  %vm1589_vm3 = vcmask (!%p13338_p7), 523264   ;;  %v1539_v21 = vlaneseq (!%p13338_p7)  ;;  %v15352_v31 = vmov (!%p13338_p7), 1983009808  }
 0x122   : > { %1525 = sbr.rel (%p13338_p7) target bundleno = 3479 (0xd97), region = 136  ;;  %1625 = vmatprep.mubr.bf16.mxu0 (!%p13338_p7), %v15343_v12  ;;  %s15344_s1 = smov (!%p13338_p7), 104   ;;  %v1667_v32 = vunpack.c.l.s4 (!%p13338_p7), %v15352_v31  ;;  %v15353_v33 = vmov (!%p13338_p7), 1934713408   ;;  %v15354_v7 = vmov (!%p13338_p7), 0.0   ;;  %vm15355_vm4 = vmmov (!%p13338_p7), 0  }
 0x123   : > { %v15657_v22 = vshrl.u32 (!%p13338_p7), %v1539_v21, 7  ;;  %s15345_s5 = smov (!%p13338_p7), 120   ;;  %s15346_s26 = smov (!%p13338_p7), 96   ;;  %v1731_v34 = vunpack.c.l.s4 (!%p13338_p7), %v15353_v33  ;;  %14464 = vmatprep.subr.bf16.mxu1 (!%p13338_p7), %v15354_v7  ;;  %14466 = vmatprep.mubr.msk.bf16.mxu1 (!%p13338_p7), %vm15355_vm4, %v15354_v7  ;;  %vm2550_vm5 = vcmask (!%p13338_p7), 64512   ;;  %vm3018_vm6 = vcmask (!%p13338_p7), 1043456  }
 0x124   : > { %s15347_s22 = smov (!%p13338_p7), 112   ;;  %s15348_s11 = smov (!%p13338_p7), 80   ;;  %v1668_v35 = vunpack.c.0.s8 (!%p13338_p7), %v1667_v32  ;;  %vm3685_vm7 = vcmask (!%p13338_p7), 130048   ;;  %vm3687_vm8 = vcmask (!%p13338_p7), 195584   ;;  %vm3689_vm9 = vcmask (!%p13338_p7), 261120  }
 0x125   : > { %v15660_v23 = vsub.s32 (!%p13338_p7), 0, %v15657_v22  ;;  %s15349_s25 = smov (!%p13338_p7), 88   ;;  %s15350_s12 = smov (!%p13338_p7), 64   ;;  %v1732_v40 = vunpack.c.0.s8 (!%p13338_p7), %v1731_v34  ;;  %vm3691_vm10 = vcmask (!%p13338_p7), 326656   ;;  %vm3693_vm11 = vcmask (!%p13338_p7), 392192  }
 0x126   : > { %v1526_v19 = vld [vmem:[#allocation2] sm:$0xff] (!%p13338_p7)  ;;  %s15351_s30 = smov (!%p13338_p7), 72   ;;  %v15679_v41 = vsub.s32 (!%p13338_p7), %v1668_v35, %v15657_v22  ;;  %s17673_s23 = sld [smem:[#allocation11_spill]] (!%p13338_p7)  ;;  %vm3695_vm12 = vcmask (!%p13338_p7), 457728  }
 0x127   : > { %v14884_v10 = vld [vmem:[%s17671_s10 + $0x4] ss:$8 sps:$4 sm:$0xff] (!%p13338_p7)   ;;  %v14886_v11 = vld [vmem:[%s17671_s10] ss:$8 sps:$4 sm:$0xff] (!%p13338_p7)   ;;  %v14887_v13 = vld [vmem:[%s17671_s10 + $0x14] ss:$8 sps:$4 sm:$0xff] (!%p13338_p7)   ;;  %v1537_v20 = vpack.c.bf16 (!%p13338_p7), %v1526_v19, %v1526_v19  ;;  %v15684_v46 = vsub.s32 (!%p13338_p7), %v1732_v40, %v15657_v22 }
 0x128   : > { %1593 = vmatprep.subr.bf16.mxu0 (!%p13338_p7), %v14884_v10  ;;  %v14889_v14 = vld [vmem:[%s17671_s10 + $0x10] ss:$8 sps:$4 sm:$0xff] (!%p13338_p7)   ;;  %v14890_v15 = vld [vmem:[%s17671_s10 + $0x24] ss:$8 sps:$4 sm:$0xff] (!%p13338_p7)   ;;  %v14892_v16 = vld [vmem:[%s17671_s10 + $0x20] ss:$8 sps:$4 sm:$0xff] (!%p13338_p7)  }
 0x129   : > { %1594 = vmatpush1.bf16.msra.mxu0 %v14886_v11  ;;  %v14893_v17 = vld [vmem:[%s17671_s10 + $0x34] ss:$8 sps:$4 sm:$0xff]   ;;  %v14895_v18 = vld [vmem:[%s17671_s10 + $0x30] ss:$8 sps:$4 sm:$0xff]   ;;  %v15663_v24 = vld [vmem:[%s17672_s9] sm:$0x3] }
 0x12a   : > { %1595 = vmatprep.subr.bf16.mxu0 %v14887_v13  ;;  %v1542_v25 = vrot.slane %v15663_v24, %v15660_v23  ;;  %s15356_s10 = smov 16   ;;  %s15357_s9 = smov 8  }
 0x12b   : > { %p13601_p8 = scmp.ne.s32.totalorder %s15532_s4, 5 }
 0x12d   : > { %1596 = vmatpush1.bf16.msra.mxu0 %v14889_v14 }
 0x12e   : > { %1597 = vmatprep.subr.bf16.mxu0 %v14890_v15 }
 0x131   : > { %1598 = vmatpush1.bf16.msra.mxu0 %v14892_v16 }
 0x132   : > { %1599 = vmatprep.subr.bf16.mxu0 %v14893_v17 }
 0x135   : > { %1600 = vmatpush1.bf16.msra.mxu0 %v14895_v18 }
 0x136   : > { %14488 = vmatprep.subr.bf16.mxu0 %v15354_v7 }
 0x138   : > { %13347 = vmatmul.mubr.msk.bf16.vlgmr.msra.gmra.mrb[0].mxu0 %vm1589_vm3, %v1537_v20 }
 0x139   : > { %14490 = vmatprep.mubr.msk.bf16.mxu0 %vm15355_vm4, %v15354_v7 }
 0x20b   : > { %v1627_v26 = vpop.f32.mrb[0].mxu0 }
 0x20c   : > { %v1628_v27 = vadd.f32 %v1627_v26, %v1542_v25  ;;  %v15667_v28 = vpop.f32.mrb[1].mxu0 }
 0x20d   : > { %v1631_v29 = vpop.f32.mrb[2].mxu0 }
 0x20e   : > { %v1632_v30 = vpop.f32.mrb[3].mxu0  ;;  %1649 = vrot.lane.b32.xlu1 %v1628_v27, %s15344_s1  ;;  %1643 = vrot.lane.b32.xlu0 %v1628_v27, %s15345_s5 }
 0x212   : > { %1652 = vrot.lane.b32.xlu1 %v1628_v27, %s15346_s26  ;;  %1646 = vrot.lane.b32.xlu0 %v1628_v27, %s15347_s22 }
 0x216   : > { %1658 = vrot.lane.b32.xlu1 %v1628_v27, %s15348_s11  ;;  %1655 = vrot.lane.b32.xlu0 %v1628_v27, %s15349_s25 }
 0x21a   : > { %1944 = vrot.lane.b32.xlu1 %v1628_v27, %s15350_s12  ;;  %1661 = vrot.lane.b32.xlu0 %v1628_v27, %s15351_s30 }
 0x280   : > { %v1650_v36 = vpop.permute.xlu1 %1649  ;;  %v1644_v37 = vpop.permute.xlu0 %1643 }
 0x281   : > { %v1680_v38 = vcombine.low %v1644_v37, %v1650_v36  ;;  %v1681_v39 = vcombine.high %v1644_v37, %v1650_v36  ;;  %1946 = vrot.lane.b32.xlu0 %v1644_v37, %s15350_s12 }
 0x283   : > { %v1688_v47 = vrot.slane %v1680_v38, %v15679_v41  ;;  %v1695_v48 = vrot.slane %v1681_v39, %v15679_v41 }
 0x284   : > { %v1653_v42 = vpop.permute.xlu1 %1652  ;;  %v1647_v43 = vpop.permute.xlu0 %1646 }
 0x285   : > { %v1664_v44 = vcombine.low %v1628_v27, %v1647_v43  ;;  %v1665_v45 = vcombine.high %v1628_v27, %v1647_v43  ;;  %1950 = vrot.lane.b32.xlu0 %v1650_v36, %s15350_s12  ;;  %1948 = vrot.lane.b32.xlu1 %v1647_v43, %s15350_s12 }
 0x287   : > { %v1672_v49 = vrot.slane %v1664_v44, %v15679_v41  ;;  %v1679_v50 = vrot.slane %v1665_v45, %v15679_v41 }
 0x288   : > { %v1659_v51 = vpop.permute.xlu1 %1658  ;;  %v1656_v52 = vpop.permute.xlu0 %1655 }
 0x289   : > { %v1728_v53 = vcombine.low %v1672_v49, %v1688_v47  ;;  %v1729_v54 = vcombine.high %v1672_v49, %v1688_v47  ;;  %v1744_v55 = vcombine.low %v1679_v50, %v1695_v48  ;;  %v1745_v56 = vcombine.high %v1679_v50, %v1695_v48  ;;  %1952 = vrot.lane.b32.xlu1 %v1653_v42, %s15350_s12 }
 0x28a   : > { %v1696_v57 = vcombine.low %v1653_v42, %v1659_v51  ;;  %v1697_v58 = vcombine.high %v1653_v42, %v1659_v51  ;;  %1954 = vrot.lane.b32.xlu0 %v1656_v52, %s15350_s12 }
 0x28b   : > { %v1736_v59 = vrot.slane %v1728_v53, %v15684_v46  ;;  %v1743_v60 = vrot.slane %v1729_v54, %v15684_v46  ;;  %v1752_v61 = vrot.slane %v1744_v55, %v15684_v46  ;;  %v1759_v62 = vrot.slane %v1745_v56, %v15684_v46 }
 0x28c   : > { %v1662_v63 = vpop.permute.xlu0 %1661  ;;  %v1704_v4 = vrot.slane %v1696_v57, %v15679_v41  ;;  %v1711_v13 = vrot.slane %v1697_v58, %v15679_v41 }
 0x28d   : > { %v13348_v0 = vcombine.low %v1736_v59, %v1743_v60  ;;  %v13350_v1 = vcombine.high %v1736_v59, %v1743_v60  ;;  %v13352_v2 = vcombine.low %v1752_v61, %v1759_v62  ;;  %v13354_v3 = vcombine.high %v1752_v61, %v1759_v62  ;;  %1956 = vrot.lane.b32.xlu1 %v1659_v51, %s15350_s12  ;;  %v1945_v62 = vpop.permute.xlu1 %1944 }
 0x28e   : > { %v1712_v5 = vcombine.low %v1656_v52, %v1662_v63  ;;  %v1713_v6 = vcombine.high %v1656_v52, %v1662_v63  ;;  %1958 = vrot.lane.b32.xlu0 %v1662_v63, %s15350_s12  ;;  %s17675_s12 = sld [smem:[#allocation13_spill]] }
 0x28f   : > { %v1808_v8 = vrot.slane %v13348_v0, %v15679_v41  ;;  %v1824_v9 = vrot.slane %v13350_v1, %v15679_v41  ;;  %v1840_v10 = vrot.slane %v13352_v2, %v15679_v41  ;;  %v1856_v11 = vrot.slane %v13354_v3, %v15679_v41 }
 0x290   : > { %v1720_v14 = vrot.slane %v1712_v5, %v15679_v41  ;;  %v1727_v15 = vrot.slane %v1713_v6, %v15679_v41 }
 0x291   : > { %v1865_v16 = vcombine.high %v1808_v8, %v1824_v9  ;;  %v1897_v17 = vcombine.high %v1840_v10, %v1856_v11  ;;  %v1864_v18 = vcombine.low %v1808_v8, %v1824_v9  ;;  %v1896_v19 = vcombine.low %v1840_v10, %v1856_v11 }
 0x292   : > { %v1760_v20 = vcombine.low %v1704_v4, %v1720_v14  ;;  %v1761_v21 = vcombine.high %v1704_v4, %v1720_v14  ;;  %v1776_v25 = vcombine.low %v1711_v13, %v1727_v15  ;;  %v1777_v26 = vcombine.high %v1711_v13, %v1727_v15 }
 0x293   : > { %v1872_v27 = vrot.slane %v1864_v18, %v15684_v46  ;;  %v1904_v29 = vrot.slane %v1896_v19, %v15684_v46  ;;  %v1879_v30 = vrot.slane %v1865_v16, %v15684_v46  ;;  %v1911_v31 = vrot.slane %v1897_v17, %v15684_v46 }
 0x294   : > { %v1768_v32 = vrot.slane %v1760_v20, %v15684_v46  ;;  %v1775_v33 = vrot.slane %v1761_v21, %v15684_v46  ;;  %v1784_v34 = vrot.slane %v1776_v25, %v15684_v46  ;;  %v1791_v35 = vrot.slane %v1777_v26, %v15684_v46 }
 0x295   : > { %v15720_v36 = vcombine.low %v1872_v27, %v1904_v29  ;;  %v15722_v37 = vcombine.high %v1872_v27, %v1904_v29  ;;  %v15724_v38 = vcombine.low %v1879_v30, %v1911_v31  ;;  %v15726_v39 = vcombine.high %v1879_v30, %v1911_v31 }
 0x296   : > { %v13349_v40 = vcombine.low %v1768_v32, %v1775_v33  ;;  %v13351_v42 = vcombine.high %v1768_v32, %v1775_v33  ;;  %v13353_v43 = vcombine.low %v1784_v34, %v1791_v35  ;;  %v13355_v44 = vcombine.high %v1784_v34, %v1791_v35 }
 0x298   : > { %v1815_v45 = vrot.slane %v13349_v40, %v15679_v41  ;;  %v1831_v47 = vrot.slane %v13351_v42, %v15679_v41  ;;  %v1847_v48 = vrot.slane %v13353_v43, %v15679_v41  ;;  %v1863_v49 = vrot.slane %v13355_v44, %v15679_v41 }
 0x29a   : > { %v1880_v50 = vcombine.low %v1815_v45, %v1831_v47  ;;  %v1881_v51 = vcombine.high %v1815_v45, %v1831_v47  ;;  %v1912_v52 = vcombine.low %v1847_v48, %v1863_v49  ;;  %v1913_v53 = vcombine.high %v1847_v48, %v1863_v49 }
 0x29c   : > { %v1888_v54 = vrot.slane %v1880_v50, %v15684_v46  ;;  %v1920_v55 = vrot.slane %v1912_v52, %v15684_v46  ;;  %v1895_v56 = vrot.slane %v1881_v51, %v15684_v46  ;;  %v1927_v57 = vrot.slane %v1913_v53, %v15684_v46 }
 0x29e   : > { %v15736_v58 = vcombine.low %v1888_v54, %v1920_v55  ;;  %v15738_v59 = vcombine.low %v1895_v56, %v1927_v57  ;;  %v15740_v60 = vcombine.high %v1888_v54, %v1920_v55  ;;  %v15742_v61 = vcombine.high %v1895_v56, %v1927_v57 }
 0x2f3   : > { %v1947_v63 = vpop.permute.xlu0 %1946 }
 0x2f7   : > { %v1949_v0 = vpop.permute.xlu1 %1948  ;;  %v1951_v1 = vpop.permute.xlu0 %1950 }
 0x2f8   : > { %v1968_v2 = vcombine.low %v1945_v62, %v1949_v0  ;;  %v1969_v3 = vcombine.high %v1945_v62, %v1949_v0  ;;  %v1984_v4 = vcombine.low %v1947_v63, %v1951_v1  ;;  %v1985_v5 = vcombine.high %v1947_v63, %v1951_v1 }
 0x2fa   : > { %v1976_v6 = vrot.slane %v1968_v2, %v15679_v41  ;;  %v1983_v8 = vrot.slane %v1969_v3, %v15679_v41  ;;  %v1992_v9 = vrot.slane %v1984_v4, %v15679_v41  ;;  %v1999_v10 = vrot.slane %v1985_v5, %v15679_v41 }
 0x2fb   : > { %v1953_v11 = vpop.permute.xlu1 %1952 }
 0x2fc   : > { %v2032_v13 = vcombine.low %v1976_v6, %v1992_v9  ;;  %v2033_v14 = vcombine.high %v1976_v6, %v1992_v9  ;;  %v2048_v15 = vcombine.low %v1983_v8, %v1999_v10  ;;  %v2049_v16 = vcombine.high %v1983_v8, %v1999_v10  ;;  %v1955_v17 = vpop.permute.xlu0 %1954 }
 0x2fe   : > { %v2040_v18 = vrot.slane %v2032_v13, %v15684_v46  ;;  %v2047_v19 = vrot.slane %v2033_v14, %v15684_v46  ;;  %v2056_v20 = vrot.slane %v2048_v15, %v15684_v46  ;;  %v2063_v21 = vrot.slane %v2049_v16, %v15684_v46 }
 0x2ff   : > { %v1957_v25 = vpop.permute.xlu1 %1956 }
 0x300   : > { %v13356_v26 = vcombine.low %v2040_v18, %v2047_v19  ;;  %v13358_v27 = vcombine.high %v2040_v18, %v2047_v19  ;;  %v13360_v29 = vcombine.low %v2056_v20, %v2063_v21  ;;  %v13362_v30 = vcombine.high %v2056_v20, %v2063_v21  ;;  %v1959_v31 = vpop.permute.xlu0 %1958 }
 0x301   : > { %v2000_v32 = vcombine.low %v1953_v11, %v1957_v25  ;;  %v2001_v33 = vcombine.high %v1953_v11, %v1957_v25  ;;  %v2016_v34 = vcombine.low %v1955_v17, %v1959_v31  ;;  %v2017_v35 = vcombine.high %v1955_v17, %v1959_v31 }
 0x302   : > { %v2112_v40 = vrot.slane %v13356_v26, %v15679_v41  ;;  %v2128_v42 = vrot.slane %v13358_v27, %v15679_v41  ;;  %v2144_v43 = vrot.slane %v13360_v29, %v15679_v41  ;;  %v2160_v44 = vrot.slane %v13362_v30, %v15679_v41 }
 0x303   : > { %v2008_v45 = vrot.slane %v2000_v32, %v15679_v41  ;;  %v2015_v47 = vrot.slane %v2001_v33, %v15679_v41  ;;  %v2024_v48 = vrot.slane %v2016_v34, %v15679_v41  ;;  %v2031_v49 = vrot.slane %v2017_v35, %v15679_v41 }
 0x304   : > { %v2168_v50 = vcombine.low %v2112_v40, %v2128_v42  ;;  %v2200_v51 = vcombine.low %v2144_v43, %v2160_v44  ;;  %v2169_v16 = vcombine.high %v2112_v40, %v2128_v42  ;;  %v2201_v17 = vcombine.high %v2144_v43, %v2160_v44 }
 0x305   : > { %v2064_v52 = vcombine.low %v2008_v45, %v2024_v48  ;;  %v2065_v53 = vcombine.high %v2008_v45, %v2024_v48  ;;  %v2080_v54 = vcombine.low %v2015_v47, %v2031_v49  ;;  %v2081_v55 = vcombine.high %v2015_v47, %v2031_v49 }
 0x306   : > { %v2176_v56 = vrot.slane %v2168_v50, %v15684_v46  ;;  %v2208_v57 = vrot.slane %v2200_v51, %v15684_v46  ;;  %v2183_v29 = vrot.slane %v2169_v16, %v15684_v46  ;;  %v2215_v30 = vrot.slane %v2201_v17, %v15684_v46 }
 0x307   : > { %v2072_v62 = vrot.slane %v2064_v52, %v15684_v46  ;;  %v2079_v63 = vrot.slane %v2065_v53, %v15684_v46  ;;  %v2088_v0 = vrot.slane %v2080_v54, %v15684_v46  ;;  %v2095_v1 = vrot.slane %v2081_v55, %v15684_v46 }
 0x308   : > { %v2232_v2 = vcombine.low %v2176_v56, %v2208_v57  ;;  %v2233_v15 = vcombine.high %v2176_v56, %v2208_v57  ;;  %v1936_v34 = vpack.c.bf16 %v15720_v36, %v15720_v36  ;;  %v2234_v42 = vcombine.low %v2183_v29, %v2215_v30 }
 0x309   : > { %v13357_v3 = vcombine.low %v2072_v62, %v2079_v63  ;;  %v13359_v4 = vcombine.high %v2072_v62, %v2079_v63  ;;  %v13361_v5 = vcombine.low %v2088_v0, %v2095_v1  ;;  %v13363_v6 = vcombine.high %v2088_v0, %v2095_v1 }
 0x30a   : > { %v2240_v8 = vpack.c.bf16 %v2232_v2, %v2232_v2  ;;  %v2241_v27 = vpack.c.bf16 %v2233_v15, %v2233_v15  ;;  %v2242_v45 = vpack.c.bf16 %v2234_v42, %v2234_v42  ;;  %v1937_v47 = vpack.c.bf16 %v15722_v37, %v15722_v37 }
 0x30b   : > { %v2119_v9 = vrot.slane %v13357_v3, %v15679_v41  ;;  %v2135_v10 = vrot.slane %v13359_v4, %v15679_v41  ;;  %v2151_v11 = vrot.slane %v13361_v5, %v15679_v41  ;;  %v2167_v13 = vrot.slane %v13363_v6, %v15679_v41 }
 0x30c   : > { %v2555_v14 = vsel %vm2550_vm5, %v2240_v8, 0  ;;  %v2601_v40 = vsel %vm2550_vm5, %v2241_v27, 0  ;;  %v1940_v48 = vpack.c.bf16 %v15736_v58, %v15736_v58  ;;  %v2647_v49 = vsel %vm2550_vm5, %v2242_v45, 0 }
 0x30d   : > { %14465 = vmatpush3.bf16.xpose.msra.mxu1 %v2555_v14  ;;  %v2184_v18 = vcombine.low %v2119_v9, %v2135_v10  ;;  %v2216_v19 = vcombine.low %v2151_v11, %v2167_v13  ;;  %v2185_v20 = vcombine.high %v2119_v9, %v2135_v10  ;;  %v2217_v21 = vcombine.high %v2151_v11, %v2167_v13 }
 0x30e   : > { %14470 = vmatprep.subr.bf16.mxu1 %v15354_v7  ;;  %v2235_v50 = vcombine.high %v2183_v29, %v2215_v30  ;;  %v1938_v58 = vpack.c.bf16 %v15724_v38, %v15724_v38  ;;  %v1942_v52 = vpack.c.bf16 %v15738_v59, %v15738_v59  ;;  %v1939_v59 = vpack.c.bf16 %v15726_v39, %v15726_v39 }
 0x30f   : > { %v2192_v25 = vrot.slane %v2184_v18, %v15684_v46  ;;  %v2224_v26 = vrot.slane %v2216_v19, %v15684_v46  ;;  %v2199_v32 = vrot.slane %v2185_v20, %v15684_v46  ;;  %v2231_v33 = vrot.slane %v2217_v21, %v15684_v46 }
 0x310   : > { %v2243_v37 = vpack.c.bf16 %v2235_v50, %v2235_v50  ;;  %v1941_v62 = vpack.c.bf16 %v15740_v60, %v15740_v60  ;;  %v1943_v39 = vpack.c.bf16 %v15742_v61, %v15742_v61  ;;  %v15834_v5 = vsub.s32 1, %v15657_v22 }
 0x311   : > { %v2236_v31 = vcombine.low %v2192_v25, %v2224_v26  ;;  %v2238_v44 = vcombine.low %v2199_v32, %v2231_v33  ;;  %v2237_v54 = vcombine.high %v2192_v25, %v2224_v26  ;;  %v2239_v56 = vcombine.high %v2199_v32, %v2231_v33 }
 0x312   : > { %v2693_v53 = vsel %vm2550_vm5, %v2243_v37, 0  ;;  %v1546_v15 = vrot.slane %v15663_v24, %v15834_v5 }
 0x313   : > { %v2244_v35 = vpack.c.bf16 %v2236_v31, %v2236_v31  ;;  %v2246_v36 = vpack.c.bf16 %v2238_v44, %v2238_v44  ;;  %v2245_v38 = vpack.c.bf16 %v2237_v54, %v2237_v54  ;;  %v2247_v57 = vpack.c.bf16 %v2239_v56, %v2239_v56 }
 0x314   : > { %14467 = vmatmul.mubr.msk.bf16.vlgmr.msra.gmra.mrb[0].mxu1 %vm2550_vm5, %v1936_v34  ;;  %v15841_v18 = vadd.f32 %v15667_v28, %v1546_v15 }
 0x315   : > { %14471 = vmatpush3.bf16.xpose.msra.mxu1 %v2601_v40  ;;  %v2739_v43 = vsel %vm2550_vm5, %v2244_v35, 0  ;;  %14472 = vmatprep.mubr.msk.bf16.mxu1 %vm15355_vm4, %v15354_v7  ;;  %v2831_v51 = vsel %vm2550_vm5, %v2246_v36, 0  ;;  %v2785_v55 = vsel %vm2550_vm5, %v2245_v38, 0  ;;  %v2877_v63 = vsel %vm2550_vm5, %v2247_v57, 0 }
 0x316   : > { %14489 = vmatpush3.bf16.xpose.msra.mxu0 %v2739_v43  ;;  %14476 = vmatprep.subr.bf16.mxu1 %v15354_v7 }
 0x317   : > { %14500 = vmatprep.subr.bf16.mxu0 %v15354_v7 }
 0x31c   : > { %14473 = vmatmul.mubr.msk.bf16.vlgmr.msra.gmra.mrb[4].mxu1 %vm2550_vm5, %v1937_v47 }
 0x31d   : > { %14491 = vmatmul.mubr.msk.bf16.vlgmr.msra.gmra.mrb[4].mxu0 %vm2550_vm5, %v1940_v48  ;;  %14477 = vmatpush3.bf16.xpose.msra.mxu1 %v2647_v49 }
 0x31e   : > { %14501 = vmatpush3.bf16.xpose.msra.mxu0 %v2831_v51  ;;  %14478 = vmatprep.mubr.msk.bf16.mxu1 %vm15355_vm4, %v15354_v7 }
 0x31f   : > { %14502 = vmatprep.mubr.msk.bf16.mxu0 %vm15355_vm4, %v15354_v7  ;;  %14482 = vmatprep.subr.bf16.mxu1 %v15354_v7 }
 0x320   : > { %14512 = vmatprep.subr.bf16.mxu0 %v15354_v7 }
 0x324   : > { %14479 = vmatmul.mubr.msk.bf16.vlgmr.msra.gmra.mrb[8].mxu1 %vm2550_vm5, %v1938_v58 }
 0x325   : > { %14503 = vmatmul.mubr.msk.bf16.vlgmr.msra.gmra.mrb[8].mxu0 %vm2550_vm5, %v1942_v52  ;;  %14483 = vmatpush3.bf16.xpose.msra.mxu1 %v2693_v53 }
 0x326   : > { %14484 = vmatprep.mubr.msk.bf16.mxu1 %vm15355_vm4, %v15354_v7  ;;  %14494 = vmatprep.subr.bf16.mxu1 %v15354_v7 }
 0x327   : > { %14514 = vmatprep.mubr.msk.bf16.mxu0 %vm15355_vm4, %v15354_v7 }
 0x32c   : > { %14485 = vmatmul.mubr.msk.bf16.vlgmr.msra.gmra.mrb[12].mxu1 %vm2550_vm5, %v1939_v59 }
 0x32d   : > { %14495 = vmatpush3.bf16.xpose.msra.mxu1 %v2785_v55  ;;  %14496 = vmatprep.mubr.msk.bf16.mxu1 %vm15355_vm4, %v15354_v7 }
 0x32e   : > { %14506 = vmatprep.subr.bf16.mxu1 %v15354_v7 }
 0x334   : > { %14497 = vmatmul.mubr.msk.bf16.vlgmr.msra.gmra.mrb[16].mxu1 %vm2550_vm5, %v1941_v62 }
 0x335   : > { %14507 = vmatpush3.bf16.xpose.msra.mxu1 %v2877_v63  ;;  %14508 = vmatprep.mubr.msk.bf16.mxu1 %vm15355_vm4, %v15354_v7 }
 0x336   : > { %14518 = vmatprep.subr.bf16.mxu1 %v15354_v7 }
 0x33c   : > { %14509 = vmatmul.mubr.msk.bf16.vlgmr.msra.gmra.mrb[20].mxu1 %vm2550_vm5, %v1943_v39 }
 0x33d   : > { %14520 = vmatprep.mubr.msk.bf16.mxu1 %vm15355_vm4, %v15354_v7 }
 0x3e7   : > { %v2591_v0 = vpop.f32.mrb[0].mxu1 }
 0x3e8   : > { %v14468_v60 = vpop.f32.mrb[1].mxu1  ;;  %v2919_v1 = vsel %vm2550_vm5, %v2591_v0, -inf }
 0x3e9   : > { %2920 = vmax.xlane.f32.xlu1 %v2919_v1  ;;  %v2594_v2 = vpop.f32.mrb[2].mxu1 }
 0x3ea   : > { %v14469_v3 = vpop.f32.mrb[3].mxu1 }
 0x3ef   : > { %v2637_v4 = vpop.f32.mrb[4].mxu1 }
 0x3f0   : > { %v2775_v6 = vpop.f32.mrb[4].mxu0  ;;  %v14474_v8 = vpop.f32.mrb[5].mxu1  ;;  %v2922_v16 = vsel %vm2550_vm5, %v2637_v4, -inf }
 0x3f1   : > { %v14492_v9 = vpop.f32.mrb[5].mxu0  ;;  %v2640_v61 = vpop.f32.mrb[6].mxu1  ;;  %v2931_v10 = vsel %vm2550_vm5, %v2775_v6, -inf }
 0x3f2   : > { %2932 = vmax.xlane.f32.xlu0 %v2931_v10  ;;  %v2778_v11 = vpop.f32.mrb[6].mxu0  ;;  %v14475_v13 = vpop.f32.mrb[7].mxu1 }
 0x3f3   : > { %v14493_v14 = vpop.f32.mrb[7].mxu0 }
 0x3f6   : > { %2923 = vmax.xlane.f32.xlu0 %v2922_v16 }
 0x3f7   : > { %v2683_v17 = vpop.f32.mrb[8].mxu1 }
 0x3f8   : > { %v15843_v19 = vpop.f32.mrb[8].mxu0  ;;  %v14480_v20 = vpop.f32.mrb[9].mxu1  ;;  %v2925_v30 = vsel %vm2550_vm5, %v2683_v17, -inf }
 0x3f9   : > { %v14504_v21 = vpop.f32.mrb[9].mxu0  ;;  %v2686_v25 = vpop.f32.mrb[10].mxu1  ;;  %v2937_v26 = vsel %vm2550_vm5, %v15843_v19, -inf }
 0x3fa   : > { %2938 = vmax.xlane.f32.xlu0 %v2937_v26  ;;  %v2870_v27 = vpop.f32.mrb[10].mxu0  ;;  %2252 = vrot.lane.b32.xlu1 %v15841_v18, %s15347_s22  ;;  %v14481_v24 = vpop.f32.mrb[11].mxu1  ;;  %s15361_s22 = smov 56  }
 0x3fb   : > { %v14505_v29 = vpop.f32.mrb[11].mxu0 }
 0x3fe   : > { %2926 = vmax.xlane.f32.xlu0 %v2925_v30  ;;  %2255 = vrot.lane.b32.xlu1 %v15841_v18, %s15344_s1  ;;  %s15358_s1 = smov 24  }
 0x3ff   : > { %v15852_v28 = vpop.f32.mrb[12].mxu1 }
 0x400   : > { %v14486_v31 = vpop.f32.mrb[13].mxu1  ;;  %v2928_v47 = vsel %vm2550_vm5, %v15852_v28, -inf }
 0x401   : > { %v2732_v32 = vpop.f32.mrb[14].mxu1 }
 0x402   : > { %v14487_v33 = vpop.f32.mrb[15].mxu1 }
 0x407   : > { %v15854_v34 = vpop.f32.mrb[16].mxu1 }
 0x408   : > { %v14498_v35 = vpop.f32.mrb[17].mxu1  ;;  %v2934_v48 = vsel %vm2550_vm5, %v15854_v34, -inf }
 0x409   : > { %v2824_v40 = vpop.f32.mrb[18].mxu1 }
 0x40a   : > { %v14499_v42 = vpop.f32.mrb[19].mxu1 }
 0x40f   : > { %v15856_v43 = vpop.f32.mrb[20].mxu1 }
 0x410   : > { %v14510_v44 = vpop.f32.mrb[21].mxu1  ;;  %v2940_v49 = vsel %vm2550_vm5, %v15856_v43, -inf }
 0x411   : > { %v2916_v45 = vpop.f32.mrb[22].mxu1 }
 0x412   : > { %v14511_v36 = vpop.f32.mrb[23].mxu1 }
 0x414   : > { %2249 = vrot.lane.b32.xlu0 %v15841_v18, %s15345_s5  ;;  %s15359_s5 = smov 40  }
 0x422   : > { %2929 = vmax.xlane.f32.xlu1 %v2928_v47 }
 0x426   : > { %2935 = vmax.xlane.f32.xlu1 %v2934_v48 }
 0x42a   : > { %2941 = vmax.xlane.f32.xlu1 %v2940_v49 }
 0x43b   : > { %2258 = vrot.lane.b32.xlu1 %v15841_v18, %s15346_s26  ;;  %s15360_s26 = smov 32  }
 0x476   : > { %v2921_v50 = vpop.xlane.xlu1 %2920 }
 0x477   : > { %v2943_v51 = vsub.f32 %v2591_v0, %v2921_v50 }
 0x479   : > { %v2951_v37 = vmul.f32 1.442695, %v2943_v51 }
 0x47a   : > { %v2253_v63 = vpop.permute.xlu1 %2252 }
 0x47b   : > { %15028 = vpow2.f32 %v2951_v37  ;;  %v2270_v1 = vcombine.low %v15841_v18, %v2253_v63  ;;  %v2271_v2 = vcombine.high %v15841_v18, %v2253_v63 }
 0x47d   : > { %v2278_v11 = vrot.slane %v2270_v1, %v15679_v41  ;;  %v2285_v13 = vrot.slane %v2271_v2, %v15679_v41 }
 0x47f   : > { %v2933_v58 = vpop.xlane.xlu0 %2932 }
 0x480   : > { %v2947_v52 = vsub.f32 %v2775_v6, %v2933_v58 }
 0x482   : > { %v2959_v53 = vmul.f32 1.442695, %v2947_v52 }
 0x483   : > { %v2924_v54 = vpop.xlane.xlu0 %2923 }
 0x484   : > { %15030 = vpow2.f32 %v2959_v53  ;;  %v2944_v38 = vsub.f32 %v2637_v4, %v2924_v54  ;;  %v2256_v4 = vpop.permute.xlu1 %2255 }
 0x485   : > { %v15868_v59 = vpop.eup %15028 }
 0x486   : > { %v2953_v55 = vmul.f32 1.442695, %v2944_v38  ;;  %v2967_v56 = vsel %vm2550_vm5, %v15868_v59, 0.0 }
 0x487   : > { %v15872_v57 = vpop.xlane.xlu0 %2938  ;;  %2968 = vadd.xlane.f32.xlu0 %v2967_v56 }
 0x488   : > { %15032 = vpow2.f32 %v2953_v55  ;;  %v2949_v62 = vsub.f32 %v15843_v19, %v15872_v57 }
 0x48b   : > { %v2927_v39 = vpop.xlane.xlu0 %2926 }
 0x48c   : > { %v2945_v0 = vsub.f32 %v2683_v17, %v2927_v39 }
 0x48e   : > { %v15876_v60 = vpop.eup %15030  ;;  %v2955_v3 = vmul.f32 1.442695, %v2945_v0 }
 0x48f   : > { %v2250_v6 = vpop.permute.xlu0 %2249  ;;  %v2979_v8 = vsel %vm2550_vm5, %v15876_v60, 0.0 }
 0x490   : > { %15034 = vpow2.f32 %v2955_v3  ;;  %v2286_v9 = vcombine.low %v2250_v6, %v2256_v4  ;;  %v2287_v61 = vcombine.high %v2250_v6, %v2256_v4  ;;  %2980 = vadd.xlane.f32.xlu0 %v2979_v8 }
 0x492   : > { %v15882_v10 = vpop.eup %15032  ;;  %v2294_v14 = vrot.slane %v2286_v9, %v15679_v41  ;;  %v2301_v15 = vrot.slane %v2287_v61, %v15679_v41 }
 0x493   : > { %v2970_v16 = vsel %vm2550_vm5, %v15882_v10, 0.0 }
 0x494   : > { %v2334_v17 = vcombine.low %v2278_v11, %v2294_v14  ;;  %v2335_v20 = vcombine.high %v2278_v11, %v2294_v14  ;;  %v2350_v21 = vcombine.low %v2285_v13, %v2301_v15  ;;  %v2351_v25 = vcombine.high %v2285_v13, %v2301_v15  ;;  %2971 = vadd.xlane.f32.xlu1 %v2970_v16 }
 0x495   : > { %v2963_v14 = vmul.f32 1.442695, %v2949_v62 }
 0x496   : > { %v2342_v26 = vrot.slane %v2334_v17, %v15684_v46  ;;  %v2349_v27 = vrot.slane %v2335_v20, %v15684_v46  ;;  %v2358_v24 = vrot.slane %v2350_v21, %v15684_v46  ;;  %v2365_v29 = vrot.slane %v2351_v25, %v15684_v46 }
 0x498   : > { %v13364_v30 = vcombine.low %v2342_v26, %v2349_v27  ;;  %v13366_v31 = vcombine.high %v2342_v26, %v2349_v27  ;;  %v13368_v32 = vcombine.low %v2358_v24, %v2365_v29  ;;  %v13370_v33 = vcombine.high %v2358_v24, %v2365_v29 }
 0x49a   : > { %v15894_v35 = vpop.eup %15034  ;;  %v2414_v40 = vrot.slane %v13364_v30, %v15679_v41  ;;  %v2430_v42 = vrot.slane %v13366_v31, %v15679_v41  ;;  %v2446_v44 = vrot.slane %v13368_v32, %v15679_v41  ;;  %v2462_v45 = vrot.slane %v13370_v33, %v15679_v41 }
 0x49b   : > { %v2973_v36 = vsel %vm2550_vm5, %v15894_v35, 0.0 }
 0x49c   : > { %2974 = vadd.xlane.f32.xlu0 %v2973_v36  ;;  %v2470_v47 = vcombine.low %v2414_v40, %v2430_v42  ;;  %v2502_v48 = vcombine.low %v2446_v44, %v2462_v45  ;;  %v2471_v49 = vcombine.high %v2414_v40, %v2430_v42  ;;  %v2503_v50 = vcombine.high %v2446_v44, %v2462_v45 }
 0x49e   : > { %v2478_v51 = vrot.slane %v2470_v47, %v15684_v46  ;;  %v2510_v37 = vrot.slane %v2502_v48, %v15684_v46  ;;  %v2485_v58 = vrot.slane %v2471_v49, %v15684_v46  ;;  %v2517_v52 = vrot.slane %v2503_v50, %v15684_v46 }
 0x4a0   : > { %v2534_v53 = vcombine.low %v2478_v51, %v2510_v37  ;;  %v2535_v54 = vcombine.high %v2478_v51, %v2510_v37  ;;  %v2536_v38 = vcombine.low %v2485_v58, %v2517_v52  ;;  %v2537_v55 = vcombine.high %v2485_v58, %v2517_v52 }
 0x4a2   : > { %v2542_v56 = vpack.c.bf16 %v2534_v53, %v2534_v53  ;;  %v2543_v63 = vpack.c.bf16 %v2535_v54, %v2535_v54  ;;  %v2544_v62 = vpack.c.bf16 %v2536_v38, %v2536_v38  ;;  %v2545_v31 = vpack.c.bf16 %v2537_v55, %v2537_v55 }
 0x4a4   : > { %v3020_v39 = vsel %vm3018_vm6, %v2542_v56, 0  ;;  %v3066_v0 = vsel %vm3018_vm6, %v2543_v63, 0  ;;  %v3112_v27 = vsel %vm3018_vm6, %v2544_v62, 0  ;;  %v3158_v33 = vsel %vm3018_vm6, %v2545_v31, 0 }
 0x4a5   : > { %14513 = vmatpush3.bf16.msra.mxu0 %v3020_v39  ;;  %14519 = vmatpush3.bf16.msra.mxu1 %v3066_v0 }
 0x4a6   : > { %14524 = vmatprep.subr.bf16.mxu0 %v15354_v7  ;;  %14530 = vmatprep.subr.bf16.mxu1 %v15354_v7 }
 0x4af   : > { %v2930_v1 = vpop.xlane.xlu1 %2929 }
 0x4b0   : > { %v2946_v2 = vsub.f32 %v15852_v28, %v2930_v1 }
 0x4b2   : > { %v2957_v3 = vmul.f32 1.442695, %v2946_v2 }
 0x4b3   : > { %v2936_v4 = vpop.xlane.xlu1 %2935 }
 0x4b4   : > { %15036 = vpow2.f32 %v2957_v3  ;;  %v2948_v6 = vsub.f32 %v15854_v34, %v2936_v4 }
 0x4b6   : > { %v2961_v8 = vmul.f32 1.442695, %v2948_v6 }
 0x4b7   : > { %v2942_v28 = vpop.xlane.xlu1 %2941 }
 0x4b8   : > { %15038 = vpow2.f32 %v2961_v8  ;;  %v2950_v34 = vsub.f32 %v15856_v43, %v2942_v28 }
 0x4b9   : > { %15040 = vpow2.f32 %v2963_v14 }
 0x4ba   : > { %v2965_v15 = vmul.f32 1.442695, %v2950_v34 }
 0x4bb   : > { %v2259_v21 = vpop.permute.xlu1 %2258 }
 0x4bc   : > { %15042 = vpow2.f32 %v2965_v15 }
 0x4be   : > { %v15912_v9 = vpop.eup %15036 }
 0x4bf   : > { %v2976_v61 = vsel %vm2550_vm5, %v15912_v9, 0.0 }
 0x4c0   : > { %2977 = vadd.xlane.f32.xlu1 %v2976_v61 }
 0x4c2   : > { %v15916_v11 = vpop.eup %15038 }
 0x4c3   : > { %v2982_v13 = vsel %vm2550_vm5, %v15916_v11, 0.0  ;;  %v15930_v16 = vpop.eup %15040 }
 0x4c4   : > { %2983 = vadd.xlane.f32.xlu0 %v2982_v13 }
 0x4c6   : > { %v15932_v17 = vpop.eup %15042 }
 0x4c7   : > { %v2988_v20 = vsel %vm2550_vm5, %v15932_v17, 0.0 }
 0x4d1   : > { %2264 = vrot.lane.b32.xlu1 %v15841_v18, %s15348_s11  ;;  %s15362_s11 = smov 48  }
 0x4d5   : > { %2267 = vrot.lane.b32.xlu1 %v15841_v18, %s15351_s30  ;;  %s17676_s30 = sld [smem:[#allocation14_spill]] }
 0x4da   : > { %2261 = vrot.lane.b32.xlu0 %v15841_v18, %s15349_s25  ;;  %v2985_v18 = vsel %vm2550_vm5, %v15930_v16, 0.0  ;;  %s17674_s25 = sld [smem:[#allocation12_spill]] }
 0x4f9   : > { %2989 = vadd.xlane.f32.xlu1 %v2988_v20  ;;  %2986 = vadd.xlane.f32.xlu0 %v2985_v18 }
 0x514   : > { %v2969_v43 = vpop.xlane.xlu0 %2968 }
 0x515   : > { %15044 = vrcp.f32 %v2969_v43 }
 0x51d   : > { %v2981_v24 = vpop.xlane.xlu0 %2980 }
 0x51f   : > { %v15045_v19 = vpop.eup %15044 }
 0x520   : > { %v2992_v57 = vmul.f32 %v15045_v19, %v15868_v59 }
 0x521   : > { %v2972_v25 = vpop.xlane.xlu1 %2971 }
 0x522   : > { %15046 = vrcp.f32 %v2972_v25  ;;  %v3007_v26 = vpack.c.bf16 %v2992_v57, %v2992_v57 }
 0x524   : > { %14515 = vmatmul.mubr.msk.bf16.vlgmr.msra.gmra.mrb[12].mxu0 %vm2550_vm5, %v3007_v26 }
 0x525   : > { %14525 = vmatpush3.bf16.msra.mxu0 %v3112_v27  ;;  %14526 = vmatprep.mubr.msk.bf16.mxu0 %vm15355_vm4, %v15354_v7 }
 0x526   : > { %14536 = vmatprep.subr.bf16.mxu0 %v15354_v7 }
 0x529   : > { %v2975_v29 = vpop.xlane.xlu0 %2974 }
 0x52a   : > { %15048 = vrcp.f32 %v2975_v29 }
 0x52c   : > { %v15047_v30 = vpop.eup %15046 }
 0x52d   : > { %v2994_v59 = vmul.f32 %v15047_v30, %v15882_v10 }
 0x52f   : > { %v3008_v32 = vpack.c.bf16 %v2994_v59, %v2994_v59 }
 0x531   : > { %14521 = vmatmul.mubr.msk.bf16.vlgmr.msra.gmra.mrb[24].mxu1 %vm2550_vm5, %v3008_v32 }
 0x532   : > { %14531 = vmatpush3.bf16.msra.mxu1 %v3158_v33  ;;  %14532 = vmatprep.mubr.msk.bf16.mxu1 %vm15355_vm4, %v15354_v7 }
 0x533   : > { %14542 = vmatprep.subr.bf16.mxu1 %v15354_v7 }
 0x534   : > { %v15049_v40 = vpop.eup %15048 }
 0x535   : > { %v2996_v42 = vmul.f32 %v15049_v40, %v15894_v35 }
 0x537   : > { %v3009_v44 = vpack.c.bf16 %v2996_v42, %v2996_v42 }
 0x539   : > { %14527 = vmatmul.mubr.msk.bf16.vlgmr.msra.gmra.mrb[16].mxu0 %vm2550_vm5, %v3009_v44 }
 0x53a   : > { %14538 = vmatprep.mubr.msk.bf16.mxu0 %vm15355_vm4, %v15354_v7 }
 0x54d   : > { %v2978_v10 = vpop.xlane.xlu1 %2977 }
 0x54e   : > { %15050 = vrcp.f32 %v2978_v10 }
 0x54f   : > { %15052 = vrcp.f32 %v2981_v24 }
 0x551   : > { %v2265_v45 = vpop.permute.xlu1 %2264  ;;  %v2984_v36 = vpop.xlane.xlu0 %2983 }
 0x552   : > { %v2302_v47 = vcombine.low %v2259_v21, %v2265_v45  ;;  %v2303_v48 = vcombine.high %v2259_v21, %v2265_v45  ;;  %15054 = vrcp.f32 %v2984_v36 }
 0x554   : > { %v2310_v52 = vrot.slane %v2302_v47, %v15679_v41  ;;  %v2317_v35 = vrot.slane %v2303_v48, %v15679_v41 }
 0x555   : > { %v2268_v49 = vpop.permute.xlu1 %2267  ;;  %v2262_v50 = vpop.permute.xlu0 %2261 }
 0x556   : > { %v2318_v51 = vcombine.low %v2262_v50, %v2268_v49  ;;  %v2319_v37 = vcombine.high %v2262_v50, %v2268_v49 }
 0x558   : > { %v15051_v58 = vpop.eup %15050  ;;  %v2326_v53 = vrot.slane %v2318_v51, %v15679_v41  ;;  %v2333_v54 = vrot.slane %v2319_v37, %v15679_v41 }
 0x559   : > { %v2998_v38 = vmul.f32 %v15051_v58, %v15912_v9  ;;  %v15053_v21 = vpop.eup %15052 }
 0x55a   : > { %v2366_v55 = vcombine.low %v2310_v52, %v2326_v53  ;;  %v2367_v56 = vcombine.high %v2310_v52, %v2326_v53  ;;  %v2382_v63 = vcombine.low %v2317_v35, %v2333_v54  ;;  %v2383_v39 = vcombine.high %v2317_v35, %v2333_v54 }
 0x55b   : > { %v3010_v0 = vpack.c.bf16 %v2998_v38, %v2998_v38  ;;  %v3000_v59 = vmul.f32 %v15053_v21, %v15876_v60 }
 0x55c   : > { %v2374_v1 = vrot.slane %v2366_v55, %v15684_v46  ;;  %v2381_v2 = vrot.slane %v2367_v56, %v15684_v46  ;;  %v2390_v3 = vrot.slane %v2382_v63, %v15684_v46  ;;  %v2397_v4 = vrot.slane %v2383_v39, %v15684_v46  ;;  %v15055_v26 = vpop.eup %15054 }
 0x55d   : > { %14533 = vmatmul.mubr.msk.bf16.vlgmr.msra.gmra.mrb[28].mxu1 %vm2550_vm5, %v3010_v0  ;;  %v3002_v31 = vmul.f32 %v15055_v26, %v15916_v11  ;;  %v3011_v45 = vpack.c.bf16 %v3000_v59, %v3000_v59 }
 0x55e   : > { %v13365_v6 = vcombine.low %v2374_v1, %v2381_v2  ;;  %v13367_v8 = vcombine.high %v2374_v1, %v2381_v2  ;;  %v13369_v61 = vcombine.low %v2390_v3, %v2397_v4  ;;  %v13371_v9 = vcombine.high %v2390_v3, %v2397_v4  ;;  %14544 = vmatprep.mubr.msk.bf16.mxu1 %vm15355_vm4, %v15354_v7 }
 0x55f   : > { %v3012_v36 = vpack.c.bf16 %v3002_v31, %v3002_v31 }
 0x560   : > { %v2421_v13 = vrot.slane %v13365_v6, %v15679_v41  ;;  %v2437_v28 = vrot.slane %v13367_v8, %v15679_v41  ;;  %v2453_v34 = vrot.slane %v13369_v61, %v15679_v41  ;;  %v2469_v14 = vrot.slane %v13371_v9, %v15679_v41 }
 0x562   : > { %v2486_v15 = vcombine.low %v2421_v13, %v2437_v28  ;;  %v2518_v20 = vcombine.low %v2453_v34, %v2469_v14  ;;  %v2487_v18 = vcombine.high %v2421_v13, %v2437_v28  ;;  %v2519_v43 = vcombine.high %v2453_v34, %v2469_v14 }
 0x564   : > { %v2494_v19 = vrot.slane %v2486_v15, %v15684_v46  ;;  %v2526_v57 = vrot.slane %v2518_v20, %v15684_v46  ;;  %v2501_v62 = vrot.slane %v2487_v18, %v15684_v46  ;;  %v2533_v25 = vrot.slane %v2519_v43, %v15684_v46 }
 0x566   : > { %v2538_v27 = vcombine.low %v2494_v19, %v2526_v57  ;;  %v2539_v24 = vcombine.high %v2494_v19, %v2526_v57  ;;  %v2540_v29 = vcombine.low %v2501_v62, %v2533_v25  ;;  %v2541_v30 = vcombine.high %v2501_v62, %v2533_v25 }
 0x568   : > { %v2546_v32 = vpack.c.bf16 %v2538_v27, %v2538_v27  ;;  %v2547_v33 = vpack.c.bf16 %v2539_v24, %v2539_v24  ;;  %v2548_v44 = vpack.c.bf16 %v2540_v29, %v2540_v29  ;;  %v2549_v10 = vpack.c.bf16 %v2541_v30, %v2541_v30  ;;  %v14896_v30 = vld [vmem:[%s17673_s23] sm:$0xff]  }
 0x56a   : > { %v3204_v40 = vsel %vm3018_vm6, %v2546_v32, 0  ;;  %v3250_v42 = vsel %vm3018_vm6, %v2547_v33, 0  ;;  %v3296_v60 = vsel %vm3018_vm6, %v2548_v44, 0  ;;  %v3342_v11 = vsel %vm3018_vm6, %v2549_v10, 0 }
 0x56b   : > { %14537 = vmatpush3.bf16.msra.mxu0 %v3204_v40  ;;  %14543 = vmatpush3.bf16.msra.mxu1 %v3250_v42  ;;  %v14897_v40 = vld [vmem:[%s17673_s23 + $0x8] sm:$0xff]  }
 0x56c   : > { %14548 = vmatprep.subr.bf16.mxu0 %v15354_v7  ;;  %14554 = vmatprep.subr.bf16.mxu1 %v15354_v7 }
 0x56e   : > { %14539 = vmatmul.mubr.msk.bf16.vlgmr.msra.gmra.mrb[20].mxu0 %vm2550_vm5, %v3011_v45  ;;  %14545 = vmatmul.mubr.msk.bf16.vlgmr.msra.gmra.mrb[32].mxu1 %vm2550_vm5, %v3012_v36 }
 0x56f   : > { %14549 = vmatpush3.bf16.msra.mxu0 %v3296_v60  ;;  %14555 = vmatpush3.bf16.msra.mxu1 %v3342_v11 }
 0x570   : > { %14550 = vmatprep.mubr.msk.bf16.mxu0 %vm15355_vm4, %v15354_v7  ;;  %14556 = vmatprep.mubr.msk.bf16.mxu1 %vm15355_vm4, %v15354_v7 }
 0x571   : > { %14560 = vmatprep.subr.bf16.mxu0 %v15354_v7 }
 0x586   : > { %v2990_v47 = vpop.xlane.xlu1 %2989  ;;  %v2987_v48 = vpop.xlane.xlu0 %2986 }
 0x587   : > { %15056 = vrcp.f32 %v2990_v47 }
 0x588   : > { %15058 = vrcp.f32 %v2987_v48 }
 0x591   : > { %v15057_v49 = vpop.eup %15056 }
 0x592   : > { %v15059_v50 = vpop.eup %15058  ;;  %v3006_v51 = vmul.f32 %v15057_v49, %v15932_v17 }
 0x593   : > { %v3004_v37 = vmul.f32 %v15059_v50, %v15930_v16 }
 0x594   : > { %v3014_v58 = vpack.c.bf16 %v3006_v51, %v3006_v51 }
 0x595   : > { %v3013_v52 = vpack.c.bf16 %v3004_v37, %v3004_v37 }
 0x596   : > { %14557 = vmatmul.mubr.msk.bf16.vlgmr.msra.gmra.mrb[36].mxu1 %vm2550_vm5, %v3014_v58 }
 0x597   : > { %14551 = vmatmul.mubr.msk.bf16.vlgmr.msra.gmra.mrb[24].mxu0 %vm2550_vm5, %v3013_v52  ;;  %4554 = vmatprep.mubr.bf16.mxu1 %v15343_v12 }
 0x598   : > { %14568 = vmatprep.mubr.msk.bf16.mxu0 %vm15355_vm4, %v15354_v7  ;;  %14561 = vmatpush3.bf16.msra.mxu0 %v14896_v30 }
 0x599   : > { %14562 = vmatprep.subr.bf16.mxu0 %v15354_v7 }
 0x59c   : > { %14563 = vmatpush3.bf16.msra.mxu0 %v14897_v40 }
 0x59d   : > { %14564 = vmatprep.subr.bf16.mxu0 %v15354_v7 }
 0x5f7   : > { %v3056_v35 = vpop.f32.mrb[12].mxu0 }
 0x5f8   : > { %v14516_v53 = vpop.f32.mrb[13].mxu0 }
 0x5f9   : > { %v3059_v54 = vpop.f32.mrb[14].mxu0 }
 0x5fa   : > { %v14517_v38 = vpop.f32.mrb[15].mxu0 }
 0x604   : > { %v3102_v55 = vpop.f32.mrb[24].mxu1 }
 0x605   : > { %v14522_v56 = vpop.f32.mrb[25].mxu1 }
 0x606   : > { %v3105_v17 = vpop.f32.mrb[26].mxu1 }
 0x607   : > { %v14523_v63 = vpop.f32.mrb[27].mxu1 }
 0x60c   : > { %v3148_v16 = vpop.f32.mrb[16].mxu0 }
 0x60d   : > { %v3384_v39 = vcombine.low %v3056_v35, %v3148_v16  ;;  %v3385_v0 = vcombine.high %v3056_v35, %v3148_v16  ;;  %v14528_v1 = vpop.f32.mrb[17].mxu0 }
 0x60e   : > { %v3151_v2 = vpop.f32.mrb[18].mxu0 }
 0x60f   : > { %v14529_v3 = vpop.f32.mrb[19].mxu0  ;;  %v3392_v13 = vrot.slane %v3384_v39, %v15679_v41  ;;  %v3399_v28 = vrot.slane %v3385_v0, %v15679_v41 }
 0x630   : > { %v3194_v4 = vpop.f32.mrb[28].mxu1 }
 0x631   : > { %v3400_v6 = vcombine.low %v3102_v55, %v3194_v4  ;;  %v3401_v8 = vcombine.high %v3102_v55, %v3194_v4  ;;  %v14534_v61 = vpop.f32.mrb[29].mxu1 }
 0x632   : > { %v3197_v9 = vpop.f32.mrb[30].mxu1 }
 0x633   : > { %v3408_v34 = vrot.slane %v3400_v6, %v15679_v41  ;;  %v3415_v14 = vrot.slane %v3401_v8, %v15679_v41  ;;  %v14535_v15 = vpop.f32.mrb[31].mxu1 }
 0x635   : > { %v3448_v20 = vcombine.low %v3392_v13, %v3408_v34  ;;  %v3449_v18 = vcombine.high %v3392_v13, %v3408_v34  ;;  %v3464_v43 = vcombine.low %v3399_v28, %v3415_v14  ;;  %v3465_v21 = vcombine.high %v3399_v28, %v3415_v14 }
 0x637   : > { %v3456_v19 = vrot.slane %v3448_v20, %v15684_v46  ;;  %v3463_v57 = vrot.slane %v3449_v18, %v15684_v46  ;;  %v3472_v62 = vrot.slane %v3464_v43, %v15684_v46  ;;  %v3479_v25 = vrot.slane %v3465_v21, %v15684_v46  ;;  %v14898_v18 = vld [vmem:[%s17673_s23 + $0x10] sm:$0xff]  }
 0x638   : > { %14565 = vmatpush3.bf16.msra.mxu0 %v14898_v18  ;;  %v3803_v18 = vld [vmem:[%s17675_s12 + $0x48] sm:$0xff] }
 0x639   : > { %v13388_v26 = vcombine.low %v3456_v19, %v3463_v57  ;;  %v13390_v27 = vcombine.high %v3456_v19, %v3463_v57  ;;  %v13392_v24 = vcombine.low %v3472_v62, %v3479_v25  ;;  %v13394_v29 = vcombine.high %v3472_v62, %v3479_v25  ;;  %14566 = vmatprep.subr.bf16.mxu0 %v15354_v7 }
 0x63b   : > { %v3528_v59 = vrot.slane %v13388_v26, %v15679_v41  ;;  %v3544_v31 = vrot.slane %v13390_v27, %v15679_v41  ;;  %v3560_v32 = vrot.slane %v13392_v24, %v15679_v41  ;;  %v3576_v33 = vrot.slane %v13394_v29, %v15679_v41  ;;  %v14899_v24 = vld [vmem:[%s17673_s23 + $0x18] sm:$0xff]  }
 0x63c   : > { %14567 = vmatpush3.bf16.msra.mxu0 %v14899_v24 }
 0x63d   : > { %v3585_v42 = vcombine.high %v3528_v59, %v3544_v31  ;;  %v3617_v44 = vcombine.high %v3560_v32, %v3576_v33  ;;  %v3584_v10 = vcombine.low %v3528_v59, %v3544_v31  ;;  %v3616_v45 = vcombine.low %v3560_v32, %v3576_v33 }
 0x63f   : > { %v3599_v36 = vrot.slane %v3585_v42, %v15684_v46  ;;  %v3631_v60 = vrot.slane %v3617_v44, %v15684_v46  ;;  %v16014_v11 = vrot.slane %v3584_v10, %v15684_v46  ;;  %v16017_v47 = vrot.slane %v3616_v45, %v15684_v46 }
 0x641   : > { %v3240_v48 = vpop.f32.mrb[20].mxu0  ;;  %v3286_v49 = vpop.f32.mrb[32].mxu1  ;;  %v3650_v50 = vcombine.low %v3599_v36, %v3631_v60  ;;  %v3649_v51 = vcombine.high %v16014_v11, %v16017_v47  ;;  %v3651_v37 = vcombine.high %v3599_v36, %v3631_v60  ;;  %v3648_v58 = vcombine.low %v16014_v11, %v16017_v47 }
 0x642   : > { %v14540_v52 = vpop.f32.mrb[21].mxu0  ;;  %v14546_v35 = vpop.f32.mrb[33].mxu1 }
 0x643   : > { %v3289_v53 = vpop.f32.mrb[34].mxu1  ;;  %3661 = vrot.lane.b32.xlu1 %v3650_v50, %s15356_s10  ;;  %3657 = vrot.lane.b32.xlu0 %v3649_v51, %s15357_s9  ;;  %v3243_v54 = vpop.f32.mrb[22].mxu0  ;;  %s17677_s10 = sld [smem:[#allocation29_spill]] (!%p13601_p8) }
 0x644   : > { %v14541_v38 = vpop.f32.mrb[23].mxu0  ;;  %v14547_v55 = vpop.f32.mrb[35].mxu1 }
 0x647   : > { %3665 = vrot.lane.b32.xlu0 %v3651_v37, %s15358_s1 }
 0x669   : > { %v3378_v56 = vpop.f32.mrb[36].mxu1 }
 0x66a   : > { %v3332_v17 = vpop.f32.mrb[24].mxu0  ;;  %v3432_v63 = vcombine.low %v3286_v49, %v3378_v56  ;;  %v3433_v16 = vcombine.high %v3286_v49, %v3378_v56  ;;  %v14558_v39 = vpop.f32.mrb[37].mxu1 }
 0x66b   : > { %v3416_v0 = vcombine.low %v3240_v48, %v3332_v17  ;;  %v3417_v1 = vcombine.high %v3240_v48, %v3332_v17  ;;  %v14552_v2 = vpop.f32.mrb[25].mxu0  ;;  %v3381_v3 = vpop.f32.mrb[38].mxu1 }
 0x66c   : > { %v3440_v4 = vrot.slane %v3432_v63, %v15679_v41  ;;  %v3447_v6 = vrot.slane %v3433_v16, %v15679_v41  ;;  %v3335_v8 = vpop.f32.mrb[26].mxu0  ;;  %v14559_v61 = vpop.f32.mrb[39].mxu1  ;;  %v15064_v3 = vld [vmem:[#allocation2] sm:$0xff] }
 0x66d   : > { %v3424_v9 = vrot.slane %v3416_v0, %v15679_v41  ;;  %v3431_v13 = vrot.slane %v3417_v1, %v15679_v41  ;;  %v14553_v28 = vpop.f32.mrb[27].mxu0 }
 0x66f   : > { %v3480_v34 = vcombine.low %v3424_v9, %v3440_v4  ;;  %v3481_v14 = vcombine.high %v3424_v9, %v3440_v4  ;;  %v3496_v15 = vcombine.low %v3431_v13, %v3447_v6  ;;  %v3497_v20 = vcombine.high %v3431_v13, %v3447_v6 }
 0x671   : > { %v3488_v43 = vrot.slane %v3480_v34, %v15684_v46  ;;  %v3495_v21 = vrot.slane %v3481_v14, %v15684_v46  ;;  %v3504_v19 = vrot.slane %v3496_v15, %v15684_v46  ;;  %v3511_v57 = vrot.slane %v3497_v20, %v15684_v46  ;;  %v3794_v34 = vld [vmem:[%s17675_s12] sm:$0xff]  ;;  %v3795_v15 = vld [vmem:[%s17675_s12 + $0x8] sm:$0xff] }
 0x672   : > { %v3802_v14 = vld [vmem:[%s17675_s12 + $0x40] sm:$0xff] }
 0x673   : > { %v13389_v62 = vcombine.low %v3488_v43, %v3495_v21  ;;  %v13391_v25 = vcombine.high %v3488_v43, %v3495_v21  ;;  %v13393_v26 = vcombine.low %v3504_v19, %v3511_v57  ;;  %v13395_v27 = vcombine.high %v3504_v19, %v3511_v57  ;;  %v3810_v57 = vld [vmem:[%s17675_s12 + $0x80] sm:$0xff] }
 0x674   : > { %v13402_v20 = vcombine.high %v3794_v34, %v3802_v14  ;;  %v13401_v43 = vcombine.low %v3794_v34, %v3802_v14  ;;  %v13403_v21 = vcombine.low %v3795_v15, %v3803_v18  ;;  %v13404_v19 = vcombine.high %v3795_v15, %v3803_v18  ;;  %v3837_v34 = vld [vmem:[%s17675_s12 + $0x158] sm:$0xff] }
 0x675   : > { %v3535_v29 = vrot.slane %v13389_v62, %v15679_v41  ;;  %v3551_v30 = vrot.slane %v13391_v25, %v15679_v41  ;;  %v3567_v59 = vrot.slane %v13393_v26, %v15679_v41  ;;  %v3583_v31 = vrot.slane %v13395_v27, %v15679_v41  ;;  %v3818_v62 = vld [vmem:[%s17675_s12 + $0xc0] sm:$0xff]  ;;  %v3811_v25 = vld [vmem:[%s17675_s12 + $0x88] sm:$0xff] }
 0x676   : > { %4522 = vmatprep.subr.bf16.mxu1 %v13402_v20  ;;  %4563 = vmatprep.subr.bf16.mxu0 %v13404_v19  ;;  %v13418_v26 = vcombine.high %v3810_v57, %v3818_v62  ;;  %v3819_v27 = vld [vmem:[%s17675_s12 + $0xc8] sm:$0xff]  ;;  %v13417_v24 = vcombine.low %v3810_v57, %v3818_v62  ;;  %v3845_v19 = vld [vmem:[%s17675_s12 + $0x198] sm:$0xff] }
 0x677   : > { %v3600_v32 = vcombine.low %v3535_v29, %v3551_v30  ;;  %v3632_v33 = vcombine.low %v3567_v59, %v3583_v31  ;;  %v3601_v40 = vcombine.high %v3535_v29, %v3551_v30  ;;  %v3633_v42 = vcombine.high %v3567_v59, %v3583_v31  ;;  %4523 = vmatpush1.bf16.msra.mxu1 %v13401_v43  ;;  %v3826_v59 = vld [vmem:[%s17675_s12 + $0x100] sm:$0xff]  ;;  %v3844_v43 = vld [vmem:[%s17675_s12 + $0x190] sm:$0xff]  ;;  %v3853_v57 = vld [vmem:[%s17675_s12 + $0x1d8] sm:$0xff] }
 0x678   : > { %v13419_v29 = vcombine.low %v3811_v25, %v3819_v27  ;;  %v13420_v30 = vcombine.high %v3811_v25, %v3819_v27  ;;  %4524 = vmatprep.subr.bf16.mxu1 %v13418_v26  ;;  %v3834_v31 = vld [vmem:[%s17675_s12 + $0x140] sm:$0xff]  ;;  %v13456_v27 = vcombine.high %v3845_v19, %v3853_v57 }
 0x679   : > { %v3608_v44 = vrot.slane %v3600_v32, %v15684_v46  ;;  %v3640_v10 = vrot.slane %v3632_v33, %v15684_v46  ;;  %v3615_v7 = vrot.slane %v3601_v40, %v15684_v46  ;;  %v3647_v45 = vrot.slane %v3633_v42, %v15684_v46  ;;  %v3827_v32 = vld [vmem:[%s17675_s12 + $0x108] sm:$0xff] }
 0x67a   : > { %v13434_v33 = vcombine.high %v3826_v59, %v3834_v31  ;;  %v3835_v40 = vld [vmem:[%s17675_s12 + $0x148] sm:$0xff]  ;;  %v13433_v42 = vcombine.low %v3826_v59, %v3834_v31 }
 0x67b   : > { %v3653_v36 = vcombine.high %v3608_v44, %v3640_v10  ;;  %v3652_v60 = vcombine.low %v3608_v44, %v3640_v10  ;;  %v3655_v48 = vcombine.high %v3615_v7, %v3647_v45  ;;  %v3654_v49 = vcombine.low %v3615_v7, %v3647_v45  ;;  %4525 = vmatpush1.bf16.msra.mxu1 %v13417_v24  ;;  %v3842_v7 = vld [vmem:[%s17675_s12 + $0x180] sm:$0xff]  ;;  %v3807_v59 = vld [vmem:[%s17675_s12 + $0x68] sm:$0xff] }
 0x67c   : > { %v13435_v44 = vcombine.low %v3827_v32, %v3835_v40  ;;  %v13436_v10 = vcombine.high %v3827_v32, %v3835_v40  ;;  %4526 = vmatprep.subr.bf16.mxu1 %v13434_v33  ;;  %v3850_v45 = vld [vmem:[%s17675_s12 + $0x1c0] sm:$0xff]  ;;  %v13455_v32 = vcombine.low %v3845_v19, %v3853_v57  ;;  %v3841_v19 = vld [vmem:[%s17675_s12 + $0x178] sm:$0xff] }
 0x67d   : > { %3673 = vrot.lane.b32.xlu0 %v3653_v36, %s15359_s5  ;;  %3669 = vrot.lane.b32.xlu1 %v3652_v60, %s15360_s26  ;;  %v3843_v36 = vld [vmem:[%s17675_s12 + $0x188] sm:$0xff]  ;;  %v13450_v60 = vcombine.high %v3842_v7, %v3850_v45  ;;  %v3798_v24 = vld [vmem:[%s17675_s12 + $0x20] sm:$0xff]  ;;  %s17678_s5 = sld [smem:[#allocation30_spill]] (!%p13601_p8) }
 0x67f   : > { %4527 = vmatpush1.bf16.msra.mxu1 %v13433_v42  ;;  %v3814_v42 = vld [vmem:[%s17675_s12 + $0xa0] sm:$0xff] }
 0x680   : > { %4528 = vmatprep.subr.bf16.mxu1 %v13450_v60 }
 0x681   : > { %3681 = vrot.lane.b32.xlu0 %v3655_v48, %s15361_s22  ;;  %3677 = vrot.lane.b32.xlu1 %v3654_v49, %s15362_s11  ;;  %v3851_v48 = vld [vmem:[%s17675_s12 + $0x1c8] sm:$0xff]  ;;  %v13449_v49 = vcombine.low %v3842_v7, %v3850_v45 }
 0x682   : > { %v3823_v7 = vld [vmem:[%s17675_s12 + $0xe8] sm:$0xff] }
 0x683   : > { %4529 = vmatpush1.bf16.msra.mxu1 %v13449_v49  ;;  %v3830_v49 = vld [vmem:[%s17675_s12 + $0x120] sm:$0xff] }
 0x6b5   : > { %v3658_v41 = vpop.permute.xlu0 %3657  ;;  %v3662_v50 = vpop.permute.xlu1 %3661 }
 0x6b6   : > { %v3684_v51 = vsel %vm2550_vm5, %v3648_v58, %v3658_v41  ;;  %v16050_v58 = vld [vmem:[%s17674_s25] sm:$0x3f]  ;;  %v13451_v41 = vcombine.low %v3843_v36, %v3851_v48 }
 0x6b7   : > { %v3686_v37 = vsel %vm3685_vm7, %v3684_v51, %v3662_v50  ;;  %v3701_v63 = vrot.slane %v16050_v58, %v15660_v23  ;;  %v13452_v50 = vcombine.high %v3843_v36, %v3851_v48  ;;  %v3796_v51 = vld [vmem:[%s17675_s12 + $0x10] sm:$0xff] }
 0x6b9   : > { %v3666_v46 = vpop.permute.xlu0 %3665 }
 0x6ba   : > { %v3688_v52 = vsel %vm3687_vm8, %v3686_v37, %v3666_v46  ;;  %v3804_v46 = vld [vmem:[%s17675_s12 + $0x50] sm:$0xff]  ;;  %v3797_v37 = vld [vmem:[%s17675_s12 + $0x18] sm:$0xff] }
 0x6ef   : > { %v3674_v35 = vpop.permute.xlu0 %3673  ;;  %v3670_v53 = vpop.permute.xlu1 %3669 }
 0x6f0   : > { %v3690_v54 = vsel %vm3689_vm9, %v3688_v52, %v3670_v53  ;;  %v13405_v52 = vcombine.low %v3796_v51, %v3804_v46  ;;  %v3805_v53 = vld [vmem:[%s17675_s12 + $0x58] sm:$0xff] }
 0x6f1   : > { %v3692_v55 = vsel %vm3691_vm10, %v3690_v54, %v3674_v35  ;;  %v13406_v35 = vcombine.high %v3796_v51, %v3804_v46  ;;  %v13407_v54 = vcombine.low %v3797_v37, %v3805_v53  ;;  %v3839_v51 = vld [vmem:[%s17675_s12 + $0x168] sm:$0xff] }
 0x6f3   : > { %v3682_v38 = vpop.permute.xlu0 %3681  ;;  %v3678_v56 = vpop.permute.xlu1 %3677  ;;  %4604 = vmatprep.subr.bf16.mxu1 %v13406_v35 }
 0x6f4   : > { %v3694_v17 = vsel %vm3693_vm11, %v3692_v55, %v3678_v56 }
 0x6f5   : > { %v3696_v11 = vsel %vm3695_vm12, %v3694_v17, %v3682_v38  ;;  %v13408_v38 = vcombine.high %v3797_v37, %v3805_v53  ;;  %v3846_v53 = vld [vmem:[%s17675_s12 + $0x1a0] sm:$0xff] }
 0x6f6   : > { %v3697_v47 = vpack.c.bf16 %v3696_v11, %v3696_v11  ;;  %v16081_v11 = vsub.s32 2, %v15657_v22 }
 0x6f8   : > { %14569 = vmatmul.mubr.msk.bf16.vlgmr.msra.gmra.mrb[28].mxu0 %vm1589_vm3, %v3697_v47  ;;  %v3787_v47 = vrot.slane %v16050_v58, %v15834_v5 }
 0x6f9   : > { %4595 = vmatprep.mubr.bf16.mxu0 %v15343_v12  ;;  %4564 = vmatpush1.bf16.msra.mxu0 %v13403_v21  ;;  %v3852_v21 = vld [vmem:[%s17675_s12 + $0x1d0] sm:$0xff] }
 0x6fa   : > { %4565 = vmatprep.subr.bf16.mxu0 %v13420_v30  ;;  %v13454_v26 = vcombine.high %v3844_v43, %v3852_v21  ;;  %v3799_v30 = vld [vmem:[%s17675_s12 + $0x28] sm:$0xff]  ;;  %v13453_v31 = vcombine.low %v3844_v43, %v3852_v21  ;;  %v3840_v43 = vld [vmem:[%s17675_s12 + $0x170] sm:$0xff]  ;;  %v3833_v21 = vld [vmem:[%s17675_s12 + $0x138] sm:$0xff] }
 0x6fb   : > { %v13412_v40 = vcombine.high %v3799_v30, %v3807_v59  ;;  %v13411_v36 = vcombine.low %v3799_v30, %v3807_v59  ;;  %v3857_v30 = vld [vmem:[%s17675_s12 + $0x1f8] sm:$0xff] }
 0x6fd   : > { %4566 = vmatpush1.bf16.msra.mxu0 %v13419_v29  ;;  %v3806_v29 = vld [vmem:[%s17675_s12 + $0x60] sm:$0xff] }
 0x6fe   : > { %4567 = vmatprep.subr.bf16.mxu0 %v13436_v10  ;;  %v13410_v33 = vcombine.high %v3798_v24, %v3806_v29  ;;  %v3815_v10 = vld [vmem:[%s17675_s12 + $0xa8] sm:$0xff]  ;;  %v13409_v45 = vcombine.low %v3798_v24, %v3806_v29  ;;  %v3856_v24 = vld [vmem:[%s17675_s12 + $0x1f0] sm:$0xff]  ;;  %v3849_v29 = vld [vmem:[%s17675_s12 + $0x1b8] sm:$0xff] }
 0x6ff   : > { %v13428_v48 = vcombine.high %v3815_v10, %v3823_v7  ;;  %v13427_v37 = vcombine.low %v3815_v10, %v3823_v7  ;;  %v14902_v10 = vld [vmem:[%s15575_s7] sm:$0xff]  }
 0x700   : > { %v14903_v7 = vld [vmem:[%s15575_s7 + $0x80] sm:$0xff]  }
 0x701   : > { %4568 = vmatpush1.bf16.msra.mxu0 %v13435_v44  ;;  %v3822_v44 = vld [vmem:[%s17675_s12 + $0xe0] sm:$0xff] }
 0x702   : > { %4569 = vmatprep.subr.bf16.mxu0 %v13452_v50  ;;  %v13426_v60 = vcombine.high %v3814_v42, %v3822_v44  ;;  %v3831_v50 = vld [vmem:[%s17675_s12 + $0x128] sm:$0xff]  ;;  %v13425_v46 = vcombine.low %v3814_v42, %v3822_v44  ;;  %v13463_v42 = vcombine.low %v3849_v29, %v3857_v30  ;;  %v14901_v44 = vld [vmem:[%s15575_s7 + $0xc0] sm:$0xff]  }
 0x703   : > { %v13444_v35 = vcombine.high %v3831_v50, %v3839_v51 }
 0x705   : > { %4570 = vmatpush1.bf16.msra.mxu0 %v13451_v41  ;;  %v3838_v41 = vld [vmem:[%s17675_s12 + $0x160] sm:$0xff] }
 0x706   : > { %4645 = vmatprep.subr.bf16.mxu0 %v13408_v38  ;;  %v3847_v38 = vld [vmem:[%s17675_s12 + $0x1a8] sm:$0xff] }
 0x7cb   : > { %v3763_v16 = vpop.f32.mrb[28].mxu0 }
 0x7cc   : > { %v3764_v39 = vadd.f32 %v3763_v16, %v3701_v63  ;;  %v14570_v0 = vpop.f32.mrb[29].mxu0  ;;  %v3792_v16 = vrot.slane %v16050_v58, %v16081_v11  ;;  %v3836_v58 = vld [vmem:[%s17675_s12 + $0x150] sm:$0xff] }
 0x7cd   : > { %v3766_v1 = vpop.f32.mrb[30].mxu0 }
 0x7ce   : > { %v14571_v2 = vpop.f32.mrb[31].mxu0  ;;  %v3769_v4 = vadd.f32 %v15064_v3, %v3764_v39  ;;  %v3812_v1 = vld [vmem:[%s17675_s12 + $0x90] sm:$0xff]  ;;  %v3813_v3 = vld [vmem:[%s17675_s12 + $0x98] sm:$0xff] }
 0x7cf   : > { %v3820_v2 = vld [vmem:[%s17675_s12 + $0xd0] sm:$0xff] }
 0x7d0   : > { %v3770_v6 = vsel %vm1589_vm3, %v3769_v4, 0.0  ;;  %v13421_v14 = vcombine.low %v3812_v1, %v3820_v2 }
 0x7d1   : > { %3771 = vadd.xlane.f32.xlu1 %v3770_v6 }
 0x85e   : > { %v3772_v8 = vpop.xlane.xlu1 %3771 }
 0x85f   : > { %v3774_v61 = vmul.f32 0.015625, %v3772_v8 }
 0x861   : > { %v16055_v9 = vsub.f32 %v3769_v4, %v3774_v61  ;;  %v3821_v4 = vld [vmem:[%s17675_s12 + $0xd8] sm:$0xff]  ;;  %v13422_v61 = vcombine.high %v3812_v1, %v3820_v2 }
 0x862   : > { %v13423_v15 = vcombine.low %v3813_v3, %v3821_v4  ;;  %v3809_v1 = vld [vmem:[%s17675_s12 + $0x78] sm:$0xff] }
 0x863   : > { %v3776_v13 = vmul.f32 %v16055_v9, %v16055_v9 }
 0x865   : > { %v3777_v28 = vsel %vm1589_vm3, %v3776_v13, 0.0  ;;  %v13424_v13 = vcombine.high %v3813_v3, %v3821_v4 }
 0x866   : > { %3778 = vadd.xlane.f32.xlu0 %v3777_v28  ;;  %v3828_v28 = vld [vmem:[%s17675_s12 + $0x110] sm:$0xff] }
 0x867   : > { %v13438_v20 = vcombine.high %v3828_v28, %v3836_v58  ;;  %v13437_v62 = vcombine.low %v3828_v28, %v3836_v58  ;;  %v3824_v28 = vld [vmem:[%s17675_s12 + $0xf0] sm:$0xff]  ;;  %v3817_v58 = vld [vmem:[%s17675_s12 + $0xb8] sm:$0xff] }
 0x8f3   : > { %v3779_v55 = vpop.xlane.xlu0 %3778 }
 0x8f4   : > { %v3780_v56 = vmul.f32 0.015625, %v3779_v55  ;;  %v3855_v55 = vld [vmem:[%s17675_s12 + $0x1e8] sm:$0xff] }
 0x8f5   : > { %v13459_v3 = vcombine.low %v3847_v38, %v3855_v55 }
 0x8f6   : > { %v3781_v17 = vadd.f32 1e-05, %v3780_v56  ;;  %v13441_v56 = vcombine.low %v3830_v49, %v3838_v41 }
 0x8f8   : > { %15060 = vrsqrt.f32 %v3781_v17  ;;  %v13443_v17 = vcombine.low %v3831_v50, %v3839_v51  ;;  %v14910_v50 = vld [vmem:[%s15575_s7 + $0x10] sm:$0xff]  }
 0x8f9   : > { %v14911_v51 = vld [vmem:[%s15575_s7 + $0x90] sm:$0xff]  }
 0x902   : > { %v15061_v63 = vpop.eup %15060 }
 0x903   : > { %v3783_v39 = vmul.f32 %v15061_v63, %v16055_v9  ;;  %v3829_v9 = vld [vmem:[%s17675_s12 + $0x118] sm:$0xff]  ;;  %v13460_v63 = vcombine.high %v3847_v38, %v3855_v55  ;;  %v14919_v38 = vld [vmem:[%s15575_s7 + $0xa0] sm:$0xff]   ;;  %v14920_v55 = vld [vmem:[%s15575_s7 + $0x68] sm:$0xff]  }
 0x904   : > { %v13440_v18 = vcombine.high %v3829_v9, %v3837_v34  ;;  %v13439_v25 = vcombine.low %v3829_v9, %v3837_v34  ;;  %v3825_v9 = vld [vmem:[%s17675_s12 + $0xf8] sm:$0xff] }
 0x905   : > { %v3788_v0 = vmul.f32 %v3787_v47, %v3783_v39  ;;  %v3808_v39 = vld [vmem:[%s17675_s12 + $0x70] sm:$0xff] }
 0x907   : > { %v16092_v6 = vadd.f32 %v3792_v16, %v3788_v0  ;;  %v3800_v16 = vld [vmem:[%s17675_s12 + $0x30] sm:$0xff]  ;;  %v3801_v0 = vld [vmem:[%s17675_s12 + $0x38] sm:$0xff] }
 0x908   : > { %v13414_v4 = vcombine.high %v3800_v16, %v3808_v39  ;;  %v13413_v34 = vcombine.low %v3800_v16, %v3808_v39  ;;  %v14925_v16 = vld [vmem:[%s15575_s7 + $0xf0] sm:$0xff]  }
 0x909   : > { %v16096_v8 = vpack.c.bf16 %v16092_v6, %v16092_v6  ;;  %v14926_v39 = vld [vmem:[%s15575_s7 + $0x30] sm:$0xff]  }
 0x90b   : > { %13465 = vmatmul.mubr.msk.bf16.vlgmr.msra.gmra.mrb[40].mxu1 %vm1589_vm3, %v16096_v8  ;;  %13466 = vmatmul.mubr.msk.bf16.vlgmr.msra.gmra.mrb[32].mxu0 %vm1589_vm3, %v16096_v8 }
 0x90c   : > { %4605 = vmatpush1.bf16.msra.mxu1 %v13405_v52  ;;  %4646 = vmatpush1.bf16.msra.mxu0 %v13407_v54  ;;  %v13442_v52 = vcombine.high %v3830_v49, %v3838_v41  ;;  %v3854_v54 = vld [vmem:[%s17675_s12 + $0x1e0] sm:$0xff]  ;;  %v14908_v49 = vld [vmem:[%s15575_s7 + $0x50] sm:$0xff]  }
 0x90d   : > { %4606 = vmatprep.subr.bf16.mxu1 %v13422_v61  ;;  %4647 = vmatprep.subr.bf16.mxu0 %v13424_v13  ;;  %v13458_v47 = vcombine.high %v3846_v53, %v3854_v54  ;;  %v13457_v2 = vcombine.low %v3846_v53, %v3854_v54  ;;  %v13416_v61 = vcombine.high %v3801_v0, %v3809_v1  ;;  %v3816_v13 = vld [vmem:[%s17675_s12 + $0xb0] sm:$0xff]  ;;  %v14917_v53 = vld [vmem:[%s15575_s7 + $0xe0] sm:$0xff]  }
 0x90e   : > { %4636 = vmatprep.mubr.bf16.mxu1 %v15343_v12  ;;  %4677 = vmatprep.mubr.bf16.mxu0 %v15343_v12  ;;  %v13429_v57 = vcombine.low %v3816_v13, %v3824_v28  ;;  %v14909_v41 = vld [vmem:[%s15575_s7 + $0xd0] sm:$0xff]   ;;  %v14918_v54 = vld [vmem:[%s15575_s7 + $0x20] sm:$0xff]  }
 0x910   : > { %4607 = vmatpush1.bf16.msra.mxu1 %v13421_v14  ;;  %4648 = vmatpush1.bf16.msra.mxu0 %v13423_v15  ;;  %v13415_v14 = vcombine.low %v3801_v0, %v3809_v1  ;;  %v13430_v15 = vcombine.high %v3816_v13, %v3824_v28  ;;  %v14927_v0 = vld [vmem:[%s15575_s7 + $0xb0] sm:$0xff]   ;;  %v14928_v1 = vld [vmem:[%s15575_s7 + $0x78] sm:$0xff]   ;;  %v14933_v13 = vld [vmem:[%s15575_s7 + $0x1c0] sm:$0xff]   ;;  %v4145_v28 = vsub.s32 6, %v15657_v22 }
 0x911   : > { %4608 = vmatprep.subr.bf16.mxu1 %v13438_v20  ;;  %4649 = vmatprep.subr.bf16.mxu0 %v13440_v18  ;;  %v13432_v20 = vcombine.high %v3817_v58, %v3825_v9  ;;  %v3832_v18 = vld [vmem:[%s17675_s12 + $0x130] sm:$0xff] }
 0x912   : > { %v13445_v59 = vcombine.low %v3832_v18, %v3840_v43 }
 0x914   : > { %4609 = vmatpush1.bf16.msra.mxu1 %v13437_v62  ;;  %4650 = vmatpush1.bf16.msra.mxu0 %v13439_v25  ;;  %v13431_v62 = vcombine.low %v3817_v58, %v3825_v9  ;;  %v13446_v25 = vcombine.high %v3832_v18, %v3840_v43  ;;  %v16196_v58 = vld [vmem:[%s17676_s30 + $0x8] sm:$0xff] }
 0x915   : > { %4610 = vmatprep.subr.bf16.mxu1 %v13454_v26  ;;  %4651 = vmatprep.subr.bf16.mxu0 %v13456_v27  ;;  %v13448_v26 = vcombine.high %v3833_v21, %v3841_v19  ;;  %v3848_v27 = vld [vmem:[%s17675_s12 + $0x1b0] sm:$0xff]  ;;  %v16201_v9 = vrot.slane %v16196_v58, %v4145_v28 }
 0x918   : > { %4611 = vmatpush1.bf16.msra.mxu1 %v13453_v31  ;;  %4652 = vmatpush1.bf16.msra.mxu0 %v13455_v32  ;;  %v13447_v31 = vcombine.low %v3833_v21, %v3841_v19  ;;  %v13462_v32 = vcombine.high %v3848_v27, %v3856_v24 }
 0x919   : > { %4686 = vmatprep.subr.bf16.mxu1 %v13410_v33  ;;  %4727 = vmatprep.subr.bf16.mxu0 %v13412_v40  ;;  %v13464_v33 = vcombine.high %v3849_v29, %v3857_v30  ;;  %v13461_v40 = vcombine.low %v3848_v27, %v3856_v24 }
 0x91b   : > { %13467 = vmatmul.mubr.msk.bf16.vlgmr.msra.gmra.mrb[44].mxu1 %vm1589_vm3, %v16096_v8  ;;  %13468 = vmatmul.mubr.msk.bf16.vlgmr.msra.gmra.mrb[36].mxu0 %vm1589_vm3, %v16096_v8 }
 0x91c   : > { %4687 = vmatpush1.bf16.msra.mxu1 %v13409_v45  ;;  %4728 = vmatpush1.bf16.msra.mxu0 %v13411_v36  ;;  %v14904_v45 = vld [vmem:[%s15575_s7 + $0x48] sm:$0xff]  }
 0x91d   : > { %4688 = vmatprep.subr.bf16.mxu1 %v13426_v60  ;;  %4729 = vmatprep.subr.bf16.mxu0 %v13428_v48  ;;  %v14905_v36 = vld [vmem:[%s15575_s7 + $0xc8] sm:$0xff]  }
 0x91e   : > { %4718 = vmatprep.mubr.bf16.mxu1 %v15343_v12  ;;  %4759 = vmatprep.mubr.bf16.mxu0 %v15343_v12  ;;  %v14906_v60 = vld [vmem:[%s15575_s7 + $0x8] sm:$0xff]  }
 0x91f   : > { %v14907_v48 = vld [vmem:[%s15575_s7 + $0x88] sm:$0xff]  }
 0x920   : > { %4689 = vmatpush1.bf16.msra.mxu1 %v13425_v46  ;;  %4730 = vmatpush1.bf16.msra.mxu0 %v13427_v37  ;;  %v14913_v46 = vld [vmem:[%s15575_s7 + $0xd8] sm:$0xff]  }
 0x921   : > { %4690 = vmatprep.subr.bf16.mxu1 %v13442_v52  ;;  %4731 = vmatprep.subr.bf16.mxu0 %v13444_v35  ;;  %v14914_v37 = vld [vmem:[%s15575_s7 + $0x18] sm:$0xff]   ;;  %v14916_v35 = vld [vmem:[%s15575_s7 + $0x60] sm:$0xff]  }
 0x922   : > { %v14915_v52 = vld [vmem:[%s15575_s7 + $0x98] sm:$0xff]  }
 0x924   : > { %4691 = vmatpush1.bf16.msra.mxu1 %v13441_v56  ;;  %4732 = vmatpush1.bf16.msra.mxu0 %v13443_v17  ;;  %v14921_v56 = vld [vmem:[%s15575_s7 + $0xe8] sm:$0xff]  }
 0x925   : > { %4692 = vmatprep.subr.bf16.mxu1 %v13458_v47  ;;  %4733 = vmatprep.subr.bf16.mxu0 %v13460_v63  ;;  %v14922_v17 = vld [vmem:[%s15575_s7 + $0x28] sm:$0xff]   ;;  %v14924_v63 = vld [vmem:[%s15575_s7 + $0x70] sm:$0xff]  }
 0x926   : > { %v14923_v47 = vld [vmem:[%s15575_s7 + $0xa8] sm:$0xff]  }
 0x928   : > { %4693 = vmatpush1.bf16.msra.mxu1 %v13457_v2  ;;  %4734 = vmatpush1.bf16.msra.mxu0 %v13459_v3  ;;  %v14929_v2 = vld [vmem:[%s15575_s7 + $0xf8] sm:$0xff]  }
 0x929   : > { %4768 = vmatprep.subr.bf16.mxu1 %v13414_v4  ;;  %4809 = vmatprep.subr.bf16.mxu0 %v13416_v61  ;;  %v14930_v3 = vld [vmem:[%s15575_s7 + $0x38] sm:$0xff]   ;;  %v14932_v61 = vld [vmem:[%s15575_s7 + $0x140] sm:$0xff]  }
 0x92a   : > { %v14931_v4 = vld [vmem:[%s15575_s7 + $0xb8] sm:$0xff]  }
 0x92b   : > { %13469 = vmatmul.mubr.msk.bf16.vlgmr.msra.gmra.mrb[48].mxu1 %vm1589_vm3, %v16096_v8  ;;  %13470 = vmatmul.mubr.msk.bf16.vlgmr.msra.gmra.mrb[40].mxu0 %vm1589_vm3, %v16096_v8 }
 0x92c   : > { %4769 = vmatpush1.bf16.msra.mxu1 %v13413_v34  ;;  %4810 = vmatpush1.bf16.msra.mxu0 %v13415_v14  ;;  %v16204_v34 = vld [vmem:[%s17676_s30] sm:$0xff]  ;;  %v16207_v14 = vsub.s32 3, %v15657_v22 }
 0x92d   : > { %4770 = vmatprep.subr.bf16.mxu1 %v13430_v15  ;;  %4811 = vmatprep.subr.bf16.mxu0 %v13432_v20  ;;  %v4122_v15 = vrot.slane %v16204_v34, %v15660_v23  ;;  %v4130_v20 = vrot.slane %v16204_v34, %v16081_v11  ;;  %v4126_v18 = vrot.slane %v16204_v34, %v15834_v5 }
 0x92e   : > { %4800 = vmatprep.mubr.bf16.mxu1 %v15343_v12  ;;  %4841 = vmatprep.mubr.bf16.mxu0 %v15343_v12  ;;  %v14900_v12 = vld [vmem:[%s15575_s7 + $0x40] sm:$0xff]   ;;  %v4134_v43 = vrot.slane %v16204_v34, %v16207_v14 }
 0x930   : > { %4771 = vmatpush1.bf16.msra.mxu1 %v13429_v57  ;;  %4812 = vmatpush1.bf16.msra.mxu0 %v13431_v62 }
 0x931   : > { %4772 = vmatprep.subr.bf16.mxu1 %v13446_v25  ;;  %4813 = vmatprep.subr.bf16.mxu0 %v13448_v26 }
 0x934   : > { %4773 = vmatpush1.bf16.msra.mxu1 %v13445_v59  ;;  %4814 = vmatpush1.bf16.msra.mxu0 %v13447_v31 }
 0x935   : > { %4774 = vmatprep.subr.bf16.mxu1 %v13462_v32  ;;  %4815 = vmatprep.subr.bf16.mxu0 %v13464_v33 }
 0x938   : > { %4775 = vmatpush1.bf16.msra.mxu1 %v13461_v40  ;;  %4816 = vmatpush1.bf16.msra.mxu0 %v13463_v42 }
 0x939   : > { %14017 = vmatprep.subr.bf16.mxu1 %v14900_v12  ;;  %14039 = vmatprep.subr.bf16.mxu0 %v14901_v44 }
 0x93b   : > { %13471 = vmatmul.mubr.msk.bf16.vlgmr.msra.gmra.mrb[52].mxu1 %vm1589_vm3, %v16096_v8  ;;  %13472 = vmatmul.mubr.msk.bf16.vlgmr.msra.gmra.mrb[44].mxu0 %vm1589_vm3, %v16096_v8  ;;  %v14912_v8 = vld [vmem:[%s15575_s7 + $0x58] sm:$0xff]  }
 0x93c   : > { %14018 = vmatpush3.bf16.msra.mxu1 %v14902_v10  ;;  %14040 = vmatpush3.bf16.msra.mxu0 %v14903_v7  ;;  %v14934_v10 = vld [vmem:[%s15575_s7 + $0x100] sm:$0xff]  }
 0x93d   : > { %14019 = vmatprep.subr.bf16.mxu1 %v14904_v45  ;;  %14041 = vmatprep.subr.bf16.mxu0 %v14905_v36  ;;  %v14935_v7 = vld [vmem:[%s15575_s7 + $0x180] sm:$0xff]  }
 0x940   : > { %14020 = vmatpush3.bf16.msra.mxu1 %v14906_v60  ;;  %14042 = vmatpush3.bf16.msra.mxu0 %v14907_v48  ;;  %v14936_v60 = vld [vmem:[%s15575_s7 + $0x148] sm:$0xff]  }
 0x941   : > { %14021 = vmatprep.subr.bf16.mxu1 %v14908_v49  ;;  %14043 = vmatprep.subr.bf16.mxu0 %v14909_v41  ;;  %v14937_v48 = vld [vmem:[%s15575_s7 + $0x1c8] sm:$0xff]  }
 0x942   : > { %v14938_v49 = vld [vmem:[%s15575_s7 + $0x108] sm:$0xff]  }
 0x943   : > { %v14939_v41 = vld [vmem:[%s15575_s7 + $0x188] sm:$0xff]  }
 0x944   : > { %14022 = vmatpush3.bf16.msra.mxu1 %v14910_v50  ;;  %14044 = vmatpush3.bf16.msra.mxu0 %v14911_v51  ;;  %v16224_v50 = vsub.s32 5, %v15657_v22  ;;  %v4149_v51 = vsub.s32 7, %v15657_v22 }
 0x945   : > { %14023 = vmatprep.subr.bf16.mxu1 %v14912_v8  ;;  %14045 = vmatprep.subr.bf16.mxu0 %v14913_v46  ;;  %v14940_v8 = vld [vmem:[%s15575_s7 + $0x150] sm:$0xff]  }
 0x946   : > { %v14941_v46 = vld [vmem:[%s15575_s7 + $0x1d0] sm:$0xff]  }
 0x948   : > { %14024 = vmatpush3.bf16.msra.mxu1 %v14914_v37  ;;  %14046 = vmatpush3.bf16.msra.mxu0 %v14915_v52  ;;  %v4142_v37 = vrot.slane %v16204_v34, %v16224_v50  ;;  %v4150_v52 = vrot.slane %v16204_v34, %v4149_v51 }
 0x949   : > { %14025 = vmatprep.subr.bf16.mxu1 %v14916_v35  ;;  %14047 = vmatprep.subr.bf16.mxu0 %v14917_v53  ;;  %v14942_v35 = vld [vmem:[%s15575_s7 + $0x110] sm:$0xff]  }
 0x94a   : > { %v14943_v53 = vld [vmem:[%s15575_s7 + $0x190] sm:$0xff]  }
 0x94c   : > { %14026 = vmatpush3.bf16.msra.mxu1 %v14918_v54  ;;  %14048 = vmatpush3.bf16.msra.mxu0 %v14919_v38  ;;  %v14944_v54 = vld [vmem:[%s15575_s7 + $0x158] sm:$0xff]  }
 0x94d   : > { %14027 = vmatprep.subr.bf16.mxu1 %v14920_v55  ;;  %14049 = vmatprep.subr.bf16.mxu0 %v14921_v56  ;;  %v14945_v38 = vld [vmem:[%s15575_s7 + $0x1d8] sm:$0xff]  }
 0x950   : > { %14028 = vmatpush3.bf16.msra.mxu1 %v14922_v17  ;;  %14050 = vmatpush3.bf16.msra.mxu0 %v14923_v47 }
 0x951   : > { %14029 = vmatprep.subr.bf16.mxu1 %v14924_v63  ;;  %14051 = vmatprep.subr.bf16.mxu0 %v14925_v16 }
 0x954   : > { %14030 = vmatpush3.bf16.msra.mxu1 %v14926_v39  ;;  %14052 = vmatpush3.bf16.msra.mxu0 %v14927_v0 }
 0x955   : > { %14031 = vmatprep.subr.bf16.mxu1 %v14928_v1  ;;  %14053 = vmatprep.subr.bf16.mxu0 %v14929_v2  ;;  %v14946_v1 = vld [vmem:[%s15575_s7 + $0x118] sm:$0xff]  }
 0x956   : > { %v14947_v2 = vld [vmem:[%s15575_s7 + $0x198] sm:$0xff]  }
 0x958   : > { %14032 = vmatpush3.bf16.msra.mxu1 %v14930_v3  ;;  %14054 = vmatpush3.bf16.msra.mxu0 %v14931_v4 }
 0x959   : > { %14061 = vmatprep.subr.bf16.mxu1 %v14932_v61  ;;  %14083 = vmatprep.subr.bf16.mxu0 %v14933_v13  ;;  %v14948_v61 = vld [vmem:[%s15575_s7 + $0x160] sm:$0xff]  }
 0x95a   : > { %v14949_v13 = vld [vmem:[%s15575_s7 + $0x1e0] sm:$0xff]  }
 0x9de   : > { %v4556_v21 = vpop.f32.mrb[40].mxu1  ;;  %v4597_v19 = vpop.f32.mrb[32].mxu0 }
 0x9df   : > { %v4557_v57 = vadd.f32 %v4556_v21, %v4122_v15  ;;  %v4598_v62 = vadd.f32 %v4597_v19, %v4130_v20  ;;  %v4558_v25 = vpop.f32.mrb[41].mxu1  ;;  %v4599_v26 = vpop.f32.mrb[33].mxu0  ;;  %v14950_v21 = vld [vmem:[%s15575_s7 + $0x120] sm:$0xff]  }
 0x9e0   : > { %v4559_v27 = vadd.f32 %v4558_v25, %v4126_v18  ;;  %v4600_v24 = vadd.f32 %v4599_v26, %v4134_v43  ;;  %v4560_v29 = vpop.f32.mrb[42].mxu1  ;;  %v4601_v30 = vpop.f32.mrb[34].mxu0  ;;  %v14951_v19 = vld [vmem:[%s15575_s7 + $0x1a0] sm:$0xff]   ;;  %v14953_v25 = vld [vmem:[%s15575_s7 + $0x1e8] sm:$0xff]  }
 0x9e1   : > { %v4850_v59 = vmax.f32 %v4557_v57, 0.0  ;;  %v4852_v31 = vmax.f32 %v4598_v62, 0.0  ;;  %v4561_v32 = vpop.f32.mrb[43].mxu1  ;;  %v4602_v33 = vpop.f32.mrb[35].mxu0  ;;  %v16245_v57 = vsub.s32 4, %v15657_v22  ;;  %v14952_v62 = vld [vmem:[%s15575_s7 + $0x168] sm:$0xff]   ;;  %v4146_v29 = vrot.slane %v16204_v34, %v4145_v28 }
 0x9e2   : > { %v4851_v40 = vmax.f32 %v4559_v27, 0.0  ;;  %v4853_v42 = vmax.f32 %v4600_v24, 0.0  ;;  %v14954_v26 = vld [vmem:[%s15575_s7 + $0x128] sm:$0xff]   ;;  %v14956_v30 = vld [vmem:[%s15575_s7 + $0x170] sm:$0xff]   ;;  %v4166_v32 = vrot.slane %v16196_v58, %v16207_v14  ;;  %v14960_v28 = vld [vmem:[%s15575_s7 + $0x178] sm:$0xff]  }
 0x9e3   : > { %v4866_v45 = vpack.c.bf16 %v4850_v59, %v4850_v59  ;;  %v4868_v36 = vpack.c.bf16 %v4852_v31, %v4852_v31  ;;  %v14955_v27 = vld [vmem:[%s15575_s7 + $0x1a8] sm:$0xff]   ;;  %v4138_v24 = vrot.slane %v16204_v34, %v16245_v57  ;;  %v14957_v59 = vld [vmem:[%s15575_s7 + $0x1f0] sm:$0xff]   ;;  %v4158_v31 = vrot.slane %v16196_v58, %v15834_v5  ;;  %v14961_v34 = vld [vmem:[%s15575_s7 + $0x1f8] sm:$0xff]  }
 0x9e4   : > { %v4867_v12 = vpack.c.bf16 %v4851_v40, %v4851_v40  ;;  %v4869_v44 = vpack.c.bf16 %v4853_v42, %v4853_v42  ;;  %v14958_v33 = vld [vmem:[%s15575_s7 + $0x130] sm:$0xff]  }
 0x9e5   : > { %v14959_v40 = vld [vmem:[%s15575_s7 + $0x1b0] sm:$0xff]  }
 0x9e6   : > { %5686 = vmatprep.mubr.bf16.mxu1 %v4867_v12  ;;  %5726 = vmatprep.mubr.bf16.mxu0 %v4869_v44 }
 0x9e7   : > { %5687 = vmatmul.mubr.bf16.vlgmr.msra.gmra.mrb[56].mxu1 %v4866_v45  ;;  %5727 = vmatmul.mubr.bf16.vlgmr.msra.gmra.mrb[48].mxu0 %v4868_v36 }
 0x9e8   : > { %14062 = vmatpush3.bf16.msra.mxu1 %v14934_v10  ;;  %14084 = vmatpush3.bf16.msra.mxu0 %v14935_v7 }
 0x9e9   : > { %14063 = vmatprep.subr.bf16.mxu1 %v14936_v60  ;;  %14085 = vmatprep.subr.bf16.mxu0 %v14937_v48 }
 0x9ec   : > { %14064 = vmatpush3.bf16.msra.mxu1 %v14938_v49  ;;  %14086 = vmatpush3.bf16.msra.mxu0 %v14939_v41  ;;  %v14962_v49 = vld [vmem:[%s15575_s7 + $0x138] sm:$0xff]  }
 0x9ed   : > { %14065 = vmatprep.subr.bf16.mxu1 %v14940_v8  ;;  %14087 = vmatprep.subr.bf16.mxu0 %v14941_v46  ;;  %v14963_v41 = vld [vmem:[%s15575_s7 + $0x1b8] sm:$0xff]  }
 0x9ee   : > { %v4638_v55 = vpop.f32.mrb[44].mxu1  ;;  %v4679_v56 = vpop.f32.mrb[36].mxu0 }
 0x9ef   : > { %v4640_v17 = vpop.f32.mrb[45].mxu1  ;;  %v4681_v47 = vpop.f32.mrb[37].mxu0  ;;  %v4639_v42 = vadd.f32 %v4638_v55, %v4138_v24  ;;  %v4680_v12 = vadd.f32 %v4679_v56, %v4146_v29  ;;  %v14966_v55 = vld [vmem:[%s15575_s7 + $0x200] sm:$0xff]   ;;  %v14978_v29 = vld [vmem:[%s15575_s7 + $0x218] sm:$0xff]  }
 0x9f0   : > { %v4641_v63 = vadd.f32 %v4640_v17, %v4142_v37  ;;  %v4682_v16 = vadd.f32 %v4681_v47, %v4150_v52  ;;  %v4642_v39 = vpop.f32.mrb[46].mxu1  ;;  %v4683_v0 = vpop.f32.mrb[38].mxu0  ;;  %14066 = vmatpush3.bf16.msra.mxu1 %v14942_v35  ;;  %14088 = vmatpush3.bf16.msra.mxu0 %v14943_v53  ;;  %v14964_v35 = vld [vmem:[%s15575_s7 + $0x240] sm:$0xff]  }
 0x9f1   : > { %v4643_v3 = vpop.f32.mrb[47].mxu1  ;;  %v4684_v4 = vpop.f32.mrb[39].mxu0  ;;  %14067 = vmatprep.subr.bf16.mxu1 %v14944_v54  ;;  %14089 = vmatprep.subr.bf16.mxu0 %v14945_v38  ;;  %v4854_v8 = vmax.f32 %v4639_v42, 0.0  ;;  %v4856_v46 = vmax.f32 %v4680_v12, 0.0  ;;  %v14965_v53 = vld [vmem:[%s15575_s7 + $0x2c0] sm:$0xff]   ;;  %v14969_v39 = vld [vmem:[%s15575_s7 + $0x2c8] sm:$0xff]  }
 0x9f2   : > { %v4855_v15 = vmax.f32 %v4641_v63, 0.0  ;;  %v4857_v20 = vmax.f32 %v4682_v16, 0.0  ;;  %v14967_v47 = vld [vmem:[%s15575_s7 + $0x280] sm:$0xff]   ;;  %v14968_v16 = vld [vmem:[%s15575_s7 + $0x248] sm:$0xff]   ;;  %v14972_v3 = vld [vmem:[%s15575_s7 + $0x250] sm:$0xff]  }
 0x9f3   : > { %v4870_v56 = vpack.c.bf16 %v4854_v8, %v4854_v8  ;;  %v4872_v17 = vpack.c.bf16 %v4856_v46, %v4856_v46  ;;  %v14973_v4 = vld [vmem:[%s15575_s7 + $0x2d0] sm:$0xff]   ;;  %v14984_v42 = vld [vmem:[%s15575_s7 + $0x268] sm:$0xff]   ;;  %v14993_v46 = vld [vmem:[%s15575_s7 + $0x2f8] sm:$0xff]  }
 0x9f4   : > { %v4871_v18 = vpack.c.bf16 %v4855_v15, %v4855_v15  ;;  %v4873_v43 = vpack.c.bf16 %v4857_v20, %v4857_v20  ;;  %14068 = vmatpush3.bf16.msra.mxu1 %v14946_v1  ;;  %14090 = vmatpush3.bf16.msra.mxu0 %v14947_v2  ;;  %v14970_v1 = vld [vmem:[%s15575_s7 + $0x208] sm:$0xff]   ;;  %v14975_v15 = vld [vmem:[%s15575_s7 + $0x290] sm:$0xff]   ;;  %v14976_v20 = vld [vmem:[%s15575_s7 + $0x258] sm:$0xff]  }
 0x9f5   : > { %14069 = vmatprep.subr.bf16.mxu1 %v14948_v61  ;;  %14091 = vmatprep.subr.bf16.mxu0 %v14949_v13  ;;  %v14971_v2 = vld [vmem:[%s15575_s7 + $0x288] sm:$0xff]   ;;  %v4170_v61 = vrot.slane %v16196_v58, %v16245_v57  ;;  %v14974_v13 = vld [vmem:[%s15575_s7 + $0x210] sm:$0xff]  }
 0x9f6   : > { %5766 = vmatprep.mubr.bf16.mxu1 %v4871_v18  ;;  %5806 = vmatprep.mubr.bf16.mxu0 %v4873_v43  ;;  %v14985_v12 = vld [vmem:[%s15575_s7 + $0x2e8] sm:$0xff]  }
 0x9f8   : > { %14070 = vmatpush3.bf16.msra.mxu1 %v14950_v21  ;;  %14092 = vmatpush3.bf16.msra.mxu0 %v14951_v19  ;;  %v14977_v21 = vld [vmem:[%s15575_s7 + $0x2d8] sm:$0xff]  }
 0x9f9   : > { %14071 = vmatprep.subr.bf16.mxu1 %v14952_v62  ;;  %14093 = vmatprep.subr.bf16.mxu0 %v14953_v25 }
 0x9fc   : > { %14072 = vmatpush3.bf16.msra.mxu1 %v14954_v26  ;;  %14094 = vmatpush3.bf16.msra.mxu0 %v14955_v27 }
 0x9fd   : > { %14073 = vmatprep.subr.bf16.mxu1 %v14956_v30  ;;  %14095 = vmatprep.subr.bf16.mxu0 %v14957_v59 }
 0x9fe   : > { %v16266_v44 = vpop.f32.mrb[48].mxu1  ;;  %v16268_v10 = vpop.f32.mrb[40].mxu0 }
 0x9ff   : > { %v4722_v7 = vpop.f32.mrb[49].mxu1  ;;  %v4763_v5 = vpop.f32.mrb[41].mxu0 }
 0xa00   : > { %v4723_v45 = vadd.f32 %v4722_v7, %v4158_v31  ;;  %v4764_v36 = vadd.f32 %v4763_v5, %v4166_v32  ;;  %v4724_v60 = vpop.f32.mrb[50].mxu1  ;;  %v4765_v48 = vpop.f32.mrb[42].mxu0  ;;  %14074 = vmatpush3.bf16.msra.mxu1 %v14958_v33  ;;  %14096 = vmatpush3.bf16.msra.mxu0 %v14959_v40  ;;  %v14979_v31 = vld [vmem:[%s15575_s7 + $0x298] sm:$0xff]   ;;  %v14980_v32 = vld [vmem:[%s15575_s7 + $0x260] sm:$0xff]   ;;  %v14987_v7 = vld [vmem:[%s15575_s7 + $0x2a8] sm:$0xff]  }
 0xa01   : > { %v4725_v37 = vpop.f32.mrb[51].mxu1  ;;  %v4766_v52 = vpop.f32.mrb[43].mxu0  ;;  %14075 = vmatprep.subr.bf16.mxu1 %v14960_v28  ;;  %14097 = vmatprep.subr.bf16.mxu0 %v14961_v34  ;;  %v14982_v33 = vld [vmem:[%s15575_s7 + $0x220] sm:$0xff]   ;;  %v14986_v28 = vld [vmem:[%s15575_s7 + $0x228] sm:$0xff]   ;;  %v4154_v34 = vrot.slane %v16196_v58, %v15660_v23  ;;  %v14988_v5 = vld [vmem:[%s15575_s7 + $0x270] sm:$0xff]   ;;  %v4174_v60 = vrot.slane %v16196_v58, %v16224_v50  ;;  %v4182_v48 = vrot.slane %v16196_v58, %v4149_v51 }
 0xa02   : > { %v4859_v54 = vmax.f32 %v4723_v45, 0.0  ;;  %v4861_v38 = vmax.f32 %v4764_v36, 0.0  ;;  %v14983_v40 = vld [vmem:[%s15575_s7 + $0x2a0] sm:$0xff]   ;;  %v4162_v45 = vrot.slane %v16196_v58, %v16081_v11  ;;  %v14989_v36 = vld [vmem:[%s15575_s7 + $0x2f0] sm:$0xff]   ;;  %v14992_v11 = vld [vmem:[%s15575_s7 + $0x278] sm:$0xff]  }
 0xa03   : > { %v14990_v23 = vld [vmem:[%s15575_s7 + $0x230] sm:$0xff]   ;;  %v14994_v58 = vld [vmem:[%s15575_s7 + $0x238] sm:$0xff]   ;;  %v14996_v52 = vld [vmem:[%s15575_s7 + $0x340] sm:$0xff]  }
 0xa04   : > { %14076 = vmatpush3.bf16.msra.mxu1 %v14962_v49  ;;  %14098 = vmatpush3.bf16.msra.mxu0 %v14963_v41  ;;  %v4875_v63 = vpack.c.bf16 %v4859_v54, %v4859_v54  ;;  %v4877_v0 = vpack.c.bf16 %v4861_v38, %v4861_v38  ;;  %v4721_v49 = vadd.f32 %v16266_v44, %v4154_v34  ;;  %v14991_v41 = vld [vmem:[%s15575_s7 + $0x2b0] sm:$0xff]   ;;  %v14995_v44 = vld [vmem:[%s15575_s7 + $0x2b8] sm:$0xff]   ;;  %v14998_v38 = vld [vmem:[%s15575_s7 + $0x300] sm:$0xff]  }
 0xa05   : > { %14105 = vmatprep.subr.bf16.mxu1 %v14964_v35  ;;  %14127 = vmatprep.subr.bf16.mxu0 %v14965_v53  ;;  %v4762_v8 = vadd.f32 %v16268_v10, %v4162_v45  ;;  %v14997_v53 = vld [vmem:[%s15575_s7 + $0x3c0] sm:$0xff]  }
 0xa06   : > { %v4858_v51 = vmax.f32 %v4721_v49, 0.0 }
 0xa07   : > { %5767 = vmatmul.mubr.bf16.vlgmr.msra.gmra.mrb[60].mxu1 %v4870_v56  ;;  %5807 = vmatmul.mubr.bf16.vlgmr.msra.gmra.mrb[52].mxu0 %v4872_v17  ;;  %v4860_v35 = vmax.f32 %v4762_v8, 0.0  ;;  %v14999_v56 = vld [vmem:[%s15575_s7 + $0x380] sm:$0xff]  }
 0xa08   : > { %14106 = vmatpush3.bf16.msra.mxu1 %v14966_v55  ;;  %5846 = vmatprep.mubr.bf16.mxu1 %v4875_v63  ;;  %v4874_v55 = vpack.c.bf16 %v4858_v51, %v4858_v51 }
 0xa09   : > { %14128 = vmatpush3.bf16.msra.mxu0 %v14967_v47  ;;  %5886 = vmatprep.mubr.bf16.mxu0 %v4877_v0  ;;  %v4876_v17 = vpack.c.bf16 %v4860_v35, %v4860_v35  ;;  %v15000_v47 = vld [vmem:[%s15575_s7 + $0x348] sm:$0xff]  }
 0xa0a   : > { %14107 = vmatprep.subr.bf16.mxu1 %v14968_v16  ;;  %14129 = vmatprep.subr.bf16.mxu0 %v14969_v39  ;;  %v15001_v16 = vld [vmem:[%s15575_s7 + $0x3c8] sm:$0xff]  }
 0xa0b   : > { %v15002_v0 = vld [vmem:[%s15575_s7 + $0x308] sm:$0xff]  }
 0xa0c   : > { %14108 = vmatpush3.bf16.msra.mxu1 %v14970_v1  ;;  %v15003_v1 = vld [vmem:[%s15575_s7 + $0x388] sm:$0xff]  }
 0xa0d   : > { %14130 = vmatpush3.bf16.msra.mxu0 %v14971_v2  ;;  %14109 = vmatprep.subr.bf16.mxu1 %v14972_v3  ;;  %v15004_v2 = vld [vmem:[%s15575_s7 + $0x350] sm:$0xff]  }
 0xa0e   : > { %v4802_v18 = vpop.f32.mrb[52].mxu1  ;;  %v4843_v43 = vpop.f32.mrb[44].mxu0  ;;  %14131 = vmatprep.subr.bf16.mxu0 %v14973_v4  ;;  %v15005_v3 = vld [vmem:[%s15575_s7 + $0x3d0] sm:$0xff]  }
 0xa0f   : > { %v16288_v19 = vadd.f32 %v4802_v18, %v4170_v61  ;;  %v16291_v62 = vadd.f32 %v4843_v43, %v16201_v9  ;;  %v4804_v25 = vpop.f32.mrb[53].mxu1  ;;  %v4845_v26 = vpop.f32.mrb[45].mxu0  ;;  %v14981_v9 = vld [vmem:[%s15575_s7 + $0x2e0] sm:$0xff]   ;;  %v15006_v4 = vld [vmem:[%s15575_s7 + $0x310] sm:$0xff]   ;;  %v15011_v18 = vld [vmem:[%s15575_s7 + $0x398] sm:$0xff]  }
 0xa10   : > { %v4806_v27 = vpop.f32.mrb[54].mxu1  ;;  %v4847_v24 = vpop.f32.mrb[46].mxu0  ;;  %14110 = vmatpush3.bf16.msra.mxu1 %v14974_v13  ;;  %v4805_v37 = vadd.f32 %v4804_v25, %v4174_v60  ;;  %v4846_v22 = vadd.f32 %v4845_v26, %v4182_v48  ;;  %v15007_v61 = vld [vmem:[%s15575_s7 + $0x390] sm:$0xff]   ;;  %v15008_v13 = vld [vmem:[%s15575_s7 + $0x358] sm:$0xff]   ;;  %v15012_v43 = vld [vmem:[%s15575_s7 + $0x360] sm:$0xff]  }
 0xa11   : > { %14132 = vmatpush3.bf16.msra.mxu0 %v14975_v15  ;;  %v4807_v30 = vpop.f32.mrb[55].mxu1  ;;  %v4848_v59 = vpop.f32.mrb[47].mxu0  ;;  %14111 = vmatprep.subr.bf16.mxu1 %v14976_v20  ;;  %v15009_v15 = vld [vmem:[%s15575_s7 + $0x3d8] sm:$0xff]   ;;  %v15014_v25 = vld [vmem:[%s15575_s7 + $0x320] sm:$0xff]   ;;  %v15016_v27 = vld [vmem:[%s15575_s7 + $0x368] sm:$0xff]   ;;  %v4864_v34 = vmax.f32 %v16291_v62, 0.0 }
 0xa12   : > { %14133 = vmatprep.subr.bf16.mxu0 %v14977_v21  ;;  %v4863_v54 = vmax.f32 %v4805_v37, 0.0  ;;  %v4865_v10 = vmax.f32 %v4846_v22, 0.0  ;;  %v15010_v20 = vld [vmem:[%s15575_s7 + $0x318] sm:$0xff]   ;;  %v15013_v21 = vld [vmem:[%s15575_s7 + $0x3e0] sm:$0xff]   ;;  %v15017_v24 = vld [vmem:[%s15575_s7 + $0x3e8] sm:$0xff]  }
 0xa13   : > { %v15015_v26 = vld [vmem:[%s15575_s7 + $0x3a0] sm:$0xff]   ;;  %v15019_v30 = vld [vmem:[%s15575_s7 + $0x3a8] sm:$0xff]   ;;  %v15020_v59 = vld [vmem:[%s15575_s7 + $0x370] sm:$0xff]  }
 0xa14   : > { %14112 = vmatpush3.bf16.msra.mxu1 %v14978_v29  ;;  %v4879_v63 = vpack.c.bf16 %v4863_v54, %v4863_v54  ;;  %v4881_v39 = vpack.c.bf16 %v4865_v10, %v4865_v10  ;;  %v15018_v29 = vld [vmem:[%s15575_s7 + $0x328] sm:$0xff]   ;;  %v16357_v60 = vld [vmem:[%s17674_s25] sm:$0x3f] }
 0xa15   : > { %14134 = vmatpush3.bf16.msra.mxu0 %v14979_v31  ;;  %14113 = vmatprep.subr.bf16.mxu1 %v14980_v32  ;;  %v15021_v31 = vld [vmem:[%s15575_s7 + $0x3f0] sm:$0xff]   ;;  %v4885_v48 = vrot.slane %v16357_v60, %v16207_v14 }
 0xa16   : > { %14135 = vmatprep.subr.bf16.mxu0 %v14981_v9  ;;  %v15022_v32 = vld [vmem:[%s15575_s7 + $0x330] sm:$0xff]  }
 0xa17   : > { %v15023_v9 = vld [vmem:[%s15575_s7 + $0x3b0] sm:$0xff]  }
 0xa18   : > { %14114 = vmatpush3.bf16.msra.mxu1 %v14982_v33  ;;  %v15024_v33 = vld [vmem:[%s15575_s7 + $0x378] sm:$0xff]  }
 0xa19   : > { %14136 = vmatpush3.bf16.msra.mxu0 %v14983_v40  ;;  %14115 = vmatprep.subr.bf16.mxu1 %v14984_v42  ;;  %v15025_v40 = vld [vmem:[%s15575_s7 + $0x3f8] sm:$0xff]  }
 0xa1a   : > { %14137 = vmatprep.subr.bf16.mxu0 %v14985_v12  ;;  %v15026_v42 = vld [vmem:[%s15575_s7 + $0x338] sm:$0xff]   ;;  %v4862_v12 = vmax.f32 %v16288_v19, 0.0 }
 0xa1c   : > { %14116 = vmatpush3.bf16.msra.mxu1 %v14986_v28  ;;  %v15027_v28 = vld [vmem:[%s15575_s7 + $0x3b8] sm:$0xff]  }
 0xa1d   : > { %14138 = vmatpush3.bf16.msra.mxu0 %v14987_v7  ;;  %14117 = vmatprep.subr.bf16.mxu1 %v14988_v5  ;;  %v4878_v7 = vpack.c.bf16 %v4862_v12, %v4862_v12  ;;  %v4880_v5 = vpack.c.bf16 %v4864_v34, %v4864_v34 }
 0xa1e   : > { %14139 = vmatprep.subr.bf16.mxu0 %v14989_v36 }
 0xa20   : > { %14118 = vmatpush3.bf16.msra.mxu1 %v14990_v23 }
 0xa21   : > { %14140 = vmatpush3.bf16.msra.mxu0 %v14991_v41  ;;  %14119 = vmatprep.subr.bf16.mxu1 %v14992_v11 }
 0xa22   : > { %14141 = vmatprep.subr.bf16.mxu0 %v14993_v46 }
 0xa24   : > { %14120 = vmatpush3.bf16.msra.mxu1 %v14994_v58 }
 0xa25   : > { %14142 = vmatpush3.bf16.msra.mxu0 %v14995_v44  ;;  %14149 = vmatprep.subr.bf16.mxu1 %v14996_v52 }
 0xa26   : > { %14171 = vmatprep.subr.bf16.mxu0 %v14997_v53 }
 0xa27   : > { %5847 = vmatmul.mubr.bf16.vlgmr.msra.gmra.mrb[64].mxu1 %v4874_v55 }
 0xa28   : > { %5887 = vmatmul.mubr.bf16.vlgmr.msra.gmra.mrb[56].mxu0 %v4876_v17  ;;  %14150 = vmatpush3.bf16.msra.mxu1 %v14998_v38 }
 0xa29   : > { %5926 = vmatprep.mubr.bf16.mxu1 %v4879_v63  ;;  %14172 = vmatpush3.bf16.msra.mxu0 %v14999_v56 }
 0xa2a   : > { %5966 = vmatprep.mubr.bf16.mxu0 %v4881_v39  ;;  %14151 = vmatprep.subr.bf16.mxu1 %v15000_v47 }
 0xa2b   : > { %14173 = vmatprep.subr.bf16.mxu0 %v15001_v16 }
 0xa2c   : > { %14152 = vmatpush3.bf16.msra.mxu1 %v15002_v0 }
 0xa2d   : > { %14174 = vmatpush3.bf16.msra.mxu0 %v15003_v1  ;;  %14153 = vmatprep.subr.bf16.mxu1 %v15004_v2 }
 0xa2e   : > { %14175 = vmatprep.subr.bf16.mxu0 %v15005_v3 }
 0xa30   : > { %14154 = vmatpush3.bf16.msra.mxu1 %v15006_v4 }
 0xa31   : > { %14176 = vmatpush3.bf16.msra.mxu0 %v15007_v61  ;;  %14155 = vmatprep.subr.bf16.mxu1 %v15008_v13 }
 0xa32   : > { %14177 = vmatprep.subr.bf16.mxu0 %v15009_v15 }
 0xa34   : > { %14156 = vmatpush3.bf16.msra.mxu1 %v15010_v20 }
 0xa35   : > { %14178 = vmatpush3.bf16.msra.mxu0 %v15011_v18  ;;  %14157 = vmatprep.subr.bf16.mxu1 %v15012_v43 }
 0xa36   : > { %14179 = vmatprep.subr.bf16.mxu0 %v15013_v21 }
 0xa38   : > { %14158 = vmatpush3.bf16.msra.mxu1 %v15014_v25 }
 0xa39   : > { %14180 = vmatpush3.bf16.msra.mxu0 %v15015_v26  ;;  %14159 = vmatprep.subr.bf16.mxu1 %v15016_v27 }
 0xa3a   : > { %14181 = vmatprep.subr.bf16.mxu0 %v15017_v24 }
 0xa3c   : > { %14160 = vmatpush3.bf16.msra.mxu1 %v15018_v29 }
 0xa3d   : > { %14182 = vmatpush3.bf16.msra.mxu0 %v15019_v30  ;;  %14161 = vmatprep.subr.bf16.mxu1 %v15020_v59 }
 0xa3e   : > { %14183 = vmatprep.subr.bf16.mxu0 %v15021_v31 }
 0xa40   : > { %14162 = vmatpush3.bf16.msra.mxu1 %v15022_v32 }
 0xa41   : > { %14184 = vmatpush3.bf16.msra.mxu0 %v15023_v9  ;;  %14163 = vmatprep.subr.bf16.mxu1 %v15024_v33 }
 0xa42   : > { %14185 = vmatprep.subr.bf16.mxu0 %v15025_v40 }
 0xa44   : > { %14164 = vmatpush3.bf16.msra.mxu1 %v15026_v42 }
 0xa45   : > { %14186 = vmatpush3.bf16.msra.mxu0 %v15027_v28 }
 0xa47   : > { %5927 = vmatmul.mubr.bf16.vlgmr.msra.gmra.mrb[68].mxu1 %v4878_v7 }
 0xa48   : > { %5967 = vmatmul.mubr.bf16.vlgmr.msra.gmra.mrb[60].mxu0 %v4880_v5  ;;  %v5991_v5 = vrot.slane %v16357_v60, %v16245_v57 }
 0xaba   : > { %v14033_v45 = vpop.f32.mrb[56].mxu1  ;;  %v14055_v36 = vpop.f32.mrb[48].mxu0 }
 0xabb   : > { %v14034_v19 = vpop.f32.mrb[57].mxu1  ;;  %v14056_v23 = vpop.f32.mrb[49].mxu0 }
 0xabc   : > { %v14035_v49 = vadd.f32 %v14034_v19, %v14033_v45  ;;  %v14057_v41 = vadd.f32 %v14056_v23, %v14055_v36  ;;  %v14036_v11 = vpop.f32.mrb[58].mxu1  ;;  %v14058_v62 = vpop.f32.mrb[50].mxu0 }
 0xabd   : > { %v14037_v8 = vpop.f32.mrb[59].mxu1  ;;  %v14059_v46 = vpop.f32.mrb[51].mxu0 }
 0xabe   : > { %v5689_v37 = vadd.f32 %v14035_v49, %v4885_v48  ;;  %v6033_v8 = vld [vmem:[#allocation3] sm:$0xff] (!%p13601_p8) }
 0xac0   : > { %v5729_v22 = vadd.f32 %v14057_v41, %v5689_v37 }
 0xada   : > { %v14077_v58 = vpop.f32.mrb[60].mxu1  ;;  %v14099_v51 = vpop.f32.mrb[52].mxu0 }
 0xadb   : > { %v14078_v44 = vpop.f32.mrb[61].mxu1  ;;  %v14100_v52 = vpop.f32.mrb[53].mxu0 }
 0xadc   : > { %v14079_v35 = vadd.f32 %v14078_v44, %v14077_v58  ;;  %v14101_v53 = vadd.f32 %v14100_v52, %v14099_v51  ;;  %v14080_v54 = vpop.f32.mrb[62].mxu1  ;;  %v14102_v10 = vpop.f32.mrb[54].mxu0  ;;  %v13603_v51 = vld [vmem:[%s17678_s5] ss:$0 sm:$0xff] (!%p13601_p8) }
 0xadd   : > { %v14081_v38 = vpop.f32.mrb[63].mxu1  ;;  %v14103_v14 = vpop.f32.mrb[55].mxu0 }
 0xade   : > { %v5769_v55 = vadd.f32 %v14079_v35, %v5729_v22  ;;  %v13602_v22 = vld [vmem:[%s17677_s10] ss:$0 sm:$0xff] (!%p13601_p8) }
 0xae0   : > { %v5809_v56 = vadd.f32 %v14101_v53, %v5769_v55 }
 0xafa   : > { %v14121_v17 = vpop.f32.mrb[64].mxu1 }
 0xafb   : > { %v14143_v47 = vpop.f32.mrb[56].mxu0  ;;  %v14122_v63 = vpop.f32.mrb[65].mxu1 }
 0xafc   : > { %v14123_v16 = vadd.f32 %v14122_v63, %v14121_v17  ;;  %v14144_v39 = vpop.f32.mrb[57].mxu0  ;;  %v14124_v0 = vpop.f32.mrb[66].mxu1 }
 0xafd   : > { %v14145_v1 = vadd.f32 %v14144_v39, %v14143_v47  ;;  %v14146_v2 = vpop.f32.mrb[58].mxu0  ;;  %v14125_v3 = vpop.f32.mrb[67].mxu1 }
 0xafe   : > { %v5849_v4 = vadd.f32 %v14123_v16, %v5809_v56  ;;  %v14147_v61 = vpop.f32.mrb[59].mxu0 }
 0xb00   : > { %v5889_v13 = vadd.f32 %v14145_v1, %v5849_v4 }
 0xb1a   : > { %v14165_v15 = vpop.f32.mrb[68].mxu1 }
 0xb1b   : > { %v14187_v20 = vpop.f32.mrb[60].mxu0  ;;  %v14166_v18 = vpop.f32.mrb[69].mxu1 }
 0xb1c   : > { %v14167_v43 = vadd.f32 %v14166_v18, %v14165_v15  ;;  %v14188_v21 = vpop.f32.mrb[61].mxu0  ;;  %v14168_v25 = vpop.f32.mrb[70].mxu1 }
 0xb1d   : > { %v14189_v26 = vadd.f32 %v14188_v21, %v14187_v20  ;;  %v14190_v27 = vpop.f32.mrb[62].mxu0  ;;  %v14169_v24 = vpop.f32.mrb[71].mxu1 }
 0xb1e   : > { %v5929_v29 = vadd.f32 %v14167_v43, %v5889_v13  ;;  %v14191_v30 = vpop.f32.mrb[63].mxu0 }
 0xb20   : > { %v5969_v59 = vadd.f32 %v14189_v26, %v5929_v29 }
 0xb22   : > { %v5974_v31 = vadd.f32 %v5969_v59, %v16092_v6  ;;  %v5996_v6 = vrot.slane %v16357_v60, %v16224_v50 }
 0xb24   : > { %v5975_v32 = vsel %vm1589_vm3, %v5974_v31, 0.0 }
 0xb25   : > { %5976 = vadd.xlane.f32.xlu0 %v5975_v32 }
 0xbb2   : > { %v5977_v9 = vpop.xlane.xlu0 %5976 }
 0xbb3   : > { %v5978_v33 = vmul.f32 0.015625, %v5977_v9 }
 0xbb5   : > { %v5979_v40 = vsub.f32 %v5974_v31, %v5978_v33 }
 0xbb7   : > { %v5980_v42 = vmul.f32 %v5979_v40, %v5979_v40 }
 0xbb9   : > { %v5981_v12 = vsel %vm1589_vm3, %v5980_v42, 0.0 }
 0xbba   : > { %5982 = vadd.xlane.f32.xlu1 %v5981_v12 }
 0xc47   : > { %v5983_v28 = vpop.xlane.xlu1 %5982 }
 0xc48   : > { %v5984_v34 = vmul.f32 0.015625, %v5983_v28 }
 0xc4a   : > { %v5985_v7 = vadd.f32 1e-05, %v5984_v34 }
 0xc4c   : > { %15062 = vrsqrt.f32 %v5985_v7 }
 0xc56   : > { %v15063_v45 = vpop.eup %15062 }
 0xc57   : > { %v5987_v36 = vmul.f32 %v15063_v45, %v5979_v40  ;;  %6002 = sbr.rel (%p13601_p8) target bundleno = 3479 (0xd97), region = 140 }
 0xc59   : > { %v5992_v48 = vmul.f32 %v5991_v5, %v5987_v36 }
 0xc5b   : > { %v5997_v19 = vadd.f32 %v5996_v6, %v5992_v48 }
 0xc5d   : > { %5998 = vst.msk [vmem:[#allocation2] sm:$0xff] %vm1589_vm3, %v5997_v19  ;;  %v6005_v23 = vsel (!%p13601_p8), %vm1589_vm3, %v5997_v19, 0.0 }
 0xc5e   : > { %6006 = vadd.xlane.f32.xlu0 %v6005_v23  ;;  %6034 = vst.msk [vmem:[#allocation2] sm:$0xff] %vm1589_vm3, %v6033_v8 }
 0xceb   : > { %v6007_v49 = vpop.xlane.xlu0 %6006 }
 0xcec   : > { %v6008_v41 = vmul.f32 0.015625, %v6007_v49 }
 0xcee   : > { %v6009_v11 = vsub.f32 %v5997_v19, %v6008_v41 }
 0xcf0   : > { %v6010_v62 = vmul.f32 %v6009_v11, %v6009_v11 }
 0xcf2   : > { %v6011_v57 = vsel %vm1589_vm3, %v6010_v62, 0.0 }
 0xcf3   : > { %6012 = vadd.xlane.f32.xlu0 %v6011_v57 }
 0xd80   : > { %v6013_v50 = vpop.xlane.xlu0 %6012 }
 0xd81   : > { %v6014_v60 = vmul.f32 0.015625, %v6013_v50 }
 0xd83   : > { %v6015_v46 = vadd.f32 1e-05, %v6014_v60 }
 0xd85   : > { %15066 = vrsqrt.f32 %v6015_v46 }
 0xd8f   : > { %v15067_v37 = vpop.eup %15066 }
 0xd90   : > { %v6017_v58 = vmul.f32 %v15067_v37, %v6009_v11 }
 0xd92   : > { %v6024_v44 = vmul.f32 %v13602_v22, %v6017_v58 }
 0xd94   : > { %v6031_v52 = vadd.f32 %v13603_v51, %v6024_v44 }
 0xd96   : > { %6032 = vst.msk [vmem:[#allocation4] sm:$0xff] %vm1589_vm3, %v6031_v52 }
 0xd97 PF: > { %p13604_p9 = scmp.lt.s32.totalorder %s15532_s4, 6 }
 0xd98   : > { %s17679_s26 = sld [smem:[#allocation15_spill]] (!%p13604_p9)  ;;  %v15363_v54 = vmov (!%p13604_p9), 0   ;;  %vm6104_vm13 = vcmask (!%p13604_p9), 523264   ;;  %v6054_v16 = vlaneseq (!%p13604_p9)  ;;  %v16397_v1 = vld [vmem:[%s15587_s0] sm:$0x3] (!%p13604_p9)  ;;  %s15364_s22 = smov (!%p13604_p9), 104  }
 0xd99   : > { %6038 = sbr.rel (%p13604_p9) target bundleno = 8732 (0x221c), region = 144  ;;  %6140 = vmatprep.mubr.bf16.mxu0 (!%p13604_p9), %v15363_v54  ;;  %s15365_s11 = smov (!%p13604_p9), 120   ;;  %v15372_v20 = vmov (!%p13604_p9), 1983009808   ;;  %v15373_v43 = vmov (!%p13604_p9), 1934713408  }
 0xd9a   : > { %v16391_v39 = vshrl.u32 (!%p13604_p9), %v6054_v16, 7  ;;  %s15366_s25 = smov (!%p13604_p9), 96   ;;  %s15367_s0 = smov (!%p13604_p9), 112   ;;  %v6182_v18 = vunpack.c.l.s4 (!%p13604_p9), %v15372_v20  ;;  %v6246_v21 = vunpack.c.l.s4 (!%p13604_p9), %v15373_v43  ;;  %v15374_v51 = vmov (!%p13604_p9), 0.0  }
 0xd9b   : > { %s15368_s12 = smov (!%p13604_p9), 80   ;;  %s15369_s30 = smov (!%p13604_p9), 88   ;;  %14572 = vmatprep.subr.bf16.mxu1 (!%p13604_p9), %v15374_v51  ;;  %vm15375_vm14 = vmmov (!%p13604_p9), 0   ;;  %vm7065_vm15 = vcmask (!%p13604_p9), 64512   ;;  %vm7533_vm0 = vcmask (!%p13604_p9), 1043456   ;;  %vm8200_vm1 = vcmask (!%p13604_p9), 130048  }
 0xd9c   : > { %v16394_v0 = vsub.s32 (!%p13604_p9), 0, %v16391_v39  ;;  %s15370_s7 = smov (!%p13604_p9), 64   ;;  %s15371_s23 = smov (!%p13604_p9), 72   ;;  %v6183_v25 = vunpack.c.0.s8 (!%p13604_p9), %v6182_v18  ;;  %v6247_v30 = vunpack.c.0.s8 (!%p13604_p9), %v6246_v21  ;;  %14574 = vmatprep.mubr.msk.bf16.mxu1 (!%p13604_p9), %vm15375_vm14, %v15374_v51  ;;  %vm8202_vm2 = vcmask (!%p13604_p9), 195584  }
 0xd9d   : > { %s15376_s10 = smov (!%p13604_p9), 16   ;;  %s15377_s9 = smov (!%p13604_p9), 8   ;;  %vm8204_vm3 = vcmask (!%p13604_p9), 261120   ;;  %vm8206_vm4 = vcmask (!%p13604_p9), 326656   ;;  %vm8208_vm5 = vcmask (!%p13604_p9), 392192   ;;  %vm8210_vm6 = vcmask (!%p13604_p9), 457728  }
 0xd9e   : > { %v15068_v35 = vld [vmem:[%s17679_s26 + $0x4] ss:$8 sps:$4 sm:$0xff] (!%p13604_p9)   ;;  %v15070_v53 = vld [vmem:[%s17679_s26] ss:$8 sps:$4 sm:$0xff] (!%p13604_p9)   ;;  %v15071_v10 = vld [vmem:[%s17679_s26 + $0x14] ss:$8 sps:$4 sm:$0xff] (!%p13604_p9)   ;;  %v6057_v2 = vrot.slane (!%p13604_p9), %v16397_v1, %v16394_v0  ;;  %v16413_v59 = vsub.s32 (!%p13604_p9), %v6183_v25, %v16391_v39  ;;  %v16418_v40 = vsub.s32 (!%p13604_p9), %v6247_v30, %v16391_v39 }
 0xd9f   : > { %6108 = vmatprep.subr.bf16.mxu0 (!%p13604_p9), %v15068_v35  ;;  %v15073_v38 = vld [vmem:[%s17679_s26 + $0x10] ss:$8 sps:$4 sm:$0xff] (!%p13604_p9)   ;;  %v15074_v14 = vld [vmem:[%s17679_s26 + $0x24] ss:$8 sps:$4 sm:$0xff] (!%p13604_p9)   ;;  %v15076_v55 = vld [vmem:[%s17679_s26 + $0x20] ss:$8 sps:$4 sm:$0xff] (!%p13604_p9)  }
 0xda0   : > { %6109 = vmatpush1.bf16.msra.mxu0 %v15070_v53  ;;  %v15077_v56 = vld [vmem:[%s17679_s26 + $0x34] ss:$8 sps:$4 sm:$0xff]   ;;  %v15079_v17 = vld [vmem:[%s17679_s26 + $0x30] ss:$8 sps:$4 sm:$0xff]   ;;  %v6039_v47 = vld [vmem:[#allocation2] sm:$0xff]  ;;  %s17627_s1 = smov 24  }
 0xda1   : > { %6110 = vmatprep.subr.bf16.mxu0 %v15071_v10  ;;  %v6052_v63 = vpack.c.bf16 %v6039_v47, %v6039_v47  ;;  %s15380_s5 = smov 32   ;;  %s17629_s26 = smov 56  }
 0xda2   : > { %p13931_p10 = scmp.ne.s32.totalorder %s15532_s4, 11 }
 0xda3   : > { %vm15384_vm7 = vmmov (!%p13931_p10), 0  }
 0xda4   : > { %6111 = vmatpush1.bf16.msra.mxu0 %v15073_v38 }
 0xda5   : > { %6112 = vmatprep.subr.bf16.mxu0 %v15074_v14 }
 0xda8   : > { %6113 = vmatpush1.bf16.msra.mxu0 %v15076_v55 }
 0xda9   : > { %6114 = vmatprep.subr.bf16.mxu0 %v15077_v56 }
 0xdac   : > { %6115 = vmatpush1.bf16.msra.mxu0 %v15079_v17 }
 0xdad   : > { %14596 = vmatprep.subr.bf16.mxu0 %v15374_v51 }
 0xdaf   : > { %13613 = vmatmul.mubr.msk.bf16.vlgmr.msra.gmra.mrb[0].mxu0 %vm6104_vm13, %v6052_v63 }
 0xdb0   : > { %14598 = vmatprep.mubr.msk.bf16.mxu0 %vm15375_vm14, %v15374_v51 }
 0xe82   : > { %v6142_v3 = vpop.f32.mrb[0].mxu0 }
 0xe83   : > { %v6143_v4 = vadd.f32 %v6142_v3, %v6057_v2  ;;  %v16401_v61 = vpop.f32.mrb[1].mxu0 }
 0xe84   : > { %v6146_v13 = vpop.f32.mrb[2].mxu0 }
 0xe85   : > { %v6147_v15 = vpop.f32.mrb[3].mxu0  ;;  %6164 = vrot.lane.b32.xlu1 %v6143_v4, %s15364_s22  ;;  %6158 = vrot.lane.b32.xlu0 %v6143_v4, %s15365_s11 }
 0xe89   : > { %6167 = vrot.lane.b32.xlu1 %v6143_v4, %s15366_s25  ;;  %6161 = vrot.lane.b32.xlu0 %v6143_v4, %s15367_s0 }
 0xe8d   : > { %6173 = vrot.lane.b32.xlu1 %v6143_v4, %s15368_s12  ;;  %6170 = vrot.lane.b32.xlu0 %v6143_v4, %s15369_s30 }
 0xe91   : > { %6459 = vrot.lane.b32.xlu1 %v6143_v4, %s15370_s7  ;;  %6176 = vrot.lane.b32.xlu0 %v6143_v4, %s15371_s23 }
 0xef7   : > { %v6165_v26 = vpop.permute.xlu1 %6164  ;;  %v6159_v27 = vpop.permute.xlu0 %6158 }
 0xef8   : > { %v6195_v24 = vcombine.low %v6159_v27, %v6165_v26  ;;  %v6196_v29 = vcombine.high %v6159_v27, %v6165_v26  ;;  %6461 = vrot.lane.b32.xlu0 %v6159_v27, %s15370_s7 }
 0xefa   : > { %v6203_v42 = vrot.slane %v6195_v24, %v16413_v59  ;;  %v6210_v12 = vrot.slane %v6196_v29, %v16413_v59 }
 0xefb   : > { %v6168_v31 = vpop.permute.xlu1 %6167  ;;  %v6162_v32 = vpop.permute.xlu0 %6161 }
 0xefc   : > { %v6179_v9 = vcombine.low %v6143_v4, %v6162_v32  ;;  %v6180_v33 = vcombine.high %v6143_v4, %v6162_v32  ;;  %6465 = vrot.lane.b32.xlu0 %v6165_v26, %s15370_s7  ;;  %6463 = vrot.lane.b32.xlu1 %v6162_v32, %s15370_s7 }
 0xefe   : > { %v6187_v28 = vrot.slane %v6179_v9, %v16413_v59  ;;  %v6194_v34 = vrot.slane %v6180_v33, %v16413_v59 }
 0xeff   : > { %v6174_v7 = vpop.permute.xlu1 %6173  ;;  %v6171_v5 = vpop.permute.xlu0 %6170 }
 0xf00   : > { %v6243_v45 = vcombine.low %v6187_v28, %v6203_v42  ;;  %v6244_v6 = vcombine.high %v6187_v28, %v6203_v42  ;;  %v6259_v36 = vcombine.low %v6194_v34, %v6210_v12  ;;  %v6260_v48 = vcombine.high %v6194_v34, %v6210_v12  ;;  %6467 = vrot.lane.b32.xlu1 %v6168_v31, %s15370_s7 }
 0xf01   : > { %v6211_v19 = vcombine.low %v6168_v31, %v6174_v7  ;;  %v6212_v23 = vcombine.high %v6168_v31, %v6174_v7  ;;  %6469 = vrot.lane.b32.xlu0 %v6171_v5, %s15370_s7 }
 0xf02   : > { %v6251_v49 = vrot.slane %v6243_v45, %v16418_v40  ;;  %v6258_v41 = vrot.slane %v6244_v6, %v16418_v40  ;;  %v6267_v11 = vrot.slane %v6259_v36, %v16418_v40  ;;  %v6274_v62 = vrot.slane %v6260_v48, %v16418_v40 }
 0xf03   : > { %v6177_v57 = vpop.permute.xlu0 %6176  ;;  %v6219_v37 = vrot.slane %v6211_v19, %v16413_v59  ;;  %v6226_v10 = vrot.slane %v6212_v23, %v16413_v59 }
 0xf04   : > { %v13614_v8 = vcombine.low %v6251_v49, %v6258_v41  ;;  %v13616_v50 = vcombine.high %v6251_v49, %v6258_v41  ;;  %v13618_v60 = vcombine.low %v6267_v11, %v6274_v62  ;;  %v13620_v46 = vcombine.high %v6267_v11, %v6274_v62  ;;  %6471 = vrot.lane.b32.xlu1 %v6174_v7, %s15370_s7  ;;  %v6460_v62 = vpop.permute.xlu1 %6459 }
 0xf05   : > { %v6227_v22 = vcombine.low %v6171_v5, %v6177_v57  ;;  %v6228_v58 = vcombine.high %v6171_v5, %v6177_v57  ;;  %6473 = vrot.lane.b32.xlu0 %v6177_v57, %s15370_s7 }
 0xf06   : > { %v6323_v44 = vrot.slane %v13614_v8, %v16413_v59  ;;  %v6339_v52 = vrot.slane %v13616_v50, %v16413_v59  ;;  %v6355_v35 = vrot.slane %v13618_v60, %v16413_v59  ;;  %v6371_v53 = vrot.slane %v13620_v46, %v16413_v59 }
 0xf07   : > { %v6235_v38 = vrot.slane %v6227_v22, %v16413_v59  ;;  %v6242_v14 = vrot.slane %v6228_v58, %v16413_v59 }
 0xf08   : > { %v6380_v55 = vcombine.high %v6323_v44, %v6339_v52  ;;  %v6412_v56 = vcombine.high %v6355_v35, %v6371_v53  ;;  %v6379_v17 = vcombine.low %v6323_v44, %v6339_v52  ;;  %v6411_v47 = vcombine.low %v6355_v35, %v6371_v53 }
 0xf09   : > { %v6275_v63 = vcombine.low %v6219_v37, %v6235_v38  ;;  %v6276_v16 = vcombine.high %v6219_v37, %v6235_v38  ;;  %v6291_v2 = vcombine.low %v6226_v10, %v6242_v14  ;;  %v6292_v3 = vcombine.high %v6226_v10, %v6242_v14 }
 0xf0a   : > { %v6387_v4 = vrot.slane %v6379_v17, %v16418_v40  ;;  %v6419_v13 = vrot.slane %v6411_v47, %v16418_v40  ;;  %v6394_v15 = vrot.slane %v6380_v55, %v16418_v40  ;;  %v6426_v20 = vrot.slane %v6412_v56, %v16418_v40 }
 0xf0b   : > { %v6283_v18 = vrot.slane %v6275_v63, %v16418_v40  ;;  %v6290_v43 = vrot.slane %v6276_v16, %v16418_v40  ;;  %v6299_v21 = vrot.slane %v6291_v2, %v16418_v40  ;;  %v6306_v25 = vrot.slane %v6292_v3, %v16418_v40 }
 0xf0c   : > { %v16454_v26 = vcombine.low %v6387_v4, %v6419_v13  ;;  %v16456_v27 = vcombine.high %v6387_v4, %v6419_v13  ;;  %v16458_v24 = vcombine.low %v6394_v15, %v6426_v20  ;;  %v16460_v29 = vcombine.high %v6394_v15, %v6426_v20 }
 0xf0d   : > { %v13615_v30 = vcombine.low %v6283_v18, %v6290_v43  ;;  %v13617_v31 = vcombine.high %v6283_v18, %v6290_v43  ;;  %v13619_v32 = vcombine.low %v6299_v21, %v6306_v25  ;;  %v13621_v9 = vcombine.high %v6299_v21, %v6306_v25 }
 0xf0f   : > { %v6330_v33 = vrot.slane %v13615_v30, %v16413_v59  ;;  %v6346_v42 = vrot.slane %v13617_v31, %v16413_v59  ;;  %v6362_v12 = vrot.slane %v13619_v32, %v16413_v59  ;;  %v6378_v28 = vrot.slane %v13621_v9, %v16413_v59 }
 0xf11   : > { %v6395_v34 = vcombine.low %v6330_v33, %v6346_v42  ;;  %v6396_v7 = vcombine.high %v6330_v33, %v6346_v42  ;;  %v6427_v5 = vcombine.low %v6362_v12, %v6378_v28  ;;  %v6428_v45 = vcombine.high %v6362_v12, %v6378_v28 }
 0xf13   : > { %v6403_v6 = vrot.slane %v6395_v34, %v16418_v40  ;;  %v6435_v36 = vrot.slane %v6427_v5, %v16418_v40  ;;  %v6410_v48 = vrot.slane %v6396_v7, %v16418_v40  ;;  %v6442_v19 = vrot.slane %v6428_v45, %v16418_v40 }
 0xf15   : > { %v16470_v23 = vcombine.low %v6403_v6, %v6435_v36  ;;  %v16472_v49 = vcombine.low %v6410_v48, %v6442_v19  ;;  %v16474_v41 = vcombine.high %v6403_v6, %v6435_v36  ;;  %v16476_v11 = vcombine.high %v6410_v48, %v6442_v19 }
 0xf6a   : > { %v6462_v57 = vpop.permute.xlu0 %6461 }
 0xf6e   : > { %v6464_v8 = vpop.permute.xlu1 %6463  ;;  %v6466_v50 = vpop.permute.xlu0 %6465 }
 0xf6f   : > { %v6483_v60 = vcombine.low %v6460_v62, %v6464_v8  ;;  %v6484_v46 = vcombine.high %v6460_v62, %v6464_v8  ;;  %v6499_v37 = vcombine.low %v6462_v57, %v6466_v50  ;;  %v6500_v22 = vcombine.high %v6462_v57, %v6466_v50 }
 0xf71   : > { %v6491_v58 = vrot.slane %v6483_v60, %v16413_v59  ;;  %v6498_v44 = vrot.slane %v6484_v46, %v16413_v59  ;;  %v6507_v52 = vrot.slane %v6499_v37, %v16413_v59  ;;  %v6514_v35 = vrot.slane %v6500_v22, %v16413_v59 }
 0xf72   : > { %v6468_v53 = vpop.permute.xlu1 %6467 }
 0xf73   : > { %v6547_v10 = vcombine.low %v6491_v58, %v6507_v52  ;;  %v6548_v38 = vcombine.high %v6491_v58, %v6507_v52  ;;  %v6563_v14 = vcombine.low %v6498_v44, %v6514_v35  ;;  %v6564_v55 = vcombine.high %v6498_v44, %v6514_v35  ;;  %v6470_v56 = vpop.permute.xlu0 %6469 }
 0xf75   : > { %v6555_v17 = vrot.slane %v6547_v10, %v16418_v40  ;;  %v6562_v47 = vrot.slane %v6548_v38, %v16418_v40  ;;  %v6571_v63 = vrot.slane %v6563_v14, %v16418_v40  ;;  %v6578_v16 = vrot.slane %v6564_v55, %v16418_v40 }
 0xf76   : > { %v6472_v2 = vpop.permute.xlu1 %6471 }
 0xf77   : > { %v13622_v3 = vcombine.low %v6555_v17, %v6562_v47  ;;  %v13624_v4 = vcombine.high %v6555_v17, %v6562_v47  ;;  %v13626_v13 = vcombine.low %v6571_v63, %v6578_v16  ;;  %v13628_v15 = vcombine.high %v6571_v63, %v6578_v16  ;;  %v6474_v20 = vpop.permute.xlu0 %6473 }
 0xf78   : > { %v6515_v18 = vcombine.low %v6468_v53, %v6472_v2  ;;  %v6516_v43 = vcombine.high %v6468_v53, %v6472_v2  ;;  %v6531_v21 = vcombine.low %v6470_v56, %v6474_v20  ;;  %v6532_v25 = vcombine.high %v6470_v56, %v6474_v20 }
 0xf79   : > { %v6627_v30 = vrot.slane %v13622_v3, %v16413_v59  ;;  %v6643_v31 = vrot.slane %v13624_v4, %v16413_v59  ;;  %v6659_v32 = vrot.slane %v13626_v13, %v16413_v59  ;;  %v6675_v9 = vrot.slane %v13628_v15, %v16413_v59 }
 0xf7a   : > { %v6523_v33 = vrot.slane %v6515_v18, %v16413_v59  ;;  %v6530_v42 = vrot.slane %v6516_v43, %v16413_v59  ;;  %v6539_v12 = vrot.slane %v6531_v21, %v16413_v59  ;;  %v6546_v28 = vrot.slane %v6532_v25, %v16413_v59 }
 0xf7b   : > { %v6683_v34 = vcombine.low %v6627_v30, %v6643_v31  ;;  %v6715_v7 = vcombine.low %v6659_v32, %v6675_v9  ;;  %v6684_v55 = vcombine.high %v6627_v30, %v6643_v31  ;;  %v6716_v56 = vcombine.high %v6659_v32, %v6675_v9 }
 0xf7c   : > { %v6579_v5 = vcombine.low %v6523_v33, %v6539_v12  ;;  %v6580_v45 = vcombine.high %v6523_v33, %v6539_v12  ;;  %v6595_v6 = vcombine.low %v6530_v42, %v6546_v28  ;;  %v6596_v36 = vcombine.high %v6530_v42, %v6546_v28 }
 0xf7d   : > { %v6691_v48 = vrot.slane %v6683_v34, %v16418_v40  ;;  %v6723_v19 = vrot.slane %v6715_v7, %v16418_v40  ;;  %v6698_v13 = vrot.slane %v6684_v55, %v16418_v40  ;;  %v6730_v15 = vrot.slane %v6716_v56, %v16418_v40 }
 0xf7e   : > { %v6587_v62 = vrot.slane %v6579_v5, %v16418_v40  ;;  %v6594_v57 = vrot.slane %v6580_v45, %v16418_v40  ;;  %v6603_v8 = vrot.slane %v6595_v6, %v16418_v40  ;;  %v6610_v50 = vrot.slane %v6596_v36, %v16418_v40 }
 0xf7f   : > { %v6747_v60 = vcombine.low %v6691_v48, %v6723_v19  ;;  %v6748_v14 = vcombine.high %v6691_v48, %v6723_v19  ;;  %v6451_v21 = vpack.c.bf16 %v16454_v26, %v16454_v26  ;;  %v6749_v31 = vcombine.low %v6698_v13, %v6730_v15 }
 0xf80   : > { %v13623_v46 = vcombine.low %v6587_v62, %v6594_v57  ;;  %v13625_v37 = vcombine.high %v6587_v62, %v6594_v57  ;;  %v13627_v22 = vcombine.low %v6603_v8, %v6610_v50  ;;  %v13629_v58 = vcombine.high %v6603_v8, %v6610_v50 }
 0xf81   : > { %v6755_v44 = vpack.c.bf16 %v6747_v60, %v6747_v60  ;;  %v6756_v4 = vpack.c.bf16 %v6748_v14, %v6748_v14  ;;  %v6757_v33 = vpack.c.bf16 %v6749_v31, %v6749_v31  ;;  %v6452_v42 = vpack.c.bf16 %v16456_v27, %v16456_v27 }
 0xf82   : > { %v6634_v52 = vrot.slane %v13623_v46, %v16413_v59  ;;  %v6650_v35 = vrot.slane %v13625_v37, %v16413_v59  ;;  %v6666_v53 = vrot.slane %v13627_v22, %v16413_v59  ;;  %v6682_v10 = vrot.slane %v13629_v58, %v16413_v59 }
 0xf83   : > { %v7070_v38 = vsel %vm7065_vm15, %v6755_v44, 0  ;;  %v7116_v30 = vsel %vm7065_vm15, %v6756_v4, 0  ;;  %v6455_v12 = vpack.c.bf16 %v16470_v23, %v16470_v23  ;;  %v7162_v28 = vsel %vm7065_vm15, %v6757_v33, 0 }
 0xf84   : > { %14573 = vmatpush3.bf16.xpose.msra.mxu1 %v7070_v38  ;;  %v6699_v17 = vcombine.low %v6634_v52, %v6650_v35  ;;  %v6731_v47 = vcombine.low %v6666_v53, %v6682_v10  ;;  %v6700_v63 = vcombine.high %v6634_v52, %v6650_v35  ;;  %v6732_v16 = vcombine.high %v6666_v53, %v6682_v10 }
 0xf85   : > { %14578 = vmatprep.subr.bf16.mxu1 %v15374_v51  ;;  %v6750_v34 = vcombine.high %v6698_v13, %v6730_v15  ;;  %v6453_v23 = vpack.c.bf16 %v16458_v24, %v16458_v24  ;;  %v6457_v5 = vpack.c.bf16 %v16472_v49, %v16472_v49  ;;  %v6454_v49 = vpack.c.bf16 %v16460_v29, %v16460_v29 }
 0xf86   : > { %v6707_v2 = vrot.slane %v6699_v17, %v16418_v40  ;;  %v6739_v3 = vrot.slane %v6731_v47, %v16418_v40  ;;  %v6714_v18 = vrot.slane %v6700_v63, %v16418_v40  ;;  %v6746_v43 = vrot.slane %v6732_v16, %v16418_v40 }
 0xf87   : > { %v6758_v27 = vpack.c.bf16 %v6750_v34, %v6750_v34  ;;  %v6456_v62 = vpack.c.bf16 %v16474_v41, %v16474_v41  ;;  %v6458_v29 = vpack.c.bf16 %v16476_v11, %v16476_v11  ;;  %v16568_v22 = vsub.s32 1, %v16391_v39 }
 0xf88   : > { %v6751_v20 = vcombine.low %v6707_v2, %v6739_v3  ;;  %v6753_v9 = vcombine.low %v6714_v18, %v6746_v43  ;;  %v6752_v6 = vcombine.high %v6707_v2, %v6739_v3  ;;  %v6754_v48 = vcombine.high %v6714_v18, %v6746_v43 }
 0xf89   : > { %v7208_v45 = vsel %vm7065_vm15, %v6758_v27, 0  ;;  %v6061_v14 = vrot.slane %v16397_v1, %v16568_v22 }
 0xf8a   : > { %v6759_v25 = vpack.c.bf16 %v6751_v20, %v6751_v20  ;;  %v6761_v26 = vpack.c.bf16 %v6753_v9, %v6753_v9  ;;  %v6760_v24 = vpack.c.bf16 %v6752_v6, %v6752_v6  ;;  %v6762_v19 = vpack.c.bf16 %v6754_v48, %v6754_v48 }
 0xf8b   : > { %14575 = vmatmul.mubr.msk.bf16.vlgmr.msra.gmra.mrb[0].mxu1 %vm7065_vm15, %v6451_v21  ;;  %v16575_v17 = vadd.f32 %v16401_v61, %v6061_v14 }
 0xf8c   : > { %14579 = vmatpush3.bf16.xpose.msra.mxu1 %v7116_v30  ;;  %v7254_v32 = vsel %vm7065_vm15, %v6759_v25, 0  ;;  %14580 = vmatprep.mubr.msk.bf16.mxu1 %vm15375_vm14, %v15374_v51  ;;  %v7346_v7 = vsel %vm7065_vm15, %v6761_v26, 0  ;;  %v7300_v36 = vsel %vm7065_vm15, %v6760_v24, 0  ;;  %v7392_v57 = vsel %vm7065_vm15, %v6762_v19, 0 }
 0xf8d   : > { %14597 = vmatpush3.bf16.xpose.msra.mxu0 %v7254_v32  ;;  %14584 = vmatprep.subr.bf16.mxu1 %v15374_v51 }
 0xf8e   : > { %14608 = vmatprep.subr.bf16.mxu0 %v15374_v51 }
 0xf93   : > { %14581 = vmatmul.mubr.msk.bf16.vlgmr.msra.gmra.mrb[4].mxu1 %vm7065_vm15, %v6452_v42 }
 0xf94   : > { %14599 = vmatmul.mubr.msk.bf16.vlgmr.msra.gmra.mrb[4].mxu0 %vm7065_vm15, %v6455_v12  ;;  %14585 = vmatpush3.bf16.xpose.msra.mxu1 %v7162_v28 }
 0xf95   : > { %14609 = vmatpush3.bf16.xpose.msra.mxu0 %v7346_v7  ;;  %14586 = vmatprep.mubr.msk.bf16.mxu1 %vm15375_vm14, %v15374_v51 }
 0xf96   : > { %14610 = vmatprep.mubr.msk.bf16.mxu0 %vm15375_vm14, %v15374_v51  ;;  %14590 = vmatprep.subr.bf16.mxu1 %v15374_v51 }
 0xf97   : > { %14620 = vmatprep.subr.bf16.mxu0 %v15374_v51 }
 0xf9b   : > { %14587 = vmatmul.mubr.msk.bf16.vlgmr.msra.gmra.mrb[8].mxu1 %vm7065_vm15, %v6453_v23 }
 0xf9c   : > { %14611 = vmatmul.mubr.msk.bf16.vlgmr.msra.gmra.mrb[8].mxu0 %vm7065_vm15, %v6457_v5  ;;  %14591 = vmatpush3.bf16.xpose.msra.mxu1 %v7208_v45 }
 0xf9d   : > { %14592 = vmatprep.mubr.msk.bf16.mxu1 %vm15375_vm14, %v15374_v51  ;;  %14602 = vmatprep.subr.bf16.mxu1 %v15374_v51 }
 0xf9e   : > { %14622 = vmatprep.mubr.msk.bf16.mxu0 %vm15375_vm14, %v15374_v51 }
 0xfa3   : > { %14593 = vmatmul.mubr.msk.bf16.vlgmr.msra.gmra.mrb[12].mxu1 %vm7065_vm15, %v6454_v49 }
 0xfa4   : > { %14603 = vmatpush3.bf16.xpose.msra.mxu1 %v7300_v36  ;;  %14604 = vmatprep.mubr.msk.bf16.mxu1 %vm15375_vm14, %v15374_v51 }
 0xfa5   : > { %14614 = vmatprep.subr.bf16.mxu1 %v15374_v51 }
 0xfab   : > { %14605 = vmatmul.mubr.msk.bf16.vlgmr.msra.gmra.mrb[16].mxu1 %vm7065_vm15, %v6456_v62 }
 0xfac   : > { %14615 = vmatpush3.bf16.xpose.msra.mxu1 %v7392_v57  ;;  %14616 = vmatprep.mubr.msk.bf16.mxu1 %vm15375_vm14, %v15374_v51 }
 0xfad   : > { %14626 = vmatprep.subr.bf16.mxu1 %v15374_v51 }
 0xfb3   : > { %14617 = vmatmul.mubr.msk.bf16.vlgmr.msra.gmra.mrb[20].mxu1 %vm7065_vm15, %v6458_v29 }
 0xfb4   : > { %14628 = vmatprep.mubr.msk.bf16.mxu1 %vm15375_vm14, %v15374_v51 }
0x105e   : > { %v7106_v8 = vpop.f32.mrb[0].mxu1 }
0x105f   : > { %v14576_v41 = vpop.f32.mrb[1].mxu1  ;;  %v7434_v50 = vsel %vm7065_vm15, %v7106_v8, -inf }
0x1060   : > { %7435 = vmax.xlane.f32.xlu1 %v7434_v50  ;;  %v7109_v60 = vpop.f32.mrb[2].mxu1 }
0x1061   : > { %v14577_v46 = vpop.f32.mrb[3].mxu1 }
0x1066   : > { %v7152_v37 = vpop.f32.mrb[4].mxu1 }
0x1067   : > { %v7290_v58 = vpop.f32.mrb[4].mxu0  ;;  %v14582_v44 = vpop.f32.mrb[5].mxu1  ;;  %v7437_v55 = vsel %vm7065_vm15, %v7152_v37, -inf }
0x1068   : > { %v14600_v52 = vpop.f32.mrb[5].mxu0  ;;  %v7155_v11 = vpop.f32.mrb[6].mxu1  ;;  %v7446_v35 = vsel %vm7065_vm15, %v7290_v58, -inf }
0x1069   : > { %7447 = vmax.xlane.f32.xlu0 %v7446_v35  ;;  %v7293_v53 = vpop.f32.mrb[6].mxu0  ;;  %v14583_v10 = vpop.f32.mrb[7].mxu1 }
0x106a   : > { %v14601_v38 = vpop.f32.mrb[7].mxu0 }
0x106d   : > { %7438 = vmax.xlane.f32.xlu0 %v7437_v55 }
0x106e   : > { %v7198_v56 = vpop.f32.mrb[8].mxu1 }
0x106f   : > { %v16577_v47 = vpop.f32.mrb[8].mxu0  ;;  %v14588_v63 = vpop.f32.mrb[9].mxu1  ;;  %v7440_v15 = vsel %vm7065_vm15, %v7198_v56, -inf }
0x1070   : > { %v14612_v16 = vpop.f32.mrb[9].mxu0  ;;  %v7201_v2 = vpop.f32.mrb[10].mxu1  ;;  %v7452_v3 = vsel %vm7065_vm15, %v16577_v47, -inf }
0x1071   : > { %7453 = vmax.xlane.f32.xlu0 %v7452_v3  ;;  %v7385_v4 = vpop.f32.mrb[10].mxu0  ;;  %6767 = vrot.lane.b32.xlu1 %v16575_v17, %s15367_s0  ;;  %v14589_v1 = vpop.f32.mrb[11].mxu1 }
0x1072   : > { %v14613_v13 = vpop.f32.mrb[11].mxu0 }
0x1075   : > { %7441 = vmax.xlane.f32.xlu0 %v7440_v15  ;;  %6770 = vrot.lane.b32.xlu1 %v16575_v17, %s15364_s22 }
0x1076   : > { %v16586_v61 = vpop.f32.mrb[12].mxu1 }
0x1077   : > { %v14594_v20 = vpop.f32.mrb[13].mxu1  ;;  %v7443_v42 = vsel %vm7065_vm15, %v16586_v61, -inf }
0x1078   : > { %v7247_v18 = vpop.f32.mrb[14].mxu1 }
0x1079   : > { %v14595_v43 = vpop.f32.mrb[15].mxu1 }
0x107e   : > { %v16588_v21 = vpop.f32.mrb[16].mxu1 }
0x107f   : > { %v14606_v25 = vpop.f32.mrb[17].mxu1  ;;  %v7449_v12 = vsel %vm7065_vm15, %v16588_v21, -inf }
0x1080   : > { %v7339_v30 = vpop.f32.mrb[18].mxu1 }
0x1081   : > { %v14607_v31 = vpop.f32.mrb[19].mxu1 }
0x1086   : > { %v16590_v32 = vpop.f32.mrb[20].mxu1 }
0x1087   : > { %v14618_v9 = vpop.f32.mrb[21].mxu1  ;;  %v7455_v28 = vsel %vm7065_vm15, %v16590_v32, -inf }
0x1088   : > { %v7431_v33 = vpop.f32.mrb[22].mxu1 }
0x1089   : > { %v14619_v26 = vpop.f32.mrb[23].mxu1 }
0x108b   : > { %6764 = vrot.lane.b32.xlu0 %v16575_v17, %s15365_s11 }
0x1099   : > { %7444 = vmax.xlane.f32.xlu1 %v7443_v42 }
0x109d   : > { %7450 = vmax.xlane.f32.xlu1 %v7449_v12 }
0x10a1   : > { %7456 = vmax.xlane.f32.xlu1 %v7455_v28 }
0x10b2   : > { %6773 = vrot.lane.b32.xlu1 %v16575_v17, %s15366_s25 }
0x10ed   : > { %v7436_v34 = vpop.xlane.xlu1 %7435 }
0x10ee   : > { %v7458_v7 = vsub.f32 %v7106_v8, %v7436_v34 }
0x10f0   : > { %v7466_v27 = vmul.f32 1.442695, %v7458_v7 }
0x10f1   : > { %v6768_v57 = vpop.permute.xlu1 %6767 }
0x10f2   : > { %15224 = vpow2.f32 %v7466_v27  ;;  %v6785_v50 = vcombine.low %v16575_v17, %v6768_v57  ;;  %v6786_v60 = vcombine.high %v16575_v17, %v6768_v57 }
0x10f4   : > { %v6793_v53 = vrot.slane %v6785_v50, %v16413_v59  ;;  %v6800_v10 = vrot.slane %v6786_v60, %v16413_v59 }
0x10f6   : > { %v7448_v23 = vpop.xlane.xlu0 %7447 }
0x10f7   : > { %v7462_v5 = vsub.f32 %v7290_v58, %v7448_v23 }
0x10f9   : > { %v7474_v45 = vmul.f32 1.442695, %v7462_v5 }
0x10fa   : > { %v7439_v6 = vpop.xlane.xlu0 %7438 }
0x10fb   : > { %15226 = vpow2.f32 %v7474_v45  ;;  %v7459_v24 = vsub.f32 %v7152_v37, %v7439_v6  ;;  %v6771_v37 = vpop.permute.xlu1 %6770 }
0x10fc   : > { %v16602_v49 = vpop.eup %15224 }
0x10fd   : > { %v7468_v36 = vmul.f32 1.442695, %v7459_v24  ;;  %v7482_v48 = vsel %vm7065_vm15, %v16602_v49, 0.0 }
0x10fe   : > { %v16606_v19 = vpop.xlane.xlu0 %7453  ;;  %7483 = vadd.xlane.f32.xlu0 %v7482_v48 }
0x10ff   : > { %15228 = vpow2.f32 %v7468_v36  ;;  %v7464_v62 = vsub.f32 %v16577_v47, %v16606_v19 }
0x1102   : > { %v7442_v29 = vpop.xlane.xlu0 %7441 }
0x1103   : > { %v7460_v8 = vsub.f32 %v7198_v56, %v7442_v29 }
0x1105   : > { %v16610_v41 = vpop.eup %15226  ;;  %v7470_v46 = vmul.f32 1.442695, %v7460_v8 }
0x1106   : > { %v6765_v58 = vpop.permute.xlu0 %6764  ;;  %v7494_v44 = vsel %vm7065_vm15, %v16610_v41, 0.0 }
0x1107   : > { %15230 = vpow2.f32 %v7470_v46  ;;  %v6801_v52 = vcombine.low %v6765_v58, %v6771_v37  ;;  %v6802_v11 = vcombine.high %v6765_v58, %v6771_v37  ;;  %7495 = vadd.xlane.f32.xlu0 %v7494_v44 }
0x1109   : > { %v16616_v35 = vpop.eup %15228  ;;  %v6809_v38 = vrot.slane %v6801_v52, %v16413_v59  ;;  %v6816_v14 = vrot.slane %v6802_v11, %v16413_v59 }
0x110a   : > { %v7485_v55 = vsel %vm7065_vm15, %v16616_v35, 0.0 }
0x110b   : > { %v6849_v56 = vcombine.low %v6793_v53, %v6809_v38  ;;  %v6850_v63 = vcombine.high %v6793_v53, %v6809_v38  ;;  %v6865_v16 = vcombine.low %v6800_v10, %v6816_v14  ;;  %v6866_v2 = vcombine.high %v6800_v10, %v6816_v14  ;;  %7486 = vadd.xlane.f32.xlu1 %v7485_v55 }
0x110c   : > { %v7478_v38 = vmul.f32 1.442695, %v7464_v62 }
0x110d   : > { %v6857_v3 = vrot.slane %v6849_v56, %v16418_v40  ;;  %v6864_v4 = vrot.slane %v6850_v63, %v16418_v40  ;;  %v6873_v1 = vrot.slane %v6865_v16, %v16418_v40  ;;  %v6880_v13 = vrot.slane %v6866_v2, %v16418_v40 }
0x110f   : > { %v13630_v15 = vcombine.low %v6857_v3, %v6864_v4  ;;  %v13632_v20 = vcombine.high %v6857_v3, %v6864_v4  ;;  %v13634_v18 = vcombine.low %v6873_v1, %v6880_v13  ;;  %v13636_v43 = vcombine.high %v6873_v1, %v6880_v13 }
0x1111   : > { %v16628_v25 = vpop.eup %15230  ;;  %v6929_v30 = vrot.slane %v13630_v15, %v16413_v59  ;;  %v6945_v31 = vrot.slane %v13632_v20, %v16413_v59  ;;  %v6961_v9 = vrot.slane %v13634_v18, %v16413_v59  ;;  %v6977_v33 = vrot.slane %v13636_v43, %v16413_v59 }
0x1112   : > { %v7488_v26 = vsel %vm7065_vm15, %v16628_v25, 0.0 }
0x1113   : > { %7489 = vadd.xlane.f32.xlu0 %v7488_v26  ;;  %v6985_v42 = vcombine.low %v6929_v30, %v6945_v31  ;;  %v7017_v12 = vcombine.low %v6961_v9, %v6977_v33  ;;  %v6986_v28 = vcombine.high %v6929_v30, %v6945_v31  ;;  %v7018_v34 = vcombine.high %v6961_v9, %v6977_v33 }
0x1115   : > { %v6993_v7 = vrot.slane %v6985_v42, %v16418_v40  ;;  %v7025_v27 = vrot.slane %v7017_v12, %v16418_v40  ;;  %v7000_v23 = vrot.slane %v6986_v28, %v16418_v40  ;;  %v7032_v5 = vrot.slane %v7018_v34, %v16418_v40 }
0x1117   : > { %v7049_v45 = vcombine.low %v6993_v7, %v7025_v27  ;;  %v7050_v6 = vcombine.high %v6993_v7, %v7025_v27  ;;  %v7051_v24 = vcombine.low %v7000_v23, %v7032_v5  ;;  %v7052_v36 = vcombine.high %v7000_v23, %v7032_v5 }
0x1119   : > { %v7057_v48 = vpack.c.bf16 %v7049_v45, %v7049_v45  ;;  %v7058_v57 = vpack.c.bf16 %v7050_v6, %v7050_v6  ;;  %v7059_v62 = vpack.c.bf16 %v7051_v24, %v7051_v24  ;;  %v7060_v20 = vpack.c.bf16 %v7052_v36, %v7052_v36 }
0x111b   : > { %v7535_v29 = vsel %vm7533_vm0, %v7057_v48, 0  ;;  %v7581_v8 = vsel %vm7533_vm0, %v7058_v57, 0  ;;  %v7627_v4 = vsel %vm7533_vm0, %v7059_v62, 0  ;;  %v7673_v43 = vsel %vm7533_vm0, %v7060_v20, 0 }
0x111c   : > { %14621 = vmatpush3.bf16.msra.mxu0 %v7535_v29  ;;  %14627 = vmatpush3.bf16.msra.mxu1 %v7581_v8 }
0x111d   : > { %14632 = vmatprep.subr.bf16.mxu0 %v15374_v51  ;;  %14638 = vmatprep.subr.bf16.mxu1 %v15374_v51 }
0x1126   : > { %v7445_v50 = vpop.xlane.xlu1 %7444 }
0x1127   : > { %v7461_v60 = vsub.f32 %v16586_v61, %v7445_v50 }
0x1129   : > { %v7472_v46 = vmul.f32 1.442695, %v7461_v60 }
0x112a   : > { %v7451_v37 = vpop.xlane.xlu1 %7450 }
0x112b   : > { %15232 = vpow2.f32 %v7472_v46  ;;  %v7463_v58 = vsub.f32 %v16588_v21, %v7451_v37 }
0x112d   : > { %v7476_v44 = vmul.f32 1.442695, %v7463_v58 }
0x112e   : > { %v7457_v61 = vpop.xlane.xlu1 %7456 }
0x112f   : > { %15234 = vpow2.f32 %v7476_v44  ;;  %v7465_v21 = vsub.f32 %v16590_v32, %v7457_v61 }
0x1130   : > { %15236 = vpow2.f32 %v7478_v38 }
0x1131   : > { %v7480_v14 = vmul.f32 1.442695, %v7465_v21 }
0x1132   : > { %v6774_v16 = vpop.permute.xlu1 %6773 }
0x1133   : > { %15238 = vpow2.f32 %v7480_v14 }
0x1135   : > { %v16646_v52 = vpop.eup %15232 }
0x1136   : > { %v7491_v11 = vsel %vm7065_vm15, %v16646_v52, 0.0 }
0x1137   : > { %7492 = vadd.xlane.f32.xlu1 %v7491_v11 }
0x1139   : > { %v16650_v53 = vpop.eup %15234 }
0x113a   : > { %v7497_v10 = vsel %vm7065_vm15, %v16650_v53, 0.0  ;;  %v16664_v55 = vpop.eup %15236 }
0x113b   : > { %7498 = vadd.xlane.f32.xlu0 %v7497_v10 }
0x113d   : > { %v16666_v56 = vpop.eup %15238 }
0x113e   : > { %v7503_v63 = vsel %vm7065_vm15, %v16666_v56, 0.0 }
0x1148   : > { %6779 = vrot.lane.b32.xlu1 %v16575_v17, %s15368_s12 }
0x114c   : > { %6782 = vrot.lane.b32.xlu1 %v16575_v17, %s15371_s23 }
0x1151   : > { %6776 = vrot.lane.b32.xlu0 %v16575_v17, %s15369_s30  ;;  %v7500_v17 = vsel %vm7065_vm15, %v16664_v55, 0.0 }
0x1170   : > { %7504 = vadd.xlane.f32.xlu1 %v7503_v63  ;;  %7501 = vadd.xlane.f32.xlu0 %v7500_v17 }
0x118b   : > { %v7484_v32 = vpop.xlane.xlu0 %7483 }
0x118c   : > { %15240 = vrcp.f32 %v7484_v32 }
0x1194   : > { %v7496_v1 = vpop.xlane.xlu0 %7495 }
0x1196   : > { %v15241_v47 = vpop.eup %15240 }
0x1197   : > { %v7507_v19 = vmul.f32 %v15241_v47, %v16602_v49 }
0x1198   : > { %v7487_v2 = vpop.xlane.xlu1 %7486 }
0x1199   : > { %15242 = vrcp.f32 %v7487_v2  ;;  %v7522_v3 = vpack.c.bf16 %v7507_v19, %v7507_v19 }
0x119b   : > { %14623 = vmatmul.mubr.msk.bf16.vlgmr.msra.gmra.mrb[12].mxu0 %vm7065_vm15, %v7522_v3 }
0x119c   : > { %14633 = vmatpush3.bf16.msra.mxu0 %v7627_v4  ;;  %14634 = vmatprep.mubr.msk.bf16.mxu0 %vm15375_vm14, %v15374_v51 }
0x119d   : > { %14644 = vmatprep.subr.bf16.mxu0 %v15374_v51 }
0x11a0   : > { %v7490_v13 = vpop.xlane.xlu0 %7489 }
0x11a1   : > { %15244 = vrcp.f32 %v7490_v13 }
0x11a3   : > { %v15243_v15 = vpop.eup %15242 }
0x11a4   : > { %v7509_v49 = vmul.f32 %v15243_v15, %v16616_v35 }
0x11a6   : > { %v7523_v18 = vpack.c.bf16 %v7509_v49, %v7509_v49 }
0x11a8   : > { %14629 = vmatmul.mubr.msk.bf16.vlgmr.msra.gmra.mrb[24].mxu1 %vm7065_vm15, %v7523_v18 }
0x11a9   : > { %14639 = vmatpush3.bf16.msra.mxu1 %v7673_v43  ;;  %14640 = vmatprep.mubr.msk.bf16.mxu1 %vm15375_vm14, %v15374_v51 }
0x11aa   : > { %14650 = vmatprep.subr.bf16.mxu1 %v15374_v51 }
0x11ab   : > { %v15245_v30 = vpop.eup %15244 }
0x11ac   : > { %v7511_v31 = vmul.f32 %v15245_v30, %v16628_v25 }
0x11ae   : > { %v7524_v9 = vpack.c.bf16 %v7511_v31, %v7511_v31 }
0x11b0   : > { %14635 = vmatmul.mubr.msk.bf16.vlgmr.msra.gmra.mrb[16].mxu0 %vm7065_vm15, %v7524_v9 }
0x11b1   : > { %14646 = vmatprep.mubr.msk.bf16.mxu0 %vm15375_vm14, %v15374_v51 }
0x11c4   : > { %v7493_v35 = vpop.xlane.xlu1 %7492 }
0x11c5   : > { %15246 = vrcp.f32 %v7493_v35 }
0x11c6   : > { %15248 = vrcp.f32 %v7496_v1 }
0x11c8   : > { %v6780_v33 = vpop.permute.xlu1 %6779  ;;  %v7499_v26 = vpop.xlane.xlu0 %7498 }
0x11c9   : > { %v6817_v42 = vcombine.low %v6774_v16, %v6780_v33  ;;  %v6818_v12 = vcombine.high %v6774_v16, %v6780_v33  ;;  %15250 = vrcp.f32 %v7499_v26 }
0x11cb   : > { %v6825_v5 = vrot.slane %v6817_v42, %v16413_v59  ;;  %v6832_v25 = vrot.slane %v6818_v12, %v16413_v59 }
0x11cc   : > { %v6783_v28 = vpop.permute.xlu1 %6782  ;;  %v6777_v34 = vpop.permute.xlu0 %6776 }
0x11cd   : > { %v6833_v7 = vcombine.low %v6777_v34, %v6783_v28  ;;  %v6834_v27 = vcombine.high %v6777_v34, %v6783_v28 }
0x11cf   : > { %v15247_v23 = vpop.eup %15246  ;;  %v6841_v45 = vrot.slane %v6833_v7, %v16413_v59  ;;  %v6848_v6 = vrot.slane %v6834_v27, %v16413_v59 }
0x11d0   : > { %v7513_v24 = vmul.f32 %v15247_v23, %v16646_v52  ;;  %v15249_v16 = vpop.eup %15248 }
0x11d1   : > { %v6881_v36 = vcombine.low %v6825_v5, %v6841_v45  ;;  %v6882_v48 = vcombine.high %v6825_v5, %v6841_v45  ;;  %v6897_v57 = vcombine.low %v6832_v25, %v6848_v6  ;;  %v6898_v29 = vcombine.high %v6832_v25, %v6848_v6 }
0x11d2   : > { %v7525_v8 = vpack.c.bf16 %v7513_v24, %v7513_v24  ;;  %v7515_v49 = vmul.f32 %v15249_v16, %v16610_v41 }
0x11d3   : > { %v6889_v50 = vrot.slane %v6881_v36, %v16418_v40  ;;  %v6896_v60 = vrot.slane %v6882_v48, %v16418_v40  ;;  %v6905_v46 = vrot.slane %v6897_v57, %v16418_v40  ;;  %v6912_v37 = vrot.slane %v6898_v29, %v16418_v40  ;;  %v15251_v3 = vpop.eup %15250 }
0x11d4   : > { %14641 = vmatmul.mubr.msk.bf16.vlgmr.msra.gmra.mrb[28].mxu1 %vm7065_vm15, %v7525_v8  ;;  %v7517_v20 = vmul.f32 %v15251_v3, %v16650_v53  ;;  %v7526_v33 = vpack.c.bf16 %v7515_v49, %v7515_v49 }
0x11d5   : > { %v13631_v58 = vcombine.low %v6889_v50, %v6896_v60  ;;  %v13633_v44 = vcombine.high %v6889_v50, %v6896_v60  ;;  %v13635_v11 = vcombine.low %v6905_v46, %v6912_v37  ;;  %v13637_v52 = vcombine.high %v6905_v46, %v6912_v37  ;;  %14652 = vmatprep.mubr.msk.bf16.mxu1 %vm15375_vm14, %v15374_v51 }
0x11d6   : > { %v7527_v26 = vpack.c.bf16 %v7517_v20, %v7517_v20 }
0x11d7   : > { %v6936_v10 = vrot.slane %v13631_v58, %v16413_v59  ;;  %v6952_v61 = vrot.slane %v13633_v44, %v16413_v59  ;;  %v6968_v21 = vrot.slane %v13635_v11, %v16413_v59  ;;  %v6984_v38 = vrot.slane %v13637_v52, %v16413_v59 }
0x11d9   : > { %v7001_v14 = vcombine.low %v6936_v10, %v6952_v61  ;;  %v7033_v63 = vcombine.low %v6968_v21, %v6984_v38  ;;  %v7002_v17 = vcombine.high %v6936_v10, %v6952_v61  ;;  %v7034_v32 = vcombine.high %v6968_v21, %v6984_v38 }
0x11db   : > { %v7009_v47 = vrot.slane %v7001_v14, %v16418_v40  ;;  %v7041_v19 = vrot.slane %v7033_v63, %v16418_v40  ;;  %v7016_v62 = vrot.slane %v7002_v17, %v16418_v40  ;;  %v7048_v2 = vrot.slane %v7034_v32, %v16418_v40 }
0x11dd   : > { %v7053_v4 = vcombine.low %v7009_v47, %v7041_v19  ;;  %v7054_v1 = vcombine.high %v7009_v47, %v7041_v19  ;;  %v7055_v13 = vcombine.low %v7016_v62, %v7048_v2  ;;  %v7056_v15 = vcombine.high %v7016_v62, %v7048_v2 }
0x11df   : > { %v7061_v18 = vpack.c.bf16 %v7053_v4, %v7053_v4  ;;  %v7062_v43 = vpack.c.bf16 %v7054_v1, %v7054_v1  ;;  %v7063_v9 = vpack.c.bf16 %v7055_v13, %v7055_v13  ;;  %v7064_v35 = vpack.c.bf16 %v7056_v15, %v7056_v15  ;;  %v15080_v15 = vld [vmem:[%s15592_s24] sm:$0xff]  }
0x11e1   : > { %v7719_v30 = vsel %vm7533_vm0, %v7061_v18, 0  ;;  %v7765_v31 = vsel %vm7533_vm0, %v7062_v43, 0  ;;  %v7811_v41 = vsel %vm7533_vm0, %v7063_v9, 0  ;;  %v7857_v53 = vsel %vm7533_vm0, %v7064_v35, 0 }
0x11e2   : > { %14645 = vmatpush3.bf16.msra.mxu0 %v7719_v30  ;;  %14651 = vmatpush3.bf16.msra.mxu1 %v7765_v31  ;;  %v15081_v30 = vld [vmem:[%s15592_s24 + $0x8] sm:$0xff]  }
0x11e3   : > { %14656 = vmatprep.subr.bf16.mxu0 %v15374_v51  ;;  %14662 = vmatprep.subr.bf16.mxu1 %v15374_v51 }
0x11e5   : > { %14647 = vmatmul.mubr.msk.bf16.vlgmr.msra.gmra.mrb[20].mxu0 %vm7065_vm15, %v7526_v33  ;;  %14653 = vmatmul.mubr.msk.bf16.vlgmr.msra.gmra.mrb[32].mxu1 %vm7065_vm15, %v7527_v26 }
0x11e6   : > { %14657 = vmatpush3.bf16.msra.mxu0 %v7811_v41  ;;  %14663 = vmatpush3.bf16.msra.mxu1 %v7857_v53 }
0x11e7   : > { %14658 = vmatprep.mubr.msk.bf16.mxu0 %vm15375_vm14, %v15374_v51  ;;  %14664 = vmatprep.mubr.msk.bf16.mxu1 %vm15375_vm14, %v15374_v51 }
0x11e8   : > { %14668 = vmatprep.subr.bf16.mxu0 %v15374_v51  ;;  %14680 = vmatprep.subr.bf16.mxu1 %v15374_v51 }
0x11fd   : > { %v7505_v42 = vpop.xlane.xlu1 %7504  ;;  %v7502_v12 = vpop.xlane.xlu0 %7501 }
0x11fe   : > { %15252 = vrcp.f32 %v7505_v42 }
0x11ff   : > { %15254 = vrcp.f32 %v7502_v12 }
0x1208   : > { %v15253_v28 = vpop.eup %15252 }
0x1209   : > { %v15255_v34 = vpop.eup %15254  ;;  %v7521_v7 = vmul.f32 %v15253_v28, %v16666_v56 }
0x120a   : > { %v7519_v27 = vmul.f32 %v15255_v34, %v16664_v55 }
0x120b   : > { %v7529_v23 = vpack.c.bf16 %v7521_v7, %v7521_v7 }
0x120c   : > { %v7528_v5 = vpack.c.bf16 %v7519_v27, %v7519_v27 }
0x120d   : > { %14665 = vmatmul.mubr.msk.bf16.vlgmr.msra.gmra.mrb[36].mxu1 %vm7065_vm15, %v7529_v23 }
0x120e   : > { %14659 = vmatmul.mubr.msk.bf16.vlgmr.msra.gmra.mrb[24].mxu0 %vm7065_vm15, %v7528_v5  ;;  %14688 = vmatprep.mubr.msk.bf16.mxu1 %vm15375_vm14, %v15374_v51 }
0x120f   : > { %14676 = vmatprep.mubr.msk.bf16.mxu0 %vm15375_vm14, %v15374_v51  ;;  %14669 = vmatpush3.bf16.msra.mxu0 %v15080_v15 }
0x1210   : > { %14670 = vmatprep.subr.bf16.mxu0 %v15374_v51 }
0x1213   : > { %14671 = vmatpush3.bf16.msra.mxu0 %v15081_v30 }
0x1214   : > { %14672 = vmatprep.subr.bf16.mxu0 %v15374_v51 }
0x126e   : > { %v7571_v25 = vpop.f32.mrb[12].mxu0 }
0x126f   : > { %v14624_v45 = vpop.f32.mrb[13].mxu0 }
0x1270   : > { %v7574_v6 = vpop.f32.mrb[14].mxu0 }
0x1271   : > { %v14625_v24 = vpop.f32.mrb[15].mxu0 }
0x127b   : > { %v7617_v36 = vpop.f32.mrb[24].mxu1 }
0x127c   : > { %v14630_v56 = vpop.f32.mrb[25].mxu1 }
0x127d   : > { %v7620_v48 = vpop.f32.mrb[26].mxu1 }
0x127e   : > { %v14631_v55 = vpop.f32.mrb[27].mxu1 }
0x1283   : > { %v7663_v57 = vpop.f32.mrb[16].mxu0 }
0x1284   : > { %v7899_v29 = vcombine.low %v7571_v25, %v7663_v57  ;;  %v7900_v8 = vcombine.high %v7571_v25, %v7663_v57  ;;  %v14636_v50 = vpop.f32.mrb[17].mxu0 }
0x1285   : > { %v7666_v60 = vpop.f32.mrb[18].mxu0 }
0x1286   : > { %v14637_v46 = vpop.f32.mrb[19].mxu0  ;;  %v7907_v10 = vrot.slane %v7899_v29, %v16413_v59  ;;  %v7914_v61 = vrot.slane %v7900_v8, %v16413_v59 }
0x12a7   : > { %v7709_v37 = vpop.f32.mrb[28].mxu1 }
0x12a8   : > { %v7915_v58 = vcombine.low %v7617_v36, %v7709_v37  ;;  %v7916_v44 = vcombine.high %v7617_v36, %v7709_v37  ;;  %v14642_v11 = vpop.f32.mrb[29].mxu1 }
0x12a9   : > { %v7712_v52 = vpop.f32.mrb[30].mxu1 }
0x12aa   : > { %v7923_v21 = vrot.slane %v7915_v58, %v16413_v59  ;;  %v7930_v38 = vrot.slane %v7916_v44, %v16413_v59  ;;  %v14643_v14 = vpop.f32.mrb[31].mxu1 }
0x12ac   : > { %v7963_v63 = vcombine.low %v7907_v10, %v7923_v21  ;;  %v7964_v17 = vcombine.high %v7907_v10, %v7923_v21  ;;  %v7979_v32 = vcombine.low %v7914_v61, %v7930_v38  ;;  %v7980_v16 = vcombine.high %v7914_v61, %v7930_v38 }
0x12ae   : > { %v7971_v47 = vrot.slane %v7963_v63, %v16418_v40  ;;  %v7978_v19 = vrot.slane %v7964_v17, %v16418_v40  ;;  %v7987_v62 = vrot.slane %v7979_v32, %v16418_v40  ;;  %v7994_v2 = vrot.slane %v7980_v16, %v16418_v40  ;;  %v15082_v17 = vld [vmem:[%s15592_s24 + $0x10] sm:$0xff]  }
0x12af   : > { %14673 = vmatpush3.bf16.msra.mxu0 %v15082_v17 }
0x12b0   : > { %v13654_v3 = vcombine.low %v7971_v47, %v7978_v19  ;;  %v13656_v4 = vcombine.high %v7971_v47, %v7978_v19  ;;  %v13658_v1 = vcombine.low %v7987_v62, %v7994_v2  ;;  %v13660_v13 = vcombine.high %v7987_v62, %v7994_v2  ;;  %14674 = vmatprep.subr.bf16.mxu0 %v15374_v51 }
0x12b2   : > { %v8043_v49 = vrot.slane %v13654_v3, %v16413_v59  ;;  %v8059_v20 = vrot.slane %v13656_v4, %v16413_v59  ;;  %v8075_v18 = vrot.slane %v13658_v1, %v16413_v59  ;;  %v8091_v43 = vrot.slane %v13660_v13, %v16413_v59  ;;  %v15083_v1 = vld [vmem:[%s15592_s24 + $0x18] sm:$0xff]   ;;  %s15379_s24 = smov 40  }
0x12b3   : > { %14675 = vmatpush3.bf16.msra.mxu0 %v15083_v1 }
0x12b4   : > { %v8100_v31 = vcombine.high %v8043_v49, %v8059_v20  ;;  %v8132_v9 = vcombine.high %v8075_v18, %v8091_v43  ;;  %v8099_v35 = vcombine.low %v8043_v49, %v8059_v20  ;;  %v8131_v33 = vcombine.low %v8075_v18, %v8091_v43  ;;  %14692 = vmatprep.subr.bf16.mxu0 %v15374_v51 }
0x12b6   : > { %v8114_v26 = vrot.slane %v8100_v31, %v16418_v40  ;;  %v8146_v41 = vrot.slane %v8132_v9, %v16418_v40  ;;  %v16750_v53 = vrot.slane %v8099_v35, %v16418_v40  ;;  %v16753_v42 = vrot.slane %v8131_v33, %v16418_v40 }
0x12b8   : > { %v7755_v12 = vpop.f32.mrb[20].mxu0  ;;  %v7801_v28 = vpop.f32.mrb[32].mxu1  ;;  %v8165_v34 = vcombine.low %v8114_v26, %v8146_v41  ;;  %v8164_v7 = vcombine.high %v16750_v53, %v16753_v42  ;;  %v8166_v27 = vcombine.high %v8114_v26, %v8146_v41  ;;  %v8163_v23 = vcombine.low %v16750_v53, %v16753_v42 }
0x12b9   : > { %v14648_v5 = vpop.f32.mrb[21].mxu0  ;;  %v14654_v25 = vpop.f32.mrb[33].mxu1 }
0x12ba   : > { %v7804_v45 = vpop.f32.mrb[34].mxu1  ;;  %8176 = vrot.lane.b32.xlu1 %v8165_v34, %s15376_s10  ;;  %8172 = vrot.lane.b32.xlu0 %v8164_v7, %s15377_s9  ;;  %v7758_v6 = vpop.f32.mrb[22].mxu0 }
0x12bb   : > { %v14649_v24 = vpop.f32.mrb[23].mxu0  ;;  %v14655_v36 = vpop.f32.mrb[35].mxu1 }
0x12be   : > { %8180 = vrot.lane.b32.xlu0 %v8166_v27, %s17627_s1  ;;  %s17628_s1 = smov 48  }
0x12e0   : > { %v7893_v56 = vpop.f32.mrb[36].mxu1 }
0x12e1   : > { %v7847_v48 = vpop.f32.mrb[24].mxu0  ;;  %v7947_v55 = vcombine.low %v7801_v28, %v7893_v56  ;;  %v7948_v57 = vcombine.high %v7801_v28, %v7893_v56  ;;  %v14666_v29 = vpop.f32.mrb[37].mxu1 }
0x12e2   : > { %v7931_v8 = vcombine.low %v7755_v12, %v7847_v48  ;;  %v7932_v50 = vcombine.high %v7755_v12, %v7847_v48  ;;  %v14660_v60 = vpop.f32.mrb[25].mxu0  ;;  %v7896_v46 = vpop.f32.mrb[38].mxu1  ;;  %v16801_v29 = vld [vmem:[%s15618_s27] sm:$0xff] }
0x12e3   : > { %v7955_v37 = vrot.slane %v7947_v55, %v16413_v59  ;;  %v7962_v58 = vrot.slane %v7948_v57, %v16413_v59  ;;  %v7850_v44 = vpop.f32.mrb[26].mxu0  ;;  %v14667_v11 = vpop.f32.mrb[39].mxu1 }
0x12e4   : > { %v7939_v52 = vrot.slane %v7931_v8, %v16413_v59  ;;  %v7946_v10 = vrot.slane %v7932_v50, %v16413_v59  ;;  %v14661_v61 = vpop.f32.mrb[27].mxu0  ;;  %v8216_v8 = vrot.slane %v16801_v29, %v16394_v0  ;;  %v15294_v44 = vld [vmem:[#allocation2] sm:$0xff] }
0x12e5   : > { %v15085_v61 = vld [vmem:[%s15602_s28 + $0x8] sm:$0xff]  }
0x12e6   : > { %v7995_v21 = vcombine.low %v7939_v52, %v7955_v37  ;;  %v7996_v38 = vcombine.high %v7939_v52, %v7955_v37  ;;  %v8011_v14 = vcombine.low %v7946_v10, %v7962_v58  ;;  %v8012_v63 = vcombine.high %v7946_v10, %v7962_v58  ;;  %v15084_v10 = vld [vmem:[%s15602_s28] sm:$0xff]  }
0x12e8   : > { %v8003_v32 = vrot.slane %v7995_v21, %v16418_v40  ;;  %v8010_v16 = vrot.slane %v7996_v38, %v16418_v40  ;;  %v8019_v47 = vrot.slane %v8011_v14, %v16418_v40  ;;  %v8026_v19 = vrot.slane %v8012_v63, %v16418_v40  ;;  %v15086_v21 = vld [vmem:[%s15602_s28 + $0x10] sm:$0xff]   ;;  %v15087_v38 = vld [vmem:[%s15602_s28 + $0x18] sm:$0xff]  }
0x12e9   : > { %v6040_v14 = vld [vmem:[#allocation4] sm:$0xff] }
0x12ea   : > { %v13655_v62 = vcombine.low %v8003_v32, %v8010_v16  ;;  %v13657_v2 = vcombine.high %v8003_v32, %v8010_v16  ;;  %v13659_v3 = vcombine.low %v8019_v47, %v8026_v19  ;;  %v13661_v4 = vcombine.high %v8019_v47, %v8026_v19 }
0x12eb   : > { %v8398_v63 = vpack.c.bf16 %v6040_v14, %v6040_v14 }
0x12ec   : > { %v8050_v13 = vrot.slane %v13655_v62, %v16413_v59  ;;  %v8066_v15 = vrot.slane %v13657_v2, %v16413_v59  ;;  %v8082_v49 = vrot.slane %v13659_v3, %v16413_v59  ;;  %v8098_v20 = vrot.slane %v13661_v4, %v16413_v59  ;;  %v15088_v62 = vld [vmem:[%s15597_s21] sm:$0xff]   ;;  %v15089_v2 = vld [vmem:[%s15597_s21 + $0x8] sm:$0xff]   ;;  %v15090_v3 = vld [vmem:[%s15597_s21 + $0x10] sm:$0xff]  }
0x12ed   : > { %14681 = vmatpush3.bf16.msra.mxu1 %v15088_v62  ;;  %v15091_v4 = vld [vmem:[%s15597_s21 + $0x18] sm:$0xff]   ;;  %s17682_s21 = smov 56  }
0x12ee   : > { %v8115_v18 = vcombine.low %v8050_v13, %v8066_v15  ;;  %v8147_v43 = vcombine.low %v8082_v49, %v8098_v20  ;;  %v8116_v30 = vcombine.high %v8050_v13, %v8066_v15  ;;  %v8148_v31 = vcombine.high %v8082_v49, %v8098_v20  ;;  %14682 = vmatprep.subr.bf16.mxu1 %v15374_v51 }
0x12f0   : > { %v8123_v9 = vrot.slane %v8115_v18, %v16418_v40  ;;  %v8155_v35 = vrot.slane %v8147_v43, %v16418_v40  ;;  %v8130_v33 = vrot.slane %v8116_v30, %v16418_v40  ;;  %v8162_v26 = vrot.slane %v8148_v31, %v16418_v40 }
0x12f1   : > { %14683 = vmatpush3.bf16.msra.mxu1 %v15089_v2 }
0x12f2   : > { %v8168_v41 = vcombine.high %v8123_v9, %v8155_v35  ;;  %v8167_v12 = vcombine.low %v8123_v9, %v8155_v35  ;;  %v8170_v28 = vcombine.high %v8130_v33, %v8162_v26  ;;  %v8169_v34 = vcombine.low %v8130_v33, %v8162_v26  ;;  %14684 = vmatprep.subr.bf16.mxu1 %v15374_v51 }
0x12f3   : > { %v16840_v9 = vsub.s32 2, %v16391_v39  ;;  %v8302_v35 = vrot.slane %v16801_v29, %v16568_v22 }
0x12f4   : > { %8188 = vrot.lane.b32.xlu0 %v8168_v41, %s15379_s24  ;;  %8184 = vrot.lane.b32.xlu1 %v8167_v12, %s15380_s5 }
0x12f5   : > { %14685 = vmatpush3.bf16.msra.mxu1 %v15090_v3  ;;  %v8307_v41 = vrot.slane %v16801_v29, %v16840_v9 }
0x12f6   : > { %14686 = vmatprep.subr.bf16.mxu1 %v15374_v51 }
0x12f8   : > { %8196 = vrot.lane.b32.xlu0 %v8170_v28, %s17629_s26  ;;  %8192 = vrot.lane.b32.xlu1 %v8169_v34, %s17628_s1  ;;  %s17680_s26 = scalar_lea.vmem %s17603_s13, %s17695_s8  ;;  %s17681_s8 = smov 24  }
0x12f9   : > { %14687 = vmatpush3.bf16.msra.mxu1 %v15091_v4  ;;  %v13672_v1 = vld [vmem:[%s17680_s26] ss:$0 sm:$0xff]  ;;  %s17686_s1 = sld [smem:[#allocation32_spill]] (!%p13931_p10)  ;;  %s17687_s26 = sld [smem:[#allocation34_spill]] (!%p13931_p10) }
0x12fa   : > { %14704 = vmatprep.subr.bf16.mxu1 %v15374_v51 }
0x132c   : > { %v8173_v7 = vpop.permute.xlu0 %8172  ;;  %v8177_v27 = vpop.permute.xlu1 %8176 }
0x132d   : > { %v8199_v5 = vsel %vm7065_vm15, %v8163_v23, %v8173_v7 }
0x132e   : > { %v8201_v45 = vsel %vm8200_vm1, %v8199_v5, %v8177_v27 }
0x1330   : > { %v8181_v25 = vpop.permute.xlu0 %8180 }
0x1331   : > { %v8203_v6 = vsel %vm8202_vm2, %v8201_v45, %v8181_v25 }
0x1366   : > { %v8189_v24 = vpop.permute.xlu0 %8188  ;;  %v8185_v36 = vpop.permute.xlu1 %8184 }
0x1367   : > { %v8205_v56 = vsel %vm8204_vm3, %v8203_v6, %v8185_v36 }
0x1368   : > { %v8207_v53 = vsel %vm8206_vm4, %v8205_v56, %v8189_v24 }
0x136a   : > { %v8197_v48 = vpop.permute.xlu0 %8196  ;;  %v8193_v42 = vpop.permute.xlu1 %8192 }
0x136b   : > { %v8209_v23 = vsel %vm8208_vm5, %v8207_v53, %v8193_v42 }
0x136c   : > { %v8211_v55 = vsel %vm8210_vm6, %v8209_v23, %v8197_v48 }
0x136d   : > { %v8212_v57 = vpack.c.bf16 %v8211_v55, %v8211_v55 }
0x136f   : > { %14677 = vmatmul.mubr.msk.bf16.vlgmr.msra.gmra.mrb[28].mxu0 %vm6104_vm13, %v8212_v57 }
0x1370   : > { %14700 = vmatprep.mubr.msk.bf16.mxu0 %vm15375_vm14, %v15374_v51  ;;  %14693 = vmatpush3.bf16.msra.mxu0 %v15084_v10 }
0x1371   : > { %14694 = vmatprep.subr.bf16.mxu0 %v15374_v51 }
0x1374   : > { %14695 = vmatpush3.bf16.msra.mxu0 %v15085_v61 }
0x1375   : > { %14696 = vmatprep.subr.bf16.mxu0 %v15374_v51 }
0x1378   : > { %14697 = vmatpush3.bf16.msra.mxu0 %v15086_v21 }
0x1379   : > { %14698 = vmatprep.subr.bf16.mxu0 %v15374_v51 }
0x137c   : > { %14699 = vmatpush3.bf16.msra.mxu0 %v15087_v38 }
0x137d   : > { %14716 = vmatprep.subr.bf16.mxu0 %v15374_v51 }
0x137f   : > { %14701 = vmatmul.mubr.msk.bf16.vlgmr.msra.gmra.mrb[32].mxu0 %vm6104_vm13, %v8398_v63 }
0x1380   : > { %14718 = vmatprep.mubr.msk.bf16.mxu0 %vm15375_vm14, %v15374_v51 }
0x1442   : > { %v8278_v50 = vpop.f32.mrb[28].mxu0 }
0x1443   : > { %v8279_v60 = vadd.f32 %v8278_v50, %v8216_v8  ;;  %v14678_v46 = vpop.f32.mrb[29].mxu0 }
0x1444   : > { %v8281_v37 = vpop.f32.mrb[30].mxu0 }
0x1445   : > { %v14679_v58 = vpop.f32.mrb[31].mxu0  ;;  %v8284_v11 = vadd.f32 %v15294_v44, %v8279_v60 }
0x1447   : > { %v8285_v52 = vsel %vm6104_vm13, %v8284_v11, 0.0 }
0x1448   : > { %8286 = vadd.xlane.f32.xlu1 %v8285_v52 }
0x1452   : > { %v8466_v13 = vpop.f32.mrb[32].mxu0 }
0x1453   : > { %v16831_v15 = vadd.f32 %v13672_v1, %v8466_v13  ;;  %v14702_v49 = vpop.f32.mrb[33].mxu0 }
0x1454   : > { %v8469_v20 = vpop.f32.mrb[34].mxu0 }
0x1455   : > { %v14703_v18 = vpop.f32.mrb[35].mxu0 }
0x1456   : > { %v16888_v18 = vsub.s32 3, %v16391_v39 }
0x1459   : > { %8786 = vrot.lane.b32.xlu1 %v16831_v15, %s15367_s0 }
0x145d   : > { %8789 = vrot.lane.b32.xlu1 %v16831_v15, %s15364_s22 }
0x14d5   : > { %v8287_v17 = vpop.xlane.xlu1 %8286 }
0x14d6   : > { %v8289_v32 = vmul.f32 0.015625, %v8287_v17 }
0x14d8   : > { %v8290_v16 = vsub.f32 %v8284_v11, %v8289_v32 }
0x14d9   : > { %v16853_v7 = vpop.permute.xlu1 %8786 }
0x14da   : > { %v8291_v47 = vmul.f32 %v8290_v16, %v8290_v16  ;;  %v8804_v25 = vcombine.low %v16831_v15, %v16853_v7  ;;  %v8805_v45 = vcombine.high %v16831_v15, %v16853_v7 }
0x14dc   : > { %v8292_v19 = vsel %vm6104_vm13, %v8291_v47, 0.0  ;;  %v8812_v36 = vrot.slane %v8804_v25, %v16413_v59  ;;  %v8819_v56 = vrot.slane %v8805_v45, %v16413_v59 }
0x14dd   : > { %8293 = vadd.xlane.f32.xlu0 %v8292_v19  ;;  %v16855_v27 = vpop.permute.xlu1 %8789 }
0x14f3   : > { %8783 = vrot.lane.b32.xlu0 %v16831_v15, %s15365_s11 }
0x156a   : > { %v8294_v43 = vpop.xlane.xlu0 %8293 }
0x156b   : > { %v8295_v30 = vmul.f32 0.015625, %v8294_v43  ;;  %v8321_v43 = vrot.slane %v16801_v29, %v16888_v18 }
0x156d   : > { %v8296_v31 = vadd.f32 1e-05, %v8295_v30 }
0x156e   : > { %v8784_v5 = vpop.permute.xlu0 %8783 }
0x156f   : > { %15256 = vrsqrt.f32 %v8296_v31  ;;  %v8820_v6 = vcombine.low %v8784_v5, %v16855_v27  ;;  %v8821_v24 = vcombine.high %v8784_v5, %v16855_v27 }
0x1571   : > { %v8828_v48 = vrot.slane %v8820_v6, %v16413_v59  ;;  %v8835_v53 = vrot.slane %v8821_v24, %v16413_v59 }
0x1573   : > { %v8868_v42 = vcombine.low %v8812_v36, %v8828_v48  ;;  %v8869_v23 = vcombine.high %v8812_v36, %v8828_v48  ;;  %v8884_v55 = vcombine.low %v8819_v56, %v8835_v53  ;;  %v8885_v57 = vcombine.high %v8819_v56, %v8835_v53 }
0x1575   : > { %v8876_v8 = vrot.slane %v8868_v42, %v16418_v40  ;;  %v8883_v50 = vrot.slane %v8869_v23, %v16418_v40  ;;  %v8892_v60 = vrot.slane %v8884_v55, %v16418_v40  ;;  %v8899_v46 = vrot.slane %v8885_v57, %v16418_v40 }
0x1577   : > { %v13686_v37 = vcombine.low %v8876_v8, %v8883_v50  ;;  %v13688_v58 = vcombine.high %v8876_v8, %v8883_v50  ;;  %v13690_v44 = vcombine.low %v8892_v60, %v8899_v46  ;;  %v13692_v11 = vcombine.high %v8892_v60, %v8899_v46 }
0x1579   : > { %v15257_v33 = vpop.eup %15256  ;;  %v8948_v52 = vrot.slane %v13686_v37, %v16413_v59  ;;  %v8964_v10 = vrot.slane %v13688_v58, %v16413_v59  ;;  %v8980_v61 = vrot.slane %v13690_v44, %v16413_v59  ;;  %v8996_v21 = vrot.slane %v13692_v11, %v16413_v59 }
0x157a   : > { %v8298_v26 = vmul.f32 %v15257_v33, %v8290_v16 }
0x157b   : > { %v9004_v38 = vcombine.low %v8948_v52, %v8964_v10  ;;  %v9036_v14 = vcombine.low %v8980_v61, %v8996_v21  ;;  %v9005_v63 = vcombine.high %v8948_v52, %v8964_v10  ;;  %v9037_v17 = vcombine.high %v8980_v61, %v8996_v21 }
0x157c   : > { %v8303_v12 = vmul.f32 %v8302_v35, %v8298_v26 }
0x157d   : > { %v9012_v32 = vrot.slane %v9004_v38, %v16418_v40  ;;  %v9044_v16 = vrot.slane %v9036_v14, %v16418_v40  ;;  %v9019_v47 = vrot.slane %v9005_v63, %v16418_v40  ;;  %v9051_v19 = vrot.slane %v9037_v17, %v16418_v40 }
0x157e   : > { %v16846_v28 = vadd.f32 %v8307_v41, %v8303_v12 }
0x157f   : > { %v9068_v62 = vcombine.low %v9012_v32, %v9044_v16  ;;  %v9070_v2 = vcombine.low %v9019_v47, %v9051_v19  ;;  %v16879_v1 = vcombine.high %v9012_v32, %v9044_v16  ;;  %v16883_v20 = vcombine.high %v9019_v47, %v9051_v19 }
0x1580   : > { %v8317_v34 = vpack.c.bf16 %v16846_v28, %v16846_v28 }
0x1581   : > { %v9076_v3 = vpack.c.bf16 %v9068_v62, %v9068_v62  ;;  %v9078_v4 = vpack.c.bf16 %v9070_v2, %v9070_v2  ;;  %v9077_v55 = vpack.c.bf16 %v16879_v1, %v16879_v1 }
0x1582   : > { %14689 = vmatmul.mubr.msk.bf16.vlgmr.msra.gmra.mrb[40].mxu1 %vm6104_vm13, %v8317_v34 }
0x1583   : > { %14706 = vmatprep.mubr.msk.bf16.mxu1 %vm15375_vm14, %v15374_v51  ;;  %v9392_v13 = vsel %vm7065_vm15, %v9076_v3, 0  ;;  %v9484_v49 = vsel %vm7065_vm15, %v9078_v4, 0  ;;  %v16941_v14 = vsel %vm7065_vm15, %v9077_v55, 0 }
0x1584   : > { %14705 = vmatpush3.bf16.xpose.msra.mxu1 %v9392_v13  ;;  %14717 = vmatpush3.bf16.xpose.msra.mxu0 %v9484_v49 }
0x1585   : > { %14710 = vmatprep.subr.bf16.mxu1 %v15374_v51  ;;  %14728 = vmatprep.subr.bf16.mxu0 %v15374_v51 }
0x1655   : > { %v8383_v30 = vpop.f32.mrb[40].mxu1 }
0x1656   : > { %v8384_v31 = vadd.f32 %v8383_v30, %v8321_v43  ;;  %v14690_v35 = vpop.f32.mrb[41].mxu1 }
0x1657   : > { %v8386_v33 = vpop.f32.mrb[42].mxu1 }
0x1658   : > { %v14691_v26 = vpop.f32.mrb[43].mxu1  ;;  %8484 = vrot.lane.b32.xlu1 %v8384_v31, %s15367_s0  ;;  %8481 = vrot.lane.b32.xlu0 %v8384_v31, %s15365_s11 }
0x165c   : > { %8792 = vrot.lane.b32.xlu1 %v16831_v15, %s15366_s25  ;;  %8487 = vrot.lane.b32.xlu0 %v8384_v31, %s15364_s22 }
0x1660   : > { %8798 = vrot.lane.b32.xlu1 %v16831_v15, %s15368_s12  ;;  %8795 = vrot.lane.b32.xlu0 %v16831_v15, %s15369_s30 }
0x1664   : > { %8490 = vrot.lane.b32.xlu1 %v8384_v31, %s15366_s25  ;;  %8801 = vrot.lane.b32.xlu0 %v16831_v15, %s15371_s23 }
0x1668   : > { %8496 = vrot.lane.b32.xlu1 %v8384_v31, %s15368_s12  ;;  %8493 = vrot.lane.b32.xlu0 %v8384_v31, %s15369_s30 }
0x166c   : > { %8499 = vrot.lane.b32.xlu0 %v8384_v31, %s15371_s23  ;;  %9086 = vrot.lane.b32.xlu1 %v8784_v5, %s15370_s7  ;;  %s17685_s23 = sld [smem:[#allocation31_spill]] (!%p13931_p10) }
0x1670   : > { %9084 = vrot.lane.b32.xlu0 %v16831_v15, %s15370_s7  ;;  %9088 = vrot.lane.b32.xlu1 %v16853_v7, %s15370_s7 }
0x1674   : > { %9090 = vrot.lane.b32.xlu0 %v16855_v27, %s15370_s7 }
0x16ca   : > { %v8485_v29 = vpop.permute.xlu1 %8484  ;;  %v8482_v41 = vpop.permute.xlu0 %8481 }
0x16cb   : > { %v8502_v12 = vcombine.low %v8384_v31, %v8485_v29  ;;  %v8503_v34 = vcombine.high %v8384_v31, %v8485_v29 }
0x16cd   : > { %v8510_v5 = vrot.slane %v8502_v12, %v16413_v59  ;;  %v8517_v36 = vrot.slane %v8503_v34, %v16413_v59 }
0x16ce   : > { %v16914_v25 = vpop.permute.xlu1 %8792  ;;  %v8488_v45 = vpop.permute.xlu0 %8487 }
0x16cf   : > { %v8518_v6 = vcombine.low %v8482_v41, %v8488_v45  ;;  %v8519_v24 = vcombine.high %v8482_v41, %v8488_v45 }
0x16d1   : > { %v8526_v15 = vrot.slane %v8518_v6, %v16413_v59  ;;  %v8533_v7 = vrot.slane %v8519_v24, %v16413_v59 }
0x16d2   : > { %v16920_v56 = vpop.permute.xlu1 %8798  ;;  %v16922_v27 = vpop.permute.xlu0 %8795 }
0x16d3   : > { %v8566_v48 = vcombine.low %v8510_v5, %v8526_v15  ;;  %v8567_v53 = vcombine.high %v8510_v5, %v8526_v15  ;;  %v8582_v42 = vcombine.low %v8517_v36, %v8533_v7  ;;  %v8583_v23 = vcombine.high %v8517_v36, %v8533_v7 }
0x16d4   : > { %v8836_v46 = vcombine.low %v16914_v25, %v16920_v56  ;;  %v8837_v37 = vcombine.high %v16914_v25, %v16920_v56 }
0x16d5   : > { %v8574_v57 = vrot.slane %v8566_v48, %v16418_v40  ;;  %v8581_v8 = vrot.slane %v8567_v53, %v16418_v40  ;;  %v8590_v50 = vrot.slane %v8582_v42, %v16418_v40  ;;  %v8597_v60 = vrot.slane %v8583_v23, %v16418_v40 }
0x16d6   : > { %v8491_v58 = vpop.permute.xlu1 %8490  ;;  %v16934_v44 = vpop.permute.xlu0 %8801  ;;  %v8844_v47 = vrot.slane %v8836_v46, %v16413_v59  ;;  %v8851_v19 = vrot.slane %v8837_v37, %v16413_v59  ;;  %v9079_v53 = vpack.c.bf16 %v16883_v20, %v16883_v20 }
0x16d7   : > { %v13678_v11 = vcombine.low %v8574_v57, %v8581_v8  ;;  %v13680_v52 = vcombine.high %v8574_v57, %v8581_v8  ;;  %v13682_v10 = vcombine.low %v8590_v50, %v8597_v60  ;;  %v13684_v61 = vcombine.high %v8590_v50, %v8597_v60 }
0x16d8   : > { %v8852_v21 = vcombine.low %v16922_v27, %v16934_v44  ;;  %v8853_v38 = vcombine.high %v16922_v27, %v16934_v44 }
0x16d9   : > { %v8646_v63 = vrot.slane %v13678_v11, %v16413_v59  ;;  %v8662_v17 = vrot.slane %v13680_v52, %v16413_v59  ;;  %v8678_v32 = vrot.slane %v13682_v10, %v16413_v59  ;;  %v8694_v16 = vrot.slane %v13684_v61, %v16413_v59 }
0x16da   : > { %v8860_v62 = vrot.slane %v8852_v21, %v16413_v59  ;;  %v8867_v2 = vrot.slane %v8853_v38, %v16413_v59  ;;  %v8497_v3 = vpop.permute.xlu1 %8496  ;;  %v8494_v4 = vpop.permute.xlu0 %8493 }
0x16db   : > { %v8702_v1 = vcombine.low %v8646_v63, %v8662_v17  ;;  %v8703_v13 = vcombine.high %v8646_v63, %v8662_v17  ;;  %v8734_v49 = vcombine.low %v8678_v32, %v8694_v16  ;;  %v8735_v43 = vcombine.high %v8678_v32, %v8694_v16 }
0x16dc   : > { %v8900_v30 = vcombine.low %v8844_v47, %v8860_v62  ;;  %v8901_v31 = vcombine.high %v8844_v47, %v8860_v62  ;;  %v8916_v35 = vcombine.low %v8851_v19, %v8867_v2  ;;  %v8917_v33 = vcombine.high %v8851_v19, %v8867_v2 }
0x16dd   : > { %v8534_v26 = vcombine.low %v8491_v58, %v8497_v3  ;;  %v8535_v29 = vcombine.high %v8491_v58, %v8497_v3  ;;  %v8710_v41 = vrot.slane %v8702_v1, %v16418_v40  ;;  %v8742_v12 = vrot.slane %v8734_v49, %v16418_v40 }
0x16de   : > { %v8908_v34 = vrot.slane %v8900_v30, %v16418_v40  ;;  %v8915_v45 = vrot.slane %v8901_v31, %v16418_v40  ;;  %v8924_v6 = vrot.slane %v8916_v35, %v16418_v40  ;;  %v8931_v24 = vrot.slane %v8917_v33, %v16418_v40  ;;  %v9087_v5 = vpop.permute.xlu1 %9086  ;;  %v8500_v36 = vpop.permute.xlu0 %8499 }
0x16df   : > { %v8542_v15 = vrot.slane %v8534_v26, %v16413_v59  ;;  %v8550_v7 = vcombine.low %v8494_v4, %v8500_v36  ;;  %v8551_v48 = vcombine.high %v8494_v4, %v8500_v36  ;;  %v8549_v57 = vrot.slane %v8535_v29, %v16413_v59 }
0x16e0   : > { %v13687_v42 = vcombine.low %v8908_v34, %v8915_v45  ;;  %v13689_v23 = vcombine.high %v8908_v34, %v8915_v45  ;;  %v13691_v55 = vcombine.low %v8924_v6, %v8931_v24  ;;  %v8766_v60 = vcombine.low %v8710_v41, %v8742_v12 }
0x16e1   : > { %v8558_v8 = vrot.slane %v8550_v7, %v16413_v59  ;;  %v8565_v50 = vrot.slane %v8551_v48, %v16413_v59  ;;  %v16964_v46 = vrot.slane %v8703_v13, %v16418_v40  ;;  %v13693_v37 = vcombine.high %v8924_v6, %v8931_v24 }
0x16e2   : > { %v9089_v58 = vpop.permute.xlu1 %9088  ;;  %v9085_v11 = vpop.permute.xlu0 %9084  ;;  %v8749_v52 = vrot.slane %v8735_v43, %v16418_v40  ;;  %v8767_v10 = vcombine.high %v8710_v41, %v8742_v12  ;;  %v16968_v20 = vrot.slane %v13687_v42, %v16413_v59  ;;  %v8774_v16 = vpack.c.bf16 %v8766_v60, %v8766_v60 }
0x16e3   : > { %v8598_v61 = vcombine.low %v8542_v15, %v8558_v8  ;;  %v8599_v21 = vcombine.high %v8542_v15, %v8558_v8  ;;  %v8614_v38 = vcombine.low %v8549_v57, %v8565_v50  ;;  %v8615_v63 = vcombine.high %v8549_v57, %v8565_v50 }
0x16e4   : > { %v9108_v17 = vcombine.low %v9085_v11, %v9089_v58  ;;  %v9109_v32 = vcombine.high %v9085_v11, %v9089_v58  ;;  %v8768_v47 = vcombine.low %v16964_v46, %v8749_v52  ;;  %14707 = vmatmul.mubr.msk.bf16.vlgmr.msra.gmra.mrb[44].mxu1 %vm7065_vm15, %v8774_v16  ;;  %v8971_v43 = vrot.slane %v13689_v23, %v16413_v59 }
0x16e5   : > { %v8606_v19 = vrot.slane %v8598_v61, %v16418_v40  ;;  %v8613_v62 = vrot.slane %v8599_v21, %v16418_v40  ;;  %v8622_v2 = vrot.slane %v8614_v38, %v16418_v40  ;;  %v8629_v3 = vrot.slane %v8615_v63, %v16418_v40  ;;  %14711 = vmatpush3.bf16.xpose.msra.mxu1 %v16941_v14 }
0x16e6   : > { %v9116_v4 = vrot.slane %v9108_v17, %v16413_v59  ;;  %v9123_v1 = vrot.slane %v9109_v32, %v16413_v59  ;;  %v8776_v13 = vpack.c.bf16 %v8768_v47, %v8768_v47  ;;  %v9091_v49 = vpop.permute.xlu0 %9090  ;;  %14712 = vmatprep.mubr.msk.bf16.mxu1 %vm15375_vm14, %v15374_v51  ;;  %v8987_v41 = vrot.slane %v13691_v55, %v16413_v59 }
0x16e7   : > { %v13679_v30 = vcombine.low %v8606_v19, %v8613_v62  ;;  %v13681_v31 = vcombine.high %v8606_v19, %v8613_v62  ;;  %v13683_v35 = vcombine.low %v8622_v2, %v8629_v3  ;;  %v13685_v33 = vcombine.high %v8622_v2, %v8629_v3  ;;  %14722 = vmatprep.subr.bf16.mxu1 %v15374_v51 }
0x16e8   : > { %14719 = vmatmul.mubr.msk.bf16.vlgmr.msra.gmra.mrb[36].mxu0 %vm7065_vm15, %v8776_v13  ;;  %v9124_v26 = vcombine.low %v9087_v5, %v9091_v49  ;;  %v9125_v29 = vcombine.high %v9087_v5, %v9091_v49  ;;  %v9003_v5 = vrot.slane %v13693_v37, %v16413_v59  ;;  %v9020_v36 = vcombine.low %v16968_v20, %v8971_v43 }
0x16e9   : > { %v16985_v12 = vrot.slane %v13679_v30, %v16413_v59  ;;  %v16988_v34 = vrot.slane %v13681_v31, %v16413_v59  ;;  %v16991_v45 = vrot.slane %v13683_v35, %v16413_v59  ;;  %v16994_v14 = vrot.slane %v13685_v33, %v16413_v59  ;;  %14730 = vmatprep.mubr.msk.bf16.mxu0 %vm15375_vm14, %v15374_v51 }
0x16ea   : > { %v9132_v6 = vrot.slane %v9124_v26, %v16413_v59  ;;  %v9139_v24 = vrot.slane %v9125_v29, %v16413_v59  ;;  %v8775_v7 = vpack.c.bf16 %v8767_v10, %v8767_v10  ;;  %v9530_v8 = vsel %vm7065_vm15, %v9079_v53, 0 }
0x16eb   : > { %v8718_v15 = vcombine.low %v16985_v12, %v16988_v34  ;;  %v8750_v57 = vcombine.low %v16991_v45, %v16994_v14  ;;  %v9028_v50 = vrot.slane %v9020_v36, %v16418_v40  ;;  %v9052_v60 = vcombine.low %v8987_v41, %v9003_v5 }
0x16ec   : > { %v9172_v48 = vcombine.low %v9116_v4, %v9132_v6  ;;  %v9173_v42 = vcombine.high %v9116_v4, %v9132_v6  ;;  %v9188_v23 = vcombine.low %v9123_v1, %v9139_v24  ;;  %v9189_v55 = vcombine.high %v9123_v1, %v9139_v24  ;;  %14713 = vmatmul.mubr.msk.bf16.vlgmr.msra.gmra.mrb[48].mxu1 %vm7065_vm15, %v8775_v7 }
0x16ed   : > { %14723 = vmatpush3.bf16.xpose.msra.mxu1 %v9530_v8  ;;  %v9060_v61 = vrot.slane %v9052_v60, %v16418_v40  ;;  %14724 = vmatprep.mubr.msk.bf16.mxu1 %vm15375_vm14, %v15374_v51  ;;  %v8769_v53 = vcombine.high %v16964_v46, %v8749_v52  ;;  %v8726_v21 = vrot.slane %v8718_v15, %v16418_v40 }
0x16ee   : > { %v9180_v37 = vrot.slane %v9172_v48, %v16418_v40  ;;  %v9187_v58 = vrot.slane %v9173_v42, %v16418_v40  ;;  %v9196_v11 = vrot.slane %v9188_v23, %v16418_v40  ;;  %v9203_v10 = vrot.slane %v9189_v55, %v16418_v40  ;;  %14734 = vmatprep.subr.bf16.mxu1 %v15374_v51 }
0x16ef   : > { %v9072_v16 = vcombine.low %v9028_v50, %v9060_v61  ;;  %v8758_v47 = vrot.slane %v8750_v57, %v16418_v40  ;;  %v9073_v19 = vcombine.high %v9028_v50, %v9060_v61  ;;  %v9021_v62 = vcombine.high %v16968_v20, %v8971_v43 }
0x16f0   : > { %v13694_v38 = vcombine.low %v9180_v37, %v9187_v58  ;;  %v13696_v63 = vcombine.high %v9180_v37, %v9187_v58  ;;  %v13698_v17 = vcombine.low %v9196_v11, %v9203_v10  ;;  %v13700_v32 = vcombine.high %v9196_v11, %v9203_v10 }
0x16f1   : > { %v9080_v4 = vpack.c.bf16 %v9072_v16, %v9072_v16  ;;  %v9081_v1 = vpack.c.bf16 %v9073_v19, %v9073_v19  ;;  %v8777_v13 = vpack.c.bf16 %v8769_v53, %v8769_v53  ;;  %v9035_v49 = vrot.slane %v9021_v62, %v16418_v40 }
0x16f2   : > { %v9252_v2 = vrot.slane %v13694_v38, %v16413_v59  ;;  %v9268_v3 = vrot.slane %v13696_v63, %v16413_v59  ;;  %v9284_v46 = vrot.slane %v13698_v17, %v16413_v59  ;;  %v9300_v52 = vrot.slane %v13700_v32, %v16413_v59 }
0x16f3   : > { %v9053_v30 = vcombine.high %v8987_v41, %v9003_v5  ;;  %v9576_v31 = vsel %vm7065_vm15, %v9080_v4, 0  ;;  %v8770_v35 = vcombine.low %v8726_v21, %v8758_v47  ;;  %v8719_v20 = vcombine.high %v16985_v12, %v16988_v34 }
0x16f4   : > { %v9308_v33 = vcombine.low %v9252_v2, %v9268_v3  ;;  %v9340_v26 = vcombine.low %v9284_v46, %v9300_v52  ;;  %14729 = vmatpush3.bf16.xpose.msra.mxu0 %v9576_v31  ;;  %14725 = vmatmul.mubr.msk.bf16.vlgmr.msra.gmra.mrb[52].mxu1 %vm7065_vm15, %v8777_v13  ;;  %v9622_v43 = vsel %vm7065_vm15, %v9081_v1, 0  ;;  %v8751_v6 = vcombine.high %v16991_v45, %v16994_v14 }
0x16f5   : > { %v9067_v29 = vrot.slane %v9053_v30, %v16418_v40  ;;  %14735 = vmatpush3.bf16.xpose.msra.mxu1 %v9622_v43  ;;  %14740 = vmatprep.subr.bf16.mxu0 %v15374_v51  ;;  %v8778_v34 = vpack.c.bf16 %v8770_v35, %v8770_v35  ;;  %v8771_v36 = vcombine.high %v8726_v21, %v8758_v47 }
0x16f6   : > { %v9316_v41 = vrot.slane %v9308_v33, %v16418_v40  ;;  %v9348_v24 = vrot.slane %v9340_v26, %v16418_v40  ;;  %14736 = vmatprep.mubr.msk.bf16.mxu1 %vm15375_vm14, %v15374_v51  ;;  %14746 = vmatprep.subr.bf16.mxu1 %v15374_v51  ;;  %v9309_v15 = vcombine.high %v9252_v2, %v9268_v3 }
0x16f7   : > { %v9074_v5 = vcombine.low %v9035_v49, %v9067_v29  ;;  %v9075_v12 = vcombine.high %v9035_v49, %v9067_v29  ;;  %v8733_v45 = vrot.slane %v8719_v20, %v16418_v40  ;;  %v9341_v14 = vcombine.high %v9284_v46, %v9300_v52 }
0x16f8   : > { %v8765_v48 = vrot.slane %v8751_v6, %v16418_v40  ;;  %v9372_v23 = vcombine.low %v9316_v41, %v9348_v24  ;;  %v9323_v55 = vrot.slane %v9309_v15, %v16418_v40  ;;  %v8779_v50 = vpack.c.bf16 %v8771_v36, %v8771_v36 }
0x16f9   : > { %v9082_v7 = vpack.c.bf16 %v9074_v5, %v9074_v5  ;;  %v9083_v42 = vpack.c.bf16 %v9075_v12, %v9075_v12  ;;  %v9355_v57 = vrot.slane %v9341_v14, %v16418_v40  ;;  %v9373_v61 = vcombine.high %v9316_v41, %v9348_v24 }
0x16fa   : > { %v8772_v58 = vcombine.low %v8733_v45, %v8765_v48  ;;  %v9380_v10 = vpack.c.bf16 %v9372_v23, %v9372_v23  ;;  %v8773_v53 = vcombine.high %v8733_v45, %v8765_v48 }
0x16fb   : > { %14731 = vmatmul.mubr.msk.bf16.vlgmr.msra.gmra.mrb[40].mxu0 %vm7065_vm15, %v8778_v34  ;;  %v9668_v8 = vsel %vm7065_vm15, %v9082_v7, 0  ;;  %v17049_v60 = vcombine.low %v9323_v55, %v9355_v57  ;;  %v17051_v37 = vcombine.high %v9323_v55, %v9355_v57  ;;  %v9714_v11 = vsel %vm7065_vm15, %v9083_v42, 0 }
0x16fc   : > { %14741 = vmatpush3.bf16.xpose.msra.mxu0 %v9668_v8  ;;  %14742 = vmatprep.mubr.msk.bf16.mxu0 %vm15375_vm14, %v15374_v51  ;;  %v8780_v21 = vpack.c.bf16 %v8772_v58, %v8772_v58  ;;  %v9856_v38 = vsel %vm7533_vm0, %v9380_v10, 0  ;;  %v9381_v63 = vpack.c.bf16 %v9373_v61, %v9373_v61  ;;  %v8781_v17 = vpack.c.bf16 %v8773_v53, %v8773_v53 }
0x16fd   : > { %14737 = vmatmul.mubr.msk.bf16.vlgmr.msra.gmra.mrb[56].mxu1 %vm7065_vm15, %v8779_v50  ;;  %14752 = vmatprep.subr.bf16.mxu0 %v15374_v51 }
0x16fe   : > { %14747 = vmatpush3.bf16.xpose.msra.mxu1 %v9714_v11  ;;  %14748 = vmatprep.mubr.msk.bf16.mxu1 %vm15375_vm14, %v15374_v51  ;;  %v9902_v32 = vsel %vm7533_vm0, %v9381_v63, 0 }
0x16ff   : > { %14758 = vmatprep.subr.bf16.mxu1 %v15374_v51 }
0x1703   : > { %14743 = vmatmul.mubr.msk.bf16.vlgmr.msra.gmra.mrb[44].mxu0 %vm7065_vm15, %v8780_v21 }
0x1704   : > { %14753 = vmatpush3.bf16.msra.mxu0 %v9856_v38  ;;  %14754 = vmatprep.mubr.msk.bf16.mxu0 %vm15375_vm14, %v15374_v51 }
0x1705   : > { %14749 = vmatmul.mubr.msk.bf16.vlgmr.msra.gmra.mrb[60].mxu1 %vm7065_vm15, %v8781_v17  ;;  %14764 = vmatprep.subr.bf16.mxu0 %v15374_v51 }
0x1706   : > { %14759 = vmatpush3.bf16.msra.mxu1 %v9902_v32  ;;  %14760 = vmatprep.mubr.msk.bf16.mxu1 %vm15375_vm14, %v15374_v51 }
0x1707   : > { %14770 = vmatprep.subr.bf16.mxu1 %v15374_v51 }
0x17b7   : > { %v9428_v16 = vpop.f32.mrb[44].mxu1 }
0x17b8   : > { %v14708_v47 = vpop.f32.mrb[45].mxu1  ;;  %v9756_v19 = vsel %vm7065_vm15, %v9428_v16, -inf }
0x17b9   : > { %9757 = vmax.xlane.f32.xlu1 %v9756_v19  ;;  %v9431_v2 = vpop.f32.mrb[46].mxu1 }
0x17ba   : > { %v14709_v52 = vpop.f32.mrb[47].mxu1 }
0x17bb   : > { %v9520_v62 = vpop.f32.mrb[36].mxu0 }
0x17bc   : > { %v14720_v3 = vpop.f32.mrb[37].mxu0  ;;  %v9762_v46 = vsel %vm7065_vm15, %v9520_v62, -inf }
0x17bd   : > { %9763 = vmax.xlane.f32.xlu0 %v9762_v46  ;;  %v9523_v4 = vpop.f32.mrb[38].mxu0 }
0x17be   : > { %v14721_v1 = vpop.f32.mrb[39].mxu0 }
0x17bf   : > { %v9474_v13 = vpop.f32.mrb[48].mxu1 }
0x17c0   : > { %v14714_v49 = vpop.f32.mrb[49].mxu1  ;;  %v9759_v30 = vsel %vm7065_vm15, %v9474_v13, -inf }
0x17c1   : > { %v9477_v31 = vpop.f32.mrb[50].mxu1  ;;  %9760 = vmax.xlane.f32.xlu0 %v9759_v30 }
0x17c2   : > { %v14715_v35 = vpop.f32.mrb[51].mxu1 }
0x17c7   : > { %v9566_v33 = vpop.f32.mrb[52].mxu1 }
0x17c8   : > { %v14726_v26 = vpop.f32.mrb[53].mxu1  ;;  %v9765_v20 = vsel %vm7065_vm15, %v9566_v33, -inf }
0x17c9   : > { %9766 = vmax.xlane.f32.xlu1 %v9765_v20  ;;  %v9569_v43 = vpop.f32.mrb[54].mxu1 }
0x17ca   : > { %v14727_v29 = vpop.f32.mrb[55].mxu1 }
0x17ce   : > { %v9612_v6 = vpop.f32.mrb[40].mxu0 }
0x17cf   : > { %v14732_v41 = vpop.f32.mrb[41].mxu0  ;;  %v9768_v24 = vsel %vm7065_vm15, %v9612_v6, -inf }
0x17d0   : > { %9769 = vmax.xlane.f32.xlu0 %v9768_v24  ;;  %v9615_v5 = vpop.f32.mrb[42].mxu0  ;;  %v9658_v12 = vpop.f32.mrb[56].mxu1 }
0x17d1   : > { %v14733_v34 = vpop.f32.mrb[43].mxu0  ;;  %v14738_v36 = vpop.f32.mrb[57].mxu1  ;;  %v9771_v15 = vsel %vm7065_vm15, %v9658_v12, -inf }
0x17d2   : > { %9772 = vmax.xlane.f32.xlu1 %v9771_v15  ;;  %v9661_v7 = vpop.f32.mrb[58].mxu1 }
0x17d3   : > { %v14739_v45 = vpop.f32.mrb[59].mxu1 }
0x17d6   : > { %v9704_v14 = vpop.f32.mrb[44].mxu0 }
0x17d7   : > { %v14744_v48 = vpop.f32.mrb[45].mxu0  ;;  %v9774_v42 = vsel %vm7065_vm15, %v9704_v14, -inf }
0x17d8   : > { %9775 = vmax.xlane.f32.xlu0 %v9774_v42  ;;  %v9707_v23 = vpop.f32.mrb[46].mxu0  ;;  %v9750_v55 = vpop.f32.mrb[60].mxu1 }
0x17d9   : > { %v14745_v57 = vpop.f32.mrb[47].mxu0  ;;  %v14750_v8 = vpop.f32.mrb[61].mxu1  ;;  %v9777_v50 = vsel %vm7065_vm15, %v9750_v55, -inf }
0x17da   : > { %9778 = vmax.xlane.f32.xlu1 %v9777_v50  ;;  %v9753_v58 = vpop.f32.mrb[62].mxu1  ;;  %v9382_v57 = vpack.c.bf16 %v17049_v60, %v17049_v60 }
0x17db   : > { %v14751_v11 = vpop.f32.mrb[63].mxu1 }
0x17dc   : > { %v9948_v58 = vsel %vm7533_vm0, %v9382_v57, 0 }
0x17eb   : > { %9094 = vrot.lane.b32.xlu1 %v16922_v27, %s15370_s7 }
0x17ee   : > { %9092 = vrot.lane.b32.xlu0 %v16914_v25, %s15370_s7 }
0x1846   : > { %v9758_v10 = vpop.xlane.xlu1 %9757 }
0x1847   : > { %v9780_v61 = vsub.f32 %v9428_v16, %v9758_v10 }
0x1849   : > { %v9788_v21 = vmul.f32 1.442695, %v9780_v61 }
0x184a   : > { %v9764_v53 = vpop.xlane.xlu0 %9763 }
0x184b   : > { %v9782_v38 = vsub.f32 %v9520_v62, %v9764_v53  ;;  %15258 = vpow2.f32 %v9788_v21  ;;  %v9383_v53 = vpack.c.bf16 %v17051_v37, %v17051_v37 }
0x184d   : > { %v9792_v63 = vmul.f32 1.442695, %v9782_v38 }
0x184e   : > { %v9761_v17 = vpop.xlane.xlu0 %9760 }
0x184f   : > { %15260 = vpow2.f32 %v9792_v63  ;;  %v9781_v32 = vsub.f32 %v9474_v13, %v9761_v17  ;;  %v9994_v63 = vsel %vm7533_vm0, %v9383_v53, 0 }
0x1851   : > { %v9790_v47 = vmul.f32 1.442695, %v9781_v32 }
0x1853   : > { %15262 = vpow2.f32 %v9790_v47 }
0x1855   : > { %v15259_v19 = vpop.eup %15258 }
0x1856   : > { %v9804_v2 = vsel %vm7065_vm15, %v15259_v19, 0.0  ;;  %v9767_v27 = vpop.xlane.xlu1 %9766 }
0x1857   : > { %9805 = vadd.xlane.f32.xlu0 %v9804_v2  ;;  %v9783_v16 = vsub.f32 %v9566_v33, %v9767_v27 }
0x1859   : > { %v15261_v3 = vpop.eup %15260  ;;  %v9794_v1 = vmul.f32 1.442695, %v9783_v16 }
0x185a   : > { %v9810_v25 = vsel %vm7065_vm15, %v15261_v3, 0.0 }
0x185b   : > { %9811 = vadd.xlane.f32.xlu1 %v9810_v25 }
0x185d   : > { %v15263_v46 = vpop.eup %15262  ;;  %v9770_v52 = vpop.xlane.xlu0 %9769 }
0x185e   : > { %v9784_v62 = vsub.f32 %v9612_v6, %v9770_v52  ;;  %v9807_v4 = vsel %vm7065_vm15, %v15263_v46, 0.0 }
0x185f   : > { %v9773_v49 = vpop.xlane.xlu1 %9772  ;;  %9808 = vadd.xlane.f32.xlu1 %v9807_v4 }
0x1860   : > { %v9796_v13 = vmul.f32 1.442695, %v9784_v62  ;;  %v9785_v30 = vsub.f32 %v9658_v12, %v9773_v49 }
0x1862   : > { %15264 = vpow2.f32 %v9796_v13  ;;  %v9798_v31 = vmul.f32 1.442695, %v9785_v30 }
0x1863   : > { %15266 = vpow2.f32 %v9794_v1 }
0x1864   : > { %15268 = vpow2.f32 %v9798_v31 }
0x1865   : > { %v9776_v6 = vpop.xlane.xlu0 %9775 }
0x1866   : > { %v9786_v24 = vsub.f32 %v9704_v14, %v9776_v6 }
0x1867   : > { %v9779_v41 = vpop.xlane.xlu1 %9778 }
0x1868   : > { %v9787_v5 = vsub.f32 %v9750_v55, %v9779_v41  ;;  %v9800_v12 = vmul.f32 1.442695, %v9786_v24 }
0x186a   : > { %v9802_v34 = vmul.f32 1.442695, %v9787_v5  ;;  %15270 = vpow2.f32 %v9800_v12 }
0x186b   : > { %v9095_v45 = vpop.permute.xlu1 %9094 }
0x186c   : > { %v17084_v35 = vpop.eup %15264  ;;  %15272 = vpow2.f32 %v9802_v34 }
0x186d   : > { %v17086_v26 = vpop.eup %15266  ;;  %v9816_v33 = vsel %vm7065_vm15, %v17084_v35, 0.0 }
0x186e   : > { %v17090_v20 = vpop.eup %15268  ;;  %9817 = vadd.xlane.f32.xlu0 %v9816_v33  ;;  %v9813_v29 = vsel %vm7065_vm15, %v17086_v26, 0.0 }
0x186f   : > { %v9819_v43 = vsel %vm7065_vm15, %v17090_v20, 0.0 }
0x1870   : > { %9820 = vadd.xlane.f32.xlu1 %v9819_v43 }
0x1872   : > { %9814 = vadd.xlane.f32.xlu0 %v9813_v29 }
0x1874   : > { %v17100_v36 = vpop.eup %15270 }
0x1875   : > { %v9822_v7 = vsel %vm7065_vm15, %v17100_v36, 0.0 }
0x1876   : > { %v17102_v15 = vpop.eup %15272 }
0x1881   : > { %9096 = vrot.lane.b32.xlu1 %v16920_v56, %s15370_s7  ;;  %v9825_v56 = vsel %vm7065_vm15, %v17102_v15, 0.0 }
0x1888   : > { %9098 = vrot.lane.b32.xlu0 %v16934_v44, %s15370_s7  ;;  %v9093_v44 = vpop.permute.xlu0 %9092 }
0x18a5   : > { %9823 = vadd.xlane.f32.xlu1 %v9822_v7 }
0x18a7   : > { %9826 = vadd.xlane.f32.xlu0 %v9825_v56 }
0x18e4   : > { %v9806_v14 = vpop.xlane.xlu0 %9805 }
0x18e5   : > { %15274 = vrcp.f32 %v9806_v14 }
0x18e8   : > { %v9812_v48 = vpop.xlane.xlu1 %9811 }
0x18e9   : > { %15276 = vrcp.f32 %v9812_v48 }
0x18ec   : > { %v9809_v42 = vpop.xlane.xlu1 %9808 }
0x18ed   : > { %15278 = vrcp.f32 %v9809_v42 }
0x18ef   : > { %v15275_v23 = vpop.eup %15274 }
0x18f0   : > { %v9829_v55 = vmul.f32 %v15275_v23, %v15259_v19 }
0x18f2   : > { %v9844_v8 = vpack.c.bf16 %v9829_v55, %v9829_v55 }
0x18f3   : > { %v15277_v50 = vpop.eup %15276 }
0x18f4   : > { %14755 = vmatmul.mubr.msk.bf16.vlgmr.msra.gmra.mrb[48].mxu0 %vm7065_vm15, %v9844_v8  ;;  %v9833_v11 = vmul.f32 %v15277_v50, %v15261_v3 }
0x18f5   : > { %14765 = vmatpush3.bf16.msra.mxu0 %v9948_v58  ;;  %14766 = vmatprep.mubr.msk.bf16.mxu0 %vm15375_vm14, %v15374_v51 }
0x18f6   : > { %14776 = vmatprep.subr.bf16.mxu0 %v15374_v51  ;;  %v9846_v60 = vpack.c.bf16 %v9833_v11, %v9833_v11 }
0x18f7   : > { %v15279_v10 = vpop.eup %15278 }
0x18f8   : > { %v9831_v61 = vmul.f32 %v15279_v10, %v15263_v46 }
0x18fa   : > { %v9845_v21 = vpack.c.bf16 %v9831_v61, %v9831_v61 }
0x18fb   : > { %v9818_v38 = vpop.xlane.xlu0 %9817 }
0x18fc   : > { %14761 = vmatmul.mubr.msk.bf16.vlgmr.msra.gmra.mrb[64].mxu1 %vm7065_vm15, %v9845_v21  ;;  %14767 = vmatmul.mubr.msk.bf16.vlgmr.msra.gmra.mrb[52].mxu0 %vm7065_vm15, %v9846_v60 }
0x18fd   : > { %14771 = vmatpush3.bf16.msra.mxu1 %v9994_v63  ;;  %v9821_v17 = vpop.xlane.xlu1 %9820  ;;  %14772 = vmatprep.mubr.msk.bf16.mxu1 %vm15375_vm14, %v15374_v51 }
0x18fe   : > { %14782 = vmatprep.subr.bf16.mxu1 %v15374_v51  ;;  %14778 = vmatprep.mubr.msk.bf16.mxu0 %vm15375_vm14, %v15374_v51 }
0x18ff   : > { %v9815_v37 = vpop.xlane.xlu0 %9814 }
0x1900   : > { %15280 = vrcp.f32 %v9815_v37 }
0x1901   : > { %v9097_v32 = vpop.permute.xlu1 %9096  ;;  %15282 = vrcp.f32 %v9818_v38 }
0x1902   : > { %v9140_v47 = vcombine.low %v9093_v44, %v9097_v32  ;;  %v9141_v19 = vcombine.high %v9093_v44, %v9097_v32  ;;  %15284 = vrcp.f32 %v9821_v17 }
0x1903   : > { %v9099_v2 = vpop.permute.xlu0 %9098 }
0x1904   : > { %v9156_v3 = vcombine.low %v9095_v45, %v9099_v2  ;;  %v9157_v27 = vcombine.high %v9095_v45, %v9099_v2  ;;  %v9148_v25 = vrot.slane %v9140_v47, %v16413_v59  ;;  %v9155_v16 = vrot.slane %v9141_v19, %v16413_v59 }
0x1906   : > { %v9164_v46 = vrot.slane %v9156_v3, %v16413_v59  ;;  %v9171_v52 = vrot.slane %v9157_v27, %v16413_v59 }
0x1908   : > { %v9204_v62 = vcombine.low %v9148_v25, %v9164_v46  ;;  %v9205_v4 = vcombine.high %v9148_v25, %v9164_v46  ;;  %v9220_v1 = vcombine.low %v9155_v16, %v9171_v52  ;;  %v9221_v49 = vcombine.high %v9155_v16, %v9171_v52 }
0x190a   : > { %v15281_v13 = vpop.eup %15280  ;;  %v9212_v30 = vrot.slane %v9204_v62, %v16418_v40  ;;  %v9219_v31 = vrot.slane %v9205_v4, %v16418_v40  ;;  %v9228_v33 = vrot.slane %v9220_v1, %v16418_v40  ;;  %v9235_v43 = vrot.slane %v9221_v49, %v16418_v40 }
0x190b   : > { %v9835_v29 = vmul.f32 %v15281_v13, %v17086_v26  ;;  %v15283_v42 = vpop.eup %15282 }
0x190c   : > { %v13695_v6 = vcombine.low %v9212_v30, %v9219_v31  ;;  %v13697_v41 = vcombine.high %v9212_v30, %v9219_v31  ;;  %v13699_v24 = vcombine.low %v9228_v33, %v9235_v43  ;;  %v13701_v5 = vcombine.high %v9228_v33, %v9235_v43  ;;  %v15285_v50 = vpop.eup %15284 }
0x190d   : > { %v9847_v12 = vpack.c.bf16 %v9835_v29, %v9835_v29  ;;  %v9837_v53 = vmul.f32 %v15283_v42, %v17084_v35  ;;  %v9839_v21 = vmul.f32 %v15285_v50, %v17090_v20 }
0x190e   : > { %v9259_v34 = vrot.slane %v13695_v6, %v16413_v59  ;;  %v9275_v7 = vrot.slane %v13697_v41, %v16413_v59  ;;  %v9291_v56 = vrot.slane %v13699_v24, %v16413_v59  ;;  %v9307_v44 = vrot.slane %v13701_v5, %v16413_v59 }
0x190f   : > { %14773 = vmatmul.mubr.msk.bf16.vlgmr.msra.gmra.mrb[68].mxu1 %vm7065_vm15, %v9847_v12  ;;  %v9848_v47 = vpack.c.bf16 %v9837_v53, %v9837_v53  ;;  %v9849_v19 = vpack.c.bf16 %v9839_v21, %v9839_v21 }
0x1910   : > { %v9324_v45 = vcombine.low %v9259_v34, %v9275_v7  ;;  %v9356_v14 = vcombine.low %v9291_v56, %v9307_v44  ;;  %14784 = vmatprep.mubr.msk.bf16.mxu1 %vm15375_vm14, %v15374_v51  ;;  %v9325_v26 = vcombine.high %v9259_v34, %v9275_v7  ;;  %v9357_v48 = vcombine.high %v9291_v56, %v9307_v44 }
0x1912   : > { %v9332_v23 = vrot.slane %v9324_v45, %v16418_v40  ;;  %v9364_v55 = vrot.slane %v9356_v14, %v16418_v40  ;;  %v9339_v57 = vrot.slane %v9325_v26, %v16418_v40  ;;  %v9371_v8 = vrot.slane %v9357_v48, %v16418_v40 }
0x1914   : > { %v9376_v58 = vcombine.low %v9332_v23, %v9364_v55  ;;  %v9377_v11 = vcombine.high %v9332_v23, %v9364_v55  ;;  %v9378_v10 = vcombine.low %v9339_v57, %v9371_v8  ;;  %v9379_v61 = vcombine.high %v9339_v57, %v9371_v8 }
0x1916   : > { %v9384_v60 = vpack.c.bf16 %v9376_v58, %v9376_v58  ;;  %v9385_v38 = vpack.c.bf16 %v9377_v11, %v9377_v11  ;;  %v9386_v37 = vpack.c.bf16 %v9378_v10, %v9378_v10  ;;  %v9387_v32 = vpack.c.bf16 %v9379_v61, %v9379_v61 }
0x1918   : > { %v10040_v63 = vsel %vm7533_vm0, %v9384_v60, 0  ;;  %v10086_v17 = vsel %vm7533_vm0, %v9385_v38, 0  ;;  %v10132_v35 = vsel %vm7533_vm0, %v9386_v37, 0  ;;  %v10178_v20 = vsel %vm7533_vm0, %v9387_v32, 0  ;;  %v15092_v60 = vld [vmem:[%s15611_s2] sm:$0xff]   ;;  %v15093_v32 = vld [vmem:[%s15611_s2 + $0x8] sm:$0xff]  }
0x1919   : > { %14777 = vmatpush3.bf16.msra.mxu0 %v10040_v63  ;;  %14783 = vmatpush3.bf16.msra.mxu1 %v10086_v17 }
0x191a   : > { %14788 = vmatprep.subr.bf16.mxu0 %v15374_v51  ;;  %14794 = vmatprep.subr.bf16.mxu1 %v15374_v51 }
0x191c   : > { %14779 = vmatmul.mubr.msk.bf16.vlgmr.msra.gmra.mrb[56].mxu0 %vm7065_vm15, %v9848_v47  ;;  %14785 = vmatmul.mubr.msk.bf16.vlgmr.msra.gmra.mrb[72].mxu1 %vm7065_vm15, %v9849_v19 }
0x191d   : > { %14789 = vmatpush3.bf16.msra.mxu0 %v10132_v35  ;;  %14795 = vmatpush3.bf16.msra.mxu1 %v10178_v20 }
0x191e   : > { %14796 = vmatprep.mubr.msk.bf16.mxu1 %vm15375_vm14, %v15374_v51  ;;  %14790 = vmatprep.mubr.msk.bf16.mxu0 %vm15375_vm14, %v15374_v51 }
0x191f   : > { %14800 = vmatprep.subr.bf16.mxu0 %v15374_v51 }
0x1932   : > { %v9824_v2 = vpop.xlane.xlu1 %9823 }
0x1933   : > { %15286 = vrcp.f32 %v9824_v2 }
0x1934   : > { %v9827_v3 = vpop.xlane.xlu0 %9826 }
0x1935   : > { %15288 = vrcp.f32 %v9827_v3 }
0x193d   : > { %v15287_v27 = vpop.eup %15286 }
0x193e   : > { %v9841_v25 = vmul.f32 %v15287_v27, %v17100_v36 }
0x193f   : > { %v15289_v16 = vpop.eup %15288 }
0x1940   : > { %v9843_v46 = vmul.f32 %v15289_v16, %v17102_v15  ;;  %v9850_v52 = vpack.c.bf16 %v9841_v25, %v9841_v25 }
0x1942   : > { %v9851_v62 = vpack.c.bf16 %v9843_v46, %v9843_v46  ;;  %14791 = vmatmul.mubr.msk.bf16.vlgmr.msra.gmra.mrb[60].mxu0 %vm7065_vm15, %v9850_v52 }
0x1943   : > { %14808 = vmatprep.mubr.msk.bf16.mxu0 %vm15375_vm14, %v15374_v51  ;;  %14801 = vmatpush3.bf16.msra.mxu0 %v15092_v60 }
0x1944   : > { %14797 = vmatmul.mubr.msk.bf16.vlgmr.msra.gmra.mrb[76].mxu1 %vm7065_vm15, %v9851_v62  ;;  %14802 = vmatprep.subr.bf16.mxu0 %v15374_v51 }
0x1945   : > { %11383 = vmatprep.mubr.bf16.mxu1 %v15363_v54 }
0x1947   : > { %14803 = vmatpush3.bf16.msra.mxu0 %v15093_v32  ;;  %v15095_v32 = vld [vmem:[%s15611_s2 + $0x18] sm:$0xff]  }
0x1948   : > { %14804 = vmatprep.subr.bf16.mxu0 %v15374_v51 }
0x19c7   : > { %v9892_v4 = vpop.f32.mrb[48].mxu0 }
0x19c8   : > { %v14756_v1 = vpop.f32.mrb[49].mxu0 }
0x19c9   : > { %v9895_v49 = vpop.f32.mrb[50].mxu0 }
0x19ca   : > { %v14757_v13 = vpop.f32.mrb[51].mxu0 }
0x19cf   : > { %v9938_v30 = vpop.f32.mrb[64].mxu1  ;;  %v9984_v36 = vpop.f32.mrb[52].mxu0 }
0x19d0   : > { %v10220_v31 = vcombine.low %v9892_v4, %v9984_v36  ;;  %v10221_v33 = vcombine.high %v9892_v4, %v9984_v36  ;;  %v14762_v15 = vpop.f32.mrb[65].mxu1  ;;  %v14768_v43 = vpop.f32.mrb[53].mxu0 }
0x19d1   : > { %v9941_v29 = vpop.f32.mrb[66].mxu1  ;;  %v9987_v6 = vpop.f32.mrb[54].mxu0 }
0x19d2   : > { %v14763_v41 = vpop.f32.mrb[67].mxu1  ;;  %v14769_v24 = vpop.f32.mrb[55].mxu0  ;;  %v10228_v44 = vrot.slane %v10220_v31, %v16413_v59  ;;  %v10235_v45 = vrot.slane %v10221_v33, %v16413_v59 }
0x19e2   : > { %v10030_v5 = vpop.f32.mrb[68].mxu1 }
0x19e3   : > { %v10236_v12 = vcombine.low %v9938_v30, %v10030_v5  ;;  %v10237_v34 = vcombine.high %v9938_v30, %v10030_v5  ;;  %v14774_v7 = vpop.f32.mrb[69].mxu1 }
0x19e4   : > { %v10033_v56 = vpop.f32.mrb[70].mxu1 }
0x19e5   : > { %v10244_v14 = vrot.slane %v10236_v12, %v16413_v59  ;;  %v10251_v26 = vrot.slane %v10237_v34, %v16413_v59  ;;  %v14775_v48 = vpop.f32.mrb[71].mxu1 }
0x19e7   : > { %v10284_v42 = vcombine.low %v10228_v44, %v10244_v14  ;;  %v10285_v23 = vcombine.high %v10228_v44, %v10244_v14  ;;  %v10300_v55 = vcombine.low %v10235_v45, %v10251_v26  ;;  %v10301_v57 = vcombine.high %v10235_v45, %v10251_v26 }
0x19e9   : > { %v10292_v8 = vrot.slane %v10284_v42, %v16418_v40  ;;  %v10299_v50 = vrot.slane %v10285_v23, %v16418_v40  ;;  %v10308_v58 = vrot.slane %v10300_v55, %v16418_v40  ;;  %v10315_v11 = vrot.slane %v10301_v57, %v16418_v40 }
0x19eb   : > { %v13718_v10 = vcombine.low %v10292_v8, %v10299_v50  ;;  %v13720_v61 = vcombine.high %v10292_v8, %v10299_v50  ;;  %v13722_v53 = vcombine.low %v10308_v58, %v10315_v11  ;;  %v13724_v21 = vcombine.high %v10308_v58, %v10315_v11  ;;  %v15094_v8 = vld [vmem:[%s15611_s2 + $0x10] sm:$0xff]   ;;  %s17683_s2 = smov 48  }
0x19ec   : > { %14805 = vmatpush3.bf16.msra.mxu0 %v15094_v8  ;;  %v10631_v8 = vld [vmem:[%s15623_s29 + $0x40] sm:$0xff] }
0x19ed   : > { %v10364_v38 = vrot.slane %v13718_v10, %v16413_v59  ;;  %v10380_v63 = vrot.slane %v13720_v61, %v16413_v59  ;;  %v10396_v17 = vrot.slane %v13722_v53, %v16413_v59  ;;  %v10412_v37 = vrot.slane %v13724_v21, %v16413_v59  ;;  %14806 = vmatprep.subr.bf16.mxu0 %v15374_v51 }
0x19ef   : > { %v10076_v47 = vpop.f32.mrb[56].mxu0  ;;  %v10122_v19 = vpop.f32.mrb[72].mxu1  ;;  %v10421_v35 = vcombine.high %v10364_v38, %v10380_v63  ;;  %v10453_v20 = vcombine.high %v10396_v17, %v10412_v37  ;;  %v10420_v2 = vcombine.low %v10364_v38, %v10380_v63  ;;  %v10452_v3 = vcombine.low %v10396_v17, %v10412_v37 }
0x19f0   : > { %v14780_v27 = vpop.f32.mrb[57].mxu0  ;;  %v14786_v25 = vpop.f32.mrb[73].mxu1  ;;  %14807 = vmatpush3.bf16.msra.mxu0 %v15095_v32 }
0x19f1   : > { %v10125_v16 = vpop.f32.mrb[74].mxu1  ;;  %v10435_v46 = vrot.slane %v10421_v35, %v16418_v40  ;;  %v10467_v52 = vrot.slane %v10453_v20, %v16418_v40  ;;  %v17185_v62 = vrot.slane %v10420_v2, %v16418_v40  ;;  %v17188_v4 = vrot.slane %v10452_v3, %v16418_v40  ;;  %v10079_v1 = vpop.f32.mrb[58].mxu0 }
0x19f2   : > { %v14781_v49 = vpop.f32.mrb[59].mxu0  ;;  %v14787_v13 = vpop.f32.mrb[75].mxu1 }
0x19f3   : > { %v10486_v30 = vcombine.low %v10435_v46, %v10467_v52  ;;  %v10485_v36 = vcombine.high %v17185_v62, %v17188_v4  ;;  %v10487_v31 = vcombine.high %v10435_v46, %v10467_v52  ;;  %v10484_v33 = vcombine.low %v17185_v62, %v17188_v4 }
0x19f5   : > { %10497 = vrot.lane.b32.xlu1 %v10486_v30, %s15376_s10  ;;  %10493 = vrot.lane.b32.xlu0 %v10485_v36, %s15377_s9 }
0x19f9   : > { %10501 = vrot.lane.b32.xlu1 %v10487_v31, %s17681_s8 }
0x1a15   : > { %v10168_v15 = vpop.f32.mrb[60].mxu0 }
0x1a16   : > { %v10252_v43 = vcombine.low %v10076_v47, %v10168_v15  ;;  %v10253_v29 = vcombine.high %v10076_v47, %v10168_v15  ;;  %v14792_v6 = vpop.f32.mrb[61].mxu0 }
0x1a17   : > { %v10214_v41 = vpop.f32.mrb[76].mxu1  ;;  %v10171_v24 = vpop.f32.mrb[62].mxu0 }
0x1a18   : > { %v10268_v5 = vcombine.low %v10122_v19, %v10214_v41  ;;  %v10269_v12 = vcombine.high %v10122_v19, %v10214_v41  ;;  %v14798_v34 = vpop.f32.mrb[77].mxu1  ;;  %v10260_v7 = vrot.slane %v10252_v43, %v16413_v59  ;;  %v10267_v56 = vrot.slane %v10253_v29, %v16413_v59  ;;  %v14793_v44 = vpop.f32.mrb[63].mxu0  ;;  %v17234_v24 = vld [vmem:[%s15618_s27] sm:$0xff] }
0x1a19   : > { %v10217_v45 = vpop.f32.mrb[78].mxu1 }
0x1a1a   : > { %v10276_v14 = vrot.slane %v10268_v5, %v16413_v59  ;;  %v10283_v26 = vrot.slane %v10269_v12, %v16413_v59  ;;  %v14799_v48 = vpop.f32.mrb[79].mxu1 }
0x1a1c   : > { %v10316_v42 = vcombine.low %v10260_v7, %v10276_v14  ;;  %v10317_v23 = vcombine.high %v10260_v7, %v10276_v14  ;;  %v10332_v55 = vcombine.low %v10267_v56, %v10283_v26  ;;  %v10333_v57 = vcombine.high %v10267_v56, %v10283_v26 }
0x1a1e   : > { %v10324_v50 = vrot.slane %v10316_v42, %v16418_v40  ;;  %v10331_v58 = vrot.slane %v10317_v23, %v16418_v40  ;;  %v10340_v11 = vrot.slane %v10332_v55, %v16418_v40  ;;  %v10347_v10 = vrot.slane %v10333_v57, %v16418_v40  ;;  %v10623_v57 = vld [vmem:[%s15623_s29] sm:$0xff] }
0x1a20   : > { %v13719_v61 = vcombine.low %v10324_v50, %v10331_v58  ;;  %v13721_v53 = vcombine.high %v10324_v50, %v10331_v58  ;;  %v13723_v21 = vcombine.low %v10340_v11, %v10347_v10  ;;  %v13725_v60 = vcombine.high %v10340_v11, %v10347_v10  ;;  %v10632_v58 = vld [vmem:[%s15623_s29 + $0x48] sm:$0xff] }
0x1a21   : > { %v13732_v50 = vcombine.high %v10623_v57, %v10631_v8  ;;  %v13731_v11 = vcombine.low %v10623_v57, %v10631_v8 }
0x1a22   : > { %v10371_v38 = vrot.slane %v13719_v61, %v16413_v59  ;;  %v10387_v63 = vrot.slane %v13721_v53, %v16413_v59  ;;  %v10403_v17 = vrot.slane %v13723_v21, %v16413_v59  ;;  %v10419_v37 = vrot.slane %v13725_v60, %v16413_v59  ;;  %v10639_v53 = vld [vmem:[%s15623_s29 + $0x80] sm:$0xff]  ;;  %v10640_v60 = vld [vmem:[%s15623_s29 + $0x88] sm:$0xff] }
0x1a23   : > { %11351 = vmatprep.subr.bf16.mxu1 %v13732_v50  ;;  %v10647_v21 = vld [vmem:[%s15623_s29 + $0xc0] sm:$0xff]  ;;  %v10657_v50 = vld [vmem:[%s15623_s29 + $0x110] sm:$0xff] }
0x1a24   : > { %v10436_v47 = vcombine.low %v10371_v38, %v10387_v63  ;;  %v10468_v19 = vcombine.low %v10403_v17, %v10419_v37  ;;  %v10437_v35 = vcombine.high %v10371_v38, %v10387_v63  ;;  %v10469_v20 = vcombine.high %v10403_v17, %v10419_v37  ;;  %11352 = vmatpush1.bf16.msra.mxu1 %v13731_v11  ;;  %v10648_v63 = vld [vmem:[%s15623_s29 + $0xc8] sm:$0xff] }
0x1a25   : > { %v13748_v38 = vcombine.high %v10639_v53, %v10647_v21  ;;  %v13747_v17 = vcombine.low %v10639_v53, %v10647_v21  ;;  %v13749_v37 = vcombine.low %v10640_v60, %v10648_v63  ;;  %v13750_v32 = vcombine.high %v10640_v60, %v10648_v63  ;;  %v10673_v21 = vld [vmem:[%s15623_s29 + $0x190] sm:$0xff]  ;;  %v10682_v63 = vld [vmem:[%s15623_s29 + $0x1d8] sm:$0xff] }
0x1a26   : > { %v10444_v2 = vrot.slane %v10436_v47, %v16418_v40  ;;  %v10476_v3 = vrot.slane %v10468_v19, %v16418_v40  ;;  %v10451_v51 = vrot.slane %v10437_v35, %v16418_v40  ;;  %v10483_v27 = vrot.slane %v10469_v20, %v16418_v40  ;;  %v10655_v47 = vld [vmem:[%s15623_s29 + $0x100] sm:$0xff]  ;;  %v10656_v35 = vld [vmem:[%s15623_s29 + $0x108] sm:$0xff]  ;;  %v10681_v60 = vld [vmem:[%s15623_s29 + $0x1d0] sm:$0xff] }
0x1a27   : > { %11353 = vmatprep.subr.bf16.mxu1 %v13748_v38  ;;  %v10663_v19 = vld [vmem:[%s15623_s29 + $0x140] sm:$0xff]  ;;  %v10674_v38 = vld [vmem:[%s15623_s29 + $0x198] sm:$0xff] }
0x1a28   : > { %v10489_v25 = vcombine.high %v10444_v2, %v10476_v3  ;;  %v10488_v16 = vcombine.low %v10444_v2, %v10476_v3  ;;  %v10491_v46 = vcombine.high %v10451_v51, %v10483_v27  ;;  %v10490_v52 = vcombine.low %v10451_v51, %v10483_v27  ;;  %11354 = vmatpush1.bf16.msra.mxu1 %v13747_v17  ;;  %v10664_v3 = vld [vmem:[%s15623_s29 + $0x148] sm:$0xff]  ;;  %v10671_v51 = vld [vmem:[%s15623_s29 + $0x180] sm:$0xff] }
0x1a29   : > { %v13763_v20 = vcombine.low %v10655_v47, %v10663_v19  ;;  %v13764_v2 = vcombine.high %v10655_v47, %v10663_v19  ;;  %v10679_v27 = vld [vmem:[%s15623_s29 + $0x1c0] sm:$0xff]  ;;  %v13786_v47 = vcombine.high %v10674_v38, %v10682_v63 }
0x1a2a   : > { %10509 = vrot.lane.b32.xlu1 %v10489_v25, %s15379_s24  ;;  %10505 = vrot.lane.b32.xlu0 %v10488_v16, %s15380_s5  ;;  %v13765_v25 = vcombine.low %v10656_v35, %v10664_v3  ;;  %v13766_v16 = vcombine.high %v10656_v35, %v10664_v3  ;;  %v10627_v19 = vld [vmem:[%s15623_s29 + $0x20] sm:$0xff]  ;;  %v13783_v3 = vcombine.low %v10673_v21, %v10681_v60 }
0x1a2b   : > { %11355 = vmatprep.subr.bf16.mxu1 %v13764_v2  ;;  %v10635_v35 = vld [vmem:[%s15623_s29 + $0x60] sm:$0xff]  ;;  %v10636_v2 = vld [vmem:[%s15623_s29 + $0x68] sm:$0xff] }
0x1a2c   : > { %11356 = vmatpush1.bf16.msra.mxu1 %v13763_v20  ;;  %v10628_v20 = vld [vmem:[%s15623_s29 + $0x28] sm:$0xff] }
0x1a2e   : > { %10517 = vrot.lane.b32.xlu1 %v10491_v46, %s17682_s21  ;;  %10513 = vrot.lane.b32.xlu0 %v10490_v52, %s17683_s2  ;;  %v13780_v46 = vcombine.high %v10671_v51, %v10679_v27  ;;  %v10672_v52 = vld [vmem:[%s15623_s29 + $0x188] sm:$0xff] }
0x1a30   : > { %11357 = vmatprep.subr.bf16.mxu1 %v13780_v46  ;;  %v10651_v46 = vld [vmem:[%s15623_s29 + $0xe0] sm:$0xff] }
0x1a67   : > { %v10498_v59 = vpop.permute.xlu1 %10497  ;;  %v10494_v62 = vpop.permute.xlu0 %10493 }
0x1a68   : > { %v10520_v4 = vsel %vm7065_vm15, %v10484_v33, %v10494_v62  ;;  %v17231_v33 = vsub.s32 4, %v16391_v39  ;;  %v10625_v62 = vld [vmem:[%s15623_s29 + $0x10] sm:$0xff] }
0x1a69   : > { %v10521_v40 = vsel %vm8200_vm1, %v10520_v4, %v10498_v59  ;;  %v10680_v59 = vld [vmem:[%s15623_s29 + $0x1c8] sm:$0xff] }
0x1a6a   : > { %v10531_v5 = vrot.slane %v17234_v24, %v17231_v33  ;;  %v13782_v4 = vcombine.high %v10672_v52, %v10680_v59 }
0x1a6b   : > { %v10502_v1 = vpop.permute.xlu1 %10501 }
0x1a6c   : > { %v10522_v49 = vsel %vm8202_vm2, %v10521_v40, %v10502_v1  ;;  %v10633_v1 = vld [vmem:[%s15623_s29 + $0x50] sm:$0xff]  ;;  %v10626_v40 = vld [vmem:[%s15623_s29 + $0x18] sm:$0xff] }
0x1a9c   : > { %v10510_v13 = vpop.permute.xlu1 %10509  ;;  %v10506_v30 = vpop.permute.xlu0 %10505 }
0x1a9d   : > { %v10523_v36 = vsel %vm8204_vm3, %v10522_v49, %v10506_v30  ;;  %v10634_v49 = vld [vmem:[%s15623_s29 + $0x58] sm:$0xff] }
0x1a9e   : > { %v10524_v15 = vsel %vm8206_vm4, %v10523_v36, %v10510_v13  ;;  %v13735_v13 = vcombine.low %v10625_v62, %v10633_v1  ;;  %v13737_v30 = vcombine.low %v10626_v40, %v10634_v49  ;;  %v13779_v36 = vcombine.low %v10671_v51, %v10679_v27 }
0x1a9f   : > { %v13785_v51 = vcombine.low %v10674_v38, %v10682_v63  ;;  %v13740_v27 = vcombine.high %v10627_v19, %v10635_v35  ;;  %v10661_v63 = vld [vmem:[%s15623_s29 + $0x130] sm:$0xff] }
0x1aa0   : > { %v10518_v31 = vpop.permute.xlu1 %10517  ;;  %v10514_v43 = vpop.permute.xlu0 %10513  ;;  %11358 = vmatpush1.bf16.msra.mxu1 %v13779_v36  ;;  %v10668_v36 = vld [vmem:[%s15623_s29 + $0x168] sm:$0xff] }
0x1aa1   : > { %v10525_v29 = vsel %vm8208_vm5, %v10524_v15, %v10514_v43  ;;  %v13736_v15 = vcombine.high %v10625_v62, %v10633_v1  ;;  %v13738_v43 = vcombine.high %v10626_v40, %v10634_v49  ;;  %v13739_v62 = vcombine.low %v10627_v19, %v10635_v35  ;;  %v10659_v49 = vld [vmem:[%s15623_s29 + $0x120] sm:$0xff] }
0x1aa2   : > { %v10526_v6 = vsel %vm8210_vm6, %v10525_v29, %v10518_v31  ;;  %v13781_v31 = vcombine.low %v10672_v52, %v10680_v59  ;;  %v10644_v52 = vld [vmem:[%s15623_s29 + $0xa8] sm:$0xff] }
0x1aa3   : > { %v10527_v41 = vpack.c.bf16 %v10526_v6, %v10526_v6  ;;  %11433 = vmatprep.subr.bf16.mxu1 %v13736_v15  ;;  %v10652_v59 = vld [vmem:[%s15623_s29 + $0xe8] sm:$0xff] }
0x1aa4   : > { %v13758_v40 = vcombine.high %v10644_v52, %v10652_v59  ;;  %v13757_v15 = vcombine.low %v10644_v52, %v10652_v59 }
0x1aa5   : > { %14809 = vmatmul.mubr.msk.bf16.vlgmr.msra.gmra.mrb[64].mxu0 %vm6104_vm13, %v10527_v41 }
0x1aa6   : > { %11424 = vmatprep.mubr.bf16.mxu0 %v15363_v54 }
0x1b78   : > { %v10593_v12 = vpop.f32.mrb[64].mxu0 }
0x1b79   : > { %v10594_v34 = vadd.f32 %v10593_v12, %v10531_v5  ;;  %v14810_v7 = vpop.f32.mrb[65].mxu0  ;;  %v17266_v5 = vsub.s32 5, %v16391_v39  ;;  %v17269_v12 = vsub.s32 6, %v16391_v39 }
0x1b7a   : > { %v10596_v56 = vpop.f32.mrb[66].mxu0 }
0x1b7b   : > { %v14811_v44 = vpop.f32.mrb[67].mxu0  ;;  %v10599_v45 = vadd.f32 %v10594_v34, %v16846_v28  ;;  %v10624_v28 = vld [vmem:[%s15623_s29 + $0x8] sm:$0xff]  ;;  %v10616_v34 = vrot.slane %v17234_v24, %v17266_v5  ;;  %v10621_v56 = vrot.slane %v17234_v24, %v17269_v12  ;;  %v10665_v24 = vld [vmem:[%s15623_s29 + $0x150] sm:$0xff] }
0x1b7c   : > { %v13733_v10 = vcombine.low %v10624_v28, %v10632_v58  ;;  %v13734_v61 = vcombine.high %v10624_v28, %v10632_v58  ;;  %v10666_v58 = vld [vmem:[%s15623_s29 + $0x158] sm:$0xff]  ;;  %v13767_v17 = vcombine.low %v10657_v50, %v10665_v24 }
0x1b7d   : > { %v10600_v14 = vsel %vm6104_vm13, %v10599_v45, 0.0 }
0x1b7e   : > { %10601 = vadd.xlane.f32.xlu0 %v10600_v14  ;;  %11392 = vmatprep.subr.bf16.mxu0 %v13734_v61  ;;  %v10641_v14 = vld [vmem:[%s15623_s29 + $0x90] sm:$0xff]  ;;  %v13768_v61 = vcombine.high %v10657_v50, %v10665_v24 }
0x1b7f   : > { %11393 = vmatpush1.bf16.msra.mxu0 %v13733_v10 }
0x1b80   : > { %11394 = vmatprep.subr.bf16.mxu0 %v13750_v32  ;;  %v13784_v32 = vcombine.high %v10673_v21, %v10681_v60 }
0x1b83   : > { %11395 = vmatpush1.bf16.msra.mxu0 %v13749_v37 }
0x1b84   : > { %11396 = vmatprep.subr.bf16.mxu0 %v13766_v16  ;;  %v10643_v16 = vld [vmem:[%s15623_s29 + $0xa0] sm:$0xff] }
0x1b85   : > { %v13756_v1 = vcombine.high %v10643_v16, %v10651_v46 }
0x1b87   : > { %11397 = vmatpush1.bf16.msra.mxu0 %v13765_v25  ;;  %v13742_v25 = vcombine.high %v10628_v20, %v10636_v2 }
0x1b88   : > { %11398 = vmatprep.subr.bf16.mxu0 %v13782_v4  ;;  %v13741_v4 = vcombine.low %v10628_v20, %v10636_v2  ;;  %v10677_v2 = vld [vmem:[%s15623_s29 + $0x1b0] sm:$0xff] }
0x1b8b   : > { %11399 = vmatpush1.bf16.msra.mxu0 %v13781_v31  ;;  %v13755_v31 = vcombine.low %v10643_v16, %v10651_v46 }
0x1b8c   : > { %11474 = vmatprep.subr.bf16.mxu0 %v13738_v43 }
0x1c0b   : > { %v10602_v26 = vpop.xlane.xlu0 %10601 }
0x1c0c   : > { %v10603_v48 = vmul.f32 0.015625, %v10602_v26  ;;  %v10649_v26 = vld [vmem:[%s15623_s29 + $0xd0] sm:$0xff] }
0x1c0d   : > { %v13752_v8 = vcombine.high %v10641_v14, %v10649_v26  ;;  %v13751_v11 = vcombine.low %v10641_v14, %v10649_v26  ;;  %v10629_v26 = vld [vmem:[%s15623_s29 + $0x30] sm:$0xff] }
0x1c0e   : > { %v17240_v42 = vsub.f32 %v10599_v45, %v10603_v48  ;;  %v10642_v48 = vld [vmem:[%s15623_s29 + $0x98] sm:$0xff] }
0x1c10   : > { %v10605_v23 = vmul.f32 %v17240_v42, %v17240_v42 }
0x1c12   : > { %v10606_v55 = vsel %vm6104_vm13, %v10605_v23, 0.0  ;;  %v10650_v23 = vld [vmem:[%s15623_s29 + $0xd8] sm:$0xff] }
0x1c13   : > { %10607 = vadd.xlane.f32.xlu1 %v10606_v55  ;;  %v13754_v28 = vcombine.high %v10642_v48, %v10650_v23  ;;  %v13753_v10 = vcombine.low %v10642_v48, %v10650_v23  ;;  %v10637_v48 = vld [vmem:[%s15623_s29 + $0x70] sm:$0xff]  ;;  %v10630_v23 = vld [vmem:[%s15623_s29 + $0x38] sm:$0xff] }
0x1c14   : > { %v13744_v24 = vcombine.high %v10629_v26, %v10637_v48 }
0x1ca0   : > { %v10608_v29 = vpop.xlane.xlu1 %10607 }
0x1ca1   : > { %v10609_v6 = vmul.f32 0.015625, %v10608_v29 }
0x1ca3   : > { %v10610_v41 = vadd.f32 1e-05, %v10609_v6  ;;  %v10675_v6 = vld [vmem:[%s15623_s29 + $0x1a0] sm:$0xff] }
0x1ca5   : > { %15290 = vrsqrt.f32 %v10610_v41  ;;  %v10683_v41 = vld [vmem:[%s15623_s29 + $0x1e0] sm:$0xff] }
0x1caf   : > { %v15291_v7 = vpop.eup %15290 }
0x1cb0   : > { %v10612_v44 = vmul.f32 %v15291_v7, %v17240_v42  ;;  %v10658_v42 = vld [vmem:[%s15623_s29 + $0x118] sm:$0xff]  ;;  %v10684_v7 = vld [vmem:[%s15623_s29 + $0x1e8] sm:$0xff] }
0x1cb1   : > { %v13770_v53 = vcombine.high %v10658_v42, %v10666_v58  ;;  %v13769_v37 = vcombine.low %v10658_v42, %v10666_v58  ;;  %v10645_v58 = vld [vmem:[%s15623_s29 + $0xb0] sm:$0xff] }
0x1cb2   : > { %v10617_v45 = vmul.f32 %v10616_v34, %v10612_v44  ;;  %v10676_v34 = vld [vmem:[%s15623_s29 + $0x1a8] sm:$0xff] }
0x1cb3   : > { %v13790_v14 = vcombine.high %v10676_v34, %v10684_v7  ;;  %v13789_v50 = vcombine.low %v10676_v34, %v10684_v7  ;;  %v15111_v34 = vld [vmem:[%s15634_s6 + $0x98] sm:$0xff]   ;;  %v15112_v7 = vld [vmem:[%s15634_s6 + $0x60] sm:$0xff]  }
0x1cb4   : > { %v17280_v55 = vadd.f32 %v10621_v56, %v10617_v45  ;;  %v13788_v45 = vcombine.high %v10675_v6, %v10683_v41 }
0x1cb6   : > { %v17284_v57 = vpack.c.bf16 %v17280_v55, %v17280_v55 }
0x1cb8   : > { %13795 = vmatmul.mubr.msk.bf16.vlgmr.msra.gmra.mrb[80].mxu1 %vm6104_vm13, %v17284_v57  ;;  %13796 = vmatmul.mubr.msk.bf16.vlgmr.msra.gmra.mrb[68].mxu0 %vm6104_vm13, %v17284_v57 }
0x1cb9   : > { %11434 = vmatpush1.bf16.msra.mxu1 %v13735_v13  ;;  %11475 = vmatpush1.bf16.msra.mxu0 %v13737_v30  ;;  %v10667_v13 = vld [vmem:[%s15623_s29 + $0x160] sm:$0xff]  ;;  %v10660_v30 = vld [vmem:[%s15623_s29 + $0x128] sm:$0xff] }
0x1cba   : > { %11435 = vmatprep.subr.bf16.mxu1 %v13752_v8  ;;  %11476 = vmatprep.subr.bf16.mxu0 %v13754_v28  ;;  %v13772_v43 = vcombine.high %v10659_v49, %v10667_v13  ;;  %v13774_v29 = vcombine.high %v10660_v30, %v10668_v36  ;;  %v13771_v56 = vcombine.low %v10659_v49, %v10667_v13  ;;  %v10638_v8 = vld [vmem:[%s15623_s29 + $0x78] sm:$0xff]  ;;  %v15100_v49 = vld [vmem:[%s15634_s6 + $0x48] sm:$0xff]  }
0x1cbb   : > { %11465 = vmatprep.mubr.bf16.mxu1 %v15363_v54  ;;  %11506 = vmatprep.mubr.bf16.mxu0 %v15363_v54  ;;  %v13773_v44 = vcombine.low %v10660_v30, %v10668_v36  ;;  %v13787_v28 = vcombine.low %v10675_v6, %v10683_v41  ;;  %v13746_v42 = vcombine.high %v10630_v23, %v10638_v8  ;;  %v15101_v13 = vld [vmem:[%s15634_s6 + $0xc8] sm:$0xff]   ;;  %v15109_v6 = vld [vmem:[%s15634_s6 + $0xd8] sm:$0xff]  }
0x1cbc   : > { %v13745_v21 = vcombine.low %v10630_v23, %v10638_v8  ;;  %v15102_v30 = vld [vmem:[%s15634_s6 + $0x8] sm:$0xff]   ;;  %v15110_v41 = vld [vmem:[%s15634_s6 + $0x18] sm:$0xff]   ;;  %v15120_v8 = vld [vmem:[%s15634_s6 + $0x70] sm:$0xff]  }
0x1cbd   : > { %11436 = vmatpush1.bf16.msra.mxu1 %v13751_v11  ;;  %11477 = vmatpush1.bf16.msra.mxu0 %v13753_v10  ;;  %v10653_v11 = vld [vmem:[%s15623_s29 + $0xf0] sm:$0xff]  ;;  %v10646_v10 = vld [vmem:[%s15623_s29 + $0xb8] sm:$0xff]  ;;  %v15103_v36 = vld [vmem:[%s15634_s6 + $0x88] sm:$0xff]  }
0x1cbe   : > { %11437 = vmatprep.subr.bf16.mxu1 %v13768_v61  ;;  %11478 = vmatprep.subr.bf16.mxu0 %v13770_v53  ;;  %v10654_v61 = vld [vmem:[%s15623_s29 + $0xf8] sm:$0xff]  ;;  %v13743_v53 = vcombine.low %v10629_v26, %v10637_v48  ;;  %v13760_v60 = vcombine.high %v10645_v58, %v10653_v11  ;;  %v15117_v26 = vld [vmem:[%s15634_s6 + $0xe8] sm:$0xff]  }
0x1cbf   : > { %v13762_v38 = vcombine.high %v10646_v10, %v10654_v61  ;;  %v13761_v19 = vcombine.low %v10646_v10, %v10654_v61  ;;  %v15118_v48 = vld [vmem:[%s15634_s6 + $0x28] sm:$0xff]   ;;  %v15127_v10 = vld [vmem:[%s15634_s6 + $0xb8] sm:$0xff]   ;;  %v15128_v61 = vld [vmem:[%s15634_s6 + $0x140] sm:$0xff]  }
0x1cc0   : > { %v15119_v23 = vld [vmem:[%s15634_s6 + $0xa8] sm:$0xff]  }
0x1cc1   : > { %11438 = vmatpush1.bf16.msra.mxu1 %v13767_v17  ;;  %11479 = vmatpush1.bf16.msra.mxu0 %v13769_v37  ;;  %v10669_v17 = vld [vmem:[%s15623_s29 + $0x170] sm:$0xff]  ;;  %v10662_v37 = vld [vmem:[%s15623_s29 + $0x138] sm:$0xff] }
0x1cc2   : > { %11439 = vmatprep.subr.bf16.mxu1 %v13784_v32  ;;  %11480 = vmatprep.subr.bf16.mxu0 %v13786_v47  ;;  %v10670_v32 = vld [vmem:[%s15623_s29 + $0x178] sm:$0xff]  ;;  %v13759_v47 = vcombine.low %v10645_v58, %v10653_v11  ;;  %v13776_v35 = vcombine.high %v10661_v63, %v10669_v17 }
0x1cc3   : > { %v13778_v20 = vcombine.high %v10662_v37, %v10670_v32  ;;  %v13777_v16 = vcombine.low %v10662_v37, %v10670_v32  ;;  %v15125_v58 = vld [vmem:[%s15634_s6 + $0xf8] sm:$0xff]  }
0x1cc4   : > { %v15126_v11 = vld [vmem:[%s15634_s6 + $0x38] sm:$0xff]  }
0x1cc5   : > { %11440 = vmatpush1.bf16.msra.mxu1 %v13783_v3  ;;  %11481 = vmatpush1.bf16.msra.mxu0 %v13785_v51  ;;  %v10685_v3 = vld [vmem:[%s15623_s29 + $0x1f0] sm:$0xff]  ;;  %v10678_v51 = vld [vmem:[%s15623_s29 + $0x1b8] sm:$0xff] }
0x1cc6   : > { %11515 = vmatprep.subr.bf16.mxu1 %v13740_v27  ;;  %11556 = vmatprep.subr.bf16.mxu0 %v13742_v25  ;;  %v10686_v27 = vld [vmem:[%s15623_s29 + $0x1f8] sm:$0xff]  ;;  %v13775_v25 = vcombine.low %v10661_v63, %v10669_v17  ;;  %v13792_v46 = vcombine.high %v10677_v2, %v10685_v3  ;;  %v13791_v59 = vcombine.low %v10677_v2, %v10685_v3  ;;  %s17684_s29 = sld [smem:[#allocation33_spill]] (!%p13931_p10) }
0x1cc7   : > { %v13794_v52 = vcombine.high %v10678_v51, %v10686_v27 }
0x1cc8   : > { %13797 = vmatmul.mubr.msk.bf16.vlgmr.msra.gmra.mrb[84].mxu1 %vm6104_vm13, %v17284_v57  ;;  %13798 = vmatmul.mubr.msk.bf16.vlgmr.msra.gmra.mrb[72].mxu0 %vm6104_vm13, %v17284_v57 }
0x1cc9   : > { %11516 = vmatpush1.bf16.msra.mxu1 %v13739_v62  ;;  %11557 = vmatpush1.bf16.msra.mxu0 %v13741_v4  ;;  %v13793_v62 = vcombine.low %v10678_v51, %v10686_v27  ;;  %v15097_v4 = vld [vmem:[%s15634_s6 + $0xc0] sm:$0xff]  }
0x1cca   : > { %11517 = vmatprep.subr.bf16.mxu1 %v13756_v1  ;;  %11558 = vmatprep.subr.bf16.mxu0 %v13758_v40  ;;  %v15098_v1 = vld [vmem:[%s15634_s6] sm:$0xff]  }
0x1ccb   : > { %11547 = vmatprep.mubr.bf16.mxu1 %v15363_v54  ;;  %11588 = vmatprep.mubr.bf16.mxu0 %v15363_v54  ;;  %v15099_v40 = vld [vmem:[%s15634_s6 + $0x80] sm:$0xff]  }
0x1ccd   : > { %11518 = vmatpush1.bf16.msra.mxu1 %v13755_v31  ;;  %11559 = vmatpush1.bf16.msra.mxu0 %v13757_v15  ;;  %v15104_v31 = vld [vmem:[%s15634_s6 + $0x50] sm:$0xff]  }
0x1cce   : > { %11519 = vmatprep.subr.bf16.mxu1 %v13772_v43  ;;  %11560 = vmatprep.subr.bf16.mxu0 %v13774_v29  ;;  %v15105_v15 = vld [vmem:[%s15634_s6 + $0xd0] sm:$0xff]  }
0x1ccf   : > { %v15106_v43 = vld [vmem:[%s15634_s6 + $0x10] sm:$0xff]  }
0x1cd0   : > { %v15107_v29 = vld [vmem:[%s15634_s6 + $0x90] sm:$0xff]  }
0x1cd1   : > { %11520 = vmatpush1.bf16.msra.mxu1 %v13771_v56  ;;  %11561 = vmatpush1.bf16.msra.mxu0 %v13773_v44  ;;  %v15113_v56 = vld [vmem:[%s15634_s6 + $0xe0] sm:$0xff]  }
0x1cd2   : > { %11521 = vmatprep.subr.bf16.mxu1 %v13788_v45  ;;  %11562 = vmatprep.subr.bf16.mxu0 %v13790_v14  ;;  %v15114_v44 = vld [vmem:[%s15634_s6 + $0x20] sm:$0xff]   ;;  %v15116_v14 = vld [vmem:[%s15634_s6 + $0x68] sm:$0xff]  }
0x1cd3   : > { %v15115_v45 = vld [vmem:[%s15634_s6 + $0xa0] sm:$0xff]  }
0x1cd5   : > { %11522 = vmatpush1.bf16.msra.mxu1 %v13787_v28  ;;  %11563 = vmatpush1.bf16.msra.mxu0 %v13789_v50  ;;  %v15121_v28 = vld [vmem:[%s15634_s6 + $0xf0] sm:$0xff]  }
0x1cd6   : > { %11597 = vmatprep.subr.bf16.mxu1 %v13744_v24  ;;  %11638 = vmatprep.subr.bf16.mxu0 %v13746_v42  ;;  %v15122_v50 = vld [vmem:[%s15634_s6 + $0x30] sm:$0xff]   ;;  %v15124_v42 = vld [vmem:[%s15634_s6 + $0x78] sm:$0xff]  }
0x1cd7   : > { %v15123_v24 = vld [vmem:[%s15634_s6 + $0xb0] sm:$0xff]  }
0x1cd8   : > { %13799 = vmatmul.mubr.msk.bf16.vlgmr.msra.gmra.mrb[88].mxu1 %vm6104_vm13, %v17284_v57  ;;  %13800 = vmatmul.mubr.msk.bf16.vlgmr.msra.gmra.mrb[76].mxu0 %vm6104_vm13, %v17284_v57 }
0x1cd9   : > { %11598 = vmatpush1.bf16.msra.mxu1 %v13743_v53  ;;  %11639 = vmatpush1.bf16.msra.mxu0 %v13745_v21  ;;  %v15129_v53 = vld [vmem:[%s15634_s6 + $0x1c0] sm:$0xff]  }
0x1cda   : > { %11599 = vmatprep.subr.bf16.mxu1 %v13760_v60  ;;  %11640 = vmatprep.subr.bf16.mxu0 %v13762_v38  ;;  %v17383_v21 = vld [vmem:[%s15628_s3] sm:$0xff] }
0x1cdb   : > { %11629 = vmatprep.mubr.bf16.mxu1 %v15363_v54  ;;  %11670 = vmatprep.mubr.bf16.mxu0 %v15363_v54  ;;  %v15096_v54 = vld [vmem:[%s15634_s6 + $0x40] sm:$0xff]   ;;  %v10951_v60 = vrot.slane %v17383_v21, %v16394_v0  ;;  %v10959_v38 = vrot.slane %v17383_v21, %v16840_v9  ;;  %v10955_v63 = vrot.slane %v17383_v21, %v16568_v22 }
0x1cdc   : > { %v10963_v17 = vrot.slane %v17383_v21, %v16888_v18 }
0x1cdd   : > { %11600 = vmatpush1.bf16.msra.mxu1 %v13759_v47  ;;  %11641 = vmatpush1.bf16.msra.mxu0 %v13761_v19 }
0x1cde   : > { %11601 = vmatprep.subr.bf16.mxu1 %v13776_v35  ;;  %11642 = vmatprep.subr.bf16.mxu0 %v13778_v20 }
0x1ce1   : > { %11602 = vmatpush1.bf16.msra.mxu1 %v13775_v25  ;;  %11643 = vmatpush1.bf16.msra.mxu0 %v13777_v16 }
0x1ce2   : > { %11603 = vmatprep.subr.bf16.mxu1 %v13792_v46  ;;  %11644 = vmatprep.subr.bf16.mxu0 %v13794_v52 }
0x1ce5   : > { %11604 = vmatpush1.bf16.msra.mxu1 %v13791_v59  ;;  %11645 = vmatpush1.bf16.msra.mxu0 %v13793_v62 }
0x1ce6   : > { %14277 = vmatprep.subr.bf16.mxu1 %v15096_v54  ;;  %14299 = vmatprep.subr.bf16.mxu0 %v15097_v4 }
0x1ce8   : > { %13801 = vmatmul.mubr.msk.bf16.vlgmr.msra.gmra.mrb[92].mxu1 %vm6104_vm13, %v17284_v57  ;;  %13802 = vmatmul.mubr.msk.bf16.vlgmr.msra.gmra.mrb[80].mxu0 %vm6104_vm13, %v17284_v57  ;;  %v15108_v57 = vld [vmem:[%s15634_s6 + $0x58] sm:$0xff]  }
0x1ce9   : > { %14278 = vmatpush3.bf16.msra.mxu1 %v15098_v1  ;;  %14300 = vmatpush3.bf16.msra.mxu0 %v15099_v40  ;;  %v15130_v1 = vld [vmem:[%s15634_s6 + $0x100] sm:$0xff]  }
0x1cea   : > { %14279 = vmatprep.subr.bf16.mxu1 %v15100_v49  ;;  %14301 = vmatprep.subr.bf16.mxu0 %v15101_v13  ;;  %v15131_v40 = vld [vmem:[%s15634_s6 + $0x180] sm:$0xff]  }
0x1ced   : > { %14280 = vmatpush3.bf16.msra.mxu1 %v15102_v30  ;;  %14302 = vmatpush3.bf16.msra.mxu0 %v15103_v36  ;;  %v15132_v30 = vld [vmem:[%s15634_s6 + $0x148] sm:$0xff]  }
0x1cee   : > { %14281 = vmatprep.subr.bf16.mxu1 %v15104_v31  ;;  %14303 = vmatprep.subr.bf16.mxu0 %v15105_v15  ;;  %v15133_v36 = vld [vmem:[%s15634_s6 + $0x1c8] sm:$0xff]  }
0x1cef   : > { %v15134_v31 = vld [vmem:[%s15634_s6 + $0x108] sm:$0xff]  }
0x1cf0   : > { %v15135_v15 = vld [vmem:[%s15634_s6 + $0x188] sm:$0xff]  }
0x1cf1   : > { %14282 = vmatpush3.bf16.msra.mxu1 %v15106_v43  ;;  %14304 = vmatpush3.bf16.msra.mxu0 %v15107_v29  ;;  %v17400_v43 = vsub.s32 7, %v16391_v39  ;;  %v15136_v29 = vld [vmem:[%s15634_s6 + $0x150] sm:$0xff]   ;;  %v15140_v39 = vld [vmem:[%s15634_s6 + $0x158] sm:$0xff]  }
0x1cf2   : > { %14283 = vmatprep.subr.bf16.mxu1 %v15108_v57  ;;  %14305 = vmatprep.subr.bf16.mxu0 %v15109_v6  ;;  %v15137_v57 = vld [vmem:[%s15634_s6 + $0x1d0] sm:$0xff]   ;;  %v10971_v6 = vrot.slane %v17383_v21, %v17266_v5 }
0x1cf5   : > { %14284 = vmatpush3.bf16.msra.mxu1 %v15110_v41  ;;  %14306 = vmatpush3.bf16.msra.mxu0 %v15111_v34  ;;  %v10979_v41 = vrot.slane %v17383_v21, %v17400_v43  ;;  %v15138_v34 = vld [vmem:[%s15634_s6 + $0x110] sm:$0xff]  }
0x1cf6   : > { %14285 = vmatprep.subr.bf16.mxu1 %v15112_v7  ;;  %14307 = vmatprep.subr.bf16.mxu0 %v15113_v56  ;;  %v15139_v7 = vld [vmem:[%s15634_s6 + $0x190] sm:$0xff]   ;;  %v15141_v56 = vld [vmem:[%s15634_s6 + $0x1d8] sm:$0xff]  }
0x1cf9   : > { %14286 = vmatpush3.bf16.msra.mxu1 %v15114_v44  ;;  %14308 = vmatpush3.bf16.msra.mxu0 %v15115_v45 }
0x1cfa   : > { %14287 = vmatprep.subr.bf16.mxu1 %v15116_v14  ;;  %14309 = vmatprep.subr.bf16.mxu0 %v15117_v26 }
0x1cfd   : > { %14288 = vmatpush3.bf16.msra.mxu1 %v15118_v48  ;;  %14310 = vmatpush3.bf16.msra.mxu0 %v15119_v23 }
0x1cfe   : > { %14289 = vmatprep.subr.bf16.mxu1 %v15120_v8  ;;  %14311 = vmatprep.subr.bf16.mxu0 %v15121_v28 }
0x1d01   : > { %14290 = vmatpush3.bf16.msra.mxu1 %v15122_v50  ;;  %14312 = vmatpush3.bf16.msra.mxu0 %v15123_v24  ;;  %v15142_v50 = vld [vmem:[%s15634_s6 + $0x118] sm:$0xff]  }
0x1d02   : > { %14291 = vmatprep.subr.bf16.mxu1 %v15124_v42  ;;  %14313 = vmatprep.subr.bf16.mxu0 %v15125_v58  ;;  %v15143_v24 = vld [vmem:[%s15634_s6 + $0x198] sm:$0xff]  }
0x1d05   : > { %14292 = vmatpush3.bf16.msra.mxu1 %v15126_v11  ;;  %14314 = vmatpush3.bf16.msra.mxu0 %v15127_v10  ;;  %v15144_v11 = vld [vmem:[%s15634_s6 + $0x160] sm:$0xff]  }
0x1d06   : > { %14321 = vmatprep.subr.bf16.mxu1 %v15128_v61  ;;  %14343 = vmatprep.subr.bf16.mxu0 %v15129_v53  ;;  %v15145_v10 = vld [vmem:[%s15634_s6 + $0x1e0] sm:$0xff]  }
0x1d8b   : > { %v11385_v37 = vpop.f32.mrb[80].mxu1  ;;  %v11426_v32 = vpop.f32.mrb[68].mxu0 }
0x1d8c   : > { %v11386_v47 = vadd.f32 %v11385_v37, %v10951_v60  ;;  %v11427_v19 = vadd.f32 %v11426_v32, %v10959_v38  ;;  %v11387_v35 = vpop.f32.mrb[81].mxu1  ;;  %v11428_v20 = vpop.f32.mrb[69].mxu0  ;;  %v15148_v37 = vld [vmem:[%s15634_s6 + $0x168] sm:$0xff]  }
0x1d8d   : > { %v11388_v2 = vadd.f32 %v11387_v35, %v10955_v63  ;;  %v11429_v3 = vadd.f32 %v11428_v20, %v10963_v17  ;;  %v11389_v51 = vpop.f32.mrb[82].mxu1  ;;  %v11430_v27 = vpop.f32.mrb[70].mxu0  ;;  %v15146_v63 = vld [vmem:[%s15634_s6 + $0x120] sm:$0xff]   ;;  %v15149_v32 = vld [vmem:[%s15634_s6 + $0x1e8] sm:$0xff]   ;;  %v10967_v35 = vrot.slane %v17383_v21, %v17231_v33  ;;  %v10975_v20 = vrot.slane %v17383_v21, %v17269_v12 }
0x1d8e   : > { %v11679_v25 = vmax.f32 %v11386_v47, 0.0  ;;  %v11681_v16 = vmax.f32 %v11427_v19, 0.0  ;;  %v11390_v46 = vpop.f32.mrb[83].mxu1  ;;  %v11431_v52 = vpop.f32.mrb[71].mxu0  ;;  %v15147_v17 = vld [vmem:[%s15634_s6 + $0x1a0] sm:$0xff]   ;;  %v15150_v47 = vld [vmem:[%s15634_s6 + $0x128] sm:$0xff]  }
0x1d8f   : > { %v11680_v59 = vmax.f32 %v11388_v2, 0.0  ;;  %v11682_v62 = vmax.f32 %v11429_v3, 0.0  ;;  %v15151_v19 = vld [vmem:[%s15634_s6 + $0x1a8] sm:$0xff]   ;;  %v15152_v3 = vld [vmem:[%s15634_s6 + $0x170] sm:$0xff]  }
0x1d90   : > { %v11695_v49 = vpack.c.bf16 %v11679_v25, %v11679_v25  ;;  %v11697_v13 = vpack.c.bf16 %v11681_v16, %v11681_v16  ;;  %v17427_v2 = vld [vmem:[%s15628_s3 + $0x8] sm:$0xff]  ;;  %v15153_v51 = vld [vmem:[%s15634_s6 + $0x1f0] sm:$0xff]  }
0x1d91   : > { %v11696_v54 = vpack.c.bf16 %v11680_v59, %v11680_v59  ;;  %v11698_v4 = vpack.c.bf16 %v11682_v62, %v11682_v62  ;;  %v10987_v27 = vrot.slane %v17427_v2, %v16568_v22  ;;  %v10995_v25 = vrot.slane %v17427_v2, %v16888_v18  ;;  %v15154_v16 = vld [vmem:[%s15634_s6 + $0x130] sm:$0xff]   ;;  %v15156_v59 = vld [vmem:[%s15634_s6 + $0x178] sm:$0xff]  }
0x1d92   : > { %v15155_v46 = vld [vmem:[%s15634_s6 + $0x1b0] sm:$0xff]   ;;  %v15157_v62 = vld [vmem:[%s15634_s6 + $0x1f8] sm:$0xff]  }
0x1d93   : > { %12515 = vmatprep.mubr.bf16.mxu1 %v11696_v54  ;;  %12555 = vmatprep.mubr.bf16.mxu0 %v11698_v4 }
0x1d94   : > { %12516 = vmatmul.mubr.bf16.vlgmr.msra.gmra.mrb[96].mxu1 %v11695_v49  ;;  %12556 = vmatmul.mubr.bf16.vlgmr.msra.gmra.mrb[84].mxu0 %v11697_v13 }
0x1d95   : > { %14322 = vmatpush3.bf16.msra.mxu1 %v15130_v1  ;;  %14344 = vmatpush3.bf16.msra.mxu0 %v15131_v40 }
0x1d96   : > { %14323 = vmatprep.subr.bf16.mxu1 %v15132_v30  ;;  %14345 = vmatprep.subr.bf16.mxu0 %v15133_v36  ;;  %v15158_v36 = vld [vmem:[%s15634_s6 + $0x138] sm:$0xff]  }
0x1d99   : > { %14324 = vmatpush3.bf16.msra.mxu1 %v15134_v31  ;;  %14346 = vmatpush3.bf16.msra.mxu0 %v15135_v15  ;;  %v15159_v31 = vld [vmem:[%s15634_s6 + $0x1b8] sm:$0xff]  }
0x1d9a   : > { %14325 = vmatprep.subr.bf16.mxu1 %v15136_v29  ;;  %14347 = vmatprep.subr.bf16.mxu0 %v15137_v57 }
0x1d9b   : > { %v11467_v44 = vpop.f32.mrb[84].mxu1  ;;  %v11508_v45 = vpop.f32.mrb[72].mxu0 }
0x1d9c   : > { %v11469_v14 = vpop.f32.mrb[85].mxu1  ;;  %v11510_v26 = vpop.f32.mrb[73].mxu0  ;;  %v11468_v52 = vadd.f32 %v11467_v44, %v10967_v35  ;;  %v11509_v21 = vadd.f32 %v11508_v45, %v10975_v20  ;;  %v15175_v20 = vld [vmem:[%s15634_s6 + $0x298] sm:$0xff]  }
0x1d9d   : > { %v11470_v48 = vadd.f32 %v11469_v14, %v10971_v6  ;;  %v11511_v23 = vadd.f32 %v11510_v26, %v10979_v41  ;;  %v11471_v8 = vpop.f32.mrb[86].mxu1  ;;  %v11512_v28 = vpop.f32.mrb[74].mxu0  ;;  %14326 = vmatpush3.bf16.msra.mxu1 %v15138_v34  ;;  %14348 = vmatpush3.bf16.msra.mxu0 %v15139_v7  ;;  %v15160_v41 = vld [vmem:[%s15634_s6 + $0x240] sm:$0xff]  }
0x1d9e   : > { %v11472_v42 = vpop.f32.mrb[87].mxu1  ;;  %v11513_v58 = vpop.f32.mrb[75].mxu0  ;;  %14327 = vmatprep.subr.bf16.mxu1 %v15140_v39  ;;  %14349 = vmatprep.subr.bf16.mxu0 %v15141_v56  ;;  %v11683_v15 = vmax.f32 %v11468_v52, 0.0  ;;  %v11685_v29 = vmax.f32 %v11509_v21, 0.0  ;;  %v15161_v34 = vld [vmem:[%s15634_s6 + $0x2c0] sm:$0xff]   ;;  %v15166_v28 = vld [vmem:[%s15634_s6 + $0x208] sm:$0xff]   ;;  %v10983_v21 = vrot.slane %v17427_v2, %v16394_v0 }
0x1d9f   : > { %v11684_v61 = vmax.f32 %v11470_v48, 0.0  ;;  %v11686_v53 = vmax.f32 %v11511_v23, 0.0  ;;  %v15162_v56 = vld [vmem:[%s15634_s6 + $0x200] sm:$0xff]   ;;  %v15164_v48 = vld [vmem:[%s15634_s6 + $0x248] sm:$0xff]   ;;  %v15169_v42 = vld [vmem:[%s15634_s6 + $0x2d0] sm:$0xff]   ;;  %v11007_v58 = vrot.slane %v17427_v2, %v17269_v12 }
0x1da0   : > { %v11699_v44 = vpack.c.bf16 %v11683_v15, %v11683_v15  ;;  %v11701_v45 = vpack.c.bf16 %v11685_v29, %v11685_v29  ;;  %v15163_v14 = vld [vmem:[%s15634_s6 + $0x280] sm:$0xff]   ;;  %v15165_v23 = vld [vmem:[%s15634_s6 + $0x2c8] sm:$0xff]   ;;  %v15189_v15 = vld [vmem:[%s15634_s6 + $0x2f8] sm:$0xff]  }
0x1da1   : > { %v11700_v60 = vpack.c.bf16 %v11684_v61, %v11684_v61  ;;  %v11702_v38 = vpack.c.bf16 %v11686_v53, %v11686_v53  ;;  %14328 = vmatpush3.bf16.msra.mxu1 %v15142_v50  ;;  %14350 = vmatpush3.bf16.msra.mxu0 %v15143_v24  ;;  %v15167_v50 = vld [vmem:[%s15634_s6 + $0x288] sm:$0xff]   ;;  %v15168_v24 = vld [vmem:[%s15634_s6 + $0x250] sm:$0xff]   ;;  %v15172_v61 = vld [vmem:[%s15634_s6 + $0x258] sm:$0xff]  }
0x1da2   : > { %14329 = vmatprep.subr.bf16.mxu1 %v15144_v11  ;;  %14351 = vmatprep.subr.bf16.mxu0 %v15145_v10  ;;  %v15170_v11 = vld [vmem:[%s15634_s6 + $0x210] sm:$0xff]   ;;  %v15182_v52 = vld [vmem:[%s15634_s6 + $0x228] sm:$0xff]  }
0x1da3   : > { %12595 = vmatprep.mubr.bf16.mxu1 %v11700_v60  ;;  %12635 = vmatprep.mubr.bf16.mxu0 %v11702_v38  ;;  %v15171_v10 = vld [vmem:[%s15634_s6 + $0x290] sm:$0xff]   ;;  %v15173_v38 = vld [vmem:[%s15634_s6 + $0x2d8] sm:$0xff]  }
0x1da5   : > { %14330 = vmatpush3.bf16.msra.mxu1 %v15146_v63  ;;  %14352 = vmatpush3.bf16.msra.mxu0 %v15147_v17 }
0x1da6   : > { %14331 = vmatprep.subr.bf16.mxu1 %v15148_v37  ;;  %14353 = vmatprep.subr.bf16.mxu0 %v15149_v32 }
0x1da9   : > { %14332 = vmatpush3.bf16.msra.mxu1 %v15150_v47  ;;  %14354 = vmatpush3.bf16.msra.mxu0 %v15151_v19  ;;  %v15174_v47 = vld [vmem:[%s15634_s6 + $0x218] sm:$0xff]  }
0x1daa   : > { %14333 = vmatprep.subr.bf16.mxu1 %v15152_v3  ;;  %14355 = vmatprep.subr.bf16.mxu0 %v15153_v51  ;;  %v15176_v3 = vld [vmem:[%s15634_s6 + $0x260] sm:$0xff]  }
0x1dab   : > { %v17439_v54 = vpop.f32.mrb[88].mxu1  ;;  %v17441_v4 = vpop.f32.mrb[76].mxu0  ;;  %v15177_v51 = vld [vmem:[%s15634_s6 + $0x2e0] sm:$0xff]  }
0x1dac   : > { %v11551_v1 = vpop.f32.mrb[89].mxu1  ;;  %v11592_v40 = vpop.f32.mrb[77].mxu0 }
0x1dad   : > { %v11552_v49 = vadd.f32 %v11551_v1, %v10987_v27  ;;  %v11593_v18 = vadd.f32 %v11592_v40, %v10995_v25  ;;  %v11553_v13 = vpop.f32.mrb[90].mxu1  ;;  %v11594_v30 = vpop.f32.mrb[78].mxu0  ;;  %14334 = vmatpush3.bf16.msra.mxu1 %v15154_v16  ;;  %14356 = vmatpush3.bf16.msra.mxu0 %v15155_v46  ;;  %v15178_v27 = vld [vmem:[%s15634_s6 + $0x220] sm:$0xff]   ;;  %v15180_v16 = vld [vmem:[%s15634_s6 + $0x268] sm:$0xff]   ;;  %v10991_v1 = vrot.slane %v17427_v2, %v16840_v9  ;;  %v15185_v40 = vld [vmem:[%s15634_s6 + $0x2f0] sm:$0xff]  }
0x1dae   : > { %v11554_v57 = vpop.f32.mrb[91].mxu1  ;;  %v11595_v6 = vpop.f32.mrb[79].mxu0  ;;  %14335 = vmatprep.subr.bf16.mxu1 %v15156_v59  ;;  %14357 = vmatprep.subr.bf16.mxu0 %v15157_v62  ;;  %v15179_v25 = vld [vmem:[%s15634_s6 + $0x2a0] sm:$0xff]   ;;  %v15181_v46 = vld [vmem:[%s15634_s6 + $0x2e8] sm:$0xff]   ;;  %v15184_v62 = vld [vmem:[%s15634_s6 + $0x270] sm:$0xff]   ;;  %v11550_v30 = vadd.f32 %v17439_v54, %v10983_v21 }
0x1daf   : > { %v11688_v7 = vmax.f32 %v11552_v49, 0.0  ;;  %v11690_v39 = vmax.f32 %v11593_v18, 0.0  ;;  %v15183_v59 = vld [vmem:[%s15634_s6 + $0x2a8] sm:$0xff]   ;;  %v11003_v49 = vrot.slane %v17427_v2, %v17266_v5  ;;  %v11011_v18 = vrot.slane %v17427_v2, %v17400_v43  ;;  %v15186_v13 = vld [vmem:[%s15634_s6 + $0x230] sm:$0xff]   ;;  %v15188_v9 = vld [vmem:[%s15634_s6 + $0x278] sm:$0xff]  }
0x1db0   : > { %v15190_v57 = vld [vmem:[%s15634_s6 + $0x238] sm:$0xff]   ;;  %v11687_v6 = vmax.f32 %v11550_v30, 0.0 }
0x1db1   : > { %14336 = vmatpush3.bf16.msra.mxu1 %v15158_v36  ;;  %14358 = vmatpush3.bf16.msra.mxu0 %v15159_v31  ;;  %v11704_v26 = vpack.c.bf16 %v11688_v7, %v11688_v7  ;;  %v11706_v8 = vpack.c.bf16 %v11690_v39, %v11690_v39  ;;  %v15187_v36 = vld [vmem:[%s15634_s6 + $0x2b0] sm:$0xff]   ;;  %v11591_v31 = vadd.f32 %v17441_v4, %v10991_v1  ;;  %v15191_v54 = vld [vmem:[%s15634_s6 + $0x2b8] sm:$0xff]   ;;  %v15193_v7 = vld [vmem:[%s15634_s6 + $0x3c0] sm:$0xff]  }
0x1db2   : > { %14365 = vmatprep.subr.bf16.mxu1 %v15160_v41  ;;  %14387 = vmatprep.subr.bf16.mxu0 %v15161_v34  ;;  %v15192_v41 = vld [vmem:[%s15634_s6 + $0x340] sm:$0xff]   ;;  %v15221_v21 = vld [vmem:[%s15634_s6 + $0x3f8] sm:$0xff]  }
0x1db3   : > { %v11689_v34 = vmax.f32 %v11591_v31, 0.0 }
0x1db4   : > { %12596 = vmatmul.mubr.bf16.vlgmr.msra.gmra.mrb[100].mxu1 %v11699_v44  ;;  %12636 = vmatmul.mubr.bf16.vlgmr.msra.gmra.mrb[88].mxu0 %v11701_v45  ;;  %v11703_v44 = vpack.c.bf16 %v11687_v6, %v11687_v6  ;;  %v15195_v45 = vld [vmem:[%s15634_s6 + $0x380] sm:$0xff]  }
0x1db5   : > { %14366 = vmatpush3.bf16.msra.mxu1 %v15162_v56  ;;  %12675 = vmatprep.mubr.bf16.mxu1 %v11704_v26  ;;  %v15194_v56 = vld [vmem:[%s15634_s6 + $0x300] sm:$0xff]   ;;  %v15196_v26 = vld [vmem:[%s15634_s6 + $0x348] sm:$0xff]  }
0x1db6   : > { %14388 = vmatpush3.bf16.msra.mxu0 %v15163_v14  ;;  %12715 = vmatprep.mubr.bf16.mxu0 %v11706_v8  ;;  %v11705_v14 = vpack.c.bf16 %v11689_v34, %v11689_v34 }
0x1db7   : > { %14367 = vmatprep.subr.bf16.mxu1 %v15164_v48  ;;  %14389 = vmatprep.subr.bf16.mxu0 %v15165_v23  ;;  %v15197_v23 = vld [vmem:[%s15634_s6 + $0x3c8] sm:$0xff]  }
0x1db9   : > { %14368 = vmatpush3.bf16.msra.mxu1 %v15166_v28  ;;  %v15198_v28 = vld [vmem:[%s15634_s6 + $0x308] sm:$0xff]  }
0x1dba   : > { %14390 = vmatpush3.bf16.msra.mxu0 %v15167_v50  ;;  %14369 = vmatprep.subr.bf16.mxu1 %v15168_v24  ;;  %v15199_v50 = vld [vmem:[%s15634_s6 + $0x388] sm:$0xff]   ;;  %v15200_v24 = vld [vmem:[%s15634_s6 + $0x350] sm:$0xff]  }
0x1dbb   : > { %v17460_v53 = vpop.f32.mrb[92].mxu1  ;;  %v11672_v60 = vpop.f32.mrb[80].mxu0  ;;  %14391 = vmatprep.subr.bf16.mxu0 %v15169_v42  ;;  %v15201_v42 = vld [vmem:[%s15634_s6 + $0x3d0] sm:$0xff]  }
0x1dbc   : > { %v17463_v63 = vadd.f32 %v11672_v60, %v11007_v58  ;;  %v11633_v17 = vpop.f32.mrb[93].mxu1  ;;  %v11674_v12 = vpop.f32.mrb[81].mxu0  ;;  %v15202_v58 = vld [vmem:[%s15634_s6 + $0x310] sm:$0xff]   ;;  %v15206_v60 = vld [vmem:[%s15634_s6 + $0x318] sm:$0xff]  }
0x1dbd   : > { %v11635_v37 = vpop.f32.mrb[94].mxu1  ;;  %v11676_v32 = vpop.f32.mrb[82].mxu0  ;;  %14370 = vmatpush3.bf16.msra.mxu1 %v15170_v11  ;;  %v11634_v5 = vadd.f32 %v11633_v17, %v11003_v49  ;;  %v11675_v29 = vadd.f32 %v11674_v12, %v11011_v18  ;;  %v15203_v11 = vld [vmem:[%s15634_s6 + $0x390] sm:$0xff]   ;;  %v15208_v17 = vld [vmem:[%s15634_s6 + $0x360] sm:$0xff]  }
0x1dbe   : > { %14392 = vmatpush3.bf16.msra.mxu0 %v15171_v10  ;;  %v11636_v19 = vpop.f32.mrb[95].mxu1  ;;  %v11677_v35 = vpop.f32.mrb[83].mxu0  ;;  %14371 = vmatprep.subr.bf16.mxu1 %v15172_v61  ;;  %v15204_v10 = vld [vmem:[%s15634_s6 + $0x358] sm:$0xff]   ;;  %v15209_v12 = vld [vmem:[%s15634_s6 + $0x3e0] sm:$0xff]  }
0x1dbf   : > { %14393 = vmatprep.subr.bf16.mxu0 %v15173_v38  ;;  %v11692_v39 = vmax.f32 %v11634_v5, 0.0  ;;  %v11694_v4 = vmax.f32 %v11675_v29, 0.0  ;;  %v15205_v61 = vld [vmem:[%s15634_s6 + $0x3d8] sm:$0xff]   ;;  %v15210_v37 = vld [vmem:[%s15634_s6 + $0x320] sm:$0xff]   ;;  %v15213_v19 = vld [vmem:[%s15634_s6 + $0x3e8] sm:$0xff]  }
0x1dc0   : > { %v15207_v38 = vld [vmem:[%s15634_s6 + $0x398] sm:$0xff]   ;;  %v15211_v32 = vld [vmem:[%s15634_s6 + $0x3a0] sm:$0xff]   ;;  %v15214_v35 = vld [vmem:[%s15634_s6 + $0x328] sm:$0xff]  }
0x1dc1   : > { %14372 = vmatpush3.bf16.msra.mxu1 %v15174_v47  ;;  %v11708_v48 = vpack.c.bf16 %v11692_v39, %v11692_v39  ;;  %v11710_v8 = vpack.c.bf16 %v11694_v4, %v11694_v4  ;;  %v15212_v47 = vld [vmem:[%s15634_s6 + $0x368] sm:$0xff]   ;;  %v15296_v18 = vld [vmem:[%s15618_s27] sm:$0xff] }
0x1dc2   : > { %14394 = vmatpush3.bf16.msra.mxu0 %v15175_v20  ;;  %14373 = vmatprep.subr.bf16.mxu1 %v15176_v3  ;;  %v10999_v20 = vrot.slane %v17427_v2, %v17231_v33  ;;  %v15215_v3 = vld [vmem:[%s15634_s6 + $0x3a8] sm:$0xff]   ;;  %v15222_v33 = vld [vmem:[%s15634_s6 + $0x338] sm:$0xff]  }
0x1dc3   : > { %14395 = vmatprep.subr.bf16.mxu0 %v15177_v51  ;;  %v15216_v51 = vld [vmem:[%s15634_s6 + $0x370] sm:$0xff]  }
0x1dc5   : > { %14374 = vmatpush3.bf16.msra.mxu1 %v15178_v27  ;;  %v15217_v27 = vld [vmem:[%s15634_s6 + $0x3f0] sm:$0xff]  }
0x1dc6   : > { %14396 = vmatpush3.bf16.msra.mxu0 %v15179_v25  ;;  %14375 = vmatprep.subr.bf16.mxu1 %v15180_v16  ;;  %v15218_v25 = vld [vmem:[%s15634_s6 + $0x330] sm:$0xff]   ;;  %v11632_v16 = vadd.f32 %v17460_v53, %v10999_v20 }
0x1dc7   : > { %14397 = vmatprep.subr.bf16.mxu0 %v15181_v46  ;;  %v15219_v46 = vld [vmem:[%s15634_s6 + $0x3b0] sm:$0xff]  }
0x1dc8   : > { %v11691_v2 = vmax.f32 %v11632_v16, 0.0 }
0x1dc9   : > { %14376 = vmatpush3.bf16.msra.mxu1 %v15182_v52  ;;  %v15220_v52 = vld [vmem:[%s15634_s6 + $0x378] sm:$0xff]  }
0x1dca   : > { %14398 = vmatpush3.bf16.msra.mxu0 %v15183_v59  ;;  %14377 = vmatprep.subr.bf16.mxu1 %v15184_v62  ;;  %v15223_v59 = vld [vmem:[%s15634_s6 + $0x3b8] sm:$0xff]   ;;  %v11693_v62 = vmax.f32 %v17463_v63, 0.0  ;;  %v11707_v1 = vpack.c.bf16 %v11691_v2, %v11691_v2 }
0x1dcb   : > { %14399 = vmatprep.subr.bf16.mxu0 %v15185_v40 }
0x1dcc   : > { %v11709_v53 = vpack.c.bf16 %v11693_v62, %v11693_v62 }
0x1dcd   : > { %14378 = vmatpush3.bf16.msra.mxu1 %v15186_v13  ;;  %v11714_v13 = vrot.slane %v15296_v18, %v17400_v43 }
0x1dce   : > { %14400 = vmatpush3.bf16.msra.mxu0 %v15187_v36  ;;  %14379 = vmatprep.subr.bf16.mxu1 %v15188_v9 }
0x1dcf   : > { %14401 = vmatprep.subr.bf16.mxu0 %v15189_v15 }
0x1dd1   : > { %14380 = vmatpush3.bf16.msra.mxu1 %v15190_v57 }
0x1dd2   : > { %14402 = vmatpush3.bf16.msra.mxu0 %v15191_v54  ;;  %14409 = vmatprep.subr.bf16.mxu1 %v15192_v41 }
0x1dd3   : > { %14431 = vmatprep.subr.bf16.mxu0 %v15193_v7 }
0x1dd4   : > { %12676 = vmatmul.mubr.bf16.vlgmr.msra.gmra.mrb[104].mxu1 %v11703_v44 }
0x1dd5   : > { %12716 = vmatmul.mubr.bf16.vlgmr.msra.gmra.mrb[92].mxu0 %v11705_v14  ;;  %14410 = vmatpush3.bf16.msra.mxu1 %v15194_v56 }
0x1dd6   : > { %12755 = vmatprep.mubr.bf16.mxu1 %v11708_v48  ;;  %14432 = vmatpush3.bf16.msra.mxu0 %v15195_v45 }
0x1dd7   : > { %12795 = vmatprep.mubr.bf16.mxu0 %v11710_v8  ;;  %14411 = vmatprep.subr.bf16.mxu1 %v15196_v26 }
0x1dd8   : > { %14433 = vmatprep.subr.bf16.mxu0 %v15197_v23 }
0x1dd9   : > { %14412 = vmatpush3.bf16.msra.mxu1 %v15198_v28 }
0x1dda   : > { %14434 = vmatpush3.bf16.msra.mxu0 %v15199_v50  ;;  %14413 = vmatprep.subr.bf16.mxu1 %v15200_v24 }
0x1ddb   : > { %14435 = vmatprep.subr.bf16.mxu0 %v15201_v42 }
0x1ddd   : > { %14414 = vmatpush3.bf16.msra.mxu1 %v15202_v58 }
0x1dde   : > { %14436 = vmatpush3.bf16.msra.mxu0 %v15203_v11  ;;  %14415 = vmatprep.subr.bf16.mxu1 %v15204_v10 }
0x1ddf   : > { %14437 = vmatprep.subr.bf16.mxu0 %v15205_v61 }
0x1de1   : > { %14416 = vmatpush3.bf16.msra.mxu1 %v15206_v60 }
0x1de2   : > { %14438 = vmatpush3.bf16.msra.mxu0 %v15207_v38  ;;  %14417 = vmatprep.subr.bf16.mxu1 %v15208_v17 }
0x1de3   : > { %14439 = vmatprep.subr.bf16.mxu0 %v15209_v12 }
0x1de5   : > { %14418 = vmatpush3.bf16.msra.mxu1 %v15210_v37 }
0x1de6   : > { %14440 = vmatpush3.bf16.msra.mxu0 %v15211_v32  ;;  %14419 = vmatprep.subr.bf16.mxu1 %v15212_v47 }
0x1de7   : > { %14441 = vmatprep.subr.bf16.mxu0 %v15213_v19 }
0x1de9   : > { %14420 = vmatpush3.bf16.msra.mxu1 %v15214_v35 }
0x1dea   : > { %14442 = vmatpush3.bf16.msra.mxu0 %v15215_v3  ;;  %14421 = vmatprep.subr.bf16.mxu1 %v15216_v51 }
0x1deb   : > { %14443 = vmatprep.subr.bf16.mxu0 %v15217_v27 }
0x1ded   : > { %14422 = vmatpush3.bf16.msra.mxu1 %v15218_v25 }
0x1dee   : > { %14444 = vmatpush3.bf16.msra.mxu0 %v15219_v46  ;;  %14423 = vmatprep.subr.bf16.mxu1 %v15220_v52 }
0x1def   : > { %14445 = vmatprep.subr.bf16.mxu0 %v15221_v21 }
0x1df1   : > { %14424 = vmatpush3.bf16.msra.mxu1 %v15222_v33 }
0x1df2   : > { %14446 = vmatpush3.bf16.msra.mxu0 %v15223_v59 }
0x1df4   : > { %12756 = vmatmul.mubr.bf16.vlgmr.msra.gmra.mrb[108].mxu1 %v11707_v1 }
0x1df5   : > { %12796 = vmatmul.mubr.bf16.vlgmr.msra.gmra.mrb[96].mxu0 %v11709_v53  ;;  %v6042_v53 = vld [vmem:[%s15618_s27 + $0x8] sm:$0x3] }
0x1e67   : > { %v14293_v40 = vpop.f32.mrb[96].mxu1  ;;  %v14315_v49 = vpop.f32.mrb[84].mxu0 }
0x1e68   : > { %v14294_v30 = vpop.f32.mrb[97].mxu1  ;;  %v14316_v36 = vpop.f32.mrb[85].mxu0 }
0x1e69   : > { %v14295_v9 = vadd.f32 %v14294_v30, %v14293_v40  ;;  %v14317_v31 = vadd.f32 %v14316_v36, %v14315_v49  ;;  %v14296_v15 = vpop.f32.mrb[98].mxu1  ;;  %v14318_v5 = vpop.f32.mrb[86].mxu0  ;;  %v12820_v40 = vrot.slane %v6042_v53, %v16394_v0 }
0x1e6a   : > { %v14297_v29 = vpop.f32.mrb[99].mxu1  ;;  %v14319_v63 = vpop.f32.mrb[87].mxu0 }
0x1e6b   : > { %v12518_v57 = vadd.f32 %v14295_v9, %v11714_v13  ;;  %v15383_v29 = vmov (!%p13931_p10), 0.0   ;;  %v15298_v63 = vld [vmem:[%s17684_s29 + $0x8] sm:$0xff] (!%p13931_p10)  }
0x1e6c   : > { %14812 = vmatprep.subr.bf16.mxu0 (!%p13931_p10), %v15383_v29  ;;  %14820 = vmatprep.mubr.msk.bf16.mxu0 (!%p13931_p10), %vm15384_vm7, %v15383_v29 }
0x1e6d   : > { %v12558_v6 = vadd.f32 %v14317_v31, %v12518_v57  ;;  %v15299_v57 = vld [vmem:[%s17684_s29 + $0x10] sm:$0xff] (!%p13931_p10)  }
0x1e87   : > { %v14337_v54 = vpop.f32.mrb[100].mxu1  ;;  %v14359_v41 = vpop.f32.mrb[88].mxu0 }
0x1e88   : > { %v14338_v34 = vpop.f32.mrb[101].mxu1  ;;  %v14360_v7 = vpop.f32.mrb[89].mxu0 }
0x1e89   : > { %v14339_v39 = vadd.f32 %v14338_v34, %v14337_v54  ;;  %v14361_v4 = vadd.f32 %v14360_v7, %v14359_v41  ;;  %v14340_v56 = vpop.f32.mrb[102].mxu1  ;;  %v14362_v44 = vpop.f32.mrb[90].mxu0 }
0x1e8a   : > { %v14341_v45 = vpop.f32.mrb[103].mxu1  ;;  %v14363_v43 = vpop.f32.mrb[91].mxu0  ;;  %v13933_v56 = vld [vmem:[%s17686_s1] ss:$0 sm:$0xff] (!%p13931_p10) }
0x1e8b   : > { %v12598_v14 = vadd.f32 %v14339_v39, %v12558_v6  ;;  %v15300_v6 = vld [vmem:[%s17684_s29 + $0x18] sm:$0xff] (!%p13931_p10)   ;;  %v13932_v39 = vld [vmem:[%s17685_s23] ss:$0 sm:$0xff] (!%p13931_p10) }
0x1e8d   : > { %v12638_v26 = vadd.f32 %v14361_v4, %v12598_v14  ;;  %v13934_v14 = vld [vmem:[%s17687_s26] ss:$0 sm:$0xff] (!%p13931_p10) }
0x1ea7   : > { %v14381_v48 = vpop.f32.mrb[104].mxu1 }
0x1ea8   : > { %v14403_v23 = vpop.f32.mrb[92].mxu0  ;;  %v14382_v8 = vpop.f32.mrb[105].mxu1 }
0x1ea9   : > { %v14383_v28 = vadd.f32 %v14382_v8, %v14381_v48  ;;  %v14404_v50 = vpop.f32.mrb[93].mxu0  ;;  %v14384_v24 = vpop.f32.mrb[106].mxu1 }
0x1eaa   : > { %v14405_v42 = vadd.f32 %v14404_v50, %v14403_v23  ;;  %v14406_v58 = vpop.f32.mrb[94].mxu0  ;;  %v14385_v11 = vpop.f32.mrb[107].mxu1 }
0x1eab   : > { %v12678_v10 = vadd.f32 %v14383_v28, %v12638_v26  ;;  %v14407_v61 = vpop.f32.mrb[95].mxu0 }
0x1ead   : > { %v12718_v60 = vadd.f32 %v14405_v42, %v12678_v10 }
0x1ec7   : > { %v14425_v38 = vpop.f32.mrb[108].mxu1 }
0x1ec8   : > { %v14447_v17 = vpop.f32.mrb[96].mxu0  ;;  %v14426_v12 = vpop.f32.mrb[109].mxu1 }
0x1ec9   : > { %v14427_v37 = vadd.f32 %v14426_v12, %v14425_v38  ;;  %v14448_v32 = vpop.f32.mrb[97].mxu0  ;;  %v14428_v47 = vpop.f32.mrb[110].mxu1 }
0x1eca   : > { %v14449_v19 = vadd.f32 %v14448_v32, %v14447_v17  ;;  %v14450_v35 = vpop.f32.mrb[98].mxu0  ;;  %v14429_v20 = vpop.f32.mrb[111].mxu1 }
0x1ecb   : > { %v12758_v3 = vadd.f32 %v14427_v37, %v12718_v60  ;;  %v14451_v51 = vpop.f32.mrb[99].mxu0 }
0x1ecd   : > { %v12798_v27 = vadd.f32 %v14449_v19, %v12758_v3 }
0x1ecf   : > { %v12803_v25 = vadd.f32 %v12798_v27, %v17280_v55  ;;  %v12825_v55 = vrot.slane %v6042_v53, %v16568_v22  ;;  %v15297_v22 = vld [vmem:[%s17684_s29] sm:$0xff] (!%p13931_p10)  }
0x1ed0   : > { %14813 = vmatpush3.bf16.msra.mxu0 (!%p13931_p10), %v15297_v22 }
0x1ed1   : > { %v12804_v16 = vsel %vm6104_vm13, %v12803_v25, 0.0  ;;  %14814 = vmatprep.subr.bf16.mxu0 (!%p13931_p10), %v15383_v29 }
0x1ed2   : > { %12805 = vadd.xlane.f32.xlu0 %v12804_v16 }
0x1ed4   : > { %14815 = vmatpush3.bf16.msra.mxu0 (!%p13931_p10), %v15298_v63 }
0x1ed5   : > { %14816 = vmatprep.subr.bf16.mxu0 (!%p13931_p10), %v15383_v29 }
0x1ed8   : > { %14817 = vmatpush3.bf16.msra.mxu0 (!%p13931_p10), %v15299_v57 }
0x1ed9   : > { %14818 = vmatprep.subr.bf16.mxu0 (!%p13931_p10), %v15383_v29 }
0x1edc   : > { %14819 = vmatpush3.bf16.msra.mxu0 (!%p13931_p10), %v15300_v6 }
0x1f5f   : > { %v12806_v46 = vpop.xlane.xlu0 %12805 }
0x1f60   : > { %v12807_v52 = vmul.f32 0.015625, %v12806_v46 }
0x1f62   : > { %v12808_v21 = vsub.f32 %v12803_v25, %v12807_v52 }
0x1f64   : > { %v12809_v33 = vmul.f32 %v12808_v21, %v12808_v21 }
0x1f66   : > { %v12810_v2 = vsel %vm6104_vm13, %v12809_v33, 0.0 }
0x1f67   : > { %12811 = vadd.xlane.f32.xlu0 %v12810_v2 }
0x1ff4   : > { %v12812_v59 = vpop.xlane.xlu0 %12811 }
0x1ff5   : > { %v12813_v62 = vmul.f32 0.015625, %v12812_v59 }
0x1ff7   : > { %v12814_v1 = vadd.f32 1e-05, %v12813_v62 }
0x1ff9   : > { %15292 = vrsqrt.f32 %v12814_v1 }
0x2003   : > { %v15293_v49 = vpop.eup %15292 }
0x2004   : > { %v12816_v18 = vmul.f32 %v15293_v49, %v12808_v21  ;;  %12831 = sbr.rel (%p13931_p10) target bundleno = 8732 (0x221c), region = 148 }
0x2006   : > { %v12821_v13 = vmul.f32 %v12820_v40, %v12816_v18 }
0x2008   : > { %v12826_v30 = vadd.f32 %v12825_v55, %v12821_v13 }
0x200a   : > { %12827 = vst.msk [vmem:[#allocation2] sm:$0xff] %vm6104_vm13, %v12826_v30  ;;  %v12834_v36 = vsel (!%p13931_p10), %vm6104_vm13, %v12826_v30, 0.0 }
0x200b   : > { %12835 = vadd.xlane.f32.xlu0 %v12834_v36 }
0x2098   : > { %v12836_v9 = vpop.xlane.xlu0 %12835 }
0x2099   : > { %v12837_v31 = vmul.f32 0.015625, %v12836_v9 }
0x209b   : > { %v12838_v15 = vsub.f32 %v12826_v30, %v12837_v31 }
0x209d   : > { %v12839_v5 = vmul.f32 %v12838_v15, %v12838_v15 }
0x209f   : > { %v12840_v0 = vsel %vm6104_vm13, %v12839_v5, 0.0 }
0x20a0   : > { %12841 = vadd.xlane.f32.xlu0 %v12840_v0 }
0x212d   : > { %v12842_v54 = vpop.xlane.xlu0 %12841 }
0x212e   : > { %v12843_v41 = vmul.f32 0.015625, %v12842_v54 }
0x2130   : > { %v12844_v34 = vadd.f32 1e-05, %v12843_v41 }
0x2132   : > { %15301 = vrsqrt.f32 %v12844_v34 }
0x213c   : > { %v15302_v7 = vpop.eup %15301 }
0x213d   : > { %v12846_v4 = vmul.f32 %v15302_v7, %v12838_v15 }
0x213f   : > { %v12853_v44 = vmul.f32 %v13932_v39, %v12846_v4 }
0x2141   : > { %v12860_v45 = vadd.f32 %v13933_v56, %v12853_v44 }
0x2143   : > { %v12870_v43 = vpack.c.bf16 %v12860_v45, %v12860_v45 }
0x2145   : > { %14821 = vmatmul.mubr.msk.bf16.vlgmr.msra.gmra.mrb[0].mxu0 %vm6104_vm13, %v12870_v43 }
0x2218   : > { %v12938_v26 = vpop.f32.mrb[0].mxu0 }
0x2219   : > { %v12939_v48 = vadd.f32 %v13934_v14, %v12938_v26  ;;  %v14822_v23 = vpop.f32.mrb[1].mxu0 }
0x221a   : > { %v12941_v8 = vpop.f32.mrb[2].mxu0 }
0x221b   : > { %12944 = vst.msk [vmem:[#allocation5] sm:$0xff] %vm8200_vm1, %v12939_v48  ;;  %v14823_v28 = vpop.f32.mrb[3].mxu0 }
0x221c PF: > { %p14828_p11 = scmp.eq.s32.totalorder %s15532_s4, 11  ;;  %s15385_s28 = smov [#allocation5]  }
0x221d   : > { %s12952_s8 = sshll.u32 %s15385_s28, 4  ;;  %s12953_s8 = int_to_ptr.vmem [resolvable:$true] %s12952_s8 }
0x221e   : > { %s15303_s21 = scalar_lea.vmem %s12953_s8, 128  ;;  %p15310_p1 = scmp.lt.s32.totalorder %s12953_s8, %s12953_s8 }
0x221f   : > { %p15304_p12 = scmp.ne.s32.totalorder %s12953_s8, %s15303_s21  ;;  %p15311_p2 = scmp.lt.s32.totalorder %s15303_s21, %s15303_s21 }
0x2221   : > { %p15305_p13 = pnand %p15304_p12, %p14828_p11  ;;  %p15312_p3 = por %p15311_p2, %p15310_p1 }
0x2223   : > { %p15306_p0 = pneg %p15305_p13 }
0x2225   : > { %p15313_p4 = pnand %p15312_p3, %p15306_p0 }
0x2227   : > { %15316 = shalt.err (!%p15313_p4)
}
0x2228   : > { %s17688_s27 = sld [smem:[#allocation35_spill]] }
0x222e   : > { %s15317_s3 = scalar_lea.hbm %s17688_s27, 128 }
0x222f   : > { %p15318_p5 = scmp.ne.s32.totalorder %s17688_s27, %s15317_s3  ;;  %p15323_p8 = scmp.lt.u32.totalorder %s15317_s3, %s17688_s27 }
0x2231   : > { %p15319_p6 = pnand %p15318_p5, %p14828_p11 }
0x2233   : > { %p15320_p7 = pneg %p15319_p6 }
0x2235   : > { %p15325_p9 = pnand %p15323_p8, %p15320_p7 }
0x2237   : > { %15328 = shalt.err (!%p15325_p9)
}
0x2238   : > { %14825 = dma.vmem_to_hbm [thread:$0]  (%p14828_p11), %s12953_s8, 128, %s17688_s27, [#allocation6]  }
0x2239   : > { %15334 = dma.done.wait (%p14828_p11), [#allocation6], 128  }
0x223a   : > { %15336 = vsyncadd (%p14828_p11), [#allocation6], 4294967168 }
0x223b PF: > { %s17689_s7 = sld [smem:[#allocation8_spill]] }
0x2241   : > { %s38_s7 = sadd.s32 1, %s17689_s7  }
0x2242   : > { %p35_p10 = scmp.ge.s32.totalorder %s38_s7, 14  }
0x2244   :  { %37 = sbr.rel (!%p35_p10) target bundleno = 22 (0x16), region = 226 }
0x224b   :  { %12965 = vsyncpa [#allocation6], 1 }
0x224c   :  { %12967 = vsyncpa [#allocation6 + $0x1], 1 }

</bundles_post_ra>
